<compile_context>
chip_gen: v7x
topology: tpu7x:2x2x1
jax: 0.10.0
libtpu: 0.0.40
codegen_flags: <defaults>
</compile_context>

<pallas_src>
import functools

import jax
import jax.numpy as jnp
from jax.experimental import pallas as pl
from jax.experimental.pallas import tpu as pltpu

_C_HID = 1280  # fixed by the Classify module (c_ = 1280)


# --------------------------- Pallas kernels ---------------------------------

def _conv_pool_kernel(x_ref, w1t_ref, b1_ref, pooled_ref, acc_ref, *,
                      inv_hw, valid_hw, needs_mask):
    # grid = (N, n_chunks); axis 1 is the spatial (pixel) reduction.
    p = pl.program_id(1)

    @pl.when(p == 0)
    def _init():
        acc_ref[...] = jnp.zeros_like(acc_ref)

    # 1x1 conv (BN folded): (1280, C1p)bf16 @ (C1p, TP)bf16 -> (1280, TP)f32.
    x = x_ref[0].astype(jnp.bfloat16)                           # (C1p, TP)
    h = jnp.dot(w1t_ref[...], x, preferred_element_type=jnp.float32)
    h = h + b1_ref[...]                                         # + (1280, 1) bias
    # SiLU: sigmoid in bf16 (EUP), multiply / accumulate in f32.
    h = h * jax.nn.sigmoid(h.astype(jnp.bfloat16)).astype(jnp.float32)
    if needs_mask:  # zero out padded pixel columns (static Python flag)
        chunk = h.shape[1]
        col = jax.lax.broadcasted_iota(jnp.int32, h.shape, 1) + p * chunk
        h = jnp.where(col < valid_hw, h, 0.0)
    acc_ref[...] += jnp.sum(h, axis=1, keepdims=True)           # (1280, 1)

    @pl.when(p == pl.num_programs(1) - 1)
    def _finalize():
        # Global average pool; Dropout(p=0.0) is the identity at inference.
        pooled_ref[0] = (acc_ref[...] * inv_hw).astype(pooled_ref.dtype)


def _head_kernel(pooled_ref, w2_ref, b2_ref, out_ref):
    # Batched Linear head: (N_pad, 1280) @ (1280, C2_pad) + bias, all f32.
    out = jnp.dot(pooled_ref[...], w2_ref[...],
                  preferred_element_type=jnp.float32)
    out_ref[...] = (out + b2_ref[...]).astype(out_ref.dtype)


# --------------------------- wrappers ----------------------------------------

def _plan_hw_chunks(hw, c1p, x_itemsize, budget_bytes=24 << 20):
    """Largest 128-multiple pixel chunk whose per-step working set fits budget."""
    # x double-buffered + ~4 f32 temporaries of the (1280, chunk) tile.
    per_col = 2 * c1p * x_itemsize + 4 * _C_HID * 4
    max_chunk = max(128, (budget_bytes // per_col) // 128 * 128)
    hw_pad = 128 * pl.cdiv(hw, 128)
    if hw_pad <= max_chunk:
        return hw_pad, 1, hw_pad
    n_chunks = pl.cdiv(hw_pad, max_chunk)
    return max_chunk, n_chunks, n_chunks * max_chunk


def conv_pool_pallas(x3, w1t, b1col, *, hw, hw_chunk, n_chunks):
    """x3: (N, C1p, HW_pad); returns pooled (N, 1280, 1) f32."""
    N, C1p, HWp = x3.shape
    needs_mask = (HWp != hw)
    kernel = functools.partial(_conv_pool_kernel, inv_hw=1.0 / hw,
                               valid_hw=hw, needs_mask=needs_mask)
    # Generation-aware VMEM limit (>= default 32 MiB, < v7x's 64 MiB physical).
    est = (2 * C1p * hw_chunk * x3.dtype.itemsize          # x (double buffered)
           + _C_HID * C1p * w1t.dtype.itemsize             # w1t (single buffered)
           + 4 * _C_HID * 128 * 4                          # b1/acc/pooled (lane padded)
           + 4 * hw_chunk * _C_HID * 4)                    # h temporaries
    vmem_limit = int(min(48 << 20, max(32 << 20, 2 * est)))
    cost = pl.CostEstimate(
        flops=2 * N * HWp * C1p * _C_HID,
        transcendentals=N * HWp * _C_HID,
        bytes_accessed=(N * C1p * HWp * x3.dtype.itemsize
                        + _C_HID * C1p * w1t.dtype.itemsize
                        + _C_HID * 4 + N * _C_HID * 4))
    return pl.pallas_call(
        kernel,
        out_shape=jax.ShapeDtypeStruct((N, _C_HID, 1), jnp.float32),
        grid_spec=pltpu.PrefetchScalarGridSpec(
            num_scalar_prefetch=0,
            grid=(N, n_chunks),
            in_specs=[
                pl.BlockSpec((1, C1p, hw_chunk), lambda n, p: (n, 0, p)),
                pl.BlockSpec((_C_HID, C1p), lambda n, p: (0, 0),
                             pipeline_mode=pl.Buffered(buffer_count=1)),
                pl.BlockSpec((_C_HID, 1), lambda n, p: (0, 0),
                             pipeline_mode=pl.Buffered(buffer_count=1)),
            ],
            out_specs=pl.BlockSpec((1, _C_HID, 1), lambda n, p: (n, 0, 0)),
            scratch_shapes=[pltpu.VMEM((_C_HID, 1), jnp.float32)],
        ),
        compiler_params=pltpu.CompilerParams(
            dimension_semantics=("parallel", "arbitrary"),
            vmem_limit_bytes=vmem_limit),
        cost_estimate=cost,
    )(x3, w1t, b1col)


def linear_head_pallas(pooled, w2, b2):
    """pooled: (N, 1280) f32; w2: (1280, C2_pad); b2: (1, C2_pad)."""
    N = pooled.shape[0]
    n_pad = 8 * pl.cdiv(N, 8)                 # pack MXU sublanes
    if n_pad != N:
        pooled = jnp.pad(pooled, ((0, n_pad - N), (0, 0)))
    out = pl.pallas_call(
        _head_kernel,
        out_shape=jax.ShapeDtypeStruct((n_pad, w2.shape[1]), jnp.float32),
    )(pooled, w2, b2)
    return out[:N]


def classify_forward(x, w_conv_f, b_conv_f, w_lin, b_lin, num_classes):
    """Classify.forward (eval mode) with BN already folded into the 1x1 conv."""
    if isinstance(x, (list, tuple)):
        x = jnp.concatenate(x, axis=1)                      # torch.cat(x, 1)
    N, C1, H, W = x.shape
    HW = H * W

    # --- parameter repack (constant-folded under jit) ---
    c1_pad = 16 * pl.cdiv(C1, 16)                           # packing-friendly K
    w1t = jnp.zeros((_C_HID, c1_pad), jnp.bfloat16)
    w1t = w1t.at[:, :C1].set(w_conv_f.reshape(_C_HID, C1).astype(jnp.bfloat16))
    b1col = b_conv_f.reshape(_C_HID, 1).astype(jnp.float32)
    c2 = w_lin.shape[0]
    c2_pad = 128 * pl.cdiv(c2, 128)                         # lane-dense head out
    w2 = jnp.zeros((_C_HID, c2_pad), jnp.float32).at[:, :c2].set(w_lin.T)
    b2 = jnp.zeros((1, c2_pad), jnp.float32).at[0, :c2].set(b_lin)

    # --- activations: free reshape, no NCHW->NHWC transpose ---
    x3 = x.reshape(N, C1, HW)
    hw_chunk, n_chunks, hw_pad = _plan_hw_chunks(HW, c1_pad, x.dtype.itemsize)
    pad_c, pad_hw = c1_pad - C1, hw_pad - HW
    if pad_c or pad_hw:
        x3 = jnp.pad(x3, ((0, 0), (0, pad_c), (0, pad_hw)))

    pooled = conv_pool_pallas(x3, w1t, b1col, hw=HW,
                              hw_chunk=hw_chunk, n_chunks=n_chunks)
    pooled = pooled.reshape(N, _C_HID)                      # drop trailing 1 (free)
    out = linear_head_pallas(pooled, w2, b2)
    return out[:, :num_classes]


# ------------------- parameter folding + pure-JAX reference -----------------

def fold_conv_bn(w, gamma, beta, mean, var, eps=1e-5):
    # y = gamma * (conv(x) - mean) / sqrt(var + eps) + beta
    scale = gamma / jnp.sqrt(var + eps)
    w_f = w * scale[:, None, None, None]                    # (O, I, kh, kw)
    b_f = beta - mean * scale
    return w_f, b_f


def _silu(x):
    return x * jax.nn.sigmoid(x)


def ref_classify(x_nchw, w_conv_f, b_conv_f, w_lin, b_lin):
    y = jax.lax.conv_general_dilated(
        x_nchw, w_conv_f, window_strides=(1, 1), padding="VALID",
        dimension_numbers=("NCHW", "OIHW", "NCHW"),
        precision=jax.lax.Precision.HIGHEST)
    y = y + b_conv_f[None, :, None, None]
    y = _silu(y)
    pooled = jnp.mean(y, axis=(2, 3))                       # (N, 1280)
    return pooled @ w_lin.T + b_lin                         # (N, c2)


# --------------------------------- demo --------------------------------------

if __name__ == "__main__":
    # Classify(c1=4, c2=8) on a (2, 4, 16, 16) input; c_ = 1280 fixed by module.
    N, C1, H, W = 2, 4, 16, 16
    C_HID = 1280
    C2 = 8

    key = jax.random.PRNGKey(0)
    ks = jax.random.split(key, 8)
    x_nchw = jax.random.normal(ks[0], (N, C1, H, W), jnp.float32)

    # conv weights (bias=False) + BatchNorm running stats (eval mode)
    w_conv = 0.3 * jax.random.normal(ks[1], (C_HID, C1, 1, 1), jnp.float32)
    g1 = 1.0 + 0.1 * jax.random.normal(ks[2], (C_HID,), jnp.float32)
    beta1 = 0.1 * jax.random.normal(ks[3], (C_HID,), jnp.float32)
    mean1 = 0.1 * jax.random.normal(ks[4], (C_HID,), jnp.float32)
    var1 = 0.5 + jnp.abs(jax.random.normal(ks[5], (C_HID,), jnp.float32))

    # Linear(1280, c2): weight (c2, 1280), bias (c2,)
    w_lin = 0.05 * jax.random.normal(ks[6], (C2, C_HID), jnp.float32)
    b_lin = 0.1 * jax.random.normal(ks[7], (C2,), jnp.float32)

    # TODO(synk): BatchNorm is folded in eval mode; training-mode batch stats,
    # dropout_p > 0, and k>1 / stride>1 / grouped-conv Classify variants are
    # not modeled.
    w_f, b_f = fold_conv_bn(w_conv, g1, beta1, mean1, var1)

    classify = jax.jit(classify_forward, static_argnames=("num_classes",))
    out = classify(x_nchw, w_f, b_f, w_lin, b_lin, num_classes=C2)
    out = jax.block_until_ready(out)

    ref = ref_classify(x_nchw, w_f, b_f, w_lin, b_lin)
    max_err = float(jnp.max(jnp.abs(out - ref)))
    assert out.shape == (N, C2), out.shape
    assert jnp.allclose(out, ref, atol=2e-2, rtol=2e-2), max_err
    print("KERNEL_OK")
</pallas_src>

<mosaic_0001>
module attributes {stable_mosaic.version = 11 : i64} {
  func.func @_conv_pool_kernel(%arg0: i32, %arg1: i32, %arg2: memref<1x16x256xf32, #tpu.memory_space<vmem>>, %arg3: memref<1280x16xbf16, #tpu.memory_space<vmem>>, %arg4: memref<1280x1xf32, #tpu.memory_space<vmem>>, %arg5: memref<1x1280x1xf32, #tpu.memory_space<vmem>>, %arg6: memref<1280x1xf32, #tpu.memory_space<vmem>>) attributes {dimension_semantics = [#tpu.dimension_semantics<parallel>, #tpu.dimension_semantics<arbitrary>], iteration_bounds = array<i64: 2, 1>, scalar_prefetch = 0 : i64, scratch_operands = 1 : i64, tpu.core_type = #tpu.core_type<tc>, window_params = [{transform_indices = @transform_0, window_bounds = array<i64: 1, 16, 256>}, {pipeline_mode = #tpu.pipeline_mode<synchronous>, transform_indices = @transform_1, window_bounds = array<i64: 1280, 16>}, {pipeline_mode = #tpu.pipeline_mode<synchronous>, transform_indices = @transform_2, window_bounds = array<i64: 1280, 1>}, {transform_indices = @transform_3, window_bounds = array<i64: 1, 1280, 1>}]} {
    %c0_i32 = arith.constant 0 : i32
    %0 = arith.cmpi eq, %arg1, %c0_i32 : i32
    %1 = arith.extui %0 : i1 to i32
    %c0_i32_0 = arith.constant 0 : i32
    %2 = arith.cmpi ne, %1, %c0_i32_0 : i32
    scf.if %2 {
      %cst_15 = arith.constant 0.000000e+00 : f32
      %27 = vector.broadcast %cst_15 : f32 to vector<1280x1xf32>
      %c0_16 = arith.constant 0 : index
      %c0_17 = arith.constant 0 : index
      %28 = vector.load %arg6[%c0_16, %c0_17] : memref<1280x1xf32, #tpu.memory_space<vmem>>, vector<1280x1xf32>
      tpu.vector_store %arg6[%c0_16, %c0_17], %27 {strides = array<i32>} : memref<1280x1xf32, #tpu.memory_space<vmem>>, vector<1280x1xf32>,
    } else {
    }
    %c0 = arith.constant 0 : index
    %c0_1 = arith.constant 0 : index
    %c0_2 = arith.constant 0 : index
    %3 = vector.load %arg2[%c0, %c0_1, %c0_2] : memref<1x16x256xf32, #tpu.memory_space<vmem>>, vector<1x16x256xf32>
    %4 = vector.shape_cast %3 : vector<1x16x256xf32> to vector<16x256xf32>
    %5 = arith.truncf %4 : vector<16x256xf32> to vector<16x256xbf16>
    %c0_3 = arith.constant 0 : index
    %c0_4 = arith.constant 0 : index
    %6 = vector.load %arg3[%c0_3, %c0_4] : memref<1280x16xbf16, #tpu.memory_space<vmem>>, vector<1280x16xbf16>
    %cst = arith.constant dense<0.000000e+00> : vector<1280x256xf32>
    %7 = tpu.matmul %6, %5, %cst {dimension_numbers = #tpu.dot_dimension_numbers<[1], [0], [0], [1], [0, 0, 1, 1], [], []>} : vector<1280x16xbf16>, vector<16x256xbf16>, vector<1280x256xf32> -> vector<1280x256xf32>
    %c0_5 = arith.constant 0 : index
    %c0_6 = arith.constant 0 : index
    %8 = vector.load %arg4[%c0_5, %c0_6] : memref<1280x1xf32, #tpu.memory_space<vmem>>, vector<1280x1xf32>
    %9 = vector.broadcast %8 : vector<1280x1xf32> to vector<1280x256xf32>
    %10 = arith.addf %7, %9 : vector<1280x256xf32>
    %11 = arith.truncf %10 : vector<1280x256xf32> to vector<1280x256xbf16>
    %12 = arith.negf %11 : vector<1280x256xbf16>
    %13 = math.exp %12 : vector<1280x256xbf16>
    %cst_7 = arith.constant 1.000000e+00 : bf16
    %14 = vector.broadcast %cst_7 : bf16 to vector<1280x256xbf16>
    %15 = arith.addf %14, %13 : vector<1280x256xbf16>
    %16 = arith.divf %14, %15 : vector<1280x256xbf16>
    %17 = arith.extf %16 : vector<1280x256xbf16> to vector<1280x256xf32>
    %18 = arith.mulf %10, %17 : vector<1280x256xf32>
    %c0_8 = arith.constant 0 : index
    %c0_9 = arith.constant 0 : index
    %19 = vector.load %arg6[%c0_8, %c0_9] : memref<1280x1xf32, #tpu.memory_space<vmem>>, vector<1280x1xf32>
    %cst_10 = arith.constant dense<0.000000e+00> : vector<1280xf32>
    %20 = vector.multi_reduction <add>, %18, %cst_10 [1] : vector<1280x256xf32> to vector<1280xf32>
    %21 = vector.shape_cast %20 : vector<1280xf32> to vector<1280x1xf32>
    %22 = arith.addf %19, %21 : vector<1280x1xf32>
    %c0_11 = arith.constant 0 : index
    %c0_12 = arith.constant 0 : index
    %23 = vector.load %arg6[%c0_11, %c0_12] : memref<1280x1xf32, #tpu.memory_space<vmem>>, vector<1280x1xf32>
    tpu.vector_store %arg6[%c0_11, %c0_12], %22 {strides = array<i32>} : memref<1280x1xf32, #tpu.memory_space<vmem>>, vector<1280x1xf32>,
    %c0_i32_13 = arith.constant 0 : i32
    %24 = arith.cmpi eq, %arg1, %c0_i32_13 : i32
    %25 = arith.extui %24 : i1 to i32
    %c0_i32_14 = arith.constant 0 : i32
    %26 = arith.cmpi ne, %25, %c0_i32_14 : i32
    scf.if %26 {
      %c0_15 = arith.constant 0 : index
      %c0_16 = arith.constant 0 : index
      %27 = vector.load %arg6[%c0_15, %c0_16] : memref<1280x1xf32, #tpu.memory_space<vmem>>, vector<1280x1xf32>
      %cst_17 = arith.constant 3.906250e-03 : f32
      %28 = vector.broadcast %cst_17 : f32 to vector<1280x1xf32>
      %29 = arith.mulf %27, %28 : vector<1280x1xf32>
      %c0_18 = arith.constant 0 : index
      %c0_19 = arith.constant 0 : index
      %c0_20 = arith.constant 0 : index
      %30 = vector.load %arg5[%c0_18, %c0_19, %c0_20] : memref<1x1280x1xf32, #tpu.memory_space<vmem>>, vector<1x1280x1xf32>
      %31 = vector.shape_cast %30 : vector<1x1280x1xf32> to vector<1280x1xf32>
      %32 = vector.shape_cast %29 : vector<1280x1xf32> to vector<1x1280x1xf32>
      tpu.vector_store %arg5[%c0_18, %c0_19, %c0_20], %32 {strides = array<i32>} : memref<1x1280x1xf32, #tpu.memory_space<vmem>>, vector<1x1280x1xf32>,
    } else {
    }
    return
  }
  func.func @transform_0(%arg0: i32, %arg1: i32) -> (i32, i32, i32) {
    %c0_i32 = arith.constant 0 : i32
    %c0_i32_0 = arith.constant 0 : i32
    return %arg0, %c0_i32, %arg1 : i32, i32, i32
  }
  func.func @transform_1(%arg0: i32, %arg1: i32) -> (i32, i32) {
    %c0_i32 = arith.constant 0 : i32
    %c0_i32_0 = arith.constant 0 : i32
    %c0_i32_1 = arith.constant 0 : i32
    return %c0_i32, %c0_i32_0 : i32, i32
  }
  func.func @transform_2(%arg0: i32, %arg1: i32) -> (i32, i32) {
    %c0_i32 = arith.constant 0 : i32
    %c0_i32_0 = arith.constant 0 : i32
    %c0_i32_1 = arith.constant 0 : i32
    return %c0_i32, %c0_i32_0 : i32, i32
  }
  func.func @transform_3(%arg0: i32, %arg1: i32) -> (i32, i32, i32) {
    %c0_i32 = arith.constant 0 : i32
    %c0_i32_0 = arith.constant 0 : i32
    %c0_i32_1 = arith.constant 0 : i32
    return %arg0, %c0_i32, %c0_i32_0 : i32, i32, i32
  }
}

module attributes {stable_mosaic.version = 11 : i64} {
  func.func @_head_kernel(%arg0: memref<8x1280xf32, #tpu.memory_space<vmem>>, %arg1: memref<1280x128xf32, #tpu.memory_space<vmem>>, %arg2: memref<1x128xf32, #tpu.memory_space<vmem>>, %arg3: memref<8x128xf32, #tpu.memory_space<vmem>>) attributes {dimension_semantics = [], scalar_prefetch = 0 : i64, scratch_operands = 0 : i64, tpu.core_type = #tpu.core_type<tc>} {
    %c0 = arith.constant 0 : index
    %c0_0 = arith.constant 0 : index
    %0 = vector.load %arg0[%c0, %c0_0] : memref<8x1280xf32, #tpu.memory_space<vmem>>, vector<8x1280xf32>
    %c0_1 = arith.constant 0 : index
    %c0_2 = arith.constant 0 : index
    %1 = vector.load %arg1[%c0_1, %c0_2] : memref<1280x128xf32, #tpu.memory_space<vmem>>, vector<1280x128xf32>
    %cst = arith.constant dense<0.000000e+00> : vector<8x128xf32>
    %2 = tpu.matmul %0, %1, %cst {dimension_numbers = #tpu.dot_dimension_numbers<[1], [0], [0], [1], [0, 0, 1, 1], [], []>} : vector<8x1280xf32>, vector<1280x128xf32>, vector<8x128xf32> -> vector<8x128xf32>
    %c0_3 = arith.constant 0 : index
    %c0_4 = arith.constant 0 : index
    %3 = vector.load %arg2[%c0_3, %c0_4] : memref<1x128xf32, #tpu.memory_space<vmem>>, vector<1x128xf32>
    %4 = vector.broadcast %3 : vector<1x128xf32> to vector<8x128xf32>
    %5 = arith.addf %2, %4 : vector<8x128xf32>
    %c0_5 = arith.constant 0 : index
    %c0_6 = arith.constant 0 : index
    %6 = vector.load %arg3[%c0_5, %c0_6] : memref<8x128xf32, #tpu.memory_space<vmem>>, vector<8x128xf32>
    tpu.vector_store %arg3[%c0_5, %c0_6], %5 {strides = array<i32>} : memref<8x128xf32, #tpu.memory_space<vmem>>, vector<8x128xf32>,
    return
  }
}

</mosaic_0001>

<bundles_post_ra>
// kernel: classify_forward.3
= control target key start
LH: loop header
LB: loop body
LE: loop exit
PB: predicated region body
PF: predicated region fallthrough
CT: control target
= control target key end

     0   :  { %s1418_s1 = inlined_call_operand.vmem [shape: f32[1280,128], index: 1, kind: input, shape index: {}]   ;;  %s1419_s0 = inlined_call_operand.vmem [shape: f32[8,1280], index: 0, kind: input, shape index: {}]   ;;  %s1420_s2 = inlined_call_operand.vmem [shape: f32[1,128], index: 2, kind: input, shape index: {}]   ;;  %s1421_s3 = inlined_call_operand.vmem [shape: f32[8,128], index: 3, kind: output, shape index: {}]  }
   0x1   :  { %v40_v0 = vld [vmem:[%s1418_s1 + $0x80] sm:$0xff]  ;;  %v41_v1 = vld [vmem:[%s1418_s1 + $0x88] sm:$0xff]  ;;  %v42_v11 = vld [vmem:[%s1418_s1 + $0x90] sm:$0xff] }
   0x2   :  { %v24_v2 = vld [vmem:[%s1418_s1] sm:$0xff]  ;;  %v722_v3 = vpack.c.bf16 %v41_v1, %v40_v0  ;;  %v25_v4 = vld [vmem:[%s1418_s1 + $0x8] sm:$0xff]  ;;  %v43_v13 = vld [vmem:[%s1418_s1 + $0x98] sm:$0xff] }
   0x3   :  { %v72_v5 = vld [vmem:[%s1418_s1 + $0x180] sm:$0xff]  ;;  %v73_v6 = vld [vmem:[%s1418_s1 + $0x188] sm:$0xff]  ;;  %v724_v7 = vpack.c.bf16 %v25_v4, %v24_v2  ;;  %v26_v14 = vld [vmem:[%s1418_s1 + $0x10] sm:$0xff]  ;;  %v726_v16 = vpack.c.bf16 %v43_v13, %v42_v11 }
   0x4   :  { %v754_v8 = vpack.c.bf16 %v73_v6, %v72_v5  ;;  %v56_v9 = vld [vmem:[%s1418_s1 + $0x100] sm:$0xff]  ;;  %v57_v10 = vld [vmem:[%s1418_s1 + $0x108] sm:$0xff]  ;;  %723 = vmatprep.subr.bf16.mxu0 %v722_v3  ;;  %v27_v15 = vld [vmem:[%s1418_s1 + $0x18] sm:$0xff] }
   0x5   :  { %v756_v12 = vpack.c.bf16 %v57_v10, %v56_v9  ;;  %725 = vmatpush3.bf16.msra.mxu0 %v724_v7  ;;  %v728_v17 = vpack.c.bf16 %v27_v15, %v26_v14  ;;  %v74_v18 = vld [vmem:[%s1418_s1 + $0x190] sm:$0xff]  ;;  %v75_v19 = vld [vmem:[%s1418_s1 + $0x198] sm:$0xff]  ;;  %v44_v23 = vld [vmem:[%s1418_s1 + $0xa0] sm:$0xff] }
   0x6   :  { %755 = vmatprep.subr.bf16.mxu1 %v754_v8  ;;  %v58_v20 = vld [vmem:[%s1418_s1 + $0x110] sm:$0xff]  ;;  %v758_v21 = vpack.c.bf16 %v75_v19, %v74_v18  ;;  %v59_v22 = vld [vmem:[%s1418_s1 + $0x118] sm:$0xff]  ;;  %v45_v24 = vld [vmem:[%s1418_s1 + $0xa8] sm:$0xff]  ;;  %727 = vmatprep.subr.bf16.mxu0 %v726_v16 }
   0x7   :  { %757 = vmatpush3.bf16.msra.mxu1 %v756_v12  ;;  %v760_v25 = vpack.c.bf16 %v59_v22, %v58_v20  ;;  %v730_v26 = vpack.c.bf16 %v45_v24, %v44_v23  ;;  %v28_v27 = vld [vmem:[%s1418_s1 + $0x20] sm:$0xff]  ;;  %v29_v28 = vld [vmem:[%s1418_s1 + $0x28] sm:$0xff]  ;;  %v46_v35 = vld [vmem:[%s1418_s1 + $0xb0] sm:$0xff] }
   0x8   :  { %v76_v29 = vld [vmem:[%s1418_s1 + $0x1a0] sm:$0xff]  ;;  %759 = vmatprep.subr.bf16.mxu1 %v758_v21  ;;  %v77_v30 = vld [vmem:[%s1418_s1 + $0x1a8] sm:$0xff]  ;;  %v732_v33 = vpack.c.bf16 %v29_v28, %v28_v27  ;;  %v47_v36 = vld [vmem:[%s1418_s1 + $0xb8] sm:$0xff] }
   0x9   :  { %v60_v31 = vld [vmem:[%s1418_s1 + $0x120] sm:$0xff]  ;;  %v61_v32 = vld [vmem:[%s1418_s1 + $0x128] sm:$0xff]  ;;  %729 = vmatpush3.bf16.msra.mxu0 %v728_v17  ;;  %v762_v34 = vpack.c.bf16 %v77_v30, %v76_v29  ;;  %v30_v37 = vld [vmem:[%s1418_s1 + $0x30] sm:$0xff]  ;;  %v734_v39 = vpack.c.bf16 %v47_v36, %v46_v35 }
   0xa   :  { %731 = vmatprep.subr.bf16.mxu0 %v730_v26  ;;  %v764_v38 = vpack.c.bf16 %v61_v32, %v60_v31  ;;  %v31_v40 = vld [vmem:[%s1418_s1 + $0x38] sm:$0xff]  ;;  %v78_v41 = vld [vmem:[%s1418_s1 + $0x1b0] sm:$0xff]  ;;  %v48_v46 = vld [vmem:[%s1418_s1 + $0xc0] sm:$0xff] }
   0xb   :  { %761 = vmatpush3.bf16.msra.mxu1 %v760_v25  ;;  %v79_v42 = vld [vmem:[%s1418_s1 + $0x1b8] sm:$0xff]  ;;  %v62_v44 = vld [vmem:[%s1418_s1 + $0x130] sm:$0xff]  ;;  %v49_v47 = vld [vmem:[%s1418_s1 + $0xc8] sm:$0xff]  ;;  %v736_v48 = vpack.c.bf16 %v31_v40, %v30_v37 }
   0xc   :  { %763 = vmatprep.subr.bf16.mxu1 %v762_v34  ;;  %v766_v43 = vpack.c.bf16 %v79_v42, %v78_v41  ;;  %v63_v45 = vld [vmem:[%s1418_s1 + $0x138] sm:$0xff]  ;;  %v80_v49 = vld [vmem:[%s1418_s1 + $0x1c0] sm:$0xff]  ;;  %v81_v50 = vld [vmem:[%s1418_s1 + $0x1c8] sm:$0xff]  ;;  %v738_v52 = vpack.c.bf16 %v49_v47, %v48_v46 }
   0xd   :  { %733 = vmatpush3.bf16.msra.mxu0 %v732_v33  ;;  %v768_v51 = vpack.c.bf16 %v63_v45, %v62_v44  ;;  %v32_v53 = vld [vmem:[%s1418_s1 + $0x40] sm:$0xff]  ;;  %v33_v54 = vld [vmem:[%s1418_s1 + $0x48] sm:$0xff]  ;;  %v770_v56 = vpack.c.bf16 %v81_v50, %v80_v49  ;;  %v50_v58 = vld [vmem:[%s1418_s1 + $0xd0] sm:$0xff] }
   0xe   :  { %735 = vmatprep.subr.bf16.mxu0 %v734_v39  ;;  %v64_v55 = vld [vmem:[%s1418_s1 + $0x140] sm:$0xff]  ;;  %v65_v57 = vld [vmem:[%s1418_s1 + $0x148] sm:$0xff]  ;;  %v51_v59 = vld [vmem:[%s1418_s1 + $0xd8] sm:$0xff]  ;;  %v740_v62 = vpack.c.bf16 %v33_v54, %v32_v53 }
   0xf   :  { %765 = vmatpush3.bf16.msra.mxu1 %v764_v38  ;;  %v82_v60 = vld [vmem:[%s1418_s1 + $0x1d0] sm:$0xff]  ;;  %v83_v61 = vld [vmem:[%s1418_s1 + $0x1d8] sm:$0xff]  ;;  %v772_v63 = vpack.c.bf16 %v65_v57, %v64_v55  ;;  %v742_v0 = vpack.c.bf16 %v51_v59, %v50_v58  ;;  %v52_v6 = vld [vmem:[%s1418_s1 + $0xe0] sm:$0xff] }
  0x10   :  { %767 = vmatprep.subr.bf16.mxu1 %v766_v43  ;;  %v34_v1 = vld [vmem:[%s1418_s1 + $0x50] sm:$0xff]  ;;  %v35_v2 = vld [vmem:[%s1418_s1 + $0x58] sm:$0xff]  ;;  %v774_v4 = vpack.c.bf16 %v83_v61, %v82_v60  ;;  %v53_v7 = vld [vmem:[%s1418_s1 + $0xe8] sm:$0xff] }
  0x11   :  { %737 = vmatpush3.bf16.msra.mxu0 %v736_v48  ;;  %v66_v3 = vld [vmem:[%s1418_s1 + $0x150] sm:$0xff]  ;;  %v67_v5 = vld [vmem:[%s1418_s1 + $0x158] sm:$0xff]  ;;  %v84_v8 = vld [vmem:[%s1418_s1 + $0x1e0] sm:$0xff]  ;;  %v744_v10 = vpack.c.bf16 %v35_v2, %v34_v1  ;;  %v746_v14 = vpack.c.bf16 %v53_v7, %v52_v6 }
  0x12   :  { %739 = vmatprep.subr.bf16.mxu0 %v738_v52  ;;  %v85_v9 = vld [vmem:[%s1418_s1 + $0x1e8] sm:$0xff]  ;;  %v36_v11 = vld [vmem:[%s1418_s1 + $0x60] sm:$0xff]  ;;  %v776_v13 = vpack.c.bf16 %v67_v5, %v66_v3  ;;  %v54_v19 = vld [vmem:[%s1418_s1 + $0xf0] sm:$0xff] }
  0x13   :  { %769 = vmatpush3.bf16.msra.mxu1 %v768_v51  ;;  %v15_v12 = vld [vmem:[%s1419_s0 + $0x8] sm:$0xff]  ;;  %v68_v16 = vld [vmem:[%s1418_s1 + $0x160] sm:$0xff]  ;;  %v778_v18 = vpack.c.bf16 %v85_v9, %v84_v8  ;;  %v55_v20 = vld [vmem:[%s1418_s1 + $0xf8] sm:$0xff] }
  0x14   :  { %771 = vmatprep.subr.bf16.mxu1 %v770_v56  ;;  %v37_v15 = vld [vmem:[%s1418_s1 + $0x68] sm:$0xff]  ;;  %255 = vmatprep.mubr.f32.mxu0 %v15_v12  ;;  %v17_v21 = vld [vmem:[%s1419_s0 + $0x18] sm:$0xff]  ;;  %v86_v22 = vld [vmem:[%s1418_s1 + $0x1f0] sm:$0xff]  ;;  %v750_v26 = vpack.c.bf16 %v55_v20, %v54_v19 }
  0x15   :  { %741 = vmatpush3.bf16.msra.mxu0 %v740_v62  ;;  %v69_v17 = vld [vmem:[%s1418_s1 + $0x168] sm:$0xff]  ;;  %v87_v23 = vld [vmem:[%s1418_s1 + $0x1f8] sm:$0xff]  ;;  %325 = vmatprep.mubr.f32.mxu1 %v17_v21  ;;  %v748_v24 = vpack.c.bf16 %v37_v15, %v36_v11  ;;  %v38_v27 = vld [vmem:[%s1418_s1 + $0x70] sm:$0xff] }
  0x16   :  { %743 = vmatprep.subr.bf16.mxu0 %v742_v0  ;;  %v780_v25 = vpack.c.bf16 %v69_v17, %v68_v16  ;;  %v39_v28 = vld [vmem:[%s1418_s1 + $0x78] sm:$0xff]  ;;  %v70_v29 = vld [vmem:[%s1418_s1 + $0x170] sm:$0xff]  ;;  %v782_v30 = vpack.c.bf16 %v87_v23, %v86_v22  ;;  %v104_v32 = vld [vmem:[%s1418_s1 + $0x280] sm:$0xff] }
  0x17   :  { %773 = vmatpush3.bf16.msra.mxu1 %v772_v63  ;;  %v71_v31 = vld [vmem:[%s1418_s1 + $0x178] sm:$0xff]  ;;  %v105_v33 = vld [vmem:[%s1418_s1 + $0x288] sm:$0xff]  ;;  %v136_v34 = vld [vmem:[%s1418_s1 + $0x380] sm:$0xff]  ;;  %v752_v36 = vpack.c.bf16 %v39_v28, %v38_v27 }
  0x18   :  { %775 = vmatprep.subr.bf16.mxu1 %v774_v4  ;;  %v137_v35 = vld [vmem:[%s1418_s1 + $0x388] sm:$0xff]  ;;  %v784_v37 = vpack.c.bf16 %v71_v31, %v70_v29  ;;  %v786_v38 = vpack.c.bf16 %v105_v33, %v104_v32  ;;  %v88_v39 = vld [vmem:[%s1418_s1 + $0x200] sm:$0xff]  ;;  %v106_v44 = vld [vmem:[%s1418_s1 + $0x290] sm:$0xff] }
  0x19   :  { %745 = vmatpush3.bf16.msra.mxu0 %v744_v10  ;;  %v89_v40 = vld [vmem:[%s1418_s1 + $0x208] sm:$0xff]  ;;  %v120_v41 = vld [vmem:[%s1418_s1 + $0x300] sm:$0xff]  ;;  %v818_v42 = vpack.c.bf16 %v137_v35, %v136_v34  ;;  %v107_v45 = vld [vmem:[%s1418_s1 + $0x298] sm:$0xff] }
  0x1a   :  { %747 = vmatprep.subr.bf16.mxu0 %v746_v14  ;;  %v121_v43 = vld [vmem:[%s1418_s1 + $0x308] sm:$0xff]  ;;  %v138_v46 = vld [vmem:[%s1418_s1 + $0x390] sm:$0xff]  ;;  %v139_v47 = vld [vmem:[%s1418_s1 + $0x398] sm:$0xff]  ;;  %v788_v49 = vpack.c.bf16 %v89_v40, %v88_v39  ;;  %v790_v52 = vpack.c.bf16 %v107_v45, %v106_v44 }
  0x1b   :  { %777 = vmatpush3.bf16.msra.mxu1 %v776_v13  ;;  %v14_v48 = vld [vmem:[%s1419_s0] sm:$0xff]  ;;  %v16_v50 = vld [vmem:[%s1419_s0 + $0x10] sm:$0xff]  ;;  %v820_v51 = vpack.c.bf16 %v121_v43, %v120_v41  ;;  %v91_v54 = vld [vmem:[%s1418_s1 + $0x218] sm:$0xff]  ;;  %v822_v56 = vpack.c.bf16 %v139_v47, %v138_v46 }
  0x1c   :  { %779 = vmatprep.subr.bf16.mxu1 %v778_v18  ;;  %v90_v53 = vld [vmem:[%s1418_s1 + $0x210] sm:$0xff]  ;;  %v123_v57 = vld [vmem:[%s1418_s1 + $0x318] sm:$0xff]  ;;  %v108_v58 = vld [vmem:[%s1418_s1 + $0x2a0] sm:$0xff] }
  0x1d   :  { %749 = vmatpush3.bf16.msra.mxu0 %v748_v24  ;;  %v122_v55 = vld [vmem:[%s1418_s1 + $0x310] sm:$0xff]  ;;  %v109_v59 = vld [vmem:[%s1418_s1 + $0x2a8] sm:$0xff]  ;;  %v140_v60 = vld [vmem:[%s1418_s1 + $0x3a0] sm:$0xff]  ;;  %v792_v62 = vpack.c.bf16 %v91_v54, %v90_v53 }
  0x1e   :  { %751 = vmatprep.subr.bf16.mxu0 %v750_v26  ;;  %v141_v61 = vld [vmem:[%s1418_s1 + $0x3a8] sm:$0xff]  ;;  %v824_v63 = vpack.c.bf16 %v123_v57, %v122_v55  ;;  %v794_v0 = vpack.c.bf16 %v109_v59, %v108_v58  ;;  %v92_v1 = vld [vmem:[%s1418_s1 + $0x220] sm:$0xff]  ;;  %v110_v6 = vld [vmem:[%s1418_s1 + $0x2b0] sm:$0xff] }
  0x1f   :  { %781 = vmatpush3.bf16.msra.mxu1 %v780_v25  ;;  %v93_v2 = vld [vmem:[%s1418_s1 + $0x228] sm:$0xff]  ;;  %v124_v3 = vld [vmem:[%s1418_s1 + $0x320] sm:$0xff]  ;;  %v826_v4 = vpack.c.bf16 %v141_v61, %v140_v60  ;;  %v111_v7 = vld [vmem:[%s1418_s1 + $0x2b8] sm:$0xff] }
  0x20   :  { %783 = vmatprep.subr.bf16.mxu1 %v782_v30  ;;  %v125_v5 = vld [vmem:[%s1418_s1 + $0x328] sm:$0xff]  ;;  %v142_v8 = vld [vmem:[%s1418_s1 + $0x3b0] sm:$0xff]  ;;  %v143_v9 = vld [vmem:[%s1418_s1 + $0x3b8] sm:$0xff]  ;;  %v796_v10 = vpack.c.bf16 %v93_v2, %v92_v1  ;;  %v798_v12 = vpack.c.bf16 %v111_v7, %v110_v6 }
  0x21   :  { %753 = vmatpush3.bf16.msra.mxu0 %v752_v36  ;;  %v828_v11 = vpack.c.bf16 %v125_v5, %v124_v3  ;;  %v94_v13 = vld [vmem:[%s1418_s1 + $0x230] sm:$0xff]  ;;  %v95_v14 = vld [vmem:[%s1418_s1 + $0x238] sm:$0xff]  ;;  %v830_v16 = vpack.c.bf16 %v143_v9, %v142_v8  ;;  %v112_v18 = vld [vmem:[%s1418_s1 + $0x2c0] sm:$0xff] }
  0x22   :  { %787 = vmatprep.subr.bf16.mxu0 %v786_v38  ;;  %v126_v15 = vld [vmem:[%s1418_s1 + $0x330] sm:$0xff]  ;;  %v127_v17 = vld [vmem:[%s1418_s1 + $0x338] sm:$0xff]  ;;  %v113_v19 = vld [vmem:[%s1418_s1 + $0x2c8] sm:$0xff]  ;;  %v800_v23 = vpack.c.bf16 %v95_v14, %v94_v13 }
  0x23   :  { %785 = vmatpush3.bf16.msra.mxu1 %v784_v37  ;;  %v144_v20 = vld [vmem:[%s1418_s1 + $0x3c0] sm:$0xff]  ;;  %v145_v21 = vld [vmem:[%s1418_s1 + $0x3c8] sm:$0xff]  ;;  %v832_v25 = vpack.c.bf16 %v127_v17, %v126_v15  ;;  %v802_v26 = vpack.c.bf16 %v113_v19, %v112_v18  ;;  %v21_v29 = vld [vmem:[%s1419_s0 + $0x38] sm:$0xff] }
  0x24   :  { %819 = vmatprep.subr.bf16.mxu1 %v818_v42  ;;  %256 = vmatmul.mubr.f32.vlgmr.msra.gmra.mrb[0].mxu0 %v14_v48  ;;  %v19_v22 = vld [vmem:[%s1419_s0 + $0x28] sm:$0xff]  ;;  %v96_v24 = vld [vmem:[%s1418_s1 + $0x240] sm:$0xff]  ;;  %v834_v30 = vpack.c.bf16 %v145_v21, %v144_v20  ;;  %v114_v32 = vld [vmem:[%s1418_s1 + $0x2d0] sm:$0xff] }
  0x25   :  { %789 = vmatpush3.bf16.msra.mxu0 %v788_v49  ;;  %395 = vmatprep.mubr.f32.mxu0 %v19_v22  ;;  %v97_v27 = vld [vmem:[%s1418_s1 + $0x248] sm:$0xff]  ;;  %v128_v28 = vld [vmem:[%s1418_s1 + $0x340] sm:$0xff]  ;;  %v115_v33 = vld [vmem:[%s1418_s1 + $0x2d8] sm:$0xff] }
  0x26   :  { %326 = vmatmul.mubr.f32.vlgmr.msra.gmra.mrb[0].mxu1 %v16_v50  ;;  %791 = vmatprep.subr.bf16.mxu0 %v790_v52  ;;  %v129_v31 = vld [vmem:[%s1418_s1 + $0x348] sm:$0xff]  ;;  %v146_v34 = vld [vmem:[%s1418_s1 + $0x3d0] sm:$0xff]  ;;  %v147_v35 = vld [vmem:[%s1418_s1 + $0x3d8] sm:$0xff]  ;;  %v804_v36 = vpack.c.bf16 %v97_v27, %v96_v24  ;;  %v806_v38 = vpack.c.bf16 %v115_v33, %v114_v32 }
  0x27   :  { %821 = vmatpush3.bf16.msra.mxu1 %v820_v51  ;;  %465 = vmatprep.mubr.f32.mxu1 %v21_v29  ;;  %v836_v37 = vpack.c.bf16 %v129_v31, %v128_v28  ;;  %v98_v39 = vld [vmem:[%s1418_s1 + $0x250] sm:$0xff]  ;;  %v99_v40 = vld [vmem:[%s1418_s1 + $0x258] sm:$0xff]  ;;  %v838_v42 = vpack.c.bf16 %v147_v35, %v146_v34  ;;  %v116_v44 = vld [vmem:[%s1418_s1 + $0x2e0] sm:$0xff] }
  0x28   :  { %823 = vmatprep.subr.bf16.mxu1 %v822_v56  ;;  %v130_v41 = vld [vmem:[%s1418_s1 + $0x350] sm:$0xff]  ;;  %v131_v43 = vld [vmem:[%s1418_s1 + $0x358] sm:$0xff]  ;;  %v117_v45 = vld [vmem:[%s1418_s1 + $0x2e8] sm:$0xff]  ;;  %v808_v48 = vpack.c.bf16 %v99_v40, %v98_v39 }
  0x29   :  { %793 = vmatpush3.bf16.msra.mxu0 %v792_v62  ;;  %v148_v46 = vld [vmem:[%s1418_s1 + $0x3e0] sm:$0xff]  ;;  %v149_v47 = vld [vmem:[%s1418_s1 + $0x3e8] sm:$0xff]  ;;  %v840_v49 = vpack.c.bf16 %v131_v43, %v130_v41  ;;  %v810_v50 = vpack.c.bf16 %v117_v45, %v116_v44  ;;  %v118_v56 = vld [vmem:[%s1418_s1 + $0x2f0] sm:$0xff] }
  0x2a   :  { %795 = vmatprep.subr.bf16.mxu0 %v794_v0  ;;  %v100_v51 = vld [vmem:[%s1418_s1 + $0x260] sm:$0xff]  ;;  %v101_v52 = vld [vmem:[%s1418_s1 + $0x268] sm:$0xff]  ;;  %v842_v54 = vpack.c.bf16 %v149_v47, %v148_v46  ;;  %v119_v57 = vld [vmem:[%s1418_s1 + $0x2f8] sm:$0xff] }
  0x2b   :  { %825 = vmatpush3.bf16.msra.mxu1 %v824_v63  ;;  %v132_v53 = vld [vmem:[%s1418_s1 + $0x360] sm:$0xff]  ;;  %v133_v55 = vld [vmem:[%s1418_s1 + $0x368] sm:$0xff]  ;;  %v150_v58 = vld [vmem:[%s1418_s1 + $0x3f0] sm:$0xff]  ;;  %v812_v60 = vpack.c.bf16 %v101_v52, %v100_v51  ;;  %v814_v62 = vpack.c.bf16 %v119_v57, %v118_v56 }
  0x2c   :  { %827 = vmatprep.subr.bf16.mxu1 %v826_v4  ;;  %v151_v59 = vld [vmem:[%s1418_s1 + $0x3f8] sm:$0xff]  ;;  %v844_v61 = vpack.c.bf16 %v133_v55, %v132_v53  ;;  %v102_v63 = vld [vmem:[%s1418_s1 + $0x270] sm:$0xff]  ;;  %v168_v4 = vld [vmem:[%s1418_s1 + $0x480] sm:$0xff] }
  0x2d   :  { %797 = vmatpush3.bf16.msra.mxu0 %v796_v10  ;;  %v103_v0 = vld [vmem:[%s1418_s1 + $0x278] sm:$0xff]  ;;  %v134_v1 = vld [vmem:[%s1418_s1 + $0x370] sm:$0xff]  ;;  %v846_v2 = vpack.c.bf16 %v151_v59, %v150_v58  ;;  %v169_v5 = vld [vmem:[%s1418_s1 + $0x488] sm:$0xff] }
  0x2e   :  { %799 = vmatprep.subr.bf16.mxu0 %v798_v12  ;;  %v135_v3 = vld [vmem:[%s1418_s1 + $0x378] sm:$0xff]  ;;  %v816_v6 = vpack.c.bf16 %v103_v0, %v102_v63  ;;  %v850_v8 = vpack.c.bf16 %v169_v5, %v168_v4  ;;  %v152_v9 = vld [vmem:[%s1418_s1 + $0x400] sm:$0xff]  ;;  %v153_v10 = vld [vmem:[%s1418_s1 + $0x408] sm:$0xff] }
  0x2f   :  { %829 = vmatpush3.bf16.msra.mxu1 %v828_v11  ;;  %v848_v7 = vpack.c.bf16 %v135_v3, %v134_v1  ;;  %v170_v11 = vld [vmem:[%s1418_s1 + $0x490] sm:$0xff]  ;;  %v171_v12 = vld [vmem:[%s1418_s1 + $0x498] sm:$0xff]  ;;  %v18_v13 = vld [vmem:[%s1419_s0 + $0x20] sm:$0xff]  ;;  %v852_v14 = vpack.c.bf16 %v153_v10, %v152_v9 }
  0x30   :  { %831 = vmatprep.subr.bf16.mxu1 %v830_v16  ;;  %v20_v15 = vld [vmem:[%s1419_s0 + $0x30] sm:$0xff]  ;;  %v854_v16 = vpack.c.bf16 %v171_v12, %v170_v11  ;;  %v155_v18 = vld [vmem:[%s1418_s1 + $0x418] sm:$0xff]  ;;  %v172_v19 = vld [vmem:[%s1418_s1 + $0x4a0] sm:$0xff] }
  0x31   :  { %801 = vmatpush3.bf16.msra.mxu0 %v800_v23  ;;  %v154_v17 = vld [vmem:[%s1418_s1 + $0x410] sm:$0xff]  ;;  %v173_v20 = vld [vmem:[%s1418_s1 + $0x4a8] sm:$0xff]  ;;  %v156_v24 = vld [vmem:[%s1418_s1 + $0x420] sm:$0xff] }
  0x32   :  { %803 = vmatprep.subr.bf16.mxu0 %v802_v26  ;;  %v23_v21 = vld [vmem:[%s1419_s0 + $0x48] sm:$0xff]  ;;  %v856_v22 = vpack.c.bf16 %v155_v18, %v154_v17  ;;  %v858_v23 = vpack.c.bf16 %v173_v20, %v172_v19  ;;  %v174_v26 = vld [vmem:[%s1418_s1 + $0x4b0] sm:$0xff]  ;;  %v175_v27 = vld [vmem:[%s1418_s1 + $0x4b8] sm:$0xff] }
  0x33   :  { %833 = vmatpush3.bf16.msra.mxu1 %v832_v25  ;;  %v157_v25 = vld [vmem:[%s1418_s1 + $0x428] sm:$0xff]  ;;  %v862_v29 = vpack.c.bf16 %v175_v27, %v174_v26  ;;  %v159_v31 = vld [vmem:[%s1418_s1 + $0x438] sm:$0xff]  ;;  %v176_v32 = vld [vmem:[%s1418_s1 + $0x4c0] sm:$0xff] }
  0x34   :  { %835 = vmatprep.subr.bf16.mxu1 %v834_v30  ;;  %v860_v28 = vpack.c.bf16 %v157_v25, %v156_v24  ;;  %v158_v30 = vld [vmem:[%s1418_s1 + $0x430] sm:$0xff]  ;;  %v177_v33 = vld [vmem:[%s1418_s1 + $0x4c8] sm:$0xff]  ;;  %v179_v39 = vld [vmem:[%s1418_s1 + $0x4d8] sm:$0xff] }
  0x35   :  { %805 = vmatpush3.bf16.msra.mxu0 %v804_v36  ;;  %v864_v34 = vpack.c.bf16 %v159_v31, %v158_v30  ;;  %v866_v35 = vpack.c.bf16 %v177_v33, %v176_v32  ;;  %v160_v36 = vld [vmem:[%s1418_s1 + $0x440] sm:$0xff]  ;;  %v163_v43 = vld [vmem:[%s1418_s1 + $0x458] sm:$0xff]  ;;  %v181_v45 = vld [vmem:[%s1418_s1 + $0x4e8] sm:$0xff] }
  0x36   :  { %807 = vmatprep.subr.bf16.mxu0 %v806_v38  ;;  %v178_v38 = vld [vmem:[%s1418_s1 + $0x4d0] sm:$0xff]  ;;  %v180_v44 = vld [vmem:[%s1418_s1 + $0x4e0] sm:$0xff]  ;;  %v183_v51 = vld [vmem:[%s1418_s1 + $0x4f8] sm:$0xff] }
  0x37   :  { %837 = vmatpush3.bf16.msra.mxu1 %v836_v37  ;;  %v161_v37 = vld [vmem:[%s1418_s1 + $0x448] sm:$0xff]  ;;  %v870_v41 = vpack.c.bf16 %v179_v39, %v178_v38  ;;  %v874_v47 = vpack.c.bf16 %v181_v45, %v180_v44  ;;  %v167_v55 = vld [vmem:[%s1418_s1 + $0x478] sm:$0xff]  ;;  %v22_v57 = vld [vmem:[%s1419_s0 + $0x40] sm:$0xff] }
  0x38   :  { %839 = vmatprep.subr.bf16.mxu1 %v838_v42  ;;  %v868_v40 = vpack.c.bf16 %v161_v37, %v160_v36  ;;  %v162_v42 = vld [vmem:[%s1418_s1 + $0x450] sm:$0xff]  ;;  %v546_v59 = vld [vmem:[%s1420_s2] ss:$0 sm:$0xff] }
  0x39   :  { %809 = vmatpush3.bf16.msra.mxu0 %v808_v48  ;;  %v872_v46 = vpack.c.bf16 %v163_v43, %v162_v42  ;;  %v164_v48 = vld [vmem:[%s1418_s1 + $0x460] sm:$0xff] }
  0x3a   :  { %811 = vmatprep.subr.bf16.mxu0 %v810_v50  ;;  %v182_v50 = vld [vmem:[%s1418_s1 + $0x4f0] sm:$0xff] }
  0x3b   :  { %841 = vmatpush3.bf16.msra.mxu1 %v840_v49  ;;  %v165_v49 = vld [vmem:[%s1418_s1 + $0x468] sm:$0xff]  ;;  %v878_v53 = vpack.c.bf16 %v183_v51, %v182_v50 }
  0x3c   :  { %843 = vmatprep.subr.bf16.mxu1 %v842_v54  ;;  %v876_v52 = vpack.c.bf16 %v165_v49, %v164_v48  ;;  %v166_v54 = vld [vmem:[%s1418_s1 + $0x470] sm:$0xff] }
  0x3d   :  { %813 = vmatpush3.bf16.msra.mxu0 %v812_v60  ;;  %v880_v56 = vpack.c.bf16 %v167_v55, %v166_v54 }
  0x3e   :  { %815 = vmatprep.subr.bf16.mxu0 %v814_v62 }
  0x3f   :  { %845 = vmatpush3.bf16.msra.mxu1 %v844_v61 }
  0x40   :  { %847 = vmatprep.subr.bf16.mxu1 %v846_v2 }
  0x41   :  { %817 = vmatpush3.bf16.msra.mxu0 %v816_v6 }
  0x42   :  { %851 = vmatprep.subr.bf16.mxu0 %v850_v8 }
  0x43   :  { %849 = vmatpush3.bf16.msra.mxu1 %v848_v7 }
  0x44   :  { %396 = vmatmul.mubr.f32.vlgmr.msra.gmra.mrb[2].mxu0 %v18_v13 }
  0x45   :  { %853 = vmatpush3.bf16.msra.mxu0 %v852_v14  ;;  %535 = vmatprep.mubr.f32.mxu0 %v23_v21 }
  0x46   :  { %466 = vmatmul.mubr.f32.vlgmr.msra.gmra.mrb[2].mxu1 %v20_v15  ;;  %855 = vmatprep.subr.bf16.mxu0 %v854_v16 }
  0x49   :  { %857 = vmatpush3.bf16.msra.mxu0 %v856_v22 }
  0x4a   :  { %859 = vmatprep.subr.bf16.mxu0 %v858_v23 }
  0x4d   :  { %861 = vmatpush3.bf16.msra.mxu0 %v860_v28 }
  0x4e   :  { %863 = vmatprep.subr.bf16.mxu0 %v862_v29 }
  0x51   :  { %865 = vmatpush3.bf16.msra.mxu0 %v864_v34 }
  0x52   :  { %867 = vmatprep.subr.bf16.mxu0 %v866_v35 }
  0x55   :  { %869 = vmatpush3.bf16.msra.mxu0 %v868_v40 }
  0x56   :  { %871 = vmatprep.subr.bf16.mxu0 %v870_v41 }
  0x59   :  { %873 = vmatpush3.bf16.msra.mxu0 %v872_v46 }
  0x5a   :  { %875 = vmatprep.subr.bf16.mxu0 %v874_v47 }
  0x5d   :  { %877 = vmatpush3.bf16.msra.mxu0 %v876_v52 }
  0x5e   :  { %879 = vmatprep.subr.bf16.mxu0 %v878_v53 }
  0x61   :  { %881 = vmatpush3.bf16.msra.mxu0 %v880_v56 }
  0x64   :  { %536 = vmatmul.mubr.f32.vlgmr.msra.gmra.mrb[4].mxu0 %v22_v57 }
  0xf7   :  { %v579_v58 = vpop.f32.mrb[0].mxu0 }
  0xf8   :  { %v580_v60 = vpop.f32.mrb[1].mxu0 }
  0xf9   :  { %v614_v61 = vpop.f32.mrb[0].mxu1  ;;  %v581_v62 = vadd.f32 %v580_v60, %v579_v58 }
  0xfa   :  { %v615_v63 = vpop.f32.mrb[1].mxu1 }
  0xfb   :  { %v616_v0 = vadd.f32 %v615_v63, %v614_v61  ;;  %v258_v1 = vadd.f32 %v581_v62, %v546_v59 }
  0xfd   :  { %v328_v2 = vadd.f32 %v616_v0, %v258_v1 }
 0x117   :  { %v649_v3 = vpop.f32.mrb[2].mxu0 }
 0x118   :  { %v650_v4 = vpop.f32.mrb[3].mxu0 }
 0x119   :  { %v684_v5 = vpop.f32.mrb[2].mxu1  ;;  %v651_v6 = vadd.f32 %v650_v4, %v649_v3 }
 0x11a   :  { %v685_v7 = vpop.f32.mrb[3].mxu1 }
 0x11b   :  { %v686_v8 = vadd.f32 %v685_v7, %v684_v5  ;;  %v398_v9 = vadd.f32 %v651_v6, %v328_v2 }
 0x11d   :  { %v468_v10 = vadd.f32 %v686_v8, %v398_v9 }
 0x137   :  { %v719_v11 = vpop.f32.mrb[4].mxu0 }
 0x138   :  { %v720_v12 = vpop.f32.mrb[5].mxu0 }
 0x139   :  { %v721_v13 = vadd.f32 %v720_v12, %v719_v11 }
 0x13b   :  { %v538_v14 = vadd.f32 %v721_v13, %v468_v10 }
 0x13d   :  { %541 = vst [vmem:[%s1421_s3] sm:$0xff] %v538_v14 }

// kernel: classify_forward.2
= control target key start
LH: loop header
LB: loop body
LE: loop exit
PB: predicated region body
PF: predicated region fallthrough
CT: control target
= control target key end

     0   :  { %s7527_s12 = smov 0   ;;  %s7529_s13 = smov 0   ;;  %s13775_s0 = inlined_call_operand.vmem [shape: f32[2,16,256], index: 0, kind: input, shape index: {}]   ;;  %s13776_s1 = inlined_call_operand.vmem [shape: bf16[1280,16], index: 1, kind: input, shape index: {}]   ;;  %s13777_s2 = inlined_call_operand.vmem [shape: f32[1280,1], index: 2, kind: input, shape index: {}]   ;;  %s13778_s3 = inlined_call_operand.vmem [shape: f32[2,1280,1], index: 3, kind: output, shape index: {}]  }
   0x1   :  { %s7531_s14 = smov 0  }
   0x2 LB: > { %s25_s15 = sadd.s32 1, %s7499_s13  ;;  %p6403_p0 = scmp.ge.s32.totalorder %s7503_s14, 1  ;;  %s7503_s14 = sphi %s7531_s14, %s13_s14   ;;  %s7499_s13 = sphi %s7529_s13, %s15635_s13   ;;  %s7495_s12 = sphi %s7527_s12, %s15634_s12  }
   0x3   : > { %p27_p1 = scmp.ge.s32.totalorder %s25_s15, 2  ;;  %p156_p2 = scmp.lt.s32.totalorder %s7503_s14, 3 }
   0x5   : > { %s15637_s15 = smov (%p27_p1, %s25_s15), 0  ;;  %p157_p3 = pnand %p6403_p0, %p156_p2 }
   0x7   : > { %160 = sbr.rel (%p157_p3) target bundleno = 1174 (0x496), region = 32 }
   0xe   : > { %v534_v0 = vld [vmem:[%s13777_s2 + $0x10] sm:$0xff]  ;;  %v532_v1 = vld [vmem:[%s13777_s2] sm:$0xff]  ;;  %p185_p4 = scmp.lt.s32.totalorder %s7495_s12, 1  ;;  %v13779_v2 = vmov 0   ;;  %v535_v3 = vld [vmem:[%s13777_s2 + $0x18] sm:$0xff]  ;;  %vm1892_vm0 = vcmask 130048  }
   0xf   : > { %6760 = vset.pattern.permute.xlu1 %v13779_v2  ;;  %6759 = vset.pattern.permute.xlu0 %v13779_v2  ;;  %v533_v4 = vld [vmem:[%s13777_s2 + $0x8] sm:$0xff]  ;;  %v536_v10 = vld [vmem:[%s13777_s2 + $0x20] sm:$0xff]  ;;  %v539_v15 = vld [vmem:[%s13777_s2 + $0x38] sm:$0xff]  ;;  %vm205_vm1 = vcmask 7168  }
  0x10   : > { %704 = vperm.xlu1 %6760, %v534_v0   ;;  %694 = vperm.xlu0 %6759, %v532_v1   ;;  %s15639_s12 = smov (!%p185_p4, %s7495_s12), 1  ;;  %v537_v5 = vld [vmem:[%s13777_s2 + $0x28] sm:$0xff]  ;;  %v6761_v13 = vld [vmem:[%s13776_s1] sm:$0xff]   ;;  %v538_v16 = vld [vmem:[%s13777_s2 + $0x30] sm:$0xff] }
  0x11   : > { %2165 = vmatprep.mubr.bf16.mxu0 %v13779_v2  ;;  %2565 = vmatprep.mubr.bf16.mxu1 %v13779_v2  ;;  %s6729_s24 = sshll.u32 %s15639_s12, 5  ;;  %v6762_v14 = vld [vmem:[%s13776_s1 + $0x140] sm:$0xff]   ;;  %v541_v17 = vld [vmem:[%s13777_s2 + $0x48] sm:$0xff]  ;;  %v543_v21 = vld [vmem:[%s13777_s2 + $0x58] sm:$0xff]  ;;  %s6732_s17 = smul.u32 1280, %s15639_s12 }
  0x12   : > { %s192_s27 = scalar_lea.vmem %s13775_s0, %s6729_s24  ;;  %v540_v18 = vld [vmem:[%s13777_s2 + $0x40] sm:$0xff]  ;;  %v6763_v19 = vld [vmem:[%s13776_s1 + $0x8] sm:$0xff]   ;;  %v542_v22 = vld [vmem:[%s13777_s2 + $0x50] sm:$0xff] }
  0x13   : > { %v367_v6 = vld [vmem:[%s192_s27 + $0x8] sm:$0xff]  ;;  %v369_v7 = vld [vmem:[%s192_s27 + $0x18] sm:$0xff]  ;;  %v366_v8 = vld [vmem:[%s192_s27] sm:$0xff]  ;;  %s12201_s19 = scalar_lea.vmem %s13778_s3, %s6732_s17 }
  0x14   : > { %709 = vperm.xlu1 %6760, %v535_v3   ;;  %699 = vperm.xlu0 %6759, %v533_v4   ;;  %v371_v9 = vpack.c.bf16 %v369_v7, %v367_v6  ;;  %v368_v11 = vld [vmem:[%s192_s27 + $0x10] sm:$0xff]  ;;  %v6764_v20 = vld [vmem:[%s13776_s1 + $0x148] sm:$0xff]   ;;  %v544_v24 = vld [vmem:[%s13777_s2 + $0x60] sm:$0xff] }
  0x15   : > { %v370_v12 = vpack.c.bf16 %v368_v11, %v366_v8  ;;  %v545_v23 = vld [vmem:[%s13777_s2 + $0x68] sm:$0xff]  ;;  %v6765_v25 = vld [vmem:[%s13776_s1 + $0x10] sm:$0xff]   ;;  %v547_v27 = vld [vmem:[%s13777_s2 + $0x78] sm:$0xff] }
  0x16   : > { %2133 = vmatprep.subr.bf16.mxu0 %v371_v9  ;;  %6730 = vmatprep.subr.bf16.mxu1 %v371_v9  ;;  %v6766_v26 = vld [vmem:[%s13776_s1 + $0x150] sm:$0xff]   ;;  %v549_v29 = vld [vmem:[%s13777_s2 + $0x88] sm:$0xff]  ;;  %v548_v30 = vld [vmem:[%s13777_s2 + $0x80] sm:$0xff] }
  0x17   : > { %2134 = vmatpush1.bf16.msra.mxu0 %v370_v12  ;;  %6731 = vmatpush1.bf16.msra.mxu1 %v370_v12  ;;  %v546_v28 = vld [vmem:[%s13777_s2 + $0x70] sm:$0xff]  ;;  %v6767_v31 = vld [vmem:[%s13776_s1 + $0x18] sm:$0xff]   ;;  %v553_v35 = vld [vmem:[%s13777_s2 + $0xa8] sm:$0xff] }
  0x18   : > { %719 = vperm.xlu1 %6760, %v537_v5   ;;  %714 = vperm.xlu0 %6759, %v536_v10   ;;  %v6768_v32 = vld [vmem:[%s13776_s1 + $0x158] sm:$0xff]   ;;  %v550_v34 = vld [vmem:[%s13777_s2 + $0x90] sm:$0xff]  ;;  %v552_v36 = vld [vmem:[%s13777_s2 + $0xa0] sm:$0xff] }
  0x19   : > { %v551_v33 = vld [vmem:[%s13777_s2 + $0x98] sm:$0xff]  ;;  %v6769_v37 = vld [vmem:[%s13776_s1 + $0x20] sm:$0xff]   ;;  %v554_v40 = vld [vmem:[%s13777_s2 + $0xb0] sm:$0xff] }
  0x1a   : > { %6487 = vmatmul.mubr.msk.bf16.vlgmr.msra.gmra.mrb[0].mxu0 %vm1892_vm0, %v6761_v13  ;;  %6527 = vmatmul.mubr.msk.bf16.vlgmr.msra.gmra.mrb[0].mxu1 %vm1892_vm0, %v6762_v14  ;;  %v6770_v38 = vld [vmem:[%s13776_s1 + $0x160] sm:$0xff]   ;;  %v555_v39 = vld [vmem:[%s13777_s2 + $0xb8] sm:$0xff]  ;;  %v557_v41 = vld [vmem:[%s13777_s2 + $0xc8] sm:$0xff] }
  0x1b   : > { %2175 = vmatprep.mubr.bf16.mxu0 %v13779_v2  ;;  %2575 = vmatprep.mubr.bf16.mxu1 %v13779_v2  ;;  %v556_v42 = vld [vmem:[%s13777_s2 + $0xc0] sm:$0xff]  ;;  %v6771_v43 = vld [vmem:[%s13776_s1 + $0x28] sm:$0xff]   ;;  %v559_v45 = vld [vmem:[%s13777_s2 + $0xd8] sm:$0xff] }
  0x1c   : > { %729 = vperm.xlu1 %6760, %v539_v15   ;;  %724 = vperm.xlu0 %6759, %v538_v16   ;;  %v6772_v44 = vld [vmem:[%s13776_s1 + $0x168] sm:$0xff]   ;;  %v558_v46 = vld [vmem:[%s13777_s2 + $0xd0] sm:$0xff]  ;;  %v560_v48 = vld [vmem:[%s13777_s2 + $0xe0] sm:$0xff] }
  0x1d   : > { %v561_v47 = vld [vmem:[%s13777_s2 + $0xe8] sm:$0xff]  ;;  %v6773_v49 = vld [vmem:[%s13776_s1 + $0x30] sm:$0xff]   ;;  %v563_v51 = vld [vmem:[%s13777_s2 + $0xf8] sm:$0xff] }
  0x1e   : > { %v6774_v50 = vld [vmem:[%s13776_s1 + $0x170] sm:$0xff]   ;;  %v565_v53 = vld [vmem:[%s13777_s2 + $0x108] sm:$0xff]  ;;  %v564_v54 = vld [vmem:[%s13777_s2 + $0x100] sm:$0xff] }
  0x1f   : > { %v562_v52 = vld [vmem:[%s13777_s2 + $0xf0] sm:$0xff]  ;;  %v6775_v55 = vld [vmem:[%s13776_s1 + $0x38] sm:$0xff]   ;;  %v569_v59 = vld [vmem:[%s13777_s2 + $0x128] sm:$0xff] }
  0x20   : > { %739 = vperm.xlu1 %6760, %v541_v17   ;;  %734 = vperm.xlu0 %6759, %v540_v18   ;;  %v6776_v56 = vld [vmem:[%s13776_s1 + $0x178] sm:$0xff]   ;;  %v566_v58 = vld [vmem:[%s13777_s2 + $0x110] sm:$0xff]  ;;  %v568_v60 = vld [vmem:[%s13777_s2 + $0x120] sm:$0xff] }
  0x21   : > { %v567_v57 = vld [vmem:[%s13777_s2 + $0x118] sm:$0xff]  ;;  %v6777_v61 = vld [vmem:[%s13776_s1 + $0x40] sm:$0xff]   ;;  %v570_v0 = vld [vmem:[%s13777_s2 + $0x130] sm:$0xff] }
  0x22   : > { %6488 = vmatmul.mubr.msk.bf16.gmra.mrb[4].mxu0 %vm1892_vm0, %v6763_v19  ;;  %6528 = vmatmul.mubr.msk.bf16.gmra.mrb[4].mxu1 %vm1892_vm0, %v6764_v20  ;;  %v6778_v62 = vld [vmem:[%s13776_s1 + $0x180] sm:$0xff]   ;;  %v571_v63 = vld [vmem:[%s13777_s2 + $0x138] sm:$0xff]  ;;  %v573_v1 = vld [vmem:[%s13777_s2 + $0x148] sm:$0xff] }
  0x23   : > { %2185 = vmatprep.mubr.bf16.mxu0 %v13779_v2  ;;  %2585 = vmatprep.mubr.bf16.mxu1 %v13779_v2  ;;  %v572_v3 = vld [vmem:[%s13777_s2 + $0x140] sm:$0xff]  ;;  %v6779_v4 = vld [vmem:[%s13776_s1 + $0x48] sm:$0xff]   ;;  %v575_v6 = vld [vmem:[%s13777_s2 + $0x158] sm:$0xff] }
  0x24   : > { %749 = vperm.xlu1 %6760, %v543_v21   ;;  %744 = vperm.xlu0 %6759, %v542_v22   ;;  %v6780_v5 = vld [vmem:[%s13776_s1 + $0x188] sm:$0xff]   ;;  %v574_v7 = vld [vmem:[%s13777_s2 + $0x150] sm:$0xff]  ;;  %v576_v9 = vld [vmem:[%s13777_s2 + $0x160] sm:$0xff] }
  0x25   : > { %v577_v8 = vld [vmem:[%s13777_s2 + $0x168] sm:$0xff]  ;;  %v6781_v10 = vld [vmem:[%s13776_s1 + $0x50] sm:$0xff]   ;;  %v579_v12 = vld [vmem:[%s13777_s2 + $0x178] sm:$0xff] }
  0x26   : > { %v6782_v11 = vld [vmem:[%s13776_s1 + $0x190] sm:$0xff]   ;;  %v581_v14 = vld [vmem:[%s13777_s2 + $0x188] sm:$0xff]  ;;  %v580_v15 = vld [vmem:[%s13777_s2 + $0x180] sm:$0xff] }
  0x27   : > { %v578_v13 = vld [vmem:[%s13777_s2 + $0x170] sm:$0xff]  ;;  %v6783_v16 = vld [vmem:[%s13776_s1 + $0x58] sm:$0xff]   ;;  %v585_v20 = vld [vmem:[%s13777_s2 + $0x1a8] sm:$0xff] }
  0x28   : > { %759 = vperm.xlu1 %6760, %v545_v23   ;;  %754 = vperm.xlu0 %6759, %v544_v24   ;;  %v6784_v17 = vld [vmem:[%s13776_s1 + $0x198] sm:$0xff]   ;;  %v582_v19 = vld [vmem:[%s13777_s2 + $0x190] sm:$0xff]  ;;  %v584_v21 = vld [vmem:[%s13777_s2 + $0x1a0] sm:$0xff] }
  0x29   : > { %v583_v18 = vld [vmem:[%s13777_s2 + $0x198] sm:$0xff]  ;;  %v6785_v22 = vld [vmem:[%s13776_s1 + $0x60] sm:$0xff]  }
  0x2a   : > { %6489 = vmatmul.mubr.msk.bf16.gmra.mrb[8].mxu0 %vm1892_vm0, %v6765_v25  ;;  %6529 = vmatmul.mubr.msk.bf16.gmra.mrb[8].mxu1 %vm1892_vm0, %v6766_v26  ;;  %v6786_v23 = vld [vmem:[%s13776_s1 + $0x1a0] sm:$0xff]   ;;  %v587_v24 = vld [vmem:[%s13777_s2 + $0x1b8] sm:$0xff]  ;;  %v586_v25 = vld [vmem:[%s13777_s2 + $0x1b0] sm:$0xff] }
  0x2b   : > { %2195 = vmatprep.mubr.bf16.mxu0 %v13779_v2  ;;  %2595 = vmatprep.mubr.bf16.mxu1 %v13779_v2  ;;  %v589_v26 = vld [vmem:[%s13777_s2 + $0x1c8] sm:$0xff] }
  0x2c   : > { %769 = vperm.xlu1 %6760, %v547_v27   ;;  %764 = vperm.xlu0 %6759, %v546_v28   ;;  %v588_v27 = vld [vmem:[%s13777_s2 + $0x1c0] sm:$0xff]  ;;  %v6787_v28 = vld [vmem:[%s13776_s1 + $0x68] sm:$0xff]  }
  0x30   : > { %779 = vperm.xlu1 %6760, %v549_v29   ;;  %774 = vperm.xlu0 %6759, %v548_v30   ;;  %v6788_v29 = vld [vmem:[%s13776_s1 + $0x1a8] sm:$0xff]   ;;  %v591_v30 = vld [vmem:[%s13777_s2 + $0x1d8] sm:$0xff] }
  0x32   : > { %6490 = vmatmul.mubr.msk.bf16.gmra.mrb[12].mxu0 %vm1892_vm0, %v6767_v31  ;;  %6530 = vmatmul.mubr.msk.bf16.gmra.mrb[12].mxu1 %vm1892_vm0, %v6768_v32  ;;  %v590_v31 = vld [vmem:[%s13777_s2 + $0x1d0] sm:$0xff]  ;;  %v593_v32 = vld [vmem:[%s13777_s2 + $0x1e8] sm:$0xff] }
  0x33   : > { %2205 = vmatprep.mubr.bf16.mxu0 %v13779_v2  ;;  %2605 = vmatprep.mubr.bf16.mxu1 %v13779_v2 }
  0x34   : > { %789 = vperm.xlu1 %6760, %v551_v33   ;;  %784 = vperm.xlu0 %6759, %v550_v34   ;;  %v592_v33 = vld [vmem:[%s13777_s2 + $0x1e0] sm:$0xff]  ;;  %v6789_v34 = vld [vmem:[%s13776_s1 + $0x70] sm:$0xff]  }
  0x38   : > { %799 = vperm.xlu1 %6760, %v553_v35   ;;  %794 = vperm.xlu0 %6759, %v552_v36   ;;  %v6790_v35 = vld [vmem:[%s13776_s1 + $0x1b0] sm:$0xff]   ;;  %v595_v36 = vld [vmem:[%s13777_s2 + $0x1f8] sm:$0xff] }
  0x3a   : > { %6491 = vmatmul.mubr.msk.bf16.gmra.mrb[16].mxu0 %vm1892_vm0, %v6769_v37  ;;  %6531 = vmatmul.mubr.msk.bf16.gmra.mrb[16].mxu1 %vm1892_vm0, %v6770_v38  ;;  %v594_v37 = vld [vmem:[%s13777_s2 + $0x1f0] sm:$0xff]  ;;  %v597_v38 = vld [vmem:[%s13777_s2 + $0x208] sm:$0xff] }
  0x3b   : > { %2215 = vmatprep.mubr.bf16.mxu0 %v13779_v2  ;;  %2615 = vmatprep.mubr.bf16.mxu1 %v13779_v2 }
  0x3c   : > { %809 = vperm.xlu1 %6760, %v555_v39   ;;  %804 = vperm.xlu0 %6759, %v554_v40   ;;  %v596_v39 = vld [vmem:[%s13777_s2 + $0x200] sm:$0xff] }
  0x40   : > { %819 = vperm.xlu1 %6760, %v557_v41   ;;  %814 = vperm.xlu0 %6759, %v556_v42   ;;  %v6791_v42 = vld [vmem:[%s13776_s1 + $0x78] sm:$0xff]  }
  0x42   : > { %6492 = vmatmul.mubr.msk.bf16.gmra.mrb[20].mxu0 %vm1892_vm0, %v6771_v43  ;;  %6532 = vmatmul.mubr.msk.bf16.gmra.mrb[20].mxu1 %vm1892_vm0, %v6772_v44  ;;  %v6792_v43 = vld [vmem:[%s13776_s1 + $0x1b8] sm:$0xff]  }
  0x43   : > { %2225 = vmatprep.mubr.bf16.mxu0 %v13779_v2  ;;  %2625 = vmatprep.mubr.bf16.mxu1 %v13779_v2  ;;  %v599_v44 = vld [vmem:[%s13777_s2 + $0x218] sm:$0xff] }
  0x44   : > { %829 = vperm.xlu1 %6760, %v559_v45   ;;  %824 = vperm.xlu0 %6759, %v558_v46   ;;  %v598_v45 = vld [vmem:[%s13777_s2 + $0x210] sm:$0xff] }
  0x48   : > { %839 = vperm.xlu1 %6760, %v561_v47   ;;  %834 = vperm.xlu0 %6759, %v560_v48   ;;  %v601_v48 = vld [vmem:[%s13777_s2 + $0x228] sm:$0xff] }
  0x4a   : > { %6493 = vmatmul.mubr.msk.bf16.gmra.mrb[24].mxu0 %vm1892_vm0, %v6773_v49  ;;  %6533 = vmatmul.mubr.msk.bf16.gmra.mrb[24].mxu1 %vm1892_vm0, %v6774_v50  ;;  %v600_v49 = vld [vmem:[%s13777_s2 + $0x220] sm:$0xff] }
  0x4b   : > { %2235 = vmatprep.mubr.bf16.mxu0 %v13779_v2  ;;  %2635 = vmatprep.mubr.bf16.mxu1 %v13779_v2 }
  0x4c   : > { %849 = vperm.xlu1 %6760, %v563_v51   ;;  %844 = vperm.xlu0 %6759, %v562_v52   ;;  %v6793_v52 = vld [vmem:[%s13776_s1 + $0x80] sm:$0xff]  }
  0x50   : > { %859 = vperm.xlu1 %6760, %v565_v53   ;;  %854 = vperm.xlu0 %6759, %v564_v54   ;;  %v6794_v53 = vld [vmem:[%s13776_s1 + $0x1c0] sm:$0xff]   ;;  %v603_v54 = vld [vmem:[%s13777_s2 + $0x238] sm:$0xff] }
  0x52   : > { %6494 = vmatmul.mubr.msk.bf16.gmra.mrb[28].mxu0 %vm1892_vm0, %v6775_v55  ;;  %6534 = vmatmul.mubr.msk.bf16.gmra.mrb[28].mxu1 %vm1892_vm0, %v6776_v56  ;;  %v602_v55 = vld [vmem:[%s13777_s2 + $0x230] sm:$0xff] }
  0x53   : > { %2245 = vmatprep.mubr.bf16.mxu0 %v13779_v2  ;;  %2645 = vmatprep.mubr.bf16.mxu1 %v13779_v2 }
  0x54   : > { %869 = vperm.xlu1 %6760, %v567_v57   ;;  %864 = vperm.xlu0 %6759, %v566_v58   ;;  %v605_v58 = vld [vmem:[%s13777_s2 + $0x248] sm:$0xff] }
  0x58   : > { %879 = vperm.xlu1 %6760, %v569_v59   ;;  %874 = vperm.xlu0 %6759, %v568_v60   ;;  %v604_v59 = vld [vmem:[%s13777_s2 + $0x240] sm:$0xff] }
  0x5a   : > { %6495 = vmatmul.mubr.msk.bf16.gmra.mrb[32].mxu0 %vm1892_vm0, %v6777_v61  ;;  %6535 = vmatmul.mubr.msk.bf16.gmra.mrb[32].mxu1 %vm1892_vm0, %v6778_v62  ;;  %v6795_v62 = vld [vmem:[%s13776_s1 + $0x88] sm:$0xff]  }
  0x5b   : > { %2255 = vmatprep.mubr.bf16.mxu0 %v13779_v2  ;;  %2655 = vmatprep.mubr.bf16.mxu1 %v13779_v2 }
  0x5c   : > { %889 = vperm.xlu1 %6760, %v571_v63   ;;  %884 = vperm.xlu0 %6759, %v570_v0   ;;  %v6796_v63 = vld [vmem:[%s13776_s1 + $0x1c8] sm:$0xff]   ;;  %v607_v0 = vld [vmem:[%s13777_s2 + $0x258] sm:$0xff] }
  0x60   : > { %899 = vperm.xlu1 %6760, %v573_v1   ;;  %894 = vperm.xlu0 %6759, %v572_v3   ;;  %v606_v1 = vld [vmem:[%s13777_s2 + $0x250] sm:$0xff] }
  0x62   : > { %6496 = vmatmul.mubr.msk.bf16.gmra.mrb[36].mxu0 %vm1892_vm0, %v6779_v4  ;;  %6536 = vmatmul.mubr.msk.bf16.gmra.mrb[36].mxu1 %vm1892_vm0, %v6780_v5  ;;  %v609_v5 = vld [vmem:[%s13777_s2 + $0x268] sm:$0xff] }
  0x63   : > { %2265 = vmatprep.mubr.bf16.mxu0 %v13779_v2  ;;  %2665 = vmatprep.mubr.bf16.mxu1 %v13779_v2 }
  0x64   : > { %909 = vperm.xlu1 %6760, %v575_v6   ;;  %904 = vperm.xlu0 %6759, %v574_v7   ;;  %v608_v6 = vld [vmem:[%s13777_s2 + $0x260] sm:$0xff] }
  0x68   : > { %919 = vperm.xlu1 %6760, %v577_v8   ;;  %914 = vperm.xlu0 %6759, %v576_v9   ;;  %v6797_v9 = vld [vmem:[%s13776_s1 + $0x90] sm:$0xff]  }
  0x6a   : > { %6497 = vmatmul.mubr.msk.bf16.gmra.mrb[40].mxu0 %vm1892_vm0, %v6781_v10  ;;  %6537 = vmatmul.mubr.msk.bf16.gmra.mrb[40].mxu1 %vm1892_vm0, %v6782_v11  ;;  %v6798_v10 = vld [vmem:[%s13776_s1 + $0x1d0] sm:$0xff]   ;;  %v611_v11 = vld [vmem:[%s13777_s2 + $0x278] sm:$0xff] }
  0x6b   : > { %2275 = vmatprep.mubr.bf16.mxu0 %v13779_v2  ;;  %2675 = vmatprep.mubr.bf16.mxu1 %v13779_v2 }
  0x6c   : > { %929 = vperm.xlu1 %6760, %v579_v12   ;;  %924 = vperm.xlu0 %6759, %v578_v13   ;;  %v610_v12 = vld [vmem:[%s13777_s2 + $0x270] sm:$0xff] }
  0x70   : > { %939 = vperm.xlu1 %6760, %v581_v14   ;;  %934 = vperm.xlu0 %6759, %v580_v15   ;;  %v613_v15 = vld [vmem:[%s13777_s2 + $0x288] sm:$0xff] }
  0x72   : > { %6498 = vmatmul.mubr.msk.bf16.gmra.mrb[44].mxu0 %vm1892_vm0, %v6783_v16  ;;  %6538 = vmatmul.mubr.msk.bf16.gmra.mrb[44].mxu1 %vm1892_vm0, %v6784_v17  ;;  %v612_v16 = vld [vmem:[%s13777_s2 + $0x280] sm:$0xff] }
  0x73   : > { %2285 = vmatprep.mubr.bf16.mxu0 %v13779_v2  ;;  %2685 = vmatprep.mubr.bf16.mxu1 %v13779_v2 }
  0x74   : > { %949 = vperm.xlu1 %6760, %v583_v18   ;;  %944 = vperm.xlu0 %6759, %v582_v19   ;;  %v6799_v19 = vld [vmem:[%s13776_s1 + $0x98] sm:$0xff]  }
  0x78   : > { %959 = vperm.xlu1 %6760, %v585_v20   ;;  %954 = vperm.xlu0 %6759, %v584_v21   ;;  %v6800_v20 = vld [vmem:[%s13776_s1 + $0x1d8] sm:$0xff]  }
  0x79   : > { %v615_v21 = vld [vmem:[%s13777_s2 + $0x298] sm:$0xff] }
  0x7a   : > { %6499 = vmatmul.mubr.msk.bf16.gmra.mrb[48].mxu0 %vm1892_vm0, %v6785_v22  ;;  %6539 = vmatmul.mubr.msk.bf16.gmra.mrb[48].mxu1 %vm1892_vm0, %v6786_v23  ;;  %v614_v22 = vld [vmem:[%s13777_s2 + $0x290] sm:$0xff] }
  0x7b   : > { %2295 = vmatprep.mubr.bf16.mxu0 %v13779_v2  ;;  %2695 = vmatprep.mubr.bf16.mxu1 %v13779_v2 }
  0x7c   : > { %969 = vperm.xlu1 %6760, %v587_v24   ;;  %964 = vperm.xlu0 %6759, %v586_v25   ;;  %v617_v25 = vld [vmem:[%s13777_s2 + $0x2a8] sm:$0xff] }
  0x80   : > { %979 = vperm.xlu1 %6760, %v589_v26   ;;  %974 = vperm.xlu0 %6759, %v588_v27   ;;  %v616_v26 = vld [vmem:[%s13777_s2 + $0x2a0] sm:$0xff] }
  0x82   : > { %6500 = vmatmul.mubr.msk.bf16.gmra.mrb[52].mxu0 %vm1892_vm0, %v6787_v28  ;;  %6540 = vmatmul.mubr.msk.bf16.gmra.mrb[52].mxu1 %vm1892_vm0, %v6788_v29  ;;  %v6801_v29 = vld [vmem:[%s13776_s1 + $0xa0] sm:$0xff]  }
  0x83   : > { %2305 = vmatprep.mubr.bf16.mxu0 %v13779_v2  ;;  %2705 = vmatprep.mubr.bf16.mxu1 %v13779_v2 }
  0x84   : > { %989 = vperm.xlu1 %6760, %v591_v30   ;;  %984 = vperm.xlu0 %6759, %v590_v31   ;;  %v6802_v30 = vld [vmem:[%s13776_s1 + $0x1e0] sm:$0xff]   ;;  %v619_v31 = vld [vmem:[%s13777_s2 + $0x2b8] sm:$0xff] }
  0x88   : > { %999 = vperm.xlu1 %6760, %v593_v32   ;;  %994 = vperm.xlu0 %6759, %v592_v33   ;;  %v618_v32 = vld [vmem:[%s13777_s2 + $0x2b0] sm:$0xff] }
  0x8a   : > { %6501 = vmatmul.mubr.msk.bf16.gmra.mrb[56].mxu0 %vm1892_vm0, %v6789_v34  ;;  %6541 = vmatmul.mubr.msk.bf16.gmra.mrb[56].mxu1 %vm1892_vm0, %v6790_v35  ;;  %v621_v35 = vld [vmem:[%s13777_s2 + $0x2c8] sm:$0xff] }
  0x8b   : > { %2315 = vmatprep.mubr.bf16.mxu0 %v13779_v2  ;;  %2715 = vmatprep.mubr.bf16.mxu1 %v13779_v2 }
  0x8c   : > { %1009 = vperm.xlu1 %6760, %v595_v36   ;;  %1004 = vperm.xlu0 %6759, %v594_v37   ;;  %v620_v36 = vld [vmem:[%s13777_s2 + $0x2c0] sm:$0xff] }
  0x8f   : > { %v7903_v40 = vpop.permute.xlu1 %704  ;;  %v7905_v41 = vpop.permute.xlu0 %694 }
  0x90   : > { %1019 = vperm.xlu1 %6760, %v597_v38   ;;  %1014 = vperm.xlu0 %6759, %v596_v39   ;;  %v6803_v39 = vld [vmem:[%s13776_s1 + $0xa8] sm:$0xff]  }
  0x92   : > { %6502 = vmatmul.mubr.msk.bf16.gmra.mrb[60].mxu0 %vm1892_vm0, %v6791_v42  ;;  %6542 = vmatmul.mubr.msk.bf16.gmra.mrb[60].mxu1 %vm1892_vm0, %v6792_v43  ;;  %v6804_v42 = vld [vmem:[%s13776_s1 + $0x1e8] sm:$0xff]   ;;  %v623_v43 = vld [vmem:[%s13777_s2 + $0x2d8] sm:$0xff] }
  0x93   : > { %v7919_v46 = vpop.permute.xlu1 %709  ;;  %v7921_v47 = vpop.permute.xlu0 %699  ;;  %2325 = vmatprep.mubr.bf16.mxu0 %v13779_v2  ;;  %2725 = vmatprep.mubr.bf16.mxu1 %v13779_v2 }
  0x94   : > { %1029 = vperm.xlu1 %6760, %v599_v44   ;;  %1024 = vperm.xlu0 %6759, %v598_v45   ;;  %v622_v44 = vld [vmem:[%s13777_s2 + $0x2d0] sm:$0xff] }
  0x97   : > { %v7933_v50 = vpop.permute.xlu1 %719  ;;  %v7935_v51 = vpop.permute.xlu0 %714 }
  0x98   : > { %1039 = vperm.xlu1 %6760, %v601_v48   ;;  %1034 = vperm.xlu0 %6759, %v600_v49   ;;  %v625_v49 = vld [vmem:[%s13777_s2 + $0x2e8] sm:$0xff] }
  0x9a   : > { %6503 = vmatmul.mubr.msk.bf16.gmra.mrb[64].mxu0 %vm1892_vm0, %v6793_v52  ;;  %6543 = vmatmul.mubr.msk.bf16.gmra.mrb[64].mxu1 %vm1892_vm0, %v6794_v53  ;;  %v624_v52 = vld [vmem:[%s13777_s2 + $0x2e0] sm:$0xff] }
  0x9b   : > { %v7949_v56 = vpop.permute.xlu1 %729  ;;  %v7951_v57 = vpop.permute.xlu0 %724  ;;  %2335 = vmatprep.mubr.bf16.mxu0 %v13779_v2  ;;  %2735 = vmatprep.mubr.bf16.mxu1 %v13779_v2 }
  0x9c   : > { %1049 = vperm.xlu1 %6760, %v603_v54   ;;  %1044 = vperm.xlu0 %6759, %v602_v55   ;;  %v6805_v55 = vld [vmem:[%s13776_s1 + $0xb0] sm:$0xff]  }
  0x9f   : > { %v7963_v60 = vpop.permute.xlu1 %739  ;;  %v7965_v61 = vpop.permute.xlu0 %734 }
  0xa0   : > { %1059 = vperm.xlu1 %6760, %v605_v58   ;;  %1054 = vperm.xlu0 %6759, %v604_v59   ;;  %v6806_v58 = vld [vmem:[%s13776_s1 + $0x1f0] sm:$0xff]   ;;  %v627_v59 = vld [vmem:[%s13777_s2 + $0x2f8] sm:$0xff] }
  0xa2   : > { %6504 = vmatmul.mubr.msk.bf16.gmra.mrb[68].mxu0 %vm1892_vm0, %v6795_v62  ;;  %6544 = vmatmul.mubr.msk.bf16.gmra.mrb[68].mxu1 %vm1892_vm0, %v6796_v63  ;;  %v626_v62 = vld [vmem:[%s13777_s2 + $0x2f0] sm:$0xff] }
  0xa3   : > { %v7979_v3 = vpop.permute.xlu1 %749  ;;  %v7981_v4 = vpop.permute.xlu0 %744  ;;  %2345 = vmatprep.mubr.bf16.mxu0 %v13779_v2  ;;  %2745 = vmatprep.mubr.bf16.mxu1 %v13779_v2 }
  0xa4   : > { %1069 = vperm.xlu1 %6760, %v607_v0   ;;  %1064 = vperm.xlu0 %6759, %v606_v1   ;;  %v629_v1 = vld [vmem:[%s13777_s2 + $0x308] sm:$0xff] }
  0xa7   : > { %v7993_v7 = vpop.permute.xlu1 %759  ;;  %v7995_v8 = vpop.permute.xlu0 %754 }
  0xa8   : > { %1079 = vperm.xlu1 %6760, %v609_v5   ;;  %1074 = vperm.xlu0 %6759, %v608_v6   ;;  %v628_v5 = vld [vmem:[%s13777_s2 + $0x300] sm:$0xff] }
  0xaa   : > { %6505 = vmatmul.mubr.msk.bf16.gmra.mrb[72].mxu0 %vm1892_vm0, %v6797_v9  ;;  %6545 = vmatmul.mubr.msk.bf16.gmra.mrb[72].mxu1 %vm1892_vm0, %v6798_v10  ;;  %v6807_v10 = vld [vmem:[%s13776_s1 + $0xb8] sm:$0xff]  }
  0xab   : > { %v8009_v13 = vpop.permute.xlu1 %769  ;;  %v8011_v14 = vpop.permute.xlu0 %764  ;;  %2355 = vmatprep.mubr.bf16.mxu0 %v13779_v2  ;;  %2755 = vmatprep.mubr.bf16.mxu1 %v13779_v2 }
  0xac   : > { %1089 = vperm.xlu1 %6760, %v611_v11   ;;  %1084 = vperm.xlu0 %6759, %v610_v12   ;;  %v6808_v11 = vld [vmem:[%s13776_s1 + $0x1f8] sm:$0xff]  }
  0xad   : > { %v631_v12 = vld [vmem:[%s13777_s2 + $0x318] sm:$0xff] }
  0xaf   : > { %v8023_v17 = vpop.permute.xlu1 %779  ;;  %v8025_v18 = vpop.permute.xlu0 %774 }
  0xb0   : > { %1099 = vperm.xlu1 %6760, %v613_v15   ;;  %1094 = vperm.xlu0 %6759, %v612_v16   ;;  %v630_v15 = vld [vmem:[%s13777_s2 + $0x310] sm:$0xff] }
  0xb2   : > { %6506 = vmatmul.mubr.msk.bf16.gmra.mrb[76].mxu0 %vm1892_vm0, %v6799_v19  ;;  %6546 = vmatmul.mubr.msk.bf16.gmra.mrb[76].mxu1 %vm1892_vm0, %v6800_v20  ;;  %v633_v20 = vld [vmem:[%s13777_s2 + $0x328] sm:$0xff] }
  0xb3   : > { %v8039_v23 = vpop.permute.xlu1 %789  ;;  %v8041_v24 = vpop.permute.xlu0 %784  ;;  %2365 = vmatprep.mubr.bf16.mxu0 %v13779_v2  ;;  %2765 = vmatprep.mubr.bf16.mxu1 %v13779_v2 }
  0xb4   : > { %1109 = vperm.xlu1 %6760, %v615_v21   ;;  %1104 = vperm.xlu0 %6759, %v614_v22   ;;  %v632_v21 = vld [vmem:[%s13777_s2 + $0x320] sm:$0xff] }
  0xb7   : > { %v8053_v27 = vpop.permute.xlu1 %799  ;;  %v8055_v28 = vpop.permute.xlu0 %794 }
  0xb8   : > { %14204 = vst [vmem:[#allocation3_spill] sm:$0xff] %v8053_v27  ;;  %14205 = vst [vmem:[#allocation4_spill] sm:$0xff] %v8055_v28  ;;  %1119 = vperm.xlu1 %6760, %v617_v25   ;;  %1114 = vperm.xlu0 %6759, %v616_v26   ;;  %v6809_v26 = vld [vmem:[%s13776_s1 + $0xc0] sm:$0xff]  }
  0xba   : > { %6507 = vmatmul.mubr.msk.bf16.gmra.mrb[80].mxu0 %vm1892_vm0, %v6801_v29  ;;  %6547 = vmatmul.mubr.msk.bf16.gmra.mrb[80].mxu1 %vm1892_vm0, %v6802_v30  ;;  %v6810_v29 = vld [vmem:[%s13776_s1 + $0x200] sm:$0xff]   ;;  %v635_v30 = vld [vmem:[%s13777_s2 + $0x338] sm:$0xff] }
  0xbb   : > { %v8069_v33 = vpop.permute.xlu1 %809  ;;  %v8071_v34 = vpop.permute.xlu0 %804  ;;  %2375 = vmatprep.mubr.bf16.mxu0 %v13779_v2  ;;  %2775 = vmatprep.mubr.bf16.mxu1 %v13779_v2 }
  0xbc   : > { %14206 = vst [vmem:[#allocation5_spill] sm:$0xff] %v8069_v33  ;;  %14207 = vst [vmem:[#allocation6_spill] sm:$0xff] %v8071_v34  ;;  %1129 = vperm.xlu1 %6760, %v619_v31   ;;  %1124 = vperm.xlu0 %6759, %v618_v32   ;;  %v634_v31 = vld [vmem:[%s13777_s2 + $0x330] sm:$0xff] }
  0xbf   : > { %v8083_v37 = vpop.permute.xlu1 %819  ;;  %v8085_v38 = vpop.permute.xlu0 %814 }
  0xc0   : > { %14208 = vst [vmem:[#allocation7_spill] sm:$0xff] %v8083_v37  ;;  %14209 = vst [vmem:[#allocation8_spill] sm:$0xff] %v8085_v38  ;;  %1139 = vperm.xlu1 %6760, %v621_v35   ;;  %1134 = vperm.xlu0 %6759, %v620_v36   ;;  %v637_v36 = vld [vmem:[%s13777_s2 + $0x348] sm:$0xff] }
  0xc2   : > { %6508 = vmatmul.mubr.msk.bf16.gmra.mrb[84].mxu0 %vm1892_vm0, %v6803_v39  ;;  %6548 = vmatmul.mubr.msk.bf16.gmra.mrb[84].mxu1 %vm1892_vm0, %v6804_v42  ;;  %v636_v39 = vld [vmem:[%s13777_s2 + $0x340] sm:$0xff] }
  0xc3   : > { %v8099_v45 = vpop.permute.xlu1 %829  ;;  %v8101_v48 = vpop.permute.xlu0 %824  ;;  %2385 = vmatprep.mubr.bf16.mxu0 %v13779_v2  ;;  %2785 = vmatprep.mubr.bf16.mxu1 %v13779_v2 }
  0xc4   : > { %14210 = vst [vmem:[#allocation9_spill] sm:$0xff] %v8099_v45  ;;  %14211 = vst [vmem:[#allocation10_spill] sm:$0xff] %v8101_v48  ;;  %1149 = vperm.xlu1 %6760, %v623_v43   ;;  %1144 = vperm.xlu0 %6759, %v622_v44   ;;  %v6811_v44 = vld [vmem:[%s13776_s1 + $0xc8] sm:$0xff]  }
  0xc7   : > { %v8113_v53 = vpop.permute.xlu1 %839  ;;  %v8115_v54 = vpop.permute.xlu0 %834 }
  0xc8   : > { %14212 = vst [vmem:[#allocation11_spill] sm:$0xff] %v8113_v53  ;;  %14213 = vst [vmem:[#allocation12_spill] sm:$0xff] %v8115_v54  ;;  %1159 = vperm.xlu1 %6760, %v625_v49   ;;  %1154 = vperm.xlu0 %6759, %v624_v52   ;;  %v6812_v49 = vld [vmem:[%s13776_s1 + $0x208] sm:$0xff]   ;;  %v639_v52 = vld [vmem:[%s13777_s2 + $0x358] sm:$0xff] }
  0xca   : > { %6509 = vmatmul.mubr.msk.bf16.gmra.mrb[88].mxu0 %vm1892_vm0, %v6805_v55  ;;  %6549 = vmatmul.mubr.msk.bf16.gmra.mrb[88].mxu1 %vm1892_vm0, %v6806_v58  ;;  %v638_v55 = vld [vmem:[%s13777_s2 + $0x350] sm:$0xff] }
  0xcb   : > { %v8129_v63 = vpop.permute.xlu1 %849  ;;  %v8131_v0 = vpop.permute.xlu0 %844  ;;  %2395 = vmatprep.mubr.bf16.mxu0 %v13779_v2  ;;  %2795 = vmatprep.mubr.bf16.mxu1 %v13779_v2 }
  0xcc   : > { %14214 = vst [vmem:[#allocation13_spill] sm:$0xff] %v8129_v63  ;;  %14215 = vst [vmem:[#allocation14_spill] sm:$0xff] %v8131_v0  ;;  %1169 = vperm.xlu1 %6760, %v627_v59   ;;  %1164 = vperm.xlu0 %6759, %v626_v62   ;;  %v641_v62 = vld [vmem:[%s13777_s2 + $0x368] sm:$0xff] }
  0xcf   : > { %v8143_v6 = vpop.permute.xlu1 %859  ;;  %v8145_v9 = vpop.permute.xlu0 %854 }
  0xd0   : > { %14216 = vst [vmem:[#allocation15_spill] sm:$0xff] %v8143_v6  ;;  %14217 = vst [vmem:[#allocation16_spill] sm:$0xff] %v8145_v9  ;;  %1179 = vperm.xlu1 %6760, %v629_v1   ;;  %1174 = vperm.xlu0 %6759, %v628_v5   ;;  %v640_v1 = vld [vmem:[%s13777_s2 + $0x360] sm:$0xff] }
  0xd2   : > { %6510 = vmatmul.mubr.msk.bf16.gmra.mrb[92].mxu0 %vm1892_vm0, %v6807_v10  ;;  %6550 = vmatmul.mubr.msk.bf16.gmra.mrb[92].mxu1 %vm1892_vm0, %v6808_v11  ;;  %v6813_v11 = vld [vmem:[%s13776_s1 + $0xd0] sm:$0xff]  }
  0xd3   : > { %v8159_v16 = vpop.permute.xlu1 %869  ;;  %v8161_v19 = vpop.permute.xlu0 %864  ;;  %2405 = vmatprep.mubr.bf16.mxu0 %v13779_v2  ;;  %2805 = vmatprep.mubr.bf16.mxu1 %v13779_v2 }
  0xd4   : > { %14218 = vst [vmem:[#allocation17_spill] sm:$0xff] %v8159_v16  ;;  %14219 = vst [vmem:[#allocation18_spill] sm:$0xff] %v8161_v19  ;;  %1189 = vperm.xlu1 %6760, %v631_v12   ;;  %1184 = vperm.xlu0 %6759, %v630_v15   ;;  %v6814_v12 = vld [vmem:[%s13776_s1 + $0x210] sm:$0xff]   ;;  %v643_v15 = vld [vmem:[%s13777_s2 + $0x378] sm:$0xff] }
  0xd7   : > { %v8173_v22 = vpop.permute.xlu1 %879  ;;  %v8175_v25 = vpop.permute.xlu0 %874 }
  0xd8   : > { %14220 = vst [vmem:[#allocation19_spill] sm:$0xff] %v8173_v22  ;;  %14221 = vst [vmem:[#allocation20_spill] sm:$0xff] %v8175_v25  ;;  %1199 = vperm.xlu1 %6760, %v633_v20   ;;  %1194 = vperm.xlu0 %6759, %v632_v21   ;;  %v642_v20 = vld [vmem:[%s13777_s2 + $0x370] sm:$0xff] }
  0xda   : > { %6511 = vmatmul.mubr.msk.bf16.gmra.mrb[96].mxu0 %vm1892_vm0, %v6809_v26  ;;  %6551 = vmatmul.mubr.msk.bf16.gmra.mrb[96].mxu1 %vm1892_vm0, %v6810_v29  ;;  %v645_v29 = vld [vmem:[%s13777_s2 + $0x388] sm:$0xff] }
  0xdb   : > { %v8189_v32 = vpop.permute.xlu1 %889  ;;  %v8191_v35 = vpop.permute.xlu0 %884  ;;  %2415 = vmatprep.mubr.bf16.mxu0 %v13779_v2  ;;  %2815 = vmatprep.mubr.bf16.mxu1 %v13779_v2 }
  0xdc   : > { %14222 = vst [vmem:[#allocation21_spill] sm:$0xff] %v8189_v32  ;;  %14223 = vst [vmem:[#allocation22_spill] sm:$0xff] %v8191_v35  ;;  %1209 = vperm.xlu1 %6760, %v635_v30   ;;  %1204 = vperm.xlu0 %6759, %v634_v31   ;;  %v644_v30 = vld [vmem:[%s13777_s2 + $0x380] sm:$0xff] }
  0xdf   : > { %v8203_v42 = vpop.permute.xlu1 %899  ;;  %v8205_v43 = vpop.permute.xlu0 %894 }
  0xe0   : > { %14224 = vst [vmem:[#allocation23_spill] sm:$0xff] %v8203_v42  ;;  %14225 = vst [vmem:[#allocation24_spill] sm:$0xff] %v8205_v43  ;;  %1219 = vperm.xlu1 %6760, %v637_v36   ;;  %1214 = vperm.xlu0 %6759, %v636_v39  }
  0xe2   : > { %6512 = vmatmul.mubr.msk.bf16.gmra.mrb[100].mxu0 %vm1892_vm0, %v6811_v44  ;;  %6552 = vmatmul.mubr.msk.bf16.gmra.mrb[100].mxu1 %vm1892_vm0, %v6812_v49  ;;  %v6815_v49 = vld [vmem:[%s13776_s1 + $0xd8] sm:$0xff]  }
  0xe3   : > { %v8219_v58 = vpop.permute.xlu1 %909  ;;  %v8221_v59 = vpop.permute.xlu0 %904  ;;  %2425 = vmatprep.mubr.bf16.mxu0 %v13779_v2  ;;  %2825 = vmatprep.mubr.bf16.mxu1 %v13779_v2 }
  0xe4   : > { %14226 = vst [vmem:[#allocation25_spill] sm:$0xff] %v8219_v58  ;;  %14227 = vst [vmem:[#allocation26_spill] sm:$0xff] %v8221_v59  ;;  %1229 = vperm.xlu1 %6760, %v639_v52   ;;  %1224 = vperm.xlu0 %6759, %v638_v55   ;;  %v6816_v52 = vld [vmem:[%s13776_s1 + $0x218] sm:$0xff]  }
  0xe7   : > { %v8233_v5 = vpop.permute.xlu1 %919  ;;  %v8235_v10 = vpop.permute.xlu0 %914 }
  0xe8   : > { %14228 = vst [vmem:[#allocation27_spill] sm:$0xff] %v8233_v5  ;;  %14229 = vst [vmem:[#allocation28_spill] sm:$0xff] %v8235_v10  ;;  %1239 = vperm.xlu1 %6760, %v641_v62   ;;  %1234 = vperm.xlu0 %6759, %v640_v1   ;;  %v6818_v5 = vld [vmem:[%s13776_s1 + $0x220] sm:$0xff]  }
  0xea   : > { %6513 = vmatmul.mubr.msk.bf16.gmra.mrb[104].mxu0 %vm1892_vm0, %v6813_v11  ;;  %6553 = vmatmul.mubr.msk.bf16.gmra.mrb[104].mxu1 %vm1892_vm0, %v6814_v12  ;;  %v647_v11 = vld [vmem:[%s13777_s2 + $0x398] sm:$0xff]  ;;  %v646_v12 = vld [vmem:[%s13777_s2 + $0x390] sm:$0xff] }
  0xeb   : > { %v8249_v21 = vpop.permute.xlu1 %929  ;;  %v8251_v26 = vpop.permute.xlu0 %924  ;;  %2435 = vmatprep.mubr.bf16.mxu0 %v13779_v2  ;;  %2835 = vmatprep.mubr.bf16.mxu1 %v13779_v2 }
  0xec   : > { %14230 = vst [vmem:[#allocation29_spill] sm:$0xff] %v8249_v21  ;;  %14231 = vst [vmem:[#allocation30_spill] sm:$0xff] %v8251_v26  ;;  %1249 = vperm.xlu1 %6760, %v643_v15   ;;  %1244 = vperm.xlu0 %6759, %v642_v20  }
  0xed   : > { %v2167_v31 = vpop.f32.mrb[0].mxu0  ;;  %v8263_v36 = vpop.f32.mrb[0].mxu1 }
  0xee   : > { %v2169_v55 = vpop.f32.mrb[1].mxu0  ;;  %v8275_v62 = vpop.f32.mrb[1].mxu1  ;;  %v8286_v20 = vadd.f32 %v2167_v31, %v7905_v41 }
  0xef   : > { %v8265_v39 = vpop.permute.xlu1 %939  ;;  %v8267_v44 = vpop.permute.xlu0 %934 }
  0xf0   : > { %14232 = vst [vmem:[#allocation31_spill] sm:$0xff] %v8265_v39  ;;  %14233 = vst [vmem:[#allocation32_spill] sm:$0xff] %v8267_v44  ;;  %1259 = vperm.xlu1 %6760, %v645_v29   ;;  %1254 = vperm.xlu0 %6759, %v644_v30   ;;  %v2171_v1 = vpop.f32.mrb[2].mxu0  ;;  %v8283_v15 = vpop.f32.mrb[2].mxu1  ;;  %v8294_v39 = vadd.f32 %v2169_v55, %v7905_v41  ;;  %v648_v55 = vld [vmem:[%s13777_s2 + $0x3a0] sm:$0xff] }
  0xf1   : > { %v8289_v2 = vadd.f32 %v2171_v1, %v7921_v47  ;;  %v2173_v29 = vpop.f32.mrb[3].mxu0  ;;  %v8291_v30 = vpop.f32.mrb[3].mxu1  ;;  %v14236_v1 = vmov 0  }
  0xf2   : > { %v8297_v44 = vadd.f32 %v2173_v29, %v7921_v47  ;;  %6514 = vmatmul.mubr.msk.bf16.gmra.mrb[108].mxu0 %vm1892_vm0, %v6815_v49  ;;  %6554 = vmatmul.mubr.msk.bf16.gmra.mrb[108].mxu1 %vm1892_vm0, %v6816_v52  ;;  %v649_v47 = vld [vmem:[%s13777_s2 + $0x3a8] sm:$0xff] }
  0xf3   : > { %v8299_v21 = vpop.permute.xlu1 %949  ;;  %v8301_v26 = vpop.permute.xlu0 %944  ;;  %v2966_v31 = vpack.c.bf16 %v8289_v2, %v8286_v20  ;;  %2445 = vmatprep.mubr.bf16.mxu0 %v14236_v1  ;;  %2845 = vmatprep.mubr.bf16.mxu1 %v14236_v1 }
  0xf4   : > { %14234 = vst [vmem:[#allocation33_spill] sm:$0xff] %v8299_v21  ;;  %14235 = vst [vmem:[#allocation34_spill] sm:$0xff] %v8301_v26  ;;  %1269 = vperm.xlu1 %6760, %v647_v11   ;;  %1264 = vperm.xlu0 %6759, %v646_v12   ;;  %v2967_v41 = vpack.c.bf16 %v8297_v44, %v8294_v39  ;;  %v6817_v26 = vld [vmem:[%s13776_s1 + $0xe0] sm:$0xff]  }
  0xf5   : > { %v6567_v49 = vmul.bf16 3216621497, %v2966_v31  ;;  %v2177_v52 = vpop.f32.mrb[4].mxu0  ;;  %v8317_v29 = vpop.f32.mrb[4].mxu1 }
  0xf6   : > { %v6568_v11 = vmul.bf16 3216621497, %v2967_v41  ;;  %v2179_v10 = vpop.f32.mrb[5].mxu0  ;;  %v8329_v31 = vpop.f32.mrb[5].mxu1  ;;  %v8340_v59 = vadd.f32 %v2177_v52, %v7903_v40 }
  0xf7   : > { %v8319_v12 = vpop.permute.xlu1 %959  ;;  %v8321_v21 = vpop.permute.xlu0 %954  ;;  %6841 = vpow.bf16 %v6567_v49 }
  0xf8   : > { %14237 = vst [vmem:[#allocation35_spill] sm:$0xff] %v8319_v12  ;;  %14238 = vst [vmem:[#allocation36_spill] sm:$0xff] %v8321_v21  ;;  %1279 = vperm.xlu1 %6760, %v649_v47   ;;  %1274 = vperm.xlu0 %6759, %v648_v55   ;;  %6843 = vpow.bf16 %v6568_v11  ;;  %v2181_v41 = vpop.f32.mrb[6].mxu0  ;;  %v651_v12 = vld [vmem:[%s13777_s2 + $0x3b8] sm:$0xff]  ;;  %v650_v21 = vld [vmem:[%s13777_s2 + $0x3b0] sm:$0xff]  ;;  %v8337_v58 = vpop.f32.mrb[6].mxu1  ;;  %v8348_v11 = vadd.f32 %v2179_v10, %v7903_v40 }
  0xf9   : > { %v8343_v47 = vadd.f32 %v2181_v41, %v7919_v46  ;;  %v2183_v55 = vpop.f32.mrb[7].mxu0  ;;  %v8345_v49 = vpop.f32.mrb[7].mxu1  ;;  %v652_v10 = vld [vmem:[%s13777_s2 + $0x3c0] sm:$0xff] }
  0xfa   : > { %v8351_v42 = vadd.f32 %v2183_v55, %v7919_v46  ;;  %6515 = vmatmul.mubr.msk.bf16.gmra.mrb[112].mxu0 %vm1892_vm0, %v6817_v26  ;;  %6555 = vmatmul.mubr.msk.bf16.gmra.mrb[112].mxu1 %vm1892_vm0, %v6818_v5  ;;  %v653_v46 = vld [vmem:[%s13777_s2 + $0x3c8] sm:$0xff] }
  0xfb   : > { %v8353_v43 = vpop.permute.xlu1 %969  ;;  %v8355_v32 = vpop.permute.xlu0 %964  ;;  %v2968_v52 = vpack.c.bf16 %v8343_v47, %v8340_v59  ;;  %2455 = vmatprep.mubr.bf16.mxu0 %v14236_v1  ;;  %2855 = vmatprep.mubr.bf16.mxu1 %v14236_v1 }
  0xfc   : > { %14239 = vst [vmem:[#allocation37_spill] sm:$0xff] %v8353_v43  ;;  %14240 = vst [vmem:[#allocation38_spill] sm:$0xff] %v8355_v32  ;;  %1289 = vperm.xlu1 %6760, %v651_v12   ;;  %1284 = vperm.xlu0 %6759, %v650_v21   ;;  %v2969_v40 = vpack.c.bf16 %v8351_v42, %v8348_v11  ;;  %v6819_v43 = vld [vmem:[%s13776_s1 + $0xe8] sm:$0xff]  }
  0xfd   : > { %v6569_v5 = vmul.bf16 3216621497, %v2968_v52  ;;  %v2187_v26 = vpop.f32.mrb[8].mxu0  ;;  %v8371_v41 = vpop.f32.mrb[8].mxu1  ;;  %v6820_v32 = vld [vmem:[%s13776_s1 + $0x228] sm:$0xff]  }
  0xfe   : > { %v6570_v21 = vmul.bf16 3216621497, %v2969_v40  ;;  %v2189_v35 = vpop.f32.mrb[9].mxu0  ;;  %v8383_v52 = vpop.f32.mrb[9].mxu1  ;;  %v8394_v25 = vadd.f32 %v2187_v26, %v7935_v51 }
  0xff   : > { %v8373_v12 = vpop.permute.xlu1 %979  ;;  %v8375_v55 = vpop.permute.xlu0 %974  ;;  %6845 = vpow.bf16 %v6569_v5  ;;  %v8402_v16 = vadd.f32 %v2189_v35, %v7935_v51  ;;  %v657_v35 = vld [vmem:[%s13777_s2 + $0x3e8] sm:$0xff] }
 0x100   : > { %14241 = vst [vmem:[#allocation39_spill] sm:$0xff] %v8373_v12  ;;  %14242 = vst [vmem:[#allocation40_spill] sm:$0xff] %v8375_v55  ;;  %1299 = vperm.xlu1 %6760, %v653_v46   ;;  %1294 = vperm.xlu0 %6759, %v652_v10   ;;  %6847 = vpow.bf16 %v6570_v21  ;;  %v2191_v40 = vpop.f32.mrb[10].mxu0  ;;  %v655_v12 = vld [vmem:[%s13777_s2 + $0x3d8] sm:$0xff]  ;;  %v654_v55 = vld [vmem:[%s13777_s2 + $0x3d0] sm:$0xff]  ;;  %v8391_v22 = vpop.f32.mrb[10].mxu1 }
 0x101   : > { %v8397_v46 = vadd.f32 %v2191_v40, %v7933_v50  ;;  %v2193_v10 = vpop.f32.mrb[11].mxu0  ;;  %v8399_v5 = vpop.f32.mrb[11].mxu1 }
 0x102   : > { %v6842_v21 = vpop.eup %6841  ;;  %v8405_v19 = vadd.f32 %v2193_v10, %v7933_v50  ;;  %6516 = vmatmul.mubr.msk.bf16.gmra.mrb[116].mxu0 %vm1892_vm0, %v6819_v43  ;;  %6556 = vmatmul.mubr.msk.bf16.gmra.mrb[116].mxu1 %vm1892_vm0, %v6820_v32  ;;  %v656_v43 = vld [vmem:[%s13777_s2 + $0x3e0] sm:$0xff] }
 0x103   : > { %v8407_v6 = vpop.permute.xlu1 %989  ;;  %v8409_v9 = vpop.permute.xlu0 %984  ;;  %v3766_v40 = vadd.bf16 1065369472, %v6842_v21  ;;  %v2970_v63 = vpack.c.bf16 %v8397_v46, %v8394_v25  ;;  %2465 = vmatprep.mubr.bf16.mxu0 %v14236_v1  ;;  %2865 = vmatprep.mubr.bf16.mxu1 %v14236_v1 }
 0x104   : > { %14243 = vst [vmem:[#allocation41_spill] sm:$0xff] %v8407_v6  ;;  %14244 = vst [vmem:[#allocation42_spill] sm:$0xff] %v8409_v9  ;;  %v6844_v26 = vpop.eup %6843  ;;  %1309 = vperm.xlu1 %6760, %v655_v12   ;;  %1304 = vperm.xlu0 %6759, %v654_v55   ;;  %v2971_v50 = vpack.c.bf16 %v8405_v19, %v8402_v16  ;;  %v6821_v6 = vld [vmem:[%s13776_s1 + $0xf0] sm:$0xff]  }
 0x105   : > { %v3767_v51 = vadd.bf16 1065369472, %v6844_v26  ;;  %6849 = vrcp.bf16 %v3766_v40  ;;  %v6571_v32 = vmul.bf16 3216621497, %v2970_v63  ;;  %v2197_v12 = vpop.f32.mrb[12].mxu0  ;;  %v8425_v55 = vpop.f32.mrb[12].mxu1 }
 0x106   : > { %v6572_v10 = vmul.bf16 3216621497, %v2971_v50  ;;  %v6822_v9 = vld [vmem:[%s13776_s1 + $0x230] sm:$0xff]   ;;  %v2199_v40 = vpop.f32.mrb[13].mxu0  ;;  %v8437_v63 = vpop.f32.mrb[13].mxu1  ;;  %v659_v50 = vld [vmem:[%s13777_s2 + $0x3f8] sm:$0xff]  ;;  %v8448_v0 = vadd.f32 %v2197_v12, %v7951_v57 }
 0x107   : > { %6851 = vrcp.bf16 %v3767_v51  ;;  %v8427_v21 = vpop.permute.xlu1 %999  ;;  %v8429_v26 = vpop.permute.xlu0 %994  ;;  %v8456_v53 = vadd.f32 %v2199_v40, %v7951_v57  ;;  %v661_v40 = vld [vmem:[%s13777_s2 + $0x408] sm:$0xff] }
 0x108   : > { %14245 = vst [vmem:[#allocation43_spill] sm:$0xff] %v8427_v21  ;;  %14246 = vst [vmem:[#allocation44_spill] sm:$0xff] %v8429_v26  ;;  %6853 = vpow.bf16 %v6571_v32  ;;  %1319 = vperm.xlu1 %6760, %v657_v35   ;;  %1314 = vperm.xlu0 %6759, %v656_v43   ;;  %v2201_v51 = vpop.f32.mrb[14].mxu0  ;;  %v658_v21 = vld [vmem:[%s13777_s2 + $0x3f0] sm:$0xff]  ;;  %v8445_v26 = vpop.f32.mrb[14].mxu1 }
 0x109   : > { %6855 = vpow.bf16 %v6572_v10  ;;  %v8451_v35 = vadd.f32 %v2201_v51, %v7949_v56  ;;  %v2203_v43 = vpop.f32.mrb[15].mxu0  ;;  %v8453_v32 = vpop.f32.mrb[15].mxu1 }
 0x10a   : > { %14247 = vst [vmem:[#allocation45_spill] sm:$0xff] %v8453_v32  ;;  %v6846_v10 = vpop.eup %6845  ;;  %v8459_v54 = vadd.f32 %v2203_v43, %v7949_v56  ;;  %6517 = vmatmul.mubr.msk.bf16.gmra.mrb[120].mxu0 %vm1892_vm0, %v6821_v6  ;;  %6557 = vmatmul.mubr.msk.bf16.gmra.mrb[120].mxu1 %vm1892_vm0, %v6822_v9  ;;  %v660_v6 = vld [vmem:[%s13777_s2 + $0x400] sm:$0xff] }
 0x10b   : > { %v8461_v45 = vpop.permute.xlu1 %1009  ;;  %v8463_v48 = vpop.permute.xlu0 %1004  ;;  %v3768_v51 = vadd.bf16 1065369472, %v6846_v10  ;;  %v2972_v37 = vpack.c.bf16 %v8451_v35, %v8448_v0  ;;  %2475 = vmatprep.mubr.bf16.mxu0 %v14236_v1  ;;  %2875 = vmatprep.mubr.bf16.mxu1 %v14236_v1 }
 0x10c   : > { %14248 = vst [vmem:[#allocation46_spill] sm:$0xff] %v8461_v45  ;;  %14249 = vst [vmem:[#allocation47_spill] sm:$0xff] %v8463_v48  ;;  %v6848_v12 = vpop.eup %6847  ;;  %1329 = vperm.xlu1 %6760, %v659_v50   ;;  %1324 = vperm.xlu0 %6759, %v658_v21   ;;  %v2973_v56 = vpack.c.bf16 %v8459_v54, %v8456_v53  ;;  %v6823_v45 = vld [vmem:[%s13776_s1 + $0xf8] sm:$0xff]  }
 0x10d   : > { %v3769_v57 = vadd.bf16 1065369472, %v6848_v12  ;;  %6857 = vrcp.bf16 %v3768_v51  ;;  %v6573_v9 = vmul.bf16 3216621497, %v2972_v37  ;;  %v2207_v50 = vpop.f32.mrb[16].mxu0  ;;  %v8479_v21 = vpop.f32.mrb[16].mxu1 }
 0x10e   : > { %14250 = vst [vmem:[#allocation48_spill] sm:$0xff] %v8479_v21  ;;  %v6574_v43 = vmul.bf16 3216621497, %v2973_v56  ;;  %v6824_v48 = vld [vmem:[%s13776_s1 + $0x238] sm:$0xff]   ;;  %v2209_v51 = vpop.f32.mrb[17].mxu0  ;;  %v8491_v37 = vpop.f32.mrb[17].mxu1 }
 0x10f   : > { %6859 = vrcp.bf16 %v3769_v57  ;;  %v8481_v10 = vpop.permute.xlu1 %1019  ;;  %v8483_v12 = vpop.permute.xlu0 %1014  ;;  %14253 = vst [vmem:[#allocation51_spill] sm:$0xff] %v8491_v37  ;;  %v8510_v21 = vadd.f32 %v2209_v51, %v7965_v61 }
 0x110   : > { %14251 = vst [vmem:[#allocation49_spill] sm:$0xff] %v8481_v10  ;;  %14252 = vst [vmem:[#allocation50_spill] sm:$0xff] %v8483_v12  ;;  %6861 = vpow.bf16 %v6573_v9  ;;  %1339 = vperm.xlu1 %6760, %v661_v40   ;;  %1334 = vperm.xlu0 %6759, %v660_v6   ;;  %v6850_v57 = vpop.eup %6849  ;;  %v2211_v56 = vpop.f32.mrb[18].mxu0  ;;  %v663_v10 = vld [vmem:[%s13777_s2 + $0x418] sm:$0xff]  ;;  %v662_v12 = vld [vmem:[%s13777_s2 + $0x410] sm:$0xff]  ;;  %v8502_v40 = vadd.f32 %v2207_v50, %v7965_v61 }
 0x111   : > { %6863 = vpow.bf16 %v6574_v43  ;;  %v8499_v38 = vpop.f32.mrb[18].mxu1  ;;  %v3927_v9 = vmul.bf16 1065369472, %v6850_v57  ;;  %v8505_v6 = vadd.f32 %v2211_v56, %v7963_v60  ;;  %v2213_v43 = vpop.f32.mrb[19].mxu0  ;;  %14257 = vst [vmem:[#allocation55_spill] sm:$0xff] %v8510_v21 }
 0x112   : > { %14254 = vst [vmem:[#allocation52_spill] sm:$0xff] %v8499_v38  ;;  %v6852_v33 = vpop.eup %6851  ;;  %14255 = vst [vmem:[#allocation53_spill] sm:$0xff] %v8502_v40  ;;  %v8507_v34 = vpop.f32.mrb[19].mxu1  ;;  %v8513_v28 = vadd.f32 %v2213_v43, %v7963_v60  ;;  %6518 = vmatmul.mubr.msk.bf16.gmra.mrb[124].mxu0 %vm1892_vm0, %v6823_v45  ;;  %6558 = vmatmul.mubr.msk.bf16.gmra.mrb[124].mxu1 %vm1892_vm0, %v6824_v48  ;;  %v665_v45 = vld [vmem:[%s13777_s2 + $0x428] sm:$0xff]  ;;  %v664_v48 = vld [vmem:[%s13777_s2 + $0x420] sm:$0xff] }
 0x113   : > { %14256 = vst [vmem:[#allocation54_spill] sm:$0xff] %v8507_v34  ;;  %v6854_v27 = vpop.eup %6853  ;;  %v3929_v37 = vmul.bf16 1065369472, %v6852_v33  ;;  %v8515_v38 = vpop.permute.xlu1 %1029  ;;  %v4248_v56 = vunpack.c.h.bf16 %v3927_v9  ;;  %v2974_v33 = vpack.c.bf16 %v8505_v6, %v8502_v40  ;;  %v4246_v61 = vunpack.c.l.bf16 %v3927_v9  ;;  %2485 = vmatprep.mubr.bf16.mxu0 %v14236_v1  ;;  %2885 = vmatprep.mubr.bf16.mxu1 %v14236_v1 }
 0x114   : > { %14258 = vst [vmem:[#allocation56_spill] sm:$0xff] %v8515_v38  ;;  %v8517_v57 = vpop.permute.xlu0 %1024  ;;  %v6856_v50 = vpop.eup %6855  ;;  %v3770_v32 = vadd.bf16 1065369472, %v6854_v27  ;;  %1349 = vperm.xlu1 %6760, %v663_v10   ;;  %1344 = vperm.xlu0 %6759, %v662_v12   ;;  %v2975_v43 = vpack.c.bf16 %v8513_v28, %v8510_v21 }
 0x115   : > { %14259 = vst [vmem:[#allocation57_spill] sm:$0xff] %v8517_v57  ;;  %v4249_v51 = vunpack.c.h.bf16 %v3929_v37  ;;  %v3771_v60 = vadd.bf16 1065369472, %v6856_v50  ;;  %v4247_v27 = vunpack.c.l.bf16 %v3929_v37  ;;  %v4568_v10 = vmul.f32 %v4248_v56, %v8289_v2  ;;  %v2217_v9 = vpop.f32.mrb[20].mxu0  ;;  %v8534_v50 = vpop.f32.mrb[20].mxu1  ;;  %v6825_v37 = vld [vmem:[%s13776_s1 + $0x100] sm:$0xff]  }
 0x116   : > { %6865 = vrcp.bf16 %v3770_v32  ;;  %v6575_v12 = vmul.bf16 3216621497, %v2974_v33  ;;  %14260 = vst [vmem:[#allocation58_spill] sm:$0xff] %v8534_v50  ;;  %v4566_v38 = vmul.f32 %v4246_v61, %v8286_v20  ;;  %v6576_v21 = vmul.bf16 3216621497, %v2975_v43  ;;  %v6826_v2 = vld [vmem:[%s13776_s1 + $0x240] sm:$0xff]  }
 0x117   : > { %v4569_v57 = vmul.f32 %v4249_v51, %v8297_v44  ;;  %6867 = vrcp.bf16 %v3771_v60  ;;  %v8538_v40 = vpop.permute.xlu1 %1039  ;;  %v2219_v32 = vpop.f32.mrb[21].mxu0  ;;  %v4567_v44 = vmul.f32 %v4247_v27, %v8294_v39  ;;  %v667_v61 = vld [vmem:[%s13777_s2 + $0x438] sm:$0xff]  ;;  %v666_v51 = vld [vmem:[%s13777_s2 + $0x430] sm:$0xff] }
 0x118   : > { %14261 = vst [vmem:[#allocation59_spill] sm:$0xff] %v8538_v40  ;;  %v8540_v34 = vpop.permute.xlu0 %1034  ;;  %6869 = vpow.bf16 %v6575_v12  ;;  %1359 = vperm.xlu1 %6760, %v665_v45   ;;  %1354 = vperm.xlu0 %6759, %v664_v48   ;;  %v8548_v20 = vpop.f32.mrb[21].mxu1  ;;  %v8562_v12 = vadd.f32 %v2217_v9, %v7981_v4  ;;  %v8572_v50 = vadd.f32 %v2219_v32, %v7981_v4 }
 0x119   : > { %14262 = vst [vmem:[#allocation60_spill] sm:$0xff] %v8540_v34  ;;  %14263 = vst [vmem:[#allocation61_spill] sm:$0xff] %v8548_v20  ;;  %v6858_v56 = vpop.eup %6857  ;;  %6871 = vpow.bf16 %v6576_v21  ;;  %v2221_v33 = vpop.f32.mrb[22].mxu0  ;;  %v8559_v43 = vadd.f32 %v4569_v57, %v4568_v10  ;;  %v8569_v40 = vadd.f32 %v4567_v44, %v4566_v38 }
 0x11a   : > { %v8557_v60 = vpop.f32.mrb[22].mxu1  ;;  %v6860_v45 = vpop.eup %6859  ;;  %v3931_v48 = vmul.bf16 1065369472, %v6858_v56  ;;  %14265 = vst [vmem:[#allocation63_spill] sm:$0xff] %v8562_v12  ;;  %v8565_v39 = vadd.f32 %v2221_v33, %v7979_v3  ;;  %14267 = vst [vmem:[#allocation65_spill] sm:$0xff] %v8572_v50  ;;  %6519 = vmatmul.mubr.msk.bf16.gmra.mrb[128].mxu0 %vm1892_vm0, %v6825_v37  ;;  %6559 = vmatmul.mubr.msk.bf16.gmra.mrb[128].mxu1 %vm1892_vm0, %v6826_v2  ;;  %v669_v37 = vld [vmem:[%s13777_s2 + $0x448] sm:$0xff] }
 0x11b   : > { %14264 = vst [vmem:[#allocation62_spill] sm:$0xff] %v8559_v43  ;;  %v2223_v21 = vpop.f32.mrb[23].mxu0  ;;  %v8567_v27 = vpop.f32.mrb[23].mxu1  ;;  %14266 = vst [vmem:[#allocation64_spill] sm:$0xff] %v8569_v40  ;;  %v3933_v20 = vmul.bf16 1065369472, %v6860_v45  ;;  %2495 = vmatprep.mubr.bf16.mxu0 %v14236_v1  ;;  %2895 = vmatprep.mubr.bf16.mxu1 %v14236_v1 }
 0x11c   : > { %v6862_v34 = vpop.eup %6861  ;;  %v8575_v57 = vadd.f32 %v2223_v21, %v7979_v3  ;;  %v8577_v10 = vpop.permute.xlu1 %1049  ;;  %v4252_v33 = vunpack.c.h.bf16 %v3931_v48  ;;  %v2976_v44 = vpack.c.bf16 %v8565_v39, %v8562_v12  ;;  %1369 = vperm.xlu1 %6760, %v667_v61   ;;  %1364 = vperm.xlu0 %6759, %v666_v51   ;;  %v4250_v4 = vunpack.c.l.bf16 %v3931_v48  ;;  %v668_v2 = vld [vmem:[%s13777_s2 + $0x440] sm:$0xff] }
 0x11d   : > { %14268 = vst [vmem:[#allocation66_spill] sm:$0xff] %v8577_v10  ;;  %v8579_v9 = vpop.permute.xlu0 %1044  ;;  %v6864_v56 = vpop.eup %6863  ;;  %v3772_v38 = vadd.bf16 1065369472, %v6862_v34  ;;  %v4253_v32 = vunpack.c.h.bf16 %v3933_v20  ;;  %v4251_v34 = vunpack.c.l.bf16 %v3933_v20  ;;  %v6827_v20 = vld [vmem:[%s13776_s1 + $0x108] sm:$0xff]  }
 0x11e   : > { %14269 = vst [vmem:[#allocation67_spill] sm:$0xff] %v8579_v9  ;;  %v3773_v3 = vadd.bf16 1065369472, %v6864_v56  ;;  %v2977_v45 = vpack.c.bf16 %v8575_v57, %v8572_v50  ;;  %v4572_v61 = vmul.f32 %v4252_v33, %v8343_v47  ;;  %v6577_v51 = vmul.bf16 3216621497, %v2976_v44  ;;  %v2227_v48 = vpop.f32.mrb[24].mxu0 }
 0x11f   : > { %6873 = vrcp.bf16 %v3772_v38  ;;  %v8596_v21 = vpop.f32.mrb[24].mxu1  ;;  %v4570_v56 = vmul.f32 %v4250_v4, %v8340_v59  ;;  %v4573_v10 = vmul.f32 %v4253_v32, %v8351_v42  ;;  %v6828_v47 = vld [vmem:[%s13776_s1 + $0x248] sm:$0xff]   ;;  %v2229_v33 = vpop.f32.mrb[25].mxu0  ;;  %v4571_v42 = vmul.f32 %v4251_v34, %v8348_v11  ;;  %v671_v4 = vld [vmem:[%s13777_s2 + $0x458] sm:$0xff]  ;;  %v670_v32 = vld [vmem:[%s13777_s2 + $0x450] sm:$0xff] }
 0x120   : > { %6875 = vrcp.bf16 %v3773_v3  ;;  %v6578_v9 = vmul.bf16 3216621497, %v2977_v45  ;;  %v8600_v50 = vpop.permute.xlu1 %1059  ;;  %1379 = vperm.xlu1 %6760, %v669_v37   ;;  %1374 = vperm.xlu0 %6759, %v668_v2   ;;  %v8610_v59 = vpop.f32.mrb[25].mxu1  ;;  %v8634_v40 = vadd.f32 %v2229_v33, %v7995_v8 }
 0x121   : > { %14270 = vst [vmem:[#allocation68_spill] sm:$0xff] %v8600_v50  ;;  %v8602_v12 = vpop.permute.xlu0 %1054  ;;  %6877 = vpow.bf16 %v6577_v51  ;;  %v6866_v38 = vpop.eup %6865  ;;  %v8621_v45 = vadd.f32 %v4573_v10, %v4572_v61  ;;  %v8624_v51 = vadd.f32 %v2227_v48, %v7995_v8  ;;  %v8631_v50 = vadd.f32 %v4571_v42, %v4570_v56 }
 0x122   : > { %14271 = vst [vmem:[#allocation69_spill] sm:$0xff] %v8602_v12  ;;  %6879 = vpow.bf16 %v6578_v9  ;;  %v2231_v44 = vpop.f32.mrb[26].mxu0  ;;  %v8619_v3 = vpop.f32.mrb[26].mxu1  ;;  %v3935_v2 = vmul.bf16 1065369472, %v6866_v38  ;;  %14275 = vst [vmem:[#allocation73_spill] sm:$0xff] %v8634_v40  ;;  %6520 = vmatmul.mubr.msk.bf16.gmra.mrb[132].mxu0 %vm1892_vm0, %v6827_v20  ;;  %6560 = vmatmul.mubr.msk.bf16.gmra.mrb[132].mxu1 %vm1892_vm0, %v6828_v47 }
 0x123   : > { %14272 = vst [vmem:[#allocation70_spill] sm:$0xff] %v8621_v45  ;;  %v6868_v37 = vpop.eup %6867  ;;  %14273 = vst [vmem:[#allocation71_spill] sm:$0xff] %v8624_v51  ;;  %v8627_v11 = vadd.f32 %v2231_v44, %v7993_v7  ;;  %v2233_v9 = vpop.f32.mrb[27].mxu0  ;;  %v673_v20 = vld [vmem:[%s13777_s2 + $0x468] sm:$0xff]  ;;  %v672_v47 = vld [vmem:[%s13777_s2 + $0x460] sm:$0xff]  ;;  %2505 = vmatprep.mubr.bf16.mxu0 %v14236_v1  ;;  %2905 = vmatprep.mubr.bf16.mxu1 %v14236_v1 }
 0x124   : > { %v8629_v34 = vpop.f32.mrb[27].mxu1  ;;  %14274 = vst [vmem:[#allocation72_spill] sm:$0xff] %v8631_v50  ;;  %v6870_v12 = vpop.eup %6869  ;;  %v3937_v43 = vmul.bf16 1065369472, %v6868_v37  ;;  %v8637_v10 = vadd.f32 %v2233_v9, %v7993_v7  ;;  %v4256_v44 = vunpack.c.h.bf16 %v3935_v2  ;;  %1389 = vperm.xlu1 %6760, %v671_v4   ;;  %1384 = vperm.xlu0 %6759, %v670_v32   ;;  %v4254_v8 = vunpack.c.l.bf16 %v3935_v2 }
 0x125   : > { %v8639_v61 = vpop.permute.xlu1 %1069  ;;  %v8641_v48 = vpop.permute.xlu0 %1064  ;;  %v3774_v56 = vadd.bf16 1065369472, %v6870_v12  ;;  %v2978_v42 = vpack.c.bf16 %v8627_v11, %v8624_v51 }
 0x126   : > { %14276 = vst [vmem:[#allocation74_spill] sm:$0xff] %v8639_v61  ;;  %14277 = vst [vmem:[#allocation75_spill] sm:$0xff] %v8641_v48  ;;  %v6872_v38 = vpop.eup %6871  ;;  %v4257_v33 = vunpack.c.h.bf16 %v3937_v43  ;;  %v2979_v37 = vpack.c.bf16 %v8637_v10, %v8634_v40  ;;  %v4255_v12 = vunpack.c.l.bf16 %v3937_v43  ;;  %v4576_v4 = vmul.f32 %v4256_v44, %v8397_v46  ;;  %v2237_v2 = vpop.f32.mrb[28].mxu0  ;;  %v6829_v43 = vld [vmem:[%s13776_s1 + $0x110] sm:$0xff]  }
 0x127   : > { %v3775_v7 = vadd.bf16 1065369472, %v6872_v38  ;;  %6881 = vrcp.bf16 %v3774_v56  ;;  %v6579_v32 = vmul.bf16 3216621497, %v2978_v42  ;;  %v8658_v9 = vpop.f32.mrb[28].mxu1  ;;  %v4574_v38 = vmul.f32 %v4254_v8, %v8394_v25  ;;  %v6830_v46 = vld [vmem:[%s13776_s1 + $0x250] sm:$0xff]  }
 0x128   : > { %v4577_v61 = vmul.f32 %v4257_v33, %v8405_v19  ;;  %v6580_v48 = vmul.bf16 3216621497, %v2979_v37  ;;  %v2239_v44 = vpop.f32.mrb[29].mxu0  ;;  %1399 = vperm.xlu1 %6760, %v673_v20   ;;  %1394 = vperm.xlu0 %6759, %v672_v47   ;;  %v8672_v25 = vpop.f32.mrb[29].mxu1  ;;  %v4575_v19 = vmul.f32 %v4255_v12, %v8402_v16  ;;  %v675_v8 = vld [vmem:[%s13777_s2 + $0x478] sm:$0xff]  ;;  %v674_v33 = vld [vmem:[%s13777_s2 + $0x470] sm:$0xff] }
 0x129   : > { %6883 = vrcp.bf16 %v3775_v7  ;;  %v8662_v40 = vpop.permute.xlu1 %1079  ;;  %v8664_v51 = vpop.permute.xlu0 %1074  ;;  %v8696_v50 = vadd.f32 %v2239_v44, %v8011_v14 }
 0x12a   : > { %14278 = vst [vmem:[#allocation76_spill] sm:$0xff] %v8662_v40  ;;  %14279 = vst [vmem:[#allocation77_spill] sm:$0xff] %v8664_v51  ;;  %6885 = vpow.bf16 %v6579_v32  ;;  %v6874_v56 = vpop.eup %6873  ;;  %v2241_v42 = vpop.f32.mrb[30].mxu0  ;;  %v8683_v37 = vadd.f32 %v4577_v61, %v4576_v4  ;;  %v8686_v32 = vadd.f32 %v2237_v2, %v8011_v14  ;;  %v8693_v40 = vadd.f32 %v4575_v19, %v4574_v38 }
 0x12b   : > { %6887 = vpow.bf16 %v6580_v48  ;;  %v8681_v7 = vpop.f32.mrb[30].mxu1  ;;  %v6876_v20 = vpop.eup %6875  ;;  %v3939_v47 = vmul.bf16 1065369472, %v6874_v56  ;;  %v8689_v16 = vadd.f32 %v2241_v42, %v8009_v13  ;;  %14283 = vst [vmem:[#allocation81_spill] sm:$0xff] %v8696_v50  ;;  %6521 = vmatmul.mubr.msk.bf16.gmra.mrb[136].mxu0 %vm1892_vm0, %v6829_v43  ;;  %6561 = vmatmul.mubr.msk.bf16.gmra.mrb[136].mxu1 %vm1892_vm0, %v6830_v46  ;;  %v677_v43 = vld [vmem:[%s13777_s2 + $0x488] sm:$0xff]  ;;  %v676_v46 = vld [vmem:[%s13777_s2 + $0x480] sm:$0xff] }
 0x12c   : > { %14280 = vst [vmem:[#allocation78_spill] sm:$0xff] %v8683_v37  ;;  %14281 = vst [vmem:[#allocation79_spill] sm:$0xff] %v8686_v32  ;;  %v2243_v48 = vpop.f32.mrb[31].mxu0  ;;  %v8691_v12 = vpop.f32.mrb[31].mxu1  ;;  %v3941_v45 = vmul.bf16 1065369472, %v6876_v20  ;;  %1409 = vperm.xlu1 %6760, %v675_v8   ;;  %1404 = vperm.xlu0 %6759, %v674_v33  }
 0x12d   : > { %14282 = vst [vmem:[#allocation80_spill] sm:$0xff] %v8693_v40  ;;  %v6878_v51 = vpop.eup %6877  ;;  %v8699_v61 = vadd.f32 %v2243_v48, %v8009_v13  ;;  %v8701_v4 = vpop.permute.xlu1 %1089  ;;  %v4260_v42 = vunpack.c.h.bf16 %v3939_v47  ;;  %v2980_v19 = vpack.c.bf16 %v8689_v16, %v8686_v32  ;;  %v4258_v14 = vunpack.c.l.bf16 %v3939_v47  ;;  %2515 = vmatprep.mubr.bf16.mxu0 %v14236_v1  ;;  %2915 = vmatprep.mubr.bf16.mxu1 %v14236_v1 }
 0x12e   : > { %14284 = vst [vmem:[#allocation82_spill] sm:$0xff] %v8701_v4  ;;  %v8703_v2 = vpop.permute.xlu0 %1084  ;;  %v6880_v56 = vpop.eup %6879  ;;  %v3776_v38 = vadd.bf16 1065369472, %v6878_v51  ;;  %v4261_v44 = vunpack.c.h.bf16 %v3941_v45  ;;  %v4259_v51 = vunpack.c.l.bf16 %v3941_v45  ;;  %v6832_v45 = vld [vmem:[%s13776_s1 + $0x258] sm:$0xff]  }
 0x12f   : > { %14285 = vst [vmem:[#allocation83_spill] sm:$0xff] %v8703_v2  ;;  %v3777_v13 = vadd.bf16 1065369472, %v6880_v56  ;;  %v2981_v20 = vpack.c.bf16 %v8699_v61, %v8696_v50  ;;  %v4580_v8 = vmul.f32 %v4260_v42, %v8451_v35  ;;  %v6581_v33 = vmul.bf16 3216621497, %v2980_v19  ;;  %v2247_v47 = vpop.f32.mrb[32].mxu0 }
 0x130   : > { %6889 = vrcp.bf16 %v3776_v38  ;;  %v8720_v48 = vpop.f32.mrb[32].mxu1  ;;  %v4578_v56 = vmul.f32 %v4258_v14, %v8448_v0  ;;  %v4581_v4 = vmul.f32 %v4261_v44, %v8459_v54  ;;  %v8725_v50 = vadd.f32 %v2247_v47, %v8025_v18  ;;  %v6831_v35 = vld [vmem:[%s13776_s1 + $0x118] sm:$0xff]   ;;  %v2249_v38 = vpop.f32.mrb[33].mxu0  ;;  %1419 = vperm.xlu1 %6760, %v677_v43   ;;  %1414 = vperm.xlu0 %6759, %v676_v46  }
 0x131   : > { %6891 = vrcp.bf16 %v3777_v13  ;;  %v6582_v2 = vmul.bf16 3216621497, %v2981_v20  ;;  %v1100_v32 = vpop.permute.xlu1 %1099  ;;  %v8742_v19 = vpop.f32.mrb[33].mxu1  ;;  %v8747_v44 = vadd.f32 %v2249_v38, %v8025_v18  ;;  %v4579_v20 = vmul.f32 %v4259_v51, %v8456_v53 }
 0x132   : > { %14286 = vst [vmem:[#allocation84_spill] sm:$0xff] %v8725_v50  ;;  %v1095_v37 = vpop.permute.xlu0 %1094  ;;  %6893 = vpow.bf16 %v6581_v33  ;;  %v8734_v0 = vadd.f32 %v8283_v15, %v1100_v32  ;;  %v8744_v14 = vpop.eup %6881  ;;  %v8750_v15 = vadd.f32 %v8291_v30, %v1100_v32  ;;  %v8771_v33 = vadd.f32 %v4581_v4, %v4580_v8 }
 0x133   : > { %v8737_v54 = vadd.f32 %v8263_v36, %v1095_v37  ;;  %v8740_v42 = vadd.f32 %v8275_v62, %v1095_v37  ;;  %14289 = vst [vmem:[#allocation87_spill] sm:$0xff] %v8744_v14  ;;  %6895 = vpow.bf16 %v6582_v2  ;;  %14290 = vst [vmem:[#allocation88_spill] sm:$0xff] %v8747_v44  ;;  %v2251_v13 = vpop.f32.mrb[34].mxu0  ;;  %v679_v36 = vld [vmem:[%s13777_s2 + $0x498] sm:$0xff]  ;;  %v678_v62 = vld [vmem:[%s13777_s2 + $0x490] sm:$0xff]  ;;  %v8758_v37 = vpop.f32.mrb[34].mxu1  ;;  %6522 = vmatmul.mubr.msk.bf16.gmra.mrb[140].mxu0 %vm1892_vm0, %v6831_v35  ;;  %6562 = vmatmul.mubr.msk.bf16.gmra.mrb[140].mxu1 %vm1892_vm0, %v6832_v45 }
 0x134   : > { %14287 = vst [vmem:[#allocation85_spill] sm:$0xff] %v8734_v0  ;;  %v8761_v2 = vpop.eup %6883  ;;  %v8767_v32 = vadd.f32 %v2251_v13, %v8023_v17  ;;  %v2253_v43 = vpop.f32.mrb[35].mxu0  ;;  %14293 = vst [vmem:[#allocation91_spill] sm:$0xff] %v8771_v33  ;;  %v8781_v13 = vadd.f32 %v4579_v20, %v4578_v56  ;;  %v14295_v4 = vmul.bf16 1065369472, %v8744_v14  ;;  %1429 = vperm.xlu1 %6760, %v679_v36   ;;  %1424 = vperm.xlu0 %6759, %v678_v62   ;;  %v681_v45 = vld [vmem:[%s13777_s2 + $0x4a8] sm:$0xff] }
 0x135   : > { %14288 = vst [vmem:[#allocation86_spill] sm:$0xff] %v8740_v42  ;;  %14291 = vst [vmem:[#allocation89_spill] sm:$0xff] %v8761_v2  ;;  %v3046_v30 = vpack.c.bf16 %v8734_v0, %v8737_v54  ;;  %v8769_v46 = vpop.f32.mrb[35].mxu1  ;;  %v6886_v47 = vpop.eup %6885  ;;  %v3047_v53 = vpack.c.bf16 %v8750_v15, %v8740_v42  ;;  %v8777_v51 = vadd.f32 %v2253_v43, %v8023_v17  ;;  %v14296_v17 = vmul.bf16 1065369472, %v8761_v2  ;;  %v680_v20 = vld [vmem:[%s13777_s2 + $0x4a0] sm:$0xff] }
 0x136   : > { %14292 = vst [vmem:[#allocation90_spill] sm:$0xff] %v8769_v46  ;;  %v1110_v18 = vpop.permute.xlu1 %1109  ;;  %v1105_v40 = vpop.permute.xlu0 %1104  ;;  %14294 = vst [vmem:[#allocation92_spill] sm:$0xff] %v8781_v13  ;;  %v4264_v8 = vunpack.c.h.bf16 %v14295_v4  ;;  %v3778_v33 = vadd.bf16 1065369472, %v6886_v47  ;;  %v2982_v42 = vpack.c.bf16 %v8767_v32, %v8725_v50  ;;  %2525 = vmatprep.mubr.bf16.mxu0 %v14236_v1  ;;  %2925 = vmatprep.mubr.bf16.mxu1 %v14236_v1 }
 0x137   : > { %v6888_v0 = vpop.eup %6887  ;;  %v6647_v38 = vmul.bf16 3216621497, %v3046_v30  ;;  %v4265_v43 = vunpack.c.h.bf16 %v14296_v17  ;;  %v6648_v35 = vmul.bf16 3216621497, %v3047_v53  ;;  %v2983_v56 = vpack.c.bf16 %v8777_v51, %v8747_v44  ;;  %v2257_v30 = vpop.f32.mrb[36].mxu0 }
 0x138   : > { %v3779_v46 = vadd.bf16 1065369472, %v6888_v0  ;;  %v8800_v36 = vmul.f32 %v4264_v8, %v8505_v6  ;;  %6897 = vrcp.bf16 %v3778_v33  ;;  %v6583_v0 = vmul.bf16 3216621497, %v2982_v42  ;;  %v8805_v47 = vpop.f32.mrb[36].mxu1  ;;  %v6833_v6 = vld [vmem:[%s13776_s1 + $0x120] sm:$0xff]   ;;  %1439 = vperm.xlu1 %6760, %v681_v45   ;;  %1434 = vperm.xlu0 %6759, %v680_v20  }
 0x139   : > { %v8803_v62 = vadd.f32 %v8337_v58, %v1110_v18  ;;  %v8808_v53 = vmul.f32 %v4265_v43, %v8513_v28  ;;  %v6584_v4 = vmul.bf16 3216621497, %v2983_v56  ;;  %v8811_v17 = vadd.f32 %v8317_v29, %v1105_v40  ;;  %v6834_v58 = vld [vmem:[%s13776_s1 + $0x260] sm:$0xff]   ;;  %v8828_v33 = vpop.f32.mrb[37].mxu1  ;;  %v682_v43 = vld [vmem:[%s13777_s2 + $0x4b0] sm:$0xff] }
 0x13a   : > { %14297 = vst [vmem:[#allocation93_spill] sm:$0xff] %v8800_v36  ;;  %6899 = vrcp.bf16 %v3779_v46  ;;  %v1120_v44 = vpop.permute.xlu1 %1119  ;;  %v1115_v50 = vpop.permute.xlu0 %1114  ;;  %v8820_v42 = vadd.f32 %v8329_v31, %v1105_v40  ;;  %v8823_v28 = vadd.f32 %v8345_v49, %v1110_v18  ;;  %v8826_v29 = vadd.f32 %v2257_v30, %v8041_v24  ;;  %v683_v18 = vld [vmem:[%s13777_s2 + $0x4b8] sm:$0xff] }
 0x13b   : > { %14298 = vst [vmem:[#allocation94_spill] sm:$0xff] %v8803_v62  ;;  %14299 = vst [vmem:[#allocation95_spill] sm:$0xff] %v8808_v53  ;;  %6901 = vpow.bf16 %v6647_v38  ;;  %v2259_v46 = vpop.f32.mrb[37].mxu0  ;;  %v8830_v8 = vpop.eup %6889  ;;  %v3048_v38 = vpack.c.bf16 %v8803_v62, %v8811_v17  ;;  %v8835_v31 = vadd.f32 %v8391_v22, %v1120_v44  ;;  %v8838_v49 = vadd.f32 %v8371_v41, %v1115_v50 }
 0x13c   : > { %14300 = vst [vmem:[#allocation96_spill] sm:$0xff] %v8820_v42  ;;  %14301 = vst [vmem:[#allocation97_spill] sm:$0xff] %v8826_v29  ;;  %6903 = vpow.bf16 %v6648_v35  ;;  %v2261_v40 = vpop.f32.mrb[38].mxu0  ;;  %v8846_v56 = vpop.f32.mrb[38].mxu1  ;;  %v13859_v45 = vmul.bf16 1065369472, %v8830_v8  ;;  %v3049_v22 = vpack.c.bf16 %v8823_v28, %v8820_v42  ;;  %v8854_v41 = vadd.f32 %v8383_v52, %v1115_v50  ;;  %6523 = vmatmul.mubr.msk.bf16.gmra.mrb[144].mxu0 %vm1892_vm0, %v6833_v6 }
 0x13d   : > { %14302 = vst [vmem:[#allocation98_spill] sm:$0xff] %v8830_v8  ;;  %14303 = vst [vmem:[#allocation99_spill] sm:$0xff] %v8835_v31  ;;  %v8848_v35 = vpop.eup %6891  ;;  %6905 = vpow.bf16 %v6583_v0  ;;  %v2263_v20 = vpop.f32.mrb[39].mxu0  ;;  %v6649_v36 = vmul.bf16 3216621497, %v3048_v38  ;;  %v3050_v2 = vpack.c.bf16 %v8835_v31, %v8838_v49  ;;  %6563 = vmatmul.mubr.msk.bf16.gmra.mrb[144].mxu1 %vm1892_vm0, %v6834_v58  ;;  %v8866_v14 = vadd.f32 %v2259_v46, %v8041_v24  ;;  %v685_v58 = vld [vmem:[%s13777_s2 + $0x4c8] sm:$0xff] }
 0x13e   : > { %14304 = vst [vmem:[#allocation100_spill] sm:$0xff] %v8848_v35  ;;  %14305 = vst [vmem:[#allocation101_spill] sm:$0xff] %v8854_v41  ;;  %v8856_v30 = vpop.f32.mrb[39].mxu1  ;;  %v6894_v62 = vpop.eup %6893  ;;  %v13858_v53 = vmul.bf16 1065369472, %v8848_v35  ;;  %6907 = vpow.bf16 %v6584_v4  ;;  %v4268_v52 = vunpack.c.h.bf16 %v13859_v45  ;;  %1449 = vperm.xlu1 %6760, %v683_v18   ;;  %1444 = vperm.xlu0 %6759, %v682_v43  }
 0x13f   : > { %14306 = vst [vmem:[#allocation102_spill] sm:$0xff] %v8856_v30  ;;  %v6896_v0 = vpop.eup %6895  ;;  %v3780_v50 = vadd.bf16 1065369472, %v6894_v62  ;;  %v6650_v42 = vmul.bf16 3216621497, %v3049_v22  ;;  %14307 = vst [vmem:[#allocation103_spill] sm:$0xff] %v8866_v14  ;;  %v1130_v13 = vpop.permute.xlu1 %1129  ;;  %6909 = vpow.bf16 %v6649_v36  ;;  %2535 = vmatprep.mubr.bf16.mxu0 %v14236_v1  ;;  %2935 = vmatprep.mubr.bf16.mxu1 %v14236_v1  ;;  %v8882_v36 = vadd.f32 %v8399_v5, %v1120_v44 }
 0x140   : > { %v4269_v4 = vunpack.c.h.bf16 %v13858_v53  ;;  %v3781_v38 = vadd.bf16 1065369472, %v6896_v0  ;;  %v6651_v6 = vmul.bf16 3216621497, %v3050_v2  ;;  %v1125_v31 = vpop.permute.xlu0 %1124  ;;  %v684_v62 = vld [vmem:[%s13777_s2 + $0x4c0] sm:$0xff]  ;;  %v8879_v24 = vmul.f32 %v4268_v52, %v8565_v39  ;;  %v2267_v46 = vpop.f32.mrb[40].mxu0 }
 0x141   : > { %6911 = vrcp.bf16 %v3780_v50  ;;  %v8885_v2 = vadd.f32 %v2261_v40, %v8039_v23  ;;  %v8887_v18 = vpop.f32.mrb[40].mxu1  ;;  %v8893_v22 = vadd.f32 %v2263_v20, %v8039_v23  ;;  %v8896_v39 = vadd.f32 %v8445_v26, %v1130_v13  ;;  %v6835_v5 = vld [vmem:[%s13776_s1 + $0x128] sm:$0xff]   ;;  %v2269_v26 = vpop.f32.mrb[41].mxu0  ;;  %v14315_v50 = vld [vmem:[#allocation45_spill] sm:$0xff] }
 0x142   : > { %14308 = vst [vmem:[#allocation104_spill] sm:$0xff] %v8879_v24  ;;  %14309 = vst [vmem:[#allocation105_spill] sm:$0xff] %v8887_v18  ;;  %v8890_v43 = vmul.f32 %v4269_v4, %v8575_v57  ;;  %6913 = vrcp.bf16 %v3781_v38  ;;  %v6836_v44 = vld [vmem:[%s13776_s1 + $0x268] sm:$0xff]   ;;  %v3051_v57 = vpack.c.bf16 %v8882_v36, %v8854_v41  ;;  %v8909_v23 = vadd.f32 %v8425_v55, %v1125_v31  ;;  %v8911_v20 = vpop.f32.mrb[41].mxu1  ;;  %v8923_v38 = vpop.f32.mrb[42].mxu0  ;;  %v687_v55 = vld [vmem:[%s13777_s2 + $0x4d8] sm:$0xff] }
 0x143   : > { %14311 = vst [vmem:[#allocation107_spill] sm:$0xff] %v8896_v39  ;;  %6915 = vpow.bf16 %v6650_v42  ;;  %v2984_v40 = vpack.c.bf16 %v8885_v2, %v8826_v29  ;;  %1459 = vperm.xlu1 %6760, %v685_v58   ;;  %1454 = vperm.xlu0 %6759, %v684_v62   ;;  %14312 = vst [vmem:[#allocation108_spill] sm:$0xff] %v8911_v20  ;;  %v8913_v0 = vpop.eup %6897  ;;  %v2985_v42 = vpack.c.bf16 %v8893_v22, %v8866_v14  ;;  %v686_v58 = vld [vmem:[%s13777_s2 + $0x4d0] sm:$0xff]  ;;  %v2273_v35 = vpop.f32.mrb[43].mxu0 }
 0x144   : > { %14310 = vst [vmem:[#allocation106_spill] sm:$0xff] %v8890_v43  ;;  %14313 = vst [vmem:[#allocation109_spill] sm:$0xff] %v8913_v0  ;;  %6917 = vpow.bf16 %v6651_v6  ;;  %v8918_v52 = vadd.f32 %v8437_v63, %v1125_v31  ;;  %v8921_v4 = vadd.f32 %v14315_v50, %v1130_v13  ;;  %v8931_v6 = vpop.f32.mrb[42].mxu1  ;;  %v13867_v63 = vmul.bf16 1065369472, %v8913_v0  ;;  %v1140_v50 = vpop.permute.xlu1 %1139  ;;  %v14318_v43 = vld [vmem:[#allocation4_spill] sm:$0xff]  ;;  %6524 = vmatmul.mubr.msk.bf16.gmra.mrb[148].mxu0 %vm1892_vm0, %v6835_v5 }
 0x145   : > { %14316 = vst [vmem:[#allocation45_spill] sm:$0xff] %v8931_v6  ;;  %v8933_v62 = vpop.eup %6899  ;;  %v6652_v31 = vmul.bf16 3216621497, %v3051_v57  ;;  %v6585_v53 = vmul.bf16 3216621497, %v2984_v40  ;;  %v3052_v13 = vpack.c.bf16 %v8896_v39, %v8909_v23  ;;  %v8942_v24 = vadd.f32 %v2267_v46, %v14318_v43  ;;  %6564 = vmatmul.mubr.msk.bf16.gmra.mrb[148].mxu1 %vm1892_vm0, %v6836_v44  ;;  %v8950_v41 = vpop.f32.mrb[43].mxu1  ;;  %2545 = vmatprep.mubr.bf16.mxu0 %v14236_v1 }
 0x146   : > { %14314 = vst [vmem:[#allocation110_spill] sm:$0xff] %v8918_v52  ;;  %14317 = vst [vmem:[#allocation111_spill] sm:$0xff] %v8933_v62  ;;  %v6902_v45 = vpop.eup %6901  ;;  %v6586_v14 = vmul.bf16 3216621497, %v2985_v42  ;;  %v3053_v29 = vpack.c.bf16 %v8921_v4, %v8918_v52  ;;  %v4272_v40 = vunpack.c.h.bf16 %v13867_v63  ;;  %v1135_v42 = vpop.permute.xlu0 %1134  ;;  %v14321_v52 = vmul.bf16 1065369472, %v8933_v62  ;;  %2945 = vmatprep.mubr.bf16.mxu1 %v14236_v1 }
 0x147   : > { %14319 = vst [vmem:[#allocation4_spill] sm:$0xff] %v8942_v24  ;;  %v6904_v57 = vpop.eup %6903  ;;  %v3846_v39 = vadd.bf16 1065369472, %v6902_v45  ;;  %6919 = vpow.bf16 %v6652_v31  ;;  %v8948_v8 = vmul.bf16 3216621497, %v3052_v13  ;;  %1469 = vperm.xlu1 %6760, %v687_v55   ;;  %1464 = vperm.xlu0 %6759, %v686_v58   ;;  %14320 = vst [vmem:[#allocation112_spill] sm:$0xff] %v8950_v41 }
 0x148   : > { %v6906_v46 = vpop.eup %6905  ;;  %v4273_v20 = vunpack.c.h.bf16 %v14321_v52  ;;  %v3847_v5 = vadd.bf16 1065369472, %v6904_v57  ;;  %6921 = vpow.bf16 %v6585_v53  ;;  %v6654_v44 = vmul.bf16 3216621497, %v3053_v29  ;;  %v689_v63 = vld [vmem:[%s13777_s2 + $0x4e8] sm:$0xff]  ;;  %v688_v45 = vld [vmem:[%s13777_s2 + $0x4e0] sm:$0xff] }
 0x149   : > { %v6908_v55 = vpop.eup %6907  ;;  %v8963_v58 = vmul.f32 %v4272_v40, %v8627_v11  ;;  %6923 = vrcp.bf16 %v3846_v39  ;;  %v3782_v52 = vadd.bf16 1065369472, %v6906_v46  ;;  %v14323_v53 = vld [vmem:[#allocation52_spill] sm:$0xff]  ;;  %v8968_v31 = vpop.f32.mrb[44].mxu0  ;;  %v6837_v11 = vld [vmem:[%s13776_s1 + $0x130] sm:$0xff]   ;;  %v14328_v46 = vld [vmem:[#allocation51_spill] sm:$0xff] }
 0x14a   : > { %v8966_v29 = vadd.f32 %v14323_v53, %v1140_v50  ;;  %v8970_v13 = vpop.f32.mrb[44].mxu1  ;;  %v8973_v57 = vmul.f32 %v4273_v20, %v8637_v10  ;;  %6925 = vrcp.bf16 %v3847_v5  ;;  %v3783_v62 = vadd.bf16 1065369472, %v6908_v55  ;;  %v14327_v0 = vld [vmem:[#allocation48_spill] sm:$0xff]  ;;  %v8978_v18 = vpop.f32.mrb[45].mxu0  ;;  %v6838_v39 = vld [vmem:[%s13776_s1 + $0x270] sm:$0xff]  }
 0x14b   : > { %14322 = vst [vmem:[#allocation113_spill] sm:$0xff] %v8963_v58  ;;  %14325 = vst [vmem:[#allocation114_spill] sm:$0xff] %v8970_v13  ;;  %v8976_v41 = vadd.f32 %v14327_v0, %v1135_v42  ;;  %v6910_v40 = vpop.eup %6909  ;;  %6927 = vrcp.bf16 %v3782_v52  ;;  %v8987_v10 = vadd.f32 %v14328_v46, %v1135_v42  ;;  %v8990_v20 = vadd.f32 %v2269_v26, %v14318_v43  ;;  %v14331_v0 = vld [vmem:[#allocation54_spill] sm:$0xff]  ;;  %v1150_v55 = vpop.permute.xlu1 %1149  ;;  %v14333_v42 = vld [vmem:[#allocation3_spill] sm:$0xff] }
 0x14c   : > { %14324 = vst [vmem:[#allocation52_spill] sm:$0xff] %v8966_v29  ;;  %14326 = vst [vmem:[#allocation115_spill] sm:$0xff] %v8973_v57  ;;  %v8993_v5 = vadd.f32 %v14331_v0, %v1140_v50  ;;  %1479 = vperm.xlu1 %6760, %v689_v63   ;;  %1474 = vperm.xlu0 %6759, %v688_v45   ;;  %v8995_v53 = vpop.f32.mrb[46].mxu0  ;;  %v8997_v57 = vpop.eup %6911  ;;  %6929 = vrcp.bf16 %v3783_v62  ;;  %v3848_v58 = vadd.bf16 1065369472, %v6910_v40  ;;  %v691_v26 = vld [vmem:[%s13777_s2 + $0x4f8] sm:$0xff] }
 0x14d   : > { %14329 = vst [vmem:[#allocation48_spill] sm:$0xff] %v8987_v10  ;;  %14330 = vst [vmem:[#allocation51_spill] sm:$0xff] %v8990_v20  ;;  %v3054_v52 = vpack.c.bf16 %v8966_v29, %v8976_v41  ;;  %v9003_v46 = vadd.f32 %v8923_v38, %v14333_v42  ;;  %v9005_v43 = vpop.f32.mrb[47].mxu0  ;;  %v690_v63 = vld [vmem:[%s13777_s2 + $0x4f0] sm:$0xff]  ;;  %v9013_v50 = vpop.f32.mrb[45].mxu1  ;;  %6931 = vpow.bf16 %v6586_v14  ;;  %v9021_v40 = vadd.f32 %v2273_v35, %v14333_v42 }
 0x14e   : > { %14332 = vst [vmem:[#allocation54_spill] sm:$0xff] %v8997_v57  ;;  %14334 = vst [vmem:[#allocation3_spill] sm:$0xff] %v9013_v50  ;;  %v9015_v62 = vpop.eup %6913  ;;  %v3055_v38 = vpack.c.bf16 %v8993_v5, %v8987_v10  ;;  %v1145_v0 = vpop.permute.xlu0 %1144  ;;  %6933 = vrcp.bf16 %v3848_v58  ;;  %6525 = vmatmul.mubr.msk.bf16.gmra.mrb[152].mxu0 %vm1892_vm0, %v6837_v11  ;;  %6565 = vmatmul.mubr.msk.bf16.gmra.mrb[152].mxu1 %vm1892_vm0, %v6838_v39  ;;  %v14337_v35 = vmul.bf16 1065369472, %v8997_v57 }
 0x14f   : > { %14335 = vst [vmem:[#allocation116_spill] sm:$0xff] %v9015_v62  ;;  %v9023_v29 = vpop.f32.mrb[46].mxu1  ;;  %v6916_v13 = vpop.eup %6915  ;;  %v13872_v6 = vmul.bf16 1065369472, %v9015_v62  ;;  %v6655_v30 = vmul.bf16 3216621497, %v3054_v52  ;;  %v2986_v50 = vpack.c.bf16 %v9003_v46, %v8942_v24  ;;  %6935 = vpow.bf16 %v8948_v8  ;;  %2555 = vmatprep.mubr.bf16.mxu0 %v14236_v1  ;;  %2955 = vmatprep.mubr.bf16.mxu1 %v14236_v1 }
 0x150   : > { %14336 = vst [vmem:[#allocation117_spill] sm:$0xff] %v9023_v29  ;;  %v9030_v14 = vpop.f32.mrb[47].mxu1  ;;  %v6918_v45 = vpop.eup %6917  ;;  %v4276_v42 = vunpack.c.h.bf16 %v14337_v35  ;;  %v3849_v10 = vadd.bf16 1065369472, %v6916_v13  ;;  %v6656_v29 = vmul.bf16 3216621497, %v3055_v38  ;;  %1489 = vperm.xlu1 %6760, %v691_v26   ;;  %1484 = vperm.xlu0 %6759, %v690_v63   ;;  %6937 = vpow.bf16 %v6654_v44 }
 0x151   : > { %v4277_v58 = vunpack.c.h.bf16 %v13872_v6  ;;  %v3850_v52 = vadd.bf16 1065369472, %v6918_v45  ;;  %v6587_v11 = vmul.bf16 3216621497, %v2986_v50  ;;  %v2987_v8 = vpack.c.bf16 %v9021_v40, %v8990_v20  ;;  %v9047_v26 = vpop.f32.mrb[48].mxu0  ;;  %v9049_v63 = vpop.f32.mrb[48].mxu1 }
 0x152   : > { %v9040_v39 = vmul.f32 %v4276_v42, %v8689_v16  ;;  %6939 = vrcp.bf16 %v3849_v10  ;;  %v9045_v13 = vadd.f32 %v8557_v60, %v1150_v55  ;;  %14340 = vst [vmem:[#allocation120_spill] sm:$0xff] %v9049_v63  ;;  %v6920_v44 = vpop.eup %6919  ;;  %v14342_v1 = vld [vmem:[#allocation58_spill] sm:$0xff]  ;;  %v14343_v16 = vld [vmem:[#allocation61_spill] sm:$0xff]  ;;  %v9060_v38 = vpop.permute.xlu1 %1159 }
 0x153   : > { %v9052_v50 = vmul.f32 %v4277_v58, %v8699_v61  ;;  %6941 = vrcp.bf16 %v3850_v52  ;;  %v9055_v45 = vadd.f32 %v14342_v1, %v1145_v0  ;;  %v9058_v10 = vadd.f32 %v14343_v16, %v1145_v0  ;;  %v9062_v35 = vpop.f32.mrb[49].mxu0  ;;  %v6839_v60 = vld [vmem:[%s13776_s1 + $0x138] sm:$0xff]   ;;  %v6922_v42 = vpop.eup %6921 }
 0x154   : > { %14338 = vst [vmem:[#allocation118_spill] sm:$0xff] %v9040_v39  ;;  %14339 = vst [vmem:[#allocation119_spill] sm:$0xff] %v9045_v13  ;;  %v6840_v61 = vld [vmem:[%s13776_s1 + $0x278] sm:$0xff]   ;;  %v3851_v58 = vadd.bf16 1065369472, %v6920_v44  ;;  %6943 = vpow.bf16 %v6655_v30  ;;  %v9071_v1 = vadd.f32 %v8567_v27, %v1150_v55  ;;  %v1155_v0 = vpop.permute.xlu0 %1154  ;;  %v9073_v16 = vpop.f32.mrb[50].mxu0 }
 0x155   : > { %14341 = vst [vmem:[#allocation121_spill] sm:$0xff] %v9052_v50  ;;  %14344 = vst [vmem:[#allocation58_spill] sm:$0xff] %v9058_v10  ;;  %v6588_v52 = vmul.bf16 3216621497, %v2987_v8  ;;  %v9075_v6 = vpop.eup %6923  ;;  %v3784_v20 = vadd.bf16 1065369472, %v6922_v42  ;;  %6945 = vpow.bf16 %v6656_v29  ;;  %v3056_v24 = vpack.c.bf16 %v9045_v13, %v9055_v45 }
 0x156   : > { %14345 = vst [vmem:[#allocation61_spill] sm:$0xff] %v9075_v6  ;;  %v14346_v50 = vld [vmem:[#allocation6_spill] sm:$0xff]  ;;  %v9083_v44 = vpop.f32.mrb[51].mxu0  ;;  %v9085_v30 = vpop.f32.mrb[49].mxu1  ;;  %6947 = vrcp.bf16 %v3851_v58  ;;  %v3057_v8 = vpack.c.bf16 %v9071_v1, %v9058_v10  ;;  %v9094_v29 = vadd.f32 %v8619_v3, %v9060_v38  ;;  %v9102_v57 = vadd.f32 %v8596_v21, %v1155_v0  ;;  %6526 = vmatmul.mubr.msk.bf16.gmra.mrb[156].mxu0 %vm1892_vm0, %v6839_v60 }
 0x157   : > { %v9081_v39 = vadd.f32 %v8968_v31, %v14346_v50  ;;  %14348 = vst [vmem:[#allocation122_spill] sm:$0xff] %v9085_v30  ;;  %v9087_v27 = vpop.eup %6925  ;;  %v9096_v42 = vpop.f32.mrb[50].mxu1  ;;  %6949 = vrcp.bf16 %v3784_v20  ;;  %v6657_v62 = vmul.bf16 3216621497, %v3056_v24  ;;  %6566 = vmatmul.mubr.msk.bf16.gmra.mrb[156].mxu1 %vm1892_vm0, %v6840_v61  ;;  %v14354_v3 = vmul.bf16 1065369472, %v9075_v6 }
 0x158   : > { %14349 = vst [vmem:[#allocation123_spill] sm:$0xff] %v9087_v27  ;;  %14350 = vst [vmem:[#allocation124_spill] sm:$0xff] %v9094_v29  ;;  %v9098_v31 = vpop.eup %6927  ;;  %v9106_v58 = vpop.f32.mrb[51].mxu1  ;;  %6951 = vpow.bf16 %v6587_v11  ;;  %v6658_v13 = vmul.bf16 3216621497, %v3057_v8  ;;  %v9117_v60 = vadd.f32 %v8610_v59, %v1155_v0 }
 0x159   : > { %14347 = vst [vmem:[#allocation6_spill] sm:$0xff] %v9081_v39  ;;  %14351 = vst [vmem:[#allocation125_spill] sm:$0xff] %v9098_v31  ;;  %v9108_v55 = vpop.eup %6929  ;;  %v4406_v10 = vunpack.c.l.bf16 %v14354_v3  ;;  %v13880_v30 = vmul.bf16 1065369472, %v9098_v31  ;;  %v14355_v24 = vmul.bf16 1065369472, %v9087_v27  ;;  %6953 = vpow.bf16 %v6588_v52 }
 0x15a   : > { %14352 = vst [vmem:[#allocation126_spill] sm:$0xff] %v9106_v58  ;;  %14353 = vst [vmem:[#allocation127_spill] sm:$0xff] %v9108_v55  ;;  %v6932_v20 = vpop.eup %6931  ;;  %v13881_v63 = vmul.bf16 1065369472, %v9108_v55  ;;  %6955 = vpow.bf16 %v6657_v62  ;;  %v9126_v8 = vpop.f32.mrb[52].mxu0 }
 0x15b   : > { %v4409_v21 = vunpack.c.h.bf16 %v14355_v24  ;;  %14356 = vst [vmem:[#allocation128_spill] sm:$0xff] %v9117_v60  ;;  %v9119_v61 = vpop.eup %6933  ;;  %v9122_v58 = vmul.f32 %v4406_v10, %v8737_v54  ;;  %v4280_v3 = vunpack.c.h.bf16 %v13880_v30  ;;  %v3785_v11 = vadd.bf16 1065369472, %v6932_v20  ;;  %v9128_v6 = vpop.f32.mrb[52].mxu1 }
 0x15c   : > { %14357 = vst [vmem:[#allocation129_spill] sm:$0xff] %v9119_v61  ;;  %v6936_v24 = vpop.eup %6935  ;;  %v4281_v59 = vunpack.c.h.bf16 %v13881_v63  ;;  %v13883_v0 = vmul.bf16 1065369472, %v9119_v61  ;;  %6957 = vpow.bf16 %v6658_v13  ;;  %v9136_v54 = vpop.f32.mrb[53].mxu0  ;;  %v3058_v30 = vpack.c.bf16 %v9094_v29, %v9102_v57 }
 0x15d   : > { %14358 = vst [vmem:[#allocation130_spill] sm:$0xff] %v9122_v58  ;;  %v9131_v52 = vmul.f32 %v4409_v21, %v8750_v15  ;;  %v6938_v10 = vpop.eup %6937  ;;  %v9139_v20 = vmul.f32 %v4280_v3, %v8767_v32  ;;  %6959 = vrcp.bf16 %v3785_v11  ;;  %v3852_v62 = vadd.bf16 1065369472, %v6936_v24  ;;  %v9143_v58 = vpop.f32.mrb[54].mxu0 }
 0x15e   : > { %v9145_v15 = vpop.eup %6939  ;;  %v9148_v21 = vmul.f32 %v4281_v59, %v8777_v51  ;;  %v4410_v13 = vunpack.c.l.bf16 %v13883_v0  ;;  %v3853_v63 = vadd.bf16 1065369472, %v6938_v10  ;;  %v9154_v32 = vadd.f32 %v8978_v18, %v14346_v50  ;;  %v9156_v3 = vpop.f32.mrb[55].mxu0  ;;  %v14366_v0 = vld [vmem:[#allocation5_spill] sm:$0xff] }
 0x15f   : > { %14359 = vst [vmem:[#allocation131_spill] sm:$0xff] %v9131_v52  ;;  %14360 = vst [vmem:[#allocation132_spill] sm:$0xff] %v9139_v20  ;;  %v9158_v11 = vpop.f32.mrb[53].mxu1  ;;  %v9160_v24 = vpop.eup %6941  ;;  %6961 = vrcp.bf16 %v3852_v62  ;;  %v6659_v52 = vmul.bf16 3216621497, %v3058_v30  ;;  %v9165_v51 = vadd.f32 %v8629_v34, %v9060_v38  ;;  %v9175_v61 = vadd.f32 %v8995_v53, %v14366_v0 }
 0x160   : > { %14361 = vst [vmem:[#allocation133_spill] sm:$0xff] %v9145_v15  ;;  %14362 = vst [vmem:[#allocation134_spill] sm:$0xff] %v9148_v21  ;;  %v9167_v59 = vpop.f32.mrb[54].mxu1  ;;  %v6944_v10 = vpop.eup %6943  ;;  %v9170_v18 = vmul.f32 %v4410_v13, %v8811_v17  ;;  %v13889_v50 = vmul.bf16 1065369472, %v9160_v24  ;;  %6963 = vrcp.bf16 %v3853_v63  ;;  %v9191_v21 = vadd.f32 %v9005_v43, %v14366_v0 }
 0x161   : > { %14363 = vst [vmem:[#allocation135_spill] sm:$0xff] %v9154_v32  ;;  %14364 = vst [vmem:[#allocation136_spill] sm:$0xff] %v9160_v24  ;;  %v9177_v29 = vpop.f32.mrb[55].mxu1  ;;  %v6946_v30 = vpop.eup %6945  ;;  %v14367_v62 = vmul.bf16 1065369472, %v9145_v15  ;;  %6965 = vpow.bf16 %v6659_v52  ;;  %v3059_v27 = vpack.c.bf16 %v9165_v51, %v9117_v60  ;;  %v2988_v53 = vpack.c.bf16 %v9175_v61, %v9081_v39 }
 0x162   : > { %14365 = vst [vmem:[#allocation137_spill] sm:$0xff] %v9170_v18  ;;  %v3854_v38 = vadd.bf16 1065369472, %v6944_v10  ;;  %v1170_v17 = vpop.permute.xlu1 %1169  ;;  %v9183_v13 = vpop.eup %6947  ;;  %v4414_v63 = vunpack.c.l.bf16 %v13889_v50  ;;  %v3855_v18 = vadd.bf16 1065369472, %v6946_v30 }
 0x163   : > { %v4413_v34 = vunpack.c.h.bf16 %v14367_v62  ;;  %14368 = vst [vmem:[#allocation5_spill] sm:$0xff] %v9183_v13  ;;  %v1165_v62 = vpop.permute.xlu0 %1164  ;;  %v9193_v10 = vpop.eup %6949  ;;  %v13892_v60 = vmul.bf16 1065369472, %v9183_v13  ;;  %v6660_v15 = vmul.bf16 3216621497, %v3059_v27  ;;  %v2989_v27 = vpack.c.bf16 %v9191_v21, %v9154_v32 }
 0x164   : > { %14369 = vst [vmem:[#allocation138_spill] sm:$0xff] %v9193_v10  ;;  %6967 = vrcp.bf16 %v3854_v38  ;;  %v9199_v24 = vpop.f32.mrb[56].mxu0  ;;  %v9201_v30 = vpop.f32.mrb[56].mxu1  ;;  %v9204_v39 = vmul.f32 %v4414_v63, %v8838_v49  ;;  %v13896_v43 = vmul.bf16 1065369472, %v9193_v10 }
 0x165   : > { %v9196_v52 = vmul.f32 %v4413_v34, %v8823_v28  ;;  %v6952_v50 = vpop.eup %6951  ;;  %6969 = vrcp.bf16 %v3855_v18  ;;  %v6589_v0 = vmul.bf16 3216621497, %v2988_v53  ;;  %v9207_v20 = vpop.f32.mrb[57].mxu0  ;;  %v4417_v34 = vunpack.c.h.bf16 %v13892_v60 }
 0x166   : > { %14371 = vst [vmem:[#allocation140_spill] sm:$0xff] %v9204_v39  ;;  %v6954_v28 = vpop.eup %6953  ;;  %v3786_v38 = vadd.bf16 1065369472, %v6952_v50  ;;  %6971 = vpow.bf16 %v6660_v15  ;;  %v4284_v49 = vunpack.c.h.bf16 %v13896_v43  ;;  %v9218_v18 = vadd.f32 %v8681_v7, %v1170_v17  ;;  %v9222_v39 = vpop.f32.mrb[57].mxu1 }
 0x167   : > { %14370 = vst [vmem:[#allocation139_spill] sm:$0xff] %v9196_v52  ;;  %v9213_v52 = vpop.f32.mrb[58].mxu0  ;;  %v6956_v55 = vpop.eup %6955  ;;  %v3787_v63 = vadd.bf16 1065369472, %v6954_v28  ;;  %6973 = vpow.bf16 %v6589_v0  ;;  %v9225_v15 = vmul.f32 %v4417_v34, %v8882_v36  ;;  %v6590_v13 = vmul.bf16 3216621497, %v2989_v27 }
 0x168   : > { %14372 = vst [vmem:[#allocation141_spill] sm:$0xff] %v9218_v18  ;;  %v9220_v53 = vpop.f32.mrb[59].mxu0  ;;  %v6958_v50 = vpop.eup %6957  ;;  %6975 = vrcp.bf16 %v3786_v38  ;;  %v3856_v60 = vadd.bf16 1065369472, %v6956_v55  ;;  %v9232_v0 = vmul.f32 %v4284_v49, %v8885_v2  ;;  %v9235_v28 = vadd.f32 %v8658_v9, %v1165_v62  ;;  %v14378_v9 = vld [vmem:[#allocation8_spill] sm:$0xff] }
 0x169   : > { %14373 = vst [vmem:[#allocation142_spill] sm:$0xff] %v9225_v15  ;;  %v1180_v32 = vpop.permute.xlu1 %1179  ;;  %v9227_v31 = vpop.f32.mrb[58].mxu1  ;;  %6977 = vrcp.bf16 %v3787_v63  ;;  %v3857_v7 = vadd.bf16 1065369472, %v6958_v50  ;;  %v9241_v55 = vadd.f32 %v8672_v25, %v1165_v62  ;;  %v9244_v34 = vadd.f32 %v8691_v12, %v1170_v17 }
 0x16a   : > { %v9229_v43 = vpop.eup %6959  ;;  %14375 = vst [vmem:[#allocation144_spill] sm:$0xff] %v9232_v0  ;;  %v9237_v10 = vpop.f32.mrb[59].mxu1  ;;  %6979 = vrcp.bf16 %v3856_v60  ;;  %v3060_v2 = vpack.c.bf16 %v9218_v18, %v9235_v28  ;;  %v9252_v49 = vadd.f32 %v9047_v26, %v14378_v9  ;;  %v9255_v63 = vadd.f32 %v8758_v37, %v1180_v32 }
 0x16b   : > { %14374 = vst [vmem:[#allocation143_spill] sm:$0xff] %v9229_v43  ;;  %v13899_v36 = vmul.bf16 1065369472, %v9229_v43  ;;  %14376 = vst [vmem:[#allocation145_spill] sm:$0xff] %v9241_v55  ;;  %v1175_v38 = vpop.permute.xlu0 %1174  ;;  %v9246_v27 = vpop.eup %6961  ;;  %6981 = vrcp.bf16 %v3857_v7  ;;  %v3061_v17 = vpack.c.bf16 %v9244_v34, %v9241_v55 }
 0x16c   : > { %14377 = vst [vmem:[#allocation146_spill] sm:$0xff] %v9246_v27  ;;  %14379 = vst [vmem:[#allocation8_spill] sm:$0xff] %v9252_v49  ;;  %v9257_v60 = vpop.eup %6963  ;;  %v13902_v12 = vmul.bf16 1065369472, %v9246_v27  ;;  %6983 = vpow.bf16 %v6590_v13  ;;  %v9264_v62 = vpop.f32.mrb[60].mxu0  ;;  %v9270_v18 = vadd.f32 %v8720_v48, %v1175_v38  ;;  %v9273_v15 = vadd.f32 %v8742_v19, %v1175_v38 }
 0x16d   : > { %14380 = vst [vmem:[#allocation147_spill] sm:$0xff] %v9255_v63  ;;  %14381 = vst [vmem:[#allocation148_spill] sm:$0xff] %v9257_v60  ;;  %v4285_v25 = vunpack.c.h.bf16 %v13899_v36  ;;  %v9266_v50 = vpop.f32.mrb[60].mxu1  ;;  %v6966_v26 = vpop.eup %6965  ;;  %v6661_v37 = vmul.bf16 3216621497, %v3060_v2 }
 0x16e   : > { %14382 = vst [vmem:[#allocation149_spill] sm:$0xff] %v9266_v50  ;;  %14383 = vst [vmem:[#allocation150_spill] sm:$0xff] %v9273_v15  ;;  %v9275_v36 = vpop.f32.mrb[61].mxu0  ;;  %v4418_v55 = vunpack.c.l.bf16 %v13902_v12  ;;  %v3858_v0 = vadd.bf16 1065369472, %v6966_v26  ;;  %v9282_v50 = vpop.permute.xlu1 %1189  ;;  %v3062_v38 = vpack.c.bf16 %v9255_v63, %v9270_v18 }
 0x16f   : > { %v9278_v13 = vmul.f32 %v4285_v25, %v8893_v22  ;;  %v6662_v43 = vmul.bf16 3216621497, %v3061_v17  ;;  %v9284_v7 = vpop.f32.mrb[62].mxu0  ;;  %v9286_v2 = vpop.eup %6967  ;;  %v14386_v48 = vmul.bf16 1065369472, %v9257_v60  ;;  %6985 = vpow.bf16 %v6661_v37  ;;  %v14391_v37 = vld [vmem:[#allocation90_spill] sm:$0xff] }
 0x170   : > { %14385 = vst [vmem:[#allocation152_spill] sm:$0xff] %v9286_v2  ;;  %v9294_v22 = vadd.f32 %v9062_v35, %v14378_v9  ;;  %v9296_v25 = vpop.f32.mrb[63].mxu0  ;;  %v9298_v17 = vpop.f32.mrb[61].mxu1  ;;  %v9303_v12 = vmul.f32 %v4418_v55, %v8909_v23  ;;  %v13906_v27 = vmul.bf16 1065369472, %v9286_v2  ;;  %6987 = vrcp.bf16 %v3858_v0  ;;  %v14394_v55 = vld [vmem:[#allocation64_spill] sm:$0xff] }
 0x171   : > { %14384 = vst [vmem:[#allocation151_spill] sm:$0xff] %v9278_v13  ;;  %v4421_v19 = vunpack.c.h.bf16 %v14386_v48  ;;  %14388 = vst [vmem:[#allocation154_spill] sm:$0xff] %v9298_v17  ;;  %v9300_v26 = vpop.eup %6969  ;;  %v9307_v48 = vadd.f32 %v14391_v37, %v1180_v32  ;;  %v9309_v63 = vpop.permute.xlu0 %1184  ;;  %6989 = vpow.bf16 %v6662_v43  ;;  %v6663_v17 = vmul.bf16 3216621497, %v3062_v38  ;;  %5047 = vadd.xlane.f32.xlu0 %v14394_v55 }
 0x172   : > { %14387 = vst [vmem:[#allocation153_spill] sm:$0xff] %v9294_v22  ;;  %14389 = vst [vmem:[#allocation155_spill] sm:$0xff] %v9300_v26  ;;  %v9311_v60 = vpop.f32.mrb[62].mxu1  ;;  %v6972_v35 = vpop.eup %6971  ;;  %v13909_v13 = vmul.bf16 1065369472, %v9300_v26  ;;  %v4422_v32 = vunpack.c.l.bf16 %v13906_v27 }
 0x173   : > { %14390 = vst [vmem:[#allocation156_spill] sm:$0xff] %v9303_v12  ;;  %14392 = vst [vmem:[#allocation90_spill] sm:$0xff] %v9311_v60  ;;  %v9314_v9 = vmul.f32 %v4421_v19, %v8921_v4  ;;  %v9317_v23 = vpop.f32.mrb[63].mxu1  ;;  %v6974_v0 = vpop.eup %6973  ;;  %v3859_v37 = vadd.bf16 1065369472, %v6972_v35  ;;  %v3063_v12 = vpack.c.bf16 %v9307_v48, %v9273_v15  ;;  %v14395_v60 = vld [vmem:[#allocation7_spill] sm:$0xff]  ;;  %6991 = vpow.bf16 %v6663_v17 }
 0x174   : > { %v9326_v4 = vadd.f32 %v9073_v16, %v14395_v60  ;;  %v9328_v19 = vpop.eup %6975  ;;  %v4425_v43 = vunpack.c.h.bf16 %v13909_v13  ;;  %v3788_v38 = vadd.bf16 1065369472, %v6974_v0  ;;  %v9334_v55 = vadd.f32 %v9083_v44, %v14395_v60  ;;  %v9342_v2 = vpop.f32.mrb[64].mxu0 }
 0x175   : > { %14393 = vst [vmem:[#allocation157_spill] sm:$0xff] %v9314_v9  ;;  %14396 = vst [vmem:[#allocation64_spill] sm:$0xff] %v9328_v19  ;;  %v9336_v27 = vpop.eup %6977  ;;  %v9339_v35 = vmul.f32 %v4422_v32, %v8976_v41  ;;  %v13912_v15 = vmul.bf16 1065369472, %v9328_v19  ;;  %6993 = vrcp.bf16 %v3859_v37  ;;  %v6664_v16 = vmul.bf16 3216621497, %v3063_v12  ;;  %v9354_v60 = vpop.permute.xlu1 %1199 }
 0x176   : > { %14397 = vst [vmem:[#allocation7_spill] sm:$0xff] %v9336_v27  ;;  %v9344_v9 = vpop.f32.mrb[64].mxu1  ;;  %v9346_v13 = vpop.eup %6979  ;;  %v9349_v17 = vmul.f32 %v4425_v43, %v8993_v5  ;;  %6995 = vrcp.bf16 %v3788_v38  ;;  %v2990_v41 = vpack.c.bf16 %v9326_v4, %v9252_v49  ;;  %v14402_v12 = vld [vmem:[#allocation72_spill] sm:$0xff]  ;;  %v2991_v43 = vpack.c.bf16 %v9334_v55, %v9294_v22 }
 0x177   : > { %14398 = vst [vmem:[#allocation158_spill] sm:$0xff] %v9339_v35  ;;  %14399 = vst [vmem:[#allocation159_spill] sm:$0xff] %v9346_v13  ;;  %v9356_v0 = vpop.f32.mrb[65].mxu0  ;;  %5053 = vadd.xlane.f32.xlu0 %v14402_v12  ;;  %v9359_v32 = vpop.eup %6981  ;;  %v4288_v37 = vunpack.c.h.bf16 %v13912_v15  ;;  %6997 = vpow.bf16 %v6664_v16  ;;  %v14406_v26 = vmul.bf16 1065369472, %v9336_v27  ;;  %v9374_v15 = vadd.f32 %v8846_v56, %v9282_v50 }
 0x178   : > { %14400 = vst [vmem:[#allocation160_spill] sm:$0xff] %v9349_v17  ;;  %14401 = vst [vmem:[#allocation161_spill] sm:$0xff] %v9356_v0  ;;  %v1195_v38 = vpop.permute.xlu0 %1194  ;;  %v9366_v44 = vpop.f32.mrb[65].mxu1  ;;  %v14405_v17 = vld [vmem:[#allocation62_spill] sm:$0xff]  ;;  %v6591_v0 = vmul.bf16 3216621497, %v2990_v41 }
 0x179   : > { %14403 = vst [vmem:[#allocation72_spill] sm:$0xff] %v9359_v32  ;;  %14404 = vst [vmem:[#allocation162_spill] sm:$0xff] %v9366_v44  ;;  %5050 = vadd.xlane.f32.xlu1 %v14405_v17  ;;  %v6984_v35 = vpop.eup %6983  ;;  %v4289_v12 = vunpack.c.h.bf16 %v14406_v26  ;;  %v9376_v16 = vpop.f32.mrb[66].mxu0  ;;  %v9381_v22 = vmul.f32 %v4288_v37, %v9003_v46  ;;  %v14410_v17 = vmul.bf16 1065369472, %v9346_v13  ;;  %v9396_v46 = vadd.f32 %v8805_v47, %v9309_v63  ;;  %v14413_v37 = vld [vmem:[#allocation70_spill] sm:$0xff] }
 0x17a   : > { %14407 = vst [vmem:[#allocation62_spill] sm:$0xff] %v9374_v15  ;;  %14408 = vst [vmem:[#allocation163_spill] sm:$0xff] %v9376_v16  ;;  %v9378_v5 = vpop.f32.mrb[66].mxu1  ;;  %v3789_v44 = vadd.bf16 1065369472, %v6984_v35  ;;  %v9385_v26 = vpop.f32.mrb[67].mxu0  ;;  %6999 = vpow.bf16 %v6591_v0 }
 0x17b   : > { %14409 = vst [vmem:[#allocation164_spill] sm:$0xff] %v9381_v22  ;;  %v4426_v19 = vunpack.c.l.bf16 %v14410_v17  ;;  %v6592_v27 = vmul.bf16 3216621497, %v2991_v43  ;;  %v9387_v49 = vpop.f32.mrb[67].mxu1  ;;  %v9390_v41 = vmul.f32 %v4289_v12, %v9021_v40  ;;  %v14412_v56 = vmul.bf16 1065369472, %v9359_v32  ;;  %5056 = vadd.xlane.f32.xlu0 %v14413_v37  ;;  %v6986_v17 = vpop.eup %6985 }
 0x17c   : > { %7001 = vrcp.bf16 %v3789_v44  ;;  %v9404_v43 = vadd.f32 %v8828_v33, %v9309_v63  ;;  %v14416_v40 = vld [vmem:[#allocation102_spill] sm:$0xff]  ;;  %v14417_v0 = vld [vmem:[#allocation80_spill] sm:$0xff]  ;;  %v3860_v37 = vadd.bf16 1065369472, %v6986_v17 }
 0x17d   : > { %14411 = vst [vmem:[#allocation165_spill] sm:$0xff] %v9390_v41  ;;  %v4429_v16 = vunpack.c.h.bf16 %v14412_v56  ;;  %v9400_v35 = vmul.f32 %v4426_v19, %v9055_v45  ;;  %v9408_v12 = vadd.f32 %v14416_v40, %v9282_v50  ;;  %5059 = vadd.xlane.f32.xlu1 %v14417_v0  ;;  %v9411_v56 = vpop.eup %6987  ;;  %7003 = vpow.bf16 %v6592_v27  ;;  %v14420_v50 = vld [vmem:[#allocation10_spill] sm:$0xff]  ;;  %v14422_v40 = vld [vmem:[#allocation45_spill] sm:$0xff]  ;;  %v9431_v27 = vpop.f32.mrb[68].mxu1  ;;  %v14428_v41 = vld [vmem:[#allocation108_spill] sm:$0xff] }
 0x17e   : > { %14415 = vst [vmem:[#allocation166_spill] sm:$0xff] %v9404_v43  ;;  %14418 = vst [vmem:[#allocation102_spill] sm:$0xff] %v9411_v56  ;;  %v3064_v45 = vpack.c.bf16 %v9374_v15, %v9396_v46  ;;  %v6990_v19 = vpop.eup %6989  ;;  %v9423_v44 = vadd.f32 %v9126_v8, %v14420_v50  ;;  %v9427_v0 = vadd.f32 %v14422_v40, %v9354_v60  ;;  %7005 = vrcp.bf16 %v3860_v37  ;;  %v14424_v15 = vld [vmem:[#allocation105_spill] sm:$0xff]  ;;  %v14426_v8 = vld [vmem:[#allocation78_spill] sm:$0xff] }
 0x17f   : > { %14414 = vst [vmem:[#allocation70_spill] sm:$0xff] %v9400_v35  ;;  %v9414_v47 = vmul.f32 %v4429_v16, %v9071_v1  ;;  %v3065_v63 = vpack.c.bf16 %v9408_v12, %v9404_v43  ;;  %v9429_v1 = vpop.f32.mrb[68].mxu0  ;;  %v3861_v16 = vadd.bf16 1065369472, %v6990_v19  ;;  %v9434_v33 = vadd.f32 %v14424_v15, %v1195_v38  ;;  %5062 = vadd.xlane.f32.xlu0 %v14426_v8  ;;  %v6992_v13 = vpop.eup %6991  ;;  %v14431_v19 = vld [vmem:[#allocation92_spill] sm:$0xff] }
 0x180   : > { %14421 = vst [vmem:[#allocation10_spill] sm:$0xff] %v9423_v44  ;;  %14423 = vst [vmem:[#allocation45_spill] sm:$0xff] %v9427_v0  ;;  %v6665_v17 = vmul.bf16 3216621497, %v3064_v45  ;;  %v9438_v43 = vpop.f32.mrb[69].mxu0  ;;  %v9444_v22 = vadd.f32 %v14428_v41, %v1195_v38  ;;  %v9448_v37 = vadd.f32 %v9136_v54, %v14420_v50  ;;  %v1205_v15 = vpop.permute.xlu0 %1204 }
 0x181   : > { %14419 = vst [vmem:[#allocation80_spill] sm:$0xff] %v9414_v47  ;;  %v9436_v47 = vpop.permute.xlu1 %1209  ;;  %14425 = vst [vmem:[#allocation105_spill] sm:$0xff] %v9438_v43  ;;  %v14427_v40 = vmul.bf16 1065369472, %v9411_v56  ;;  %v6666_v32 = vmul.bf16 3216621497, %v3065_v63  ;;  %5065 = vadd.xlane.f32.xlu1 %v14431_v19  ;;  %v9453_v43 = vpop.eup %6993  ;;  %7007 = vrcp.bf16 %v3861_v16 }
 0x182   : > { %14429 = vst [vmem:[#allocation78_spill] sm:$0xff] %v9444_v22  ;;  %14430 = vst [vmem:[#allocation108_spill] sm:$0xff] %v9448_v37  ;;  %v9450_v45 = vpop.f32.mrb[69].mxu1  ;;  %v3862_v8 = vadd.bf16 1065369472, %v6992_v13  ;;  %v14433_v63 = vld [vmem:[#allocation112_spill] sm:$0xff]  ;;  %v9465_v50 = vpop.eup %6995  ;;  %7009 = vpow.bf16 %v6665_v17 }
 0x183   : > { %v4430_v35 = vunpack.c.l.bf16 %v14427_v40  ;;  %14432 = vst [vmem:[#allocation92_spill] sm:$0xff] %v9453_v43  ;;  %v3066_v40 = vpack.c.bf16 %v9427_v0, %v9434_v33  ;;  %v9459_v38 = vadd.f32 %v14433_v63, %v9354_v60  ;;  %v9461_v41 = vpop.f32.mrb[70].mxu0  ;;  %v9463_v54 = vpop.f32.mrb[70].mxu1  ;;  %14436 = vst [vmem:[#allocation168_spill] sm:$0xff] %v9465_v50  ;;  %v13922_v19 = vmul.bf16 1065369472, %v9453_v43 }
 0x184   : > { %14434 = vst [vmem:[#allocation112_spill] sm:$0xff] %v9461_v41  ;;  %14435 = vst [vmem:[#allocation167_spill] sm:$0xff] %v9463_v54  ;;  %v14438_v13 = vld [vmem:[#allocation9_spill] sm:$0xff]  ;;  %v9475_v0 = vpop.f32.mrb[71].mxu0  ;;  %v9477_v60 = vpop.f32.mrb[71].mxu1  ;;  %7011 = vrcp.bf16 %v3862_v8 }
 0x185   : > { %v9468_v56 = vmul.f32 %v4430_v35, %v9102_v57  ;;  %v9473_v16 = vadd.f32 %v9143_v58, %v14438_v13  ;;  %14439 = vst [vmem:[#allocation9_spill] sm:$0xff] %v9475_v0  ;;  %14440 = vst [vmem:[#allocation170_spill] sm:$0xff] %v9477_v60  ;;  %v6998_v63 = vpop.eup %6997  ;;  %v13925_v41 = vmul.bf16 1065369472, %v9465_v50  ;;  %v6667_v54 = vmul.bf16 3216621497, %v3066_v40 }
 0x186   : > { %v3067_v57 = vpack.c.bf16 %v9459_v38, %v9444_v22  ;;  %v14441_v35 = vld [vmem:[#allocation91_spill] sm:$0xff]  ;;  %v4433_v17 = vunpack.c.h.bf16 %v13922_v19  ;;  %7013 = vpow.bf16 %v6666_v32  ;;  %v9491_v8 = vadd.f32 %v9156_v3, %v14438_v13  ;;  %v7000_v40 = vpop.eup %6999  ;;  %v14443_v32 = vld [vmem:[#allocation117_spill] sm:$0xff]  ;;  %v9500_v22 = vpop.f32.mrb[72].mxu0  ;;  %v14457_v50 = vld [vmem:[#allocation12_spill] sm:$0xff] }
 0x187   : > { %14437 = vst [vmem:[#allocation169_spill] sm:$0xff] %v9468_v56  ;;  %5068 = vadd.xlane.f32.xlu0 %v14441_v35  ;;  %v3863_v56 = vadd.bf16 1065369472, %v6998_v63  ;;  %v2992_v58 = vpack.c.bf16 %v9473_v16, %v9423_v44  ;;  %v4292_v60 = vunpack.c.h.bf16 %v13925_v41  ;;  %7015 = vpow.bf16 %v6667_v54  ;;  %v9502_v43 = vpop.f32.mrb[72].mxu1  ;;  %v9504_v54 = vpop.eup %7001 }
 0x188   : > { %v6668_v0 = vmul.bf16 3216621497, %v3067_v57  ;;  %v9494_v35 = vmul.f32 %v4433_v17, %v9165_v51  ;;  %v9498_v63 = vadd.f32 %v14443_v32, %v9436_v47  ;;  %14445 = vst [vmem:[#allocation171_spill] sm:$0xff] %v9502_v43  ;;  %14446 = vst [vmem:[#allocation172_spill] sm:$0xff] %v9504_v54  ;;  %v3790_v3 = vadd.bf16 1065369472, %v7000_v40  ;;  %v7004_v17 = vpop.eup %7003 }
 0x189   : > { %7017 = vrcp.bf16 %v3863_v56  ;;  %v6593_v19 = vmul.bf16 3216621497, %v2992_v58  ;;  %v9507_v57 = vmul.f32 %v4292_v60, %v9175_v61  ;;  %v2993_v51 = vpack.c.bf16 %v9491_v8, %v9448_v37  ;;  %v1220_v56 = vpop.permute.xlu1 %1219  ;;  %v9511_v13 = vpop.f32.mrb[73].mxu0  ;;  %v14449_v32 = vld [vmem:[#allocation114_spill] sm:$0xff] }
 0x18a   : > { %14442 = vst [vmem:[#allocation91_spill] sm:$0xff] %v9494_v35  ;;  %14444 = vst [vmem:[#allocation117_spill] sm:$0xff] %v9498_v63  ;;  %7019 = vpow.bf16 %v6668_v0  ;;  %v9515_v41 = vadd.f32 %v14449_v32, %v1205_v15  ;;  %v14450_v35 = vld [vmem:[#allocation3_spill] sm:$0xff]  ;;  %v1215_v61 = vpop.permute.xlu0 %1214  ;;  %v9520_v60 = vpop.f32.mrb[73].mxu1  ;;  %v3791_v0 = vadd.bf16 1065369472, %v7004_v17  ;;  %v9524_v37 = vadd.f32 %v9030_v14, %v9436_v47 }
 0x18b   : > { %14447 = vst [vmem:[#allocation173_spill] sm:$0xff] %v9507_v57  ;;  %14448 = vst [vmem:[#allocation174_spill] sm:$0xff] %v9511_v13  ;;  %7021 = vpow.bf16 %v6593_v19  ;;  %v9518_v44 = vadd.f32 %v14450_v35, %v1205_v15  ;;  %v6594_v40 = vmul.bf16 3216621497, %v2993_v51  ;;  %v9526_v57 = vpop.f32.mrb[74].mxu0  ;;  %v9528_v58 = vpop.f32.mrb[74].mxu1  ;;  %v9541_v51 = vadd.f32 %v9096_v42, %v1220_v56 }
 0x18c   : > { %14452 = vst [vmem:[#allocation3_spill] sm:$0xff] %v9520_v60  ;;  %7023 = vrcp.bf16 %v3790_v3  ;;  %14453 = vst [vmem:[#allocation175_spill] sm:$0xff] %v9526_v57  ;;  %v9530_v19 = vpop.eup %7005  ;;  %v14456_v32 = vmul.bf16 1065369472, %v9504_v54  ;;  %v3068_v35 = vpack.c.bf16 %v9498_v63, %v9515_v41  ;;  %v9538_v3 = vadd.f32 %v9199_v24, %v14457_v50  ;;  %v9543_v14 = vpop.f32.mrb[75].mxu0  ;;  %v14462_v54 = vld [vmem:[#allocation120_spill] sm:$0xff] }
 0x18d   : > { %14451 = vst [vmem:[#allocation114_spill] sm:$0xff] %v9518_v44  ;;  %14454 = vst [vmem:[#allocation176_spill] sm:$0xff] %v9528_v58  ;;  %v9545_v47 = vpop.f32.mrb[75].mxu1  ;;  %v13932_v17 = vmul.bf16 1065369472, %v9530_v19  ;;  %7025 = vrcp.bf16 %v3791_v0  ;;  %v9551_v58 = vadd.f32 %v14462_v54, %v1215_v61  ;;  %v9553_v63 = vpop.eup %7007  ;;  %v14465_v57 = vld [vmem:[#allocation122_spill] sm:$0xff] }
 0x18e   : > { %14455 = vst [vmem:[#allocation177_spill] sm:$0xff] %v9530_v19  ;;  %v4293_v15 = vunpack.c.h.bf16 %v14456_v32  ;;  %14458 = vst [vmem:[#allocation12_spill] sm:$0xff] %v9538_v3  ;;  %v3069_v32 = vpack.c.bf16 %v9524_v37, %v9518_v44  ;;  %7027 = vpow.bf16 %v6594_v40  ;;  %v6669_v42 = vmul.bf16 3216621497, %v3068_v35  ;;  %v9575_v40 = vpop.f32.mrb[76].mxu0  ;;  %v1225_v19 = vpop.permute.xlu0 %1224 }
 0x18f   : > { %14459 = vst [vmem:[#allocation178_spill] sm:$0xff] %v9541_v51  ;;  %14460 = vst [vmem:[#allocation179_spill] sm:$0xff] %v9543_v14  ;;  %v9559_v14 = vadd.f32 %v14465_v57, %v1215_v61  ;;  %v4434_v0 = vunpack.c.l.bf16 %v13932_v17  ;;  %v13935_v60 = vmul.bf16 1065369472, %v9553_v63  ;;  %v3070_v54 = vpack.c.bf16 %v9541_v51, %v9551_v58  ;;  %v14469_v57 = vld [vmem:[#allocation126_spill] sm:$0xff] }
 0x190   : > { %14461 = vst [vmem:[#allocation180_spill] sm:$0xff] %v9545_v47  ;;  %14463 = vst [vmem:[#allocation120_spill] sm:$0xff] %v9553_v63  ;;  %v9556_v24 = vmul.f32 %v4293_v15, %v9191_v21  ;;  %v7010_v47 = vpop.eup %7009  ;;  %v6670_v44 = vmul.bf16 3216621497, %v3069_v32  ;;  %7029 = vpow.bf16 %v6669_v42  ;;  %v9570_v21 = vadd.f32 %v9207_v20, %v14457_v50  ;;  %v9577_v15 = vpop.f32.mrb[76].mxu1 }
 0x191   : > { %14466 = vst [vmem:[#allocation122_spill] sm:$0xff] %v9559_v14  ;;  %v9566_v13 = vpop.eup %7011  ;;  %v3864_v43 = vadd.bf16 1065369472, %v7010_v47  ;;  %v9573_v61 = vadd.f32 %v14469_v57, %v1220_v56  ;;  %v9580_v32 = vmul.f32 %v4434_v0, %v9235_v28  ;;  %v4437_v17 = vunpack.c.h.bf16 %v13935_v60  ;;  %v1230_v42 = vpop.permute.xlu1 %1229 }
 0x192   : > { %14464 = vst [vmem:[#allocation181_spill] sm:$0xff] %v9556_v24  ;;  %14467 = vst [vmem:[#allocation182_spill] sm:$0xff] %v9566_v13  ;;  %v7014_v35 = vpop.eup %7013  ;;  %v13938_v47 = vmul.bf16 1065369472, %v9566_v13  ;;  %7031 = vpow.bf16 %v6670_v44  ;;  %v9585_v20 = vpop.f32.mrb[77].mxu0 }
 0x193   : > { %14468 = vst [vmem:[#allocation183_spill] sm:$0xff] %v9570_v21  ;;  %14470 = vst [vmem:[#allocation126_spill] sm:$0xff] %v9580_v32  ;;  %v7016_v50 = vpop.eup %7015  ;;  %7033 = vrcp.bf16 %v3864_v43  ;;  %v3865_v56 = vadd.bf16 1065369472, %v7014_v35  ;;  %v6671_v57 = vmul.bf16 3216621497, %v3070_v54  ;;  %v3071_v51 = vpack.c.bf16 %v9573_v61, %v9559_v14 }
 0x194   : > { %v9589_v24 = vpop.f32.mrb[77].mxu1  ;;  %v9591_v28 = vpop.eup %7017  ;;  %v9594_v0 = vmul.f32 %v4437_v17, %v9244_v34  ;;  %v4438_v44 = vunpack.c.l.bf16 %v13938_v47  ;;  %v3866_v60 = vadd.bf16 1065369472, %v7016_v50  ;;  %v14474_v32 = vld [vmem:[#allocation11_spill] sm:$0xff] }
 0x195   : > { %14471 = vst [vmem:[#allocation184_spill] sm:$0xff] %v9589_v24  ;;  %14472 = vst [vmem:[#allocation185_spill] sm:$0xff] %v9591_v28  ;;  %v9600_v43 = vadd.f32 %v9213_v52, %v14474_v32  ;;  %v9602_v54 = vpop.f32.mrb[78].mxu0  ;;  %v9604_v35 = vpop.f32.mrb[78].mxu1  ;;  %7035 = vrcp.bf16 %v3865_v56  ;;  %v6672_v24 = vmul.bf16 3216621497, %v3071_v51  ;;  %v9609_v34 = vadd.f32 %v9220_v53, %v14474_v32 }
 0x196   : > { %14473 = vst [vmem:[#allocation186_spill] sm:$0xff] %v9594_v0  ;;  %v7020_v14 = vpop.eup %7019  ;;  %v9611_v17 = vpop.f32.mrb[79].mxu0  ;;  %v9616_v52 = vmul.f32 %v4438_v44, %v9270_v18  ;;  %7037 = vrcp.bf16 %v3866_v60  ;;  %v14478_v51 = vmul.bf16 1065369472, %v9591_v28  ;;  %v9628_v60 = vadd.f32 %v9167_v59, %v1230_v42 }
 0x197   : > { %v9613_v50 = vpop.f32.mrb[79].mxu1  ;;  %v7022_v47 = vpop.eup %7021  ;;  %v3867_v13 = vadd.bf16 1065369472, %v7020_v14  ;;  %v2994_v0 = vpack.c.bf16 %v9600_v43, %v9538_v3  ;;  %7039 = vpow.bf16 %v6671_v57  ;;  %v2995_v32 = vpack.c.bf16 %v9609_v34, %v9570_v21 }
 0x198   : > { %14475 = vst [vmem:[#allocation11_spill] sm:$0xff] %v9613_v50  ;;  %14476 = vst [vmem:[#allocation187_spill] sm:$0xff] %v9616_v52  ;;  %v9620_v63 = vpop.eup %7023  ;;  %v4441_v56 = vunpack.c.h.bf16 %v14478_v51  ;;  %v3792_v53 = vadd.bf16 1065369472, %v7022_v47  ;;  %v9636_v47 = vadd.f32 %v9128_v6, %v1225_v19  ;;  %v9638_v57 = vpop.f32.mrb[80].mxu0  ;;  %v9646_v28 = vadd.f32 %v9158_v11, %v1225_v19  ;;  %v14485_v19 = vld [vmem:[#allocation14_spill] sm:$0xff] }
 0x199   : > { %14477 = vst [vmem:[#allocation188_spill] sm:$0xff] %v9620_v63  ;;  %7041 = vrcp.bf16 %v3867_v13  ;;  %v6595_v18 = vmul.bf16 3216621497, %v2994_v0  ;;  %14479 = vst [vmem:[#allocation189_spill] sm:$0xff] %v9628_v60  ;;  %v9630_v14 = vpop.eup %7025  ;;  %v6596_v52 = vmul.bf16 3216621497, %v2995_v32  ;;  %v9653_v32 = vadd.f32 %v9177_v29, %v1230_v42 }
 0x19a   : > { %14480 = vst [vmem:[#allocation190_spill] sm:$0xff] %v9630_v14  ;;  %v9633_v44 = vmul.f32 %v4441_v56, %v9307_v48  ;;  %7043 = vrcp.bf16 %v3792_v53  ;;  %v9640_v51 = vpop.f32.mrb[80].mxu1  ;;  %v7028_v50 = vpop.eup %7027  ;;  %v14482_v13 = vmul.bf16 1065369472, %v9620_v63  ;;  %v13944_v59 = vmul.bf16 1065369472, %v9630_v14 }
 0x19b   : > { %7045 = vpow.bf16 %v6672_v24  ;;  %14483 = vst [vmem:[#allocation192_spill] sm:$0xff] %v9646_v28  ;;  %v1240_v48 = vpop.permute.xlu1 %1239  ;;  %v9648_v56 = vpop.f32.mrb[81].mxu0  ;;  %v3793_v53 = vadd.bf16 1065369472, %v7028_v50  ;;  %v3072_v6 = vpack.c.bf16 %v9628_v60, %v9636_v47  ;;  %v9664_v50 = vadd.f32 %v9264_v62, %v14485_v19 }
 0x19c   : > { %14481 = vst [vmem:[#allocation191_spill] sm:$0xff] %v9633_v44  ;;  %v4296_v0 = vunpack.c.h.bf16 %v14482_v13  ;;  %7047 = vpow.bf16 %v6595_v18  ;;  %v1235_v44 = vpop.permute.xlu0 %1234  ;;  %v9655_v21 = vpop.f32.mrb[81].mxu1  ;;  %v4297_v11 = vunpack.c.h.bf16 %v13944_v59  ;;  %v9682_v14 = vadd.f32 %v9227_v31, %v1240_v48 }
 0x19d   : > { %v7030_v13 = vpop.eup %7029  ;;  %7049 = vpow.bf16 %v6596_v52  ;;  %14486 = vst [vmem:[#allocation14_spill] sm:$0xff] %v9664_v50  ;;  %v9666_v18 = vpop.f32.mrb[82].mxu0  ;;  %v6673_v3 = vmul.bf16 3216621497, %v3072_v6  ;;  %v9697_v31 = vadd.f32 %v9275_v36, %v14485_v19 }
 0x19e   : > { %v9658_v24 = vmul.f32 %v4296_v0, %v9326_v4  ;;  %v9668_v60 = vpop.f32.mrb[82].mxu1  ;;  %v7032_v29 = vpop.eup %7031  ;;  %7051 = vrcp.bf16 %v3793_v53  ;;  %v3868_v42 = vadd.bf16 1065369472, %v7030_v13  ;;  %v3073_v4 = vpack.c.bf16 %v9653_v32, %v9646_v28  ;;  %14489 = vst [vmem:[#allocation196_spill] sm:$0xff] %v9682_v14 }
 0x19f   : > { %v9672_v0 = vpop.f32.mrb[83].mxu0  ;;  %v9676_v52 = vpop.eup %7033  ;;  %v9679_v62 = vmul.f32 %v4297_v11, %v9334_v55  ;;  %v3869_v59 = vadd.bf16 1065369472, %v7032_v29  ;;  %v9685_v53 = vadd.f32 %v9201_v30, %v1235_v44  ;;  %v9689_v28 = vadd.f32 %v9222_v39, %v1235_v44  ;;  %14492 = vst [vmem:[#allocation199_spill] sm:$0xff] %v9697_v31  ;;  %v14494_v44 = vld [vmem:[#allocation13_spill] sm:$0xff] }
 0x1a0   : > { %14484 = vst [vmem:[#allocation193_spill] sm:$0xff] %v9658_v24  ;;  %v9674_v24 = vpop.f32.mrb[83].mxu1  ;;  %14487 = vst [vmem:[#allocation194_spill] sm:$0xff] %v9676_v52  ;;  %v13948_v6 = vmul.bf16 1065369472, %v9676_v52  ;;  %7053 = vrcp.bf16 %v3868_v42  ;;  %v9691_v63 = vpop.eup %7035  ;;  %v9700_v30 = vadd.f32 %v9237_v10, %v1240_v48 }
 0x1a1   : > { %14488 = vst [vmem:[#allocation195_spill] sm:$0xff] %v9679_v62  ;;  %v6674_v13 = vmul.bf16 3216621497, %v3073_v4  ;;  %14490 = vst [vmem:[#allocation197_spill] sm:$0xff] %v9689_v28  ;;  %7055 = vrcp.bf16 %v3869_v59  ;;  %v3074_v55 = vpack.c.bf16 %v9682_v14, %v9685_v53  ;;  %v9702_v11 = vpop.eup %7037  ;;  %v13952_v39 = vmul.bf16 1065369472, %v9691_v63 }
 0x1a2   : > { %14491 = vst [vmem:[#allocation198_spill] sm:$0xff] %v9691_v63  ;;  %14493 = vst [vmem:[#allocation200_spill] sm:$0xff] %v9702_v11  ;;  %v4442_v29 = vunpack.c.l.bf16 %v13948_v6  ;;  %7057 = vpow.bf16 %v6673_v3  ;;  %v9709_v59 = vadd.f32 %v9284_v7, %v14494_v44  ;;  %v9711_v42 = vpop.f32.mrb[84].mxu0  ;;  %v9713_v4 = vpop.f32.mrb[84].mxu1  ;;  %v3075_v19 = vpack.c.bf16 %v9700_v30, %v9689_v28 }
 0x1a3   : > { %14495 = vst [vmem:[#allocation13_spill] sm:$0xff] %v9711_v42  ;;  %14496 = vst [vmem:[#allocation201_spill] sm:$0xff] %v9713_v4  ;;  %v7040_v36 = vpop.eup %7039  ;;  %7059 = vpow.bf16 %v6674_v13  ;;  %v6675_v48 = vmul.bf16 3216621497, %v3074_v55  ;;  %v1245_v6 = vpop.permute.xlu0 %1244  ;;  %v4445_v52 = vunpack.c.h.bf16 %v13952_v39  ;;  %v14502_v28 = vmul.bf16 1065369472, %v9702_v11 }
 0x1a4   : > { %v9718_v14 = vpop.f32.mrb[85].mxu0  ;;  %v9720_v3 = vpop.eup %7041  ;;  %v9723_v7 = vmul.f32 %v4442_v29, %v9396_v46  ;;  %v3870_v62 = vadd.bf16 1065369472, %v7040_v36  ;;  %v2996_v10 = vpack.c.bf16 %v9709_v59, %v9664_v50  ;;  %v6676_v46 = vmul.bf16 3216621497, %v3075_v19 }
 0x1a5   : > { %14497 = vst [vmem:[#allocation202_spill] sm:$0xff] %v9718_v14  ;;  %14498 = vst [vmem:[#allocation203_spill] sm:$0xff] %v9720_v3  ;;  %v1250_v13 = vpop.permute.xlu1 %1249  ;;  %v9729_v55 = vpop.f32.mrb[85].mxu1  ;;  %v4446_v14 = vunpack.c.l.bf16 %v14502_v28  ;;  %v13956_v42 = vmul.bf16 1065369472, %v9720_v3  ;;  %7061 = vpow.bf16 %v6675_v48  ;;  %v9741_v39 = vmul.f32 %v4445_v52, %v9408_v12 }
 0x1a6   : > { %14499 = vst [vmem:[#allocation204_spill] sm:$0xff] %v9723_v7  ;;  %14500 = vst [vmem:[#allocation205_spill] sm:$0xff] %v9729_v55  ;;  %v9731_v4 = vpop.eup %7043  ;;  %v9736_v29 = vpop.f32.mrb[86].mxu0  ;;  %7063 = vrcp.bf16 %v3870_v62  ;;  %v6597_v50 = vmul.bf16 3216621497, %v2996_v10  ;;  %v9757_v62 = vadd.f32 %v9296_v25, %v14494_v44 }
 0x1a7   : > { %14501 = vst [vmem:[#allocation206_spill] sm:$0xff] %v9731_v4  ;;  %14503 = vst [vmem:[#allocation207_spill] sm:$0xff] %v9736_v29  ;;  %v9738_v7 = vpop.f32.mrb[86].mxu1  ;;  %v7046_v36 = vpop.eup %7045  ;;  %v13957_v63 = vmul.bf16 1065369472, %v9731_v4  ;;  %v9749_v48 = vmul.f32 %v4446_v14, %v9434_v33  ;;  %v4449_v19 = vunpack.c.h.bf16 %v13956_v42  ;;  %7065 = vpow.bf16 %v6676_v46  ;;  %v14509_v42 = vld [vmem:[#allocation90_spill] sm:$0xff] }
 0x1a8   : > { %14504 = vst [vmem:[#allocation208_spill] sm:$0xff] %v9738_v7  ;;  %14505 = vst [vmem:[#allocation209_spill] sm:$0xff] %v9741_v39  ;;  %v9744_v55 = vpop.f32.mrb[87].mxu0  ;;  %v9746_v11 = vpop.f32.mrb[87].mxu1  ;;  %v3871_v7 = vadd.bf16 1065369472, %v7046_v36  ;;  %7067 = vpow.bf16 %v6597_v50  ;;  %v9765_v36 = vadd.f32 %v14509_v42, %v1250_v13  ;;  %v2997_v25 = vpack.c.bf16 %v9757_v62, %v9697_v31 }
 0x1a9   : > { %v7048_v28 = vpop.eup %7047  ;;  %14506 = vst [vmem:[#allocation210_spill] sm:$0xff] %v9749_v48  ;;  %v4300_v12 = vunpack.c.h.bf16 %v13957_v63  ;;  %v9762_v33 = vmul.f32 %v4449_v19, %v9459_v38  ;;  %v1255_v46 = vpop.permute.xlu0 %1254 }
 0x1aa   : > { %v7050_v29 = vpop.eup %7049  ;;  %v3794_v52 = vadd.bf16 1065369472, %v7048_v28  ;;  %7069 = vrcp.bf16 %v3871_v7  ;;  %14510 = vst [vmem:[#allocation90_spill] sm:$0xff] %v9765_v36  ;;  %v9773_v44 = vpop.f32.mrb[88].mxu0  ;;  %v14514_v7 = vld [vmem:[#allocation149_spill] sm:$0xff] }
 0x1ab   : > { %v9759_v10 = vpop.eup %7051  ;;  %14508 = vst [vmem:[#allocation212_spill] sm:$0xff] %v9762_v33  ;;  %v3795_v14 = vadd.bf16 1065369472, %v7050_v29  ;;  %v9768_v48 = vmul.f32 %v4300_v12, %v9473_v16  ;;  %v9775_v28 = vpop.f32.mrb[88].mxu1  ;;  %v9780_v42 = vadd.f32 %v14514_v7, %v1245_v6  ;;  %v14515_v29 = vld [vmem:[#allocation154_spill] sm:$0xff]  ;;  %v9786_v16 = vadd.f32 %v9317_v23, %v1250_v13 }
 0x1ac   : > { %14507 = vst [vmem:[#allocation211_spill] sm:$0xff] %v9759_v10  ;;  %v13959_v50 = vmul.bf16 1065369472, %v9759_v10  ;;  %7071 = vrcp.bf16 %v3794_v52  ;;  %14512 = vst [vmem:[#allocation214_spill] sm:$0xff] %v9775_v28  ;;  %v9777_v38 = vpop.eup %7053  ;;  %v9783_v19 = vadd.f32 %v14515_v29, %v1245_v6  ;;  %v9788_v12 = vpop.f32.mrb[89].mxu0 }
 0x1ad   : > { %14511 = vst [vmem:[#allocation213_spill] sm:$0xff] %v9768_v48  ;;  %14513 = vst [vmem:[#allocation215_spill] sm:$0xff] %v9777_v38  ;;  %7073 = vrcp.bf16 %v3795_v14  ;;  %v9790_v52 = vpop.eup %7055  ;;  %v6598_v39 = vmul.bf16 3216621497, %v2997_v25  ;;  %v14519_v14 = vld [vmem:[#allocation16_spill] sm:$0xff]  ;;  %v9799_v3 = vpop.f32.mrb[89].mxu1  ;;  %v3076_v13 = vpack.c.bf16 %v9765_v36, %v9780_v42 }
 0x1ae   : > { %14516 = vst [vmem:[#allocation149_spill] sm:$0xff] %v9783_v19  ;;  %14517 = vst [vmem:[#allocation154_spill] sm:$0xff] %v9788_v12  ;;  %v4301_v63 = vunpack.c.h.bf16 %v13959_v50  ;;  %v9797_v7 = vadd.f32 %v9342_v2, %v14519_v14  ;;  %v7058_v6 = vpop.eup %7057  ;;  %v3077_v29 = vpack.c.bf16 %v9786_v16, %v9783_v19  ;;  %v9807_v50 = vadd.f32 %v9344_v9, %v1255_v46  ;;  %v9809_v33 = vpop.f32.mrb[90].mxu0 }
 0x1af   : > { %14518 = vst [vmem:[#allocation216_spill] sm:$0xff] %v9790_v52  ;;  %14521 = vst [vmem:[#allocation217_spill] sm:$0xff] %v9799_v3  ;;  %v9811_v25 = vpop.f32.mrb[90].mxu1  ;;  %v7060_v2 = vpop.eup %7059  ;;  %v14525_v48 = vmul.bf16 1065369472, %v9777_v38  ;;  %7075 = vpow.bf16 %v6598_v39  ;;  %v14530_v39 = vld [vmem:[#allocation162_spill] sm:$0xff] }
 0x1b0   : > { %14520 = vst [vmem:[#allocation16_spill] sm:$0xff] %v9797_v7  ;;  %14522 = vst [vmem:[#allocation218_spill] sm:$0xff] %v9807_v50  ;;  %v9814_v31 = vmul.f32 %v4301_v63, %v9491_v8  ;;  %v3872_v10 = vadd.bf16 1065369472, %v7058_v6  ;;  %v9818_v36 = vpop.f32.mrb[91].mxu0  ;;  %v9820_v4 = vpop.f32.mrb[91].mxu1  ;;  %v9832_v6 = vadd.f32 %v14530_v39, %v1255_v46 }
 0x1b1   : > { %14523 = vst [vmem:[#allocation219_spill] sm:$0xff] %v9809_v33  ;;  %14524 = vst [vmem:[#allocation220_spill] sm:$0xff] %v9811_v25  ;;  %v4450_v23 = vunpack.c.l.bf16 %v14525_v48  ;;  %v14526_v9 = vmul.bf16 1065369472, %v9790_v52  ;;  %v3873_v3 = vadd.bf16 1065369472, %v7060_v2  ;;  %v1260_v25 = vpop.permute.xlu1 %1259  ;;  %v7062_v28 = vpop.eup %7061 }
 0x1b2   : > { %v6677_v33 = vmul.bf16 3216621497, %v3076_v13  ;;  %v6678_v12 = vmul.bf16 3216621497, %v3077_v29  ;;  %7077 = vrcp.bf16 %v3872_v10  ;;  %v14528_v63 = vld [vmem:[#allocation161_spill] sm:$0xff]  ;;  %14531 = vst [vmem:[#allocation162_spill] sm:$0xff] %v9832_v6  ;;  %v9834_v38 = vpop.eup %7063 }
 0x1b3   : > { %v4453_v19 = vunpack.c.h.bf16 %v14526_v9  ;;  %v9825_v8 = vmul.f32 %v4450_v23, %v9515_v41  ;;  %v9829_v48 = vadd.f32 %v14528_v63, %v14519_v14  ;;  %14532 = vst [vmem:[#allocation222_spill] sm:$0xff] %v9834_v38  ;;  %7079 = vrcp.bf16 %v3873_v3  ;;  %v14534_v29 = vld [vmem:[#allocation15_spill] sm:$0xff]  ;;  %v7066_v41 = vpop.eup %7065  ;;  %v9851_v23 = vpop.f32.mrb[92].mxu0 }
 0x1b4   : > { %v3874_v13 = vadd.bf16 1065369472, %v7062_v28  ;;  %v14535_v2 = vld [vmem:[#allocation163_spill] sm:$0xff]  ;;  %v13968_v10 = vmul.bf16 1065369472, %v9834_v38  ;;  %7081 = vpow.bf16 %v6677_v33  ;;  %v9845_v14 = vadd.f32 %v9378_v5, %v1260_v25  ;;  %v7068_v3 = vpop.eup %7067  ;;  %v9860_v33 = vpop.f32.mrb[93].mxu0 }
 0x1b5   : > { %14527 = vst [vmem:[#allocation221_spill] sm:$0xff] %v9825_v8  ;;  %14529 = vst [vmem:[#allocation161_spill] sm:$0xff] %v9829_v48  ;;  %v9837_v9 = vmul.f32 %v4453_v19, %v9524_v37  ;;  %v9841_v52 = vadd.f32 %v14535_v2, %v14534_v29  ;;  %v9849_v46 = vadd.f32 %v9385_v26, %v14534_v29  ;;  %v9853_v37 = vpop.f32.mrb[92].mxu1  ;;  %v3875_v28 = vadd.bf16 1065369472, %v7066_v41  ;;  %v9862_v5 = vpop.eup %7069 }
 0x1b6   : > { %7083 = vrcp.bf16 %v3874_v13  ;;  %v9858_v63 = vadd.f32 %v9387_v49, %v1260_v25  ;;  %14536 = vst [vmem:[#allocation15_spill] sm:$0xff] %v9862_v5  ;;  %v4454_v26 = vunpack.c.l.bf16 %v13968_v10  ;;  %v3796_v39 = vadd.bf16 1065369472, %v7068_v3  ;;  %v9868_v13 = vpop.f32.mrb[93].mxu1 }
 0x1b7   : > { %14533 = vst [vmem:[#allocation223_spill] sm:$0xff] %v9837_v9  ;;  %v2998_v19 = vpack.c.bf16 %v9841_v52, %v9797_v7  ;;  %7085 = vpow.bf16 %v6678_v12  ;;  %v3078_v29 = vpack.c.bf16 %v9845_v14, %v9807_v50  ;;  %v9870_v2 = vpop.eup %7071  ;;  %v13973_v41 = vmul.bf16 1065369472, %v9862_v5  ;;  %v9875_v9 = vpop.f32.mrb[94].mxu0 }
 0x1b8   : > { %7087 = vrcp.bf16 %v3875_v28  ;;  %v2999_v25 = vpack.c.bf16 %v9849_v46, %v9829_v48  ;;  %14537 = vst [vmem:[#allocation163_spill] sm:$0xff] %v9875_v9  ;;  %v9877_v38 = vpop.f32.mrb[94].mxu1  ;;  %v9879_v3 = vpop.eup %7073  ;;  %v9882_v12 = vmul.f32 %v4454_v26, %v9551_v58  ;;  %v13974_v10 = vmul.bf16 1065369472, %v9870_v2 }
 0x1b9   : > { %v6599_v49 = vmul.bf16 3216621497, %v2998_v19  ;;  %14538 = vst [vmem:[#allocation224_spill] sm:$0xff] %v9877_v38  ;;  %7089 = vrcp.bf16 %v3796_v39  ;;  %v6679_v50 = vmul.bf16 3216621497, %v3078_v29  ;;  %v9885_v8 = vpop.f32.mrb[95].mxu0  ;;  %v4457_v19 = vunpack.c.h.bf16 %v13973_v41  ;;  %v1265_v26 = vpop.permute.xlu0 %1264 }
 0x1ba   : > { %14539 = vst [vmem:[#allocation225_spill] sm:$0xff] %v9882_v12  ;;  %14540 = vst [vmem:[#allocation226_spill] sm:$0xff] %v9885_v8  ;;  %v9887_v28 = vpop.f32.mrb[95].mxu1  ;;  %v13976_v48 = vmul.bf16 1065369472, %v9879_v3  ;;  %v4304_v38 = vunpack.c.h.bf16 %v13974_v10  ;;  %v3079_v58 = vpack.c.bf16 %v9858_v63, %v9832_v6  ;;  %v14542_v39 = vld [vmem:[#allocation18_spill] sm:$0xff]  ;;  %v7076_v12 = vpop.eup %7075  ;;  %v9906_v41 = vadd.f32 %v9431_v27, %v1265_v26 }
 0x1bb   : > { %14541 = vst [vmem:[#allocation227_spill] sm:$0xff] %v9887_v28  ;;  %7091 = vpow.bf16 %v6599_v49  ;;  %v6600_v7 = vmul.bf16 3216621497, %v2999_v25  ;;  %v9898_v29 = vadd.f32 %v9429_v1, %v14542_v39  ;;  %v9901_v5 = vmul.f32 %v4457_v19, %v9573_v61  ;;  %v1270_v25 = vpop.permute.xlu1 %1269  ;;  %v14547_v1 = vld [vmem:[#allocation105_spill] sm:$0xff]  ;;  %v9915_v8 = vpop.f32.mrb[96].mxu0 }
 0x1bc   : > { %7093 = vpow.bf16 %v6679_v50  ;;  %v4305_v49 = vunpack.c.h.bf16 %v13976_v48  ;;  %14545 = vst [vmem:[#allocation229_spill] sm:$0xff] %v9906_v41  ;;  %v9909_v50 = vmul.f32 %v4304_v38, %v9600_v43  ;;  %v3797_v10 = vadd.bf16 1065369472, %v7076_v12  ;;  %14549 = vst [vmem:[#allocation231_spill] sm:$0xff] %v9915_v8  ;;  %v9917_v61 = vpop.f32.mrb[96].mxu1  ;;  %v14554_v43 = vld [vmem:[#allocation17_spill] sm:$0xff] }
 0x1bd   : > { %14543 = vst [vmem:[#allocation18_spill] sm:$0xff] %v9898_v29  ;;  %14544 = vst [vmem:[#allocation228_spill] sm:$0xff] %v9901_v5  ;;  %7095 = vpow.bf16 %v6600_v7  ;;  %v6680_v6 = vmul.bf16 3216621497, %v3079_v58  ;;  %v9913_v28 = vadd.f32 %v14547_v1, %v14542_v39  ;;  %v9919_v19 = vpop.eup %7077  ;;  %v9925_v27 = vadd.f32 %v9450_v45, %v1265_v26  ;;  %v14555_v38 = vld [vmem:[#allocation112_spill] sm:$0xff]  ;;  %v14556_v58 = vld [vmem:[#allocation167_spill] sm:$0xff] }
 0x1be   : > { %14546 = vst [vmem:[#allocation230_spill] sm:$0xff] %v9909_v50  ;;  %14550 = vst [vmem:[#allocation232_spill] sm:$0xff] %v9917_v61  ;;  %v9922_v7 = vmul.f32 %v4305_v49, %v9609_v34  ;;  %v9929_v12 = vadd.f32 %v14555_v38, %v14554_v43  ;;  %v9932_v48 = vadd.f32 %v14556_v58, %v1270_v25  ;;  %v9934_v39 = vpop.f32.mrb[97].mxu0  ;;  %v9936_v1 = vpop.eup %7079  ;;  %7097 = vrcp.bf16 %v3797_v10  ;;  %v14559_v34 = vld [vmem:[#allocation9_spill] sm:$0xff]  ;;  %v14560_v45 = vld [vmem:[#allocation170_spill] sm:$0xff] }
 0x1bf   : > { %14548 = vst [vmem:[#allocation105_spill] sm:$0xff] %v9913_v28  ;;  %14551 = vst [vmem:[#allocation233_spill] sm:$0xff] %v9919_v19  ;;  %v9941_v49 = vadd.f32 %v14559_v34, %v14554_v43  ;;  %v9944_v26 = vadd.f32 %v14560_v45, %v1270_v25  ;;  %v9946_v61 = vpop.f32.mrb[97].mxu1  ;;  %v7082_v38 = vpop.eup %7081  ;;  %7099 = vpow.bf16 %v6680_v6  ;;  %v14565_v25 = vmul.bf16 1065369472, %v9919_v19 }
 0x1c0   : > { %14552 = vst [vmem:[#allocation234_spill] sm:$0xff] %v9922_v7  ;;  %14553 = vst [vmem:[#allocation235_spill] sm:$0xff] %v9925_v27  ;;  %v3080_v5 = vpack.c.bf16 %v9932_v48, %v9906_v41  ;;  %v9953_v10 = vpop.f32.mrb[98].mxu0  ;;  %v9955_v8 = vpop.f32.mrb[98].mxu1  ;;  %v3876_v45 = vadd.bf16 1065369472, %v7082_v38 }
 0x1c1   : > { %14557 = vst [vmem:[#allocation17_spill] sm:$0xff] %v9934_v39  ;;  %14558 = vst [vmem:[#allocation112_spill] sm:$0xff] %v9936_v1  ;;  %v3000_v39 = vpack.c.bf16 %v9929_v12, %v9898_v29  ;;  %v9957_v43 = vpop.eup %7083  ;;  %v4458_v34 = vunpack.c.l.bf16 %v14565_v25  ;;  %v3001_v58 = vpack.c.bf16 %v9941_v49, %v9913_v28  ;;  %v3081_v6 = vpack.c.bf16 %v9944_v26, %v9925_v27  ;;  %v9973_v28 = vpop.f32.mrb[99].mxu0 }
 0x1c2   : > { %14561 = vst [vmem:[#allocation167_spill] sm:$0xff] %v9946_v61  ;;  %14562 = vst [vmem:[#allocation9_spill] sm:$0xff] %v9953_v10  ;;  %v7086_v29 = vpop.eup %7085  ;;  %v14566_v61 = vmul.bf16 1065369472, %v9936_v1  ;;  %v13983_v10 = vmul.bf16 1065369472, %v9957_v43  ;;  %7101 = vrcp.bf16 %v3876_v45 }
 0x1c3   : > { %14563 = vst [vmem:[#allocation170_spill] sm:$0xff] %v9955_v8  ;;  %14564 = vst [vmem:[#allocation236_spill] sm:$0xff] %v9957_v43  ;;  %v6601_v9 = vmul.bf16 3216621497, %v3000_v39  ;;  %v6681_v8 = vmul.bf16 3216621497, %v3080_v5  ;;  %v9968_v7 = vpop.eup %7087  ;;  %v9971_v19 = vmul.f32 %v4458_v34, %v9636_v47 }
 0x1c4   : > { %v4461_v41 = vunpack.c.h.bf16 %v14566_v61  ;;  %14567 = vst [vmem:[#allocation237_spill] sm:$0xff] %v9968_v7  ;;  %v3877_v38 = vadd.bf16 1065369472, %v7086_v29  ;;  %v6602_v25 = vmul.bf16 3216621497, %v3001_v58  ;;  %14569 = vst [vmem:[#allocation239_spill] sm:$0xff] %v9973_v28  ;;  %v9975_v50 = vpop.eup %7089  ;;  %v4462_v61 = vunpack.c.l.bf16 %v13983_v10 }
 0x1c5   : > { %14568 = vst [vmem:[#allocation238_spill] sm:$0xff] %v9971_v19  ;;  %14570 = vst [vmem:[#allocation240_spill] sm:$0xff] %v9975_v50  ;;  %v13985_v5 = vmul.bf16 1065369472, %v9968_v7  ;;  %7103 = vpow.bf16 %v6601_v9  ;;  %v9983_v39 = vpop.f32.mrb[99].mxu1  ;;  %v14573_v58 = vld [vmem:[#allocation87_spill] sm:$0xff] }
 0x1c6   : > { %v9978_v27 = vmul.f32 %v4461_v41, %v9653_v32  ;;  %14572 = vst [vmem:[#allocation242_spill] sm:$0xff] %v9983_v39  ;;  %v7092_v47 = vpop.eup %7091  ;;  %v13987_v34 = vmul.bf16 1065369472, %v9975_v50  ;;  %7105 = vrcp.bf16 %v3877_v38  ;;  %v6682_v29 = vmul.bf16 3216621497, %v3081_v6  ;;  %v9993_v9 = vpop.f32.mrb[100].mxu0 }
 0x1c7   : > { %v14574_v45 = vmul.bf16 1065369472, %v14573_v58  ;;  %v7094_v1 = vpop.eup %7093  ;;  %v9989_v32 = vmul.f32 %v4462_v61, %v9685_v53  ;;  %v4465_v41 = vunpack.c.h.bf16 %v13985_v5  ;;  %v3798_v10 = vadd.bf16 1065369472, %v7092_v47  ;;  %14576 = vst [vmem:[#allocation243_spill] sm:$0xff] %v9993_v9  ;;  %v14578_v58 = vld [vmem:[#allocation89_spill] sm:$0xff] }
 0x1c8   : > { %14571 = vst [vmem:[#allocation241_spill] sm:$0xff] %v9978_v27  ;;  %7107 = vpow.bf16 %v6681_v8  ;;  %v9995_v27 = vpop.f32.mrb[100].mxu1  ;;  %v7096_v43 = vpop.eup %7095  ;;  %v4308_v6 = vunpack.c.h.bf16 %v13987_v34  ;;  %v3878_v38 = vadd.bf16 1065369472, %v7094_v1  ;;  %v14583_v5 = vld [vmem:[#allocation53_spill] sm:$0xff] }
 0x1c9   : > { %v4262_v19 = vunpack.c.l.bf16 %v14574_v45  ;;  %14575 = vst [vmem:[#allocation87_spill] sm:$0xff] %v9989_v32  ;;  %14577 = vst [vmem:[#allocation244_spill] sm:$0xff] %v9995_v27  ;;  %7109 = vpow.bf16 %v6602_v25  ;;  %v14579_v45 = vmul.bf16 1065369472, %v14578_v58  ;;  %v10001_v53 = vpop.f32.mrb[101].mxu0  ;;  %v10003_v61 = vpop.f32.mrb[101].mxu1  ;;  %v10006_v47 = vmul.f32 %v4465_v41, %v9700_v30 }
 0x1ca   : > { %14580 = vst [vmem:[#allocation89_spill] sm:$0xff] %v10001_v53  ;;  %14581 = vst [vmem:[#allocation245_spill] sm:$0xff] %v10003_v61  ;;  %7111 = vrcp.bf16 %v3798_v10  ;;  %v3799_v8 = vadd.bf16 1065369472, %v7096_v43  ;;  %v10009_v7 = vpop.f32.mrb[102].mxu0  ;;  %v10012_v34 = vmul.f32 %v4308_v6, %v9709_v59  ;;  %v1275_v1 = vpop.permute.xlu0 %1274  ;;  %v14586_v25 = vld [vmem:[#allocation55_spill] sm:$0xff] }
 0x1cb   : > { %v4263_v39 = vunpack.c.l.bf16 %v14579_v45  ;;  %14582 = vst [vmem:[#allocation246_spill] sm:$0xff] %v10006_v47  ;;  %v4582_v32 = vmul.f32 %v4262_v19, %v14583_v5  ;;  %14584 = vst [vmem:[#allocation53_spill] sm:$0xff] %v10009_v7  ;;  %7113 = vrcp.bf16 %v3878_v38  ;;  %v14587_v45 = vld [vmem:[#allocation20_spill] sm:$0xff]  ;;  %v10019_v61 = vpop.eup %7097  ;;  %v14590_v30 = vld [vmem:[#allocation171_spill] sm:$0xff]  ;;  %v1280_v6 = vpop.permute.xlu1 %1279 }
 0x1cc   : > { %14585 = vst [vmem:[#allocation247_spill] sm:$0xff] %v10012_v34  ;;  %v10017_v53 = vadd.f32 %v9500_v22, %v14587_v45  ;;  %14589 = vst [vmem:[#allocation20_spill] sm:$0xff] %v10019_v61  ;;  %7115 = vrcp.bf16 %v3799_v8  ;;  %v10022_v10 = vadd.f32 %v14590_v30, %v1275_v1  ;;  %v14592_v19 = vld [vmem:[#allocation174_spill] sm:$0xff]  ;;  %v14594_v59 = vld [vmem:[#allocation3_spill] sm:$0xff]  ;;  %v7100_v41 = vpop.eup %7099  ;;  %v10034_v8 = vpop.f32.mrb[102].mxu1 }
 0x1cd   : > { %v4583_v58 = vmul.f32 %v4263_v39, %v14586_v25  ;;  %v10026_v43 = vadd.f32 %v14592_v19, %v14587_v45  ;;  %v10029_v5 = vadd.f32 %v14594_v59, %v1275_v1  ;;  %7117 = vpow.bf16 %v6682_v29  ;;  %v14596_v38 = vld [vmem:[#allocation93_spill] sm:$0xff]  ;;  %v14597_v25 = vld [vmem:[#allocation95_spill] sm:$0xff]  ;;  %v14601_v45 = vld [vmem:[#allocation176_spill] sm:$0xff]  ;;  %v10045_v39 = vpop.f32.mrb[103].mxu0  ;;  %v10047_v29 = vpop.f32.mrb[103].mxu1 }
 0x1ce   : > { %14588 = vst [vmem:[#allocation55_spill] sm:$0xff] %v10017_v53  ;;  %14591 = vst [vmem:[#allocation171_spill] sm:$0xff] %v10022_v10  ;;  %v5073_v47 = vadd.f32 %v14597_v25, %v14596_v38  ;;  %v3879_v30 = vadd.bf16 1065369472, %v7100_v41  ;;  %v14599_v7 = vld [vmem:[#allocation19_spill] sm:$0xff]  ;;  %v10041_v19 = vadd.f32 %v14601_v45, %v1280_v6  ;;  %v14602_v1 = vld [vmem:[#allocation98_spill] sm:$0xff] }
 0x1cf   : > { %14593 = vst [vmem:[#allocation174_spill] sm:$0xff] %v10026_v43  ;;  %14595 = vst [vmem:[#allocation3_spill] sm:$0xff] %v10029_v5  ;;  %v5070_v22 = vadd.f32 %v4583_v58, %v4582_v32  ;;  %v14600_v27 = vld [vmem:[#allocation175_spill] sm:$0xff]  ;;  %v14603_v59 = vmul.bf16 1065369472, %v14602_v1  ;;  %v14607_v41 = vld [vmem:[#allocation100_spill] sm:$0xff]  ;;  %v10060_v1 = vpop.eup %7101 }
 0x1d0   : > { %14598 = vst [vmem:[#allocation93_spill] sm:$0xff] %v10034_v8  ;;  %v10038_v9 = vadd.f32 %v14600_v27, %v14599_v7  ;;  %14604 = vst [vmem:[#allocation95_spill] sm:$0xff] %v10045_v39  ;;  %v14606_v32 = vmul.bf16 1065369472, %v10019_v61  ;;  %5074 = vadd.xlane.f32.xlu0 %v5073_v47  ;;  %v14608_v38 = vmul.bf16 1065369472, %v14607_v41  ;;  %7119 = vrcp.bf16 %v3879_v30  ;;  %v7104_v41 = vpop.eup %7103 }
 0x1d1   : > { %v4266_v28 = vunpack.c.l.bf16 %v14603_v59  ;;  %14605 = vst [vmem:[#allocation19_spill] sm:$0xff] %v10047_v29  ;;  %5071 = vadd.xlane.f32.xlu1 %v5070_v22  ;;  %v14609_v27 = vld [vmem:[#allocation179_spill] sm:$0xff]  ;;  %v14610_v45 = vld [vmem:[#allocation180_spill] sm:$0xff]  ;;  %14611 = vst [vmem:[#allocation175_spill] sm:$0xff] %v10060_v1  ;;  %v3082_v22 = vpack.c.bf16 %v10041_v19, %v10022_v10  ;;  %v10074_v30 = vpop.eup %7105  ;;  %v3800_v29 = vadd.bf16 1065369472, %v7104_v41 }
 0x1d2   : > { %v4309_v58 = vunpack.c.h.bf16 %v14606_v32  ;;  %v4267_v25 = vunpack.c.l.bf16 %v14608_v38  ;;  %v10055_v8 = vadd.f32 %v14609_v27, %v14599_v7  ;;  %v10058_v34 = vadd.f32 %v14610_v45, %v1280_v6  ;;  %v14612_v47 = vld [vmem:[#allocation63_spill] sm:$0xff]  ;;  %v14614_v27 = vld [vmem:[#allocation65_spill] sm:$0xff]  ;;  %14615 = vst [vmem:[#allocation98_spill] sm:$0xff] %v10074_v30  ;;  %v14619_v61 = vld [vmem:[#allocation106_spill] sm:$0xff] }
 0x1d3   : > { %v3002_v59 = vpack.c.bf16 %v10038_v9, %v10017_v53  ;;  %v4586_v32 = vmul.f32 %v4266_v28, %v14612_v47  ;;  %v13995_v7 = vmul.bf16 1065369472, %v10060_v1  ;;  %v6683_v53 = vmul.bf16 3216621497, %v3082_v22  ;;  %v7108_v28 = vpop.eup %7107  ;;  %v14618_v22 = vld [vmem:[#allocation104_spill] sm:$0xff] }
 0x1d4   : > { %v10068_v38 = vmul.f32 %v4309_v58, %v9757_v62  ;;  %v4587_v6 = vmul.f32 %v4267_v25, %v14614_v27  ;;  %v3003_v45 = vpack.c.bf16 %v10055_v8, %v10026_v43  ;;  %v3083_v10 = vpack.c.bf16 %v10058_v34, %v10029_v5  ;;  %v10081_v25 = vpop.f32.mrb[104].mxu0  ;;  %v10083_v27 = vpop.f32.mrb[104].mxu1 }
 0x1d5   : > { %v6603_v39 = vmul.bf16 3216621497, %v3002_v59  ;;  %v4466_v62 = vunpack.c.l.bf16 %v13995_v7  ;;  %v13996_v58 = vmul.bf16 1065369472, %v10074_v30  ;;  %14616 = vst [vmem:[#allocation100_spill] sm:$0xff] %v10081_v25  ;;  %14617 = vst [vmem:[#allocation179_spill] sm:$0xff] %v10083_v27  ;;  %v7110_v43 = vpop.eup %7109  ;;  %7121 = vrcp.bf16 %v3800_v29 }
 0x1d6   : > { %14613 = vst [vmem:[#allocation176_spill] sm:$0xff] %v10068_v38  ;;  %v5076_v47 = vadd.f32 %v4587_v6, %v4586_v32  ;;  %v6604_v38 = vmul.bf16 3216621497, %v3003_v45  ;;  %v3880_v41 = vadd.bf16 1065369472, %v7108_v28  ;;  %v5079_v50 = vadd.f32 %v14619_v61, %v14618_v22  ;;  %v10087_v5 = vpop.eup %7111  ;;  %v10094_v45 = vpop.f32.mrb[105].mxu0 }
 0x1d7   : > { %v6684_v59 = vmul.bf16 3216621497, %v3083_v10  ;;  %v10090_v1 = vmul.f32 %v4466_v62, %v9780_v42  ;;  %v4469_v32 = vunpack.c.h.bf16 %v13996_v58  ;;  %v3801_v6 = vadd.bf16 1065369472, %v7110_v43  ;;  %14621 = vst [vmem:[#allocation63_spill] sm:$0xff] %v10094_v45  ;;  %v10096_v7 = vpop.f32.mrb[105].mxu1  ;;  %v10098_v29 = vpop.eup %7113 }
 0x1d8   : > { %7123 = vpow.bf16 %v6603_v39  ;;  %5077 = vadd.xlane.f32.xlu1 %v5076_v47  ;;  %14622 = vst [vmem:[#allocation65_spill] sm:$0xff] %v10096_v7  ;;  %14623 = vst [vmem:[#allocation104_spill] sm:$0xff] %v10098_v29  ;;  %v13998_v10 = vmul.bf16 1065369472, %v10087_v5  ;;  %5080 = vadd.xlane.f32.xlu0 %v5079_v50  ;;  %v14624_v61 = vld [vmem:[#allocation109_spill] sm:$0xff]  ;;  %v14626_v62 = vld [vmem:[#allocation111_spill] sm:$0xff]  ;;  %v10109_v39 = vpop.eup %7115 }
 0x1d9   : > { %14620 = vst [vmem:[#allocation180_spill] sm:$0xff] %v10090_v1  ;;  %7125 = vrcp.bf16 %v3880_v41  ;;  %v14625_v28 = vmul.bf16 1065369472, %v14624_v61  ;;  %v14627_v22 = vmul.bf16 1065369472, %v14626_v62  ;;  %v10105_v58 = vpop.f32.mrb[106].mxu0  ;;  %v10112_v47 = vmul.f32 %v4469_v32, %v9786_v16  ;;  %v7118_v61 = vpop.eup %7117 }
 0x1da   : > { %14628 = vst [vmem:[#allocation106_spill] sm:$0xff] %v10105_v58  ;;  %v10107_v43 = vpop.f32.mrb[106].mxu1  ;;  %v13999_v30 = vmul.bf16 1065369472, %v10098_v29  ;;  %7127 = vrcp.bf16 %v3801_v6  ;;  %v14631_v41 = vld [vmem:[#allocation22_spill] sm:$0xff]  ;;  %v14634_v6 = vld [vmem:[#allocation73_spill] sm:$0xff] }
 0x1db   : > { %v4270_v42 = vunpack.c.l.bf16 %v14625_v28  ;;  %v4271_v1 = vunpack.c.l.bf16 %v14627_v22  ;;  %14629 = vst [vmem:[#allocation109_spill] sm:$0xff] %v10107_v43  ;;  %14630 = vst [vmem:[#allocation111_spill] sm:$0xff] %v10112_v47  ;;  %v10117_v50 = vadd.f32 %v9575_v40, %v14631_v41  ;;  %v4312_v28 = vunpack.c.h.bf16 %v13998_v10  ;;  %v1285_v22 = vpop.permute.xlu0 %1284  ;;  %v14633_v43 = vld [vmem:[#allocation71_spill] sm:$0xff]  ;;  %v14661_v27 = vld [vmem:[#allocation125_spill] sm:$0xff] }
 0x1dc   : > { %v14000_v62 = vmul.bf16 1065369472, %v10109_v39  ;;  %7129 = vpow.bf16 %v6683_v53  ;;  %v4472_v16 = vunpack.c.h.bf16 %v13999_v30  ;;  %v3881_v32 = vadd.bf16 1065369472, %v7118_v61  ;;  %v10134_v53 = vpop.eup %7119  ;;  %v14648_v30 = vld [vmem:[#allocation116_spill] sm:$0xff] }
 0x1dd   : > { %14632 = vst [vmem:[#allocation22_spill] sm:$0xff] %v10117_v50  ;;  %v4590_v58 = vmul.f32 %v4270_v42, %v14633_v43  ;;  %7131 = vpow.bf16 %v6604_v38  ;;  %v4591_v47 = vmul.f32 %v4271_v1, %v14634_v6  ;;  %v10127_v40 = vmul.f32 %v4312_v28, %v9841_v52  ;;  %14636 = vst [vmem:[#allocation73_spill] sm:$0xff] %v10134_v53  ;;  %v1290_v43 = vpop.permute.xlu1 %1289  ;;  %v10143_v52 = vpop.f32.mrb[107].mxu0  ;;  %v14642_v6 = vld [vmem:[#allocation113_spill] sm:$0xff] }
 0x1de   : > { %v4313_v7 = vunpack.c.h.bf16 %v14000_v62  ;;  %7133 = vpow.bf16 %v6684_v59  ;;  %v10132_v10 = vadd.f32 %v9577_v15, %v1285_v22  ;;  %v10137_v42 = vmul.f32 %v4472_v16, %v9845_v14  ;;  %14639 = vst [vmem:[#allocation250_spill] sm:$0xff] %v10143_v52  ;;  %v14640_v59 = vld [vmem:[#allocation184_spill] sm:$0xff]  ;;  %v14643_v14 = vld [vmem:[#allocation115_spill] sm:$0xff] }
 0x1df   : > { %7135 = vrcp.bf16 %v3881_v32  ;;  %v5082_v38 = vadd.f32 %v4591_v47, %v4590_v58  ;;  %v10141_v1 = vadd.f32 %v9585_v20, %v14631_v41  ;;  %v14001_v15 = vmul.bf16 1065369472, %v10134_v53  ;;  %v10154_v32 = vpop.f32.mrb[107].mxu1  ;;  %v14645_v58 = vld [vmem:[#allocation21_spill] sm:$0xff] }
 0x1e0   : > { %14635 = vst [vmem:[#allocation71_spill] sm:$0xff] %v10132_v10  ;;  %14637 = vst [vmem:[#allocation248_spill] sm:$0xff] %v10137_v42  ;;  %v10146_v61 = vmul.f32 %v4313_v7, %v9849_v46  ;;  %v10150_v28 = vadd.f32 %v14640_v59, %v1285_v22  ;;  %v5085_v16 = vadd.f32 %v14643_v14, %v14642_v6  ;;  %v14646_v46 = vld [vmem:[#allocation54_spill] sm:$0xff]  ;;  %v14649_v62 = vmul.bf16 1065369472, %v14648_v30  ;;  %v10169_v6 = vpop.permute.xlu0 %1294  ;;  %v14652_v42 = vld [vmem:[#allocation121_spill] sm:$0xff] }
 0x1e1   : > { %14638 = vst [vmem:[#allocation249_spill] sm:$0xff] %v10141_v1  ;;  %14644 = vst [vmem:[#allocation113_spill] sm:$0xff] %v10154_v32  ;;  %5083 = vadd.xlane.f32.xlu1 %v5082_v38  ;;  %v10158_v20 = vadd.f32 %v9602_v54, %v14645_v58  ;;  %v10161_v47 = vadd.f32 %v9604_v35, %v1290_v43  ;;  %v14647_v7 = vmul.bf16 1065369472, %v14646_v46  ;;  %v4473_v59 = vunpack.c.h.bf16 %v14001_v15  ;;  %v14650_v54 = vld [vmem:[#allocation11_spill] sm:$0xff]  ;;  %v14651_v35 = vld [vmem:[#allocation118_spill] sm:$0xff] }
 0x1e2   : > { %14641 = vst [vmem:[#allocation184_spill] sm:$0xff] %v10150_v28  ;;  %v4275_v22 = vunpack.c.l.bf16 %v14649_v62  ;;  %5086 = vadd.xlane.f32.xlu0 %v5085_v16  ;;  %v10173_v38 = vadd.f32 %v9611_v17, %v14645_v58  ;;  %v10176_v14 = vadd.f32 %v14650_v54, %v1290_v43  ;;  %v5091_v46 = vadd.f32 %v14652_v42, %v14651_v35  ;;  %v14653_v15 = vld [vmem:[#allocation79_spill] sm:$0xff]  ;;  %v14654_v53 = vld [vmem:[#allocation81_spill] sm:$0xff]  ;;  %v10188_v17 = vpop.f32.mrb[108].mxu0  ;;  %v10190_v58 = vpop.f32.mrb[108].mxu1 }
 0x1e3   : > { %v4274_v41 = vunpack.c.l.bf16 %v14647_v7  ;;  %v10180_v7 = vpop.eup %7121  ;;  %v3004_v30 = vpack.c.bf16 %v10158_v20, %v10117_v50  ;;  %v3084_v62 = vpack.c.bf16 %v10161_v47, %v10132_v10  ;;  %14655 = vst [vmem:[#allocation115_spill] sm:$0xff] %v10188_v17  ;;  %14656 = vst [vmem:[#allocation21_spill] sm:$0xff] %v10190_v58  ;;  %v10193_v54 = vmul.f32 %v4473_v59, %v9858_v63  ;;  %v10200_v32 = vpop.f32.mrb[109].mxu0 }
 0x1e4   : > { %v4595_v29 = vmul.f32 %v4275_v22, %v14654_v53  ;;  %v7124_v43 = vpop.eup %7123  ;;  %v14007_v42 = vmul.bf16 1065369472, %v10180_v7  ;;  %v3005_v35 = vpack.c.bf16 %v10173_v38, %v10141_v1  ;;  %v3085_v10 = vpack.c.bf16 %v10176_v14, %v10150_v28  ;;  %14658 = vst [vmem:[#allocation116_spill] sm:$0xff] %v10200_v32  ;;  %v10216_v25 = vpop.f32.mrb[110].mxu0 }
 0x1e5   : > { %v4594_v16 = vmul.f32 %v4274_v41, %v14653_v15  ;;  %14657 = vst [vmem:[#allocation54_spill] sm:$0xff] %v10193_v54  ;;  %v10202_v15 = vpop.f32.mrb[109].mxu1  ;;  %v10204_v53 = vpop.eup %7125  ;;  %v3802_v22 = vadd.bf16 1065369472, %v7124_v43  ;;  %v6605_v58 = vmul.bf16 3216621497, %v3004_v30 }
 0x1e6   : > { %14659 = vst [vmem:[#allocation11_spill] sm:$0xff] %v10202_v15  ;;  %14660 = vst [vmem:[#allocation118_spill] sm:$0xff] %v10204_v53  ;;  %v1300_v41 = vpop.permute.xlu1 %1299  ;;  %v6685_v17 = vmul.bf16 3216621497, %v3084_v62  ;;  %v10206_v59 = vpop.eup %7127  ;;  %v4316_v54 = vunpack.c.h.bf16 %v14007_v42  ;;  %v14008_v52 = vmul.bf16 1065369472, %v10204_v53  ;;  %5092 = vadd.xlane.f32.xlu0 %v5091_v46 }
 0x1e7   : > { %v5088_v63 = vadd.f32 %v4595_v29, %v4594_v16  ;;  %v6606_v45 = vmul.bf16 3216621497, %v3005_v35  ;;  %v6686_v28 = vmul.bf16 3216621497, %v3085_v10  ;;  %v7130_v32 = vpop.eup %7129  ;;  %v14011_v15 = vmul.bf16 1065369472, %v10206_v59 }
 0x1e8   : > { %7137 = vrcp.bf16 %v3802_v22  ;;  %v14662_v43 = vmul.bf16 1065369472, %v14661_v27  ;;  %v14663_v62 = vld [vmem:[#allocation127_spill] sm:$0xff]  ;;  %14665 = vst [vmem:[#allocation121_spill] sm:$0xff] %v10216_v25  ;;  %v7132_v1 = vpop.eup %7131  ;;  %v10219_v42 = vmul.f32 %v4316_v54, %v9929_v12  ;;  %v4476_v10 = vunpack.c.h.bf16 %v14008_v52  ;;  %v14669_v52 = vld [vmem:[#allocation88_spill] sm:$0xff] }
 0x1e9   : > { %5089 = vadd.xlane.f32.xlu1 %v5088_v63  ;;  %v14664_v29 = vmul.bf16 1065369472, %v14663_v62  ;;  %v3882_v46 = vadd.bf16 1065369472, %v7130_v32  ;;  %7139 = vpow.bf16 %v6605_v58  ;;  %v7134_v35 = vpop.eup %7133  ;;  %v4317_v22 = vunpack.c.h.bf16 %v14011_v15  ;;  %v10225_v63 = vpop.permute.xlu0 %1304  ;;  %v14700_v25 = vld [vmem:[#allocation51_spill] sm:$0xff] }
 0x1ea   : > { %v4278_v30 = vunpack.c.l.bf16 %v14662_v43  ;;  %v3803_v27 = vadd.bf16 1065369472, %v7132_v1  ;;  %7141 = vpow.bf16 %v6685_v17  ;;  %v14666_v43 = vld [vmem:[#allocation84_spill] sm:$0xff]  ;;  %v10231_v12 = vmul.f32 %v4476_v10, %v9932_v48  ;;  %v10234_v58 = vpop.f32.mrb[110].mxu1  ;;  %v10240_v17 = vpop.permute.xlu1 %1309 }
 0x1eb   : > { %v4279_v16 = vunpack.c.l.bf16 %v14664_v29  ;;  %v10228_v29 = vpop.eup %7135  ;;  %7143 = vrcp.bf16 %v3882_v46  ;;  %v3883_v54 = vadd.bf16 1065369472, %v7134_v35  ;;  %14670 = vst [vmem:[#allocation125_spill] sm:$0xff] %v10234_v58  ;;  %v10237_v53 = vmul.f32 %v4317_v22, %v9941_v49  ;;  %v10246_v48 = vpop.f32.mrb[111].mxu0  ;;  %v14677_v46 = vld [vmem:[#allocation132_spill] sm:$0xff]  ;;  %v14678_v35 = vld [vmem:[#allocation134_spill] sm:$0xff] }
 0x1ec   : > { %v4598_v62 = vmul.f32 %v4278_v30, %v14666_v43  ;;  %14667 = vst [vmem:[#allocation79_spill] sm:$0xff] %v10228_v29  ;;  %14668 = vst [vmem:[#allocation81_spill] sm:$0xff] %v10231_v12  ;;  %v14010_v1 = vmul.bf16 1065369472, %v10228_v29  ;;  %7145 = vrcp.bf16 %v3803_v27  ;;  %v14671_v30 = vld [vmem:[#allocation24_spill] sm:$0xff]  ;;  %v5097_v22 = vadd.f32 %v14678_v35, %v14677_v46  ;;  %v14679_v27 = vld [vmem:[#allocation23_spill] sm:$0xff] }
 0x1ed   : > { %v4599_v32 = vmul.f32 %v4279_v16, %v14669_v52  ;;  %v10244_v43 = vadd.f32 %v9638_v57, %v14671_v30  ;;  %14673 = vst [vmem:[#allocation84_spill] sm:$0xff] %v10246_v48  ;;  %7147 = vrcp.bf16 %v3883_v54  ;;  %v10250_v52 = vadd.f32 %v9640_v51, %v10169_v6  ;;  %v14695_v29 = vld [vmem:[#allocation13_spill] sm:$0xff] }
 0x1ee   : > { %v10254_v49 = vadd.f32 %v9648_v56, %v14671_v30  ;;  %v4477_v16 = vunpack.c.h.bf16 %v14010_v1  ;;  %7149 = vpow.bf16 %v6606_v45  ;;  %v10260_v57 = vadd.f32 %v9655_v21, %v10169_v6  ;;  %v10276_v21 = vpop.permute.xlu0 %1314  ;;  %5098 = vadd.xlane.f32.xlu0 %v5097_v22  ;;  %v14683_v6 = vld [vmem:[#allocation143_spill] sm:$0xff]  ;;  %v14687_v22 = vld [vmem:[#allocation144_spill] sm:$0xff] }
 0x1ef   : > { %14672 = vst [vmem:[#allocation127_spill] sm:$0xff] %v10244_v43  ;;  %v5094_v10 = vadd.f32 %v4599_v32, %v4598_v62  ;;  %14674 = vst [vmem:[#allocation88_spill] sm:$0xff] %v10250_v52  ;;  %7151 = vpow.bf16 %v6686_v28  ;;  %v10266_v51 = vadd.f32 %v9666_v18, %v14679_v27  ;;  %v10269_v56 = vadd.f32 %v9668_v60, %v1300_v41  ;;  %v14680_v62 = vld [vmem:[#allocation138_spill] sm:$0xff]  ;;  %v10287_v60 = vpop.f32.mrb[111].mxu1 }
 0x1f0   : > { %14675 = vst [vmem:[#allocation24_spill] sm:$0xff] %v10254_v49  ;;  %14676 = vst [vmem:[#allocation251_spill] sm:$0xff] %v10260_v57  ;;  %v14681_v54 = vmul.bf16 1065369472, %v14680_v62  ;;  %v10274_v45 = vmul.f32 %v4477_v16, %v9944_v26  ;;  %v14684_v30 = vmul.bf16 1065369472, %v14683_v6  ;;  %v10285_v18 = vadd.f32 %v9674_v24, %v1300_v41  ;;  %v10296_v6 = vpop.permute.xlu1 %1319 }
 0x1f1   : > { %5095 = vadd.xlane.f32.xlu1 %v5094_v10  ;;  %v10282_v10 = vadd.f32 %v9672_v0, %v14679_v27  ;;  %14685 = vst [vmem:[#allocation134_spill] sm:$0xff] %v10287_v60  ;;  %v3006_v46 = vpack.c.bf16 %v10266_v51, %v10244_v43  ;;  %v3086_v26 = vpack.c.bf16 %v10269_v56, %v10250_v52  ;;  %v14686_v16 = vld [vmem:[#allocation97_spill] sm:$0xff]  ;;  %v14688_v62 = vld [vmem:[#allocation151_spill] sm:$0xff] }
 0x1f2   : > { %v4282_v32 = vunpack.c.l.bf16 %v14681_v54  ;;  %14682 = vst [vmem:[#allocation132_spill] sm:$0xff] %v10274_v45  ;;  %v4283_v28 = vunpack.c.l.bf16 %v14684_v30  ;;  %v5103_v54 = vadd.f32 %v14688_v62, %v14687_v22  ;;  %v14689_v0 = vld [vmem:[#allocation103_spill] sm:$0xff]  ;;  %v3087_v41 = vpack.c.bf16 %v10285_v18, %v10260_v57  ;;  %v14690_v30 = vld [vmem:[#allocation64_spill] sm:$0xff]  ;;  %v14694_v62 = vld [vmem:[#allocation26_spill] sm:$0xff] }
 0x1f3   : > { %v3007_v24 = vpack.c.bf16 %v10282_v10, %v10254_v49  ;;  %v14691_v1 = vmul.bf16 1065369472, %v14690_v30  ;;  %v10305_v45 = vpop.eup %7137  ;;  %v6607_v52 = vmul.bf16 3216621497, %v3006_v46  ;;  %v10311_v60 = vadd.f32 %v14695_v29, %v14694_v62 }
 0x1f4   : > { %v4602_v35 = vmul.f32 %v4282_v32, %v14686_v16  ;;  %v4603_v27 = vmul.f32 %v4283_v28, %v14689_v0  ;;  %v6687_v32 = vmul.bf16 3216621497, %v3086_v26  ;;  %v14692_v16 = vld [vmem:[#allocation7_spill] sm:$0xff]  ;;  %v10313_v28 = vpop.f32.mrb[112].mxu0  ;;  %v10315_v0 = vpop.f32.mrb[112].mxu1  ;;  %5104 = vadd.xlane.f32.xlu0 %v5103_v54 }
 0x1f5   : > { %v4286_v15 = vunpack.c.l.bf16 %v14691_v1  ;;  %v14693_v12 = vmul.bf16 1065369472, %v14692_v16  ;;  %14696 = vst [vmem:[#allocation23_spill] sm:$0xff] %v10311_v60  ;;  %14697 = vst [vmem:[#allocation138_spill] sm:$0xff] %v10313_v28  ;;  %v7140_v48 = vpop.eup %7139  ;;  %v14017_v57 = vmul.bf16 1065369472, %v10305_v45  ;;  %7153 = vpow.bf16 %v6607_v52 }
 0x1f6   : > { %14698 = vst [vmem:[#allocation143_spill] sm:$0xff] %v10315_v0  ;;  %v5100_v30 = vadd.f32 %v4603_v27, %v4602_v35  ;;  %v6608_v1 = vmul.bf16 3216621497, %v3007_v24  ;;  %v6688_v58 = vmul.bf16 3216621497, %v3087_v41  ;;  %v7142_v46 = vpop.eup %7141  ;;  %v14699_v16 = vld [vmem:[#allocation4_spill] sm:$0xff]  ;;  %v10328_v27 = vpop.permute.xlu0 %1324  ;;  %7155 = vpow.bf16 %v6687_v32 }
 0x1f7   : > { %v4287_v22 = vunpack.c.l.bf16 %v14693_v12  ;;  %v3804_v26 = vadd.bf16 1065369472, %v7140_v48  ;;  %v4606_v12 = vmul.f32 %v4286_v15, %v14699_v16  ;;  %v10320_v29 = vpop.f32.mrb[113].mxu0  ;;  %v10322_v43 = vpop.f32.mrb[113].mxu1  ;;  %v4320_v0 = vunpack.c.h.bf16 %v14017_v57  ;;  %v14704_v48 = vld [vmem:[#allocation201_spill] sm:$0xff]  ;;  %v14707_v41 = vld [vmem:[#allocation202_spill] sm:$0xff] }
 0x1f8   : > { %14701 = vst [vmem:[#allocation97_spill] sm:$0xff] %v10320_v29  ;;  %14702 = vst [vmem:[#allocation144_spill] sm:$0xff] %v10322_v43  ;;  %v10324_v28 = vpop.eup %7143  ;;  %v3884_v35 = vadd.bf16 1065369472, %v7142_v46  ;;  %5101 = vadd.xlane.f32.xlu1 %v5100_v30  ;;  %v10332_v52 = vadd.f32 %v14704_v48, %v10225_v63  ;;  %v10334_v15 = vpop.f32.mrb[114].mxu0  ;;  %v14710_v48 = vld [vmem:[#allocation205_spill] sm:$0xff] }
 0x1f9   : > { %v4607_v49 = vmul.f32 %v4287_v22, %v14700_v25  ;;  %14703 = vst [vmem:[#allocation151_spill] sm:$0xff] %v10324_v28  ;;  %14706 = vst [vmem:[#allocation64_spill] sm:$0xff] %v10334_v15  ;;  %v10336_v25 = vpop.eup %7145  ;;  %v14019_v54 = vmul.bf16 1065369472, %v10324_v28  ;;  %7157 = vrcp.bf16 %v3804_v26  ;;  %v10341_v22 = vadd.f32 %v14707_v41, %v14694_v62  ;;  %v10349_v16 = vpop.permute.xlu1 %1329  ;;  %v14713_v41 = vld [vmem:[#allocation165_spill] sm:$0xff] }
 0x1fa   : > { %14705 = vst [vmem:[#allocation103_spill] sm:$0xff] %v10332_v52  ;;  %v10343_v46 = vpop.eup %7147  ;;  %v10346_v32 = vmul.f32 %v4320_v0, %v10038_v9  ;;  %v14020_v30 = vmul.bf16 1065369472, %v10336_v25  ;;  %7159 = vrcp.bf16 %v3884_v35  ;;  %v10353_v57 = vadd.f32 %v14710_v48, %v10225_v63  ;;  %v14714_v43 = vld [vmem:[#allocation25_spill] sm:$0xff]  ;;  %v14715_v63 = vld [vmem:[#allocation207_spill] sm:$0xff] }
 0x1fb   : > { %v5106_v24 = vadd.f32 %v4607_v49, %v4606_v12  ;;  %14708 = vst [vmem:[#allocation7_spill] sm:$0xff] %v10341_v22  ;;  %14709 = vst [vmem:[#allocation26_spill] sm:$0xff] %v10343_v46  ;;  %v7150_v26 = vpop.eup %7149  ;;  %v4480_v49 = vunpack.c.h.bf16 %v14019_v54  ;;  %v14021_v62 = vmul.bf16 1065369472, %v10343_v46  ;;  %7161 = vpow.bf16 %v6608_v1  ;;  %v14712_v12 = vld [vmem:[#allocation164_spill] sm:$0xff] }
 0x1fc   : > { %14711 = vst [vmem:[#allocation13_spill] sm:$0xff] %v10353_v57  ;;  %v5109_v9 = vadd.f32 %v14713_v41, %v14712_v12  ;;  %v7152_v0 = vpop.eup %7151  ;;  %v4321_v35 = vunpack.c.h.bf16 %v14020_v30  ;;  %v3805_v15 = vadd.bf16 1065369472, %v7150_v26  ;;  %7163 = vpow.bf16 %v6688_v58  ;;  %v14717_v12 = vld [vmem:[#allocation208_spill] sm:$0xff]  ;;  %v10375_v30 = vpop.f32.mrb[114].mxu1 }
 0x1fd   : > { %5107 = vadd.xlane.f32.xlu1 %v5106_v24  ;;  %v10364_v48 = vadd.f32 %v14715_v63, %v14714_v43  ;;  %v10367_v28 = vmul.f32 %v4480_v49, %v10041_v19  ;;  %v4481_v1 = vunpack.c.h.bf16 %v14021_v62  ;;  %v3885_v54 = vadd.bf16 1065369472, %v7152_v0  ;;  %14718 = vst [vmem:[#allocation51_spill] sm:$0xff] %v10375_v30  ;;  %v10380_v24 = vpop.permute.xlu0 %1334  ;;  %v14719_v26 = vld [vmem:[#allocation168_spill] sm:$0xff]  ;;  %v10386_v0 = vpop.f32.mrb[115].mxu0  ;;  %v14726_v30 = vld [vmem:[#allocation6_spill] sm:$0xff] }
 0x1fe   : > { %5110 = vadd.xlane.f32.xlu0 %v5109_v9  ;;  %v10373_v41 = vadd.f32 %v14717_v12, %v10240_v17  ;;  %v10378_v58 = vmul.f32 %v4321_v35, %v10055_v8  ;;  %7165 = vrcp.bf16 %v3805_v15  ;;  %v14720_v49 = vmul.bf16 1065369472, %v14719_v26  ;;  %14721 = vst [vmem:[#allocation201_spill] sm:$0xff] %v10386_v0  ;;  %v14723_v8 = vld [vmem:[#allocation172_spill] sm:$0xff]  ;;  %v10395_v62 = vpop.f32.mrb[115].mxu1 }
 0x1ff   : > { %14716 = vst [vmem:[#allocation4_spill] sm:$0xff] %v10367_v28  ;;  %v3008_v19 = vpack.c.bf16 %v10364_v48, %v10311_v60  ;;  %v10389_v9 = vmul.f32 %v4481_v1, %v10058_v34  ;;  %7167 = vrcp.bf16 %v3885_v54  ;;  %v14724_v35 = vmul.bf16 1065369472, %v14723_v8  ;;  %14725 = vst [vmem:[#allocation205_spill] sm:$0xff] %v10395_v62  ;;  %v10397_v28 = vpop.permute.xlu1 %1339  ;;  %v14727_v1 = vld [vmem:[#allocation135_spill] sm:$0xff]  ;;  %v14728_v8 = vld [vmem:[#allocation173_spill] sm:$0xff] }
 0x200   : > { %v4290_v63 = vunpack.c.l.bf16 %v14720_v49  ;;  %v3088_v12 = vpack.c.bf16 %v10373_v41, %v10332_v52  ;;  %v10402_v49 = vadd.f32 %v9744_v55, %v14714_v43  ;;  %v10406_v34 = vadd.f32 %v9746_v11, %v10240_v17  ;;  %v14730_v62 = vld [vmem:[#allocation188_spill] sm:$0xff]  ;;  %v14734_v17 = vld [vmem:[#allocation190_spill] sm:$0xff]  ;;  %v14740_v60 = vld [vmem:[#allocation153_spill] sm:$0xff] }
 0x201   : > { %14722 = vst [vmem:[#allocation202_spill] sm:$0xff] %v10389_v9  ;;  %v4291_v15 = vunpack.c.l.bf16 %v14724_v35  ;;  %v6609_v46 = vmul.bf16 3216621497, %v3008_v19  ;;  %v14729_v35 = vld [vmem:[#allocation181_spill] sm:$0xff]  ;;  %v14731_v0 = vmul.bf16 1065369472, %v14730_v62 }
 0x202   : > { %v4610_v26 = vmul.f32 %v4290_v63, %v14726_v30  ;;  %v6689_v54 = vmul.bf16 3216621497, %v3088_v12  ;;  %v5115_v9 = vadd.f32 %v14729_v35, %v14728_v8  ;;  %v10413_v19 = vpop.f32.mrb[116].mxu0  ;;  %v10415_v30 = vpop.f32.mrb[116].mxu1  ;;  %v3009_v55 = vpack.c.bf16 %v10402_v49, %v10341_v22  ;;  %v14738_v35 = vld [vmem:[#allocation8_spill] sm:$0xff] }
 0x203   : > { %v4611_v52 = vmul.f32 %v4291_v15, %v14727_v1  ;;  %v4294_v29 = vunpack.c.l.bf16 %v14731_v0  ;;  %14732 = vst [vmem:[#allocation164_spill] sm:$0xff] %v10413_v19  ;;  %14733 = vst [vmem:[#allocation165_spill] sm:$0xff] %v10415_v30  ;;  %v7154_v63 = vpop.eup %7153  ;;  %7169 = vpow.bf16 %v6609_v46  ;;  %v3089_v11 = vpack.c.bf16 %v10406_v34, %v10353_v57  ;;  %v10423_v15 = vpop.f32.mrb[117].mxu0 }
 0x204   : > { %v14735_v43 = vmul.bf16 1065369472, %v14734_v17  ;;  %14736 = vst [vmem:[#allocation25_spill] sm:$0xff] %v10423_v15  ;;  %v10425_v1 = vpop.f32.mrb[117].mxu1  ;;  %v7156_v62 = vpop.eup %7155  ;;  %v3806_v0 = vadd.bf16 1065369472, %v7154_v63  ;;  %7171 = vpow.bf16 %v6689_v54  ;;  %5116 = vadd.xlane.f32.xlu0 %v5115_v9 }
 0x205   : > { %14737 = vst [vmem:[#allocation207_spill] sm:$0xff] %v10425_v1  ;;  %v5112_v8 = vadd.f32 %v4611_v52, %v4610_v26  ;;  %v4614_v46 = vmul.f32 %v4294_v29, %v14738_v35  ;;  %v10428_v30 = vpop.f32.mrb[118].mxu0  ;;  %v10430_v19 = vpop.eup %7157  ;;  %v3886_v22 = vadd.bf16 1065369472, %v7156_v62  ;;  %v6610_v17 = vmul.bf16 3216621497, %v3009_v55 }
 0x206   : > { %v4295_v12 = vunpack.c.l.bf16 %v14735_v43  ;;  %14739 = vst [vmem:[#allocation208_spill] sm:$0xff] %v10428_v30  ;;  %v10432_v57 = vpop.permute.xlu0 %1344  ;;  %v6690_v43 = vmul.bf16 3216621497, %v3089_v11  ;;  %v10435_v50 = vpop.eup %7159  ;;  %v14028_v63 = vmul.bf16 1065369472, %v10430_v19  ;;  %7173 = vrcp.bf16 %v3806_v0  ;;  %v14742_v52 = vld [vmem:[#allocation28_spill] sm:$0xff] }
 0x207   : > { %14741 = vst [vmem:[#allocation168_spill] sm:$0xff] %v10435_v50  ;;  %5113 = vadd.xlane.f32.xlu1 %v5112_v8  ;;  %v10440_v29 = vadd.f32 %v9773_v44, %v14742_v52  ;;  %v14744_v9 = vld [vmem:[#allocation214_spill] sm:$0xff]  ;;  %v7162_v54 = vpop.eup %7161  ;;  %v14029_v55 = vmul.bf16 1065369472, %v10435_v50  ;;  %7175 = vrcp.bf16 %v3886_v22  ;;  %v10453_v44 = vpop.permute.xlu1 %1349  ;;  %v14747_v35 = vld [vmem:[#allocation217_spill] sm:$0xff] }
 0x208   : > { %v4615_v15 = vmul.f32 %v4295_v12, %v14740_v60  ;;  %v10444_v26 = vadd.f32 %v14744_v9, %v10276_v21  ;;  %v14746_v60 = vld [vmem:[#allocation154_spill] sm:$0xff]  ;;  %v7164_v62 = vpop.eup %7163  ;;  %v4324_v0 = vunpack.c.h.bf16 %v14028_v63  ;;  %v3807_v8 = vadd.bf16 1065369472, %v7162_v54  ;;  %v14753_v54 = vld [vmem:[#allocation219_spill] sm:$0xff] }
 0x209   : > { %14743 = vst [vmem:[#allocation172_spill] sm:$0xff] %v10440_v29  ;;  %v10449_v12 = vadd.f32 %v14746_v60, %v14742_v52  ;;  %7177 = vpow.bf16 %v6610_v17  ;;  %v10457_v9 = vadd.f32 %v14747_v35, %v10276_v21  ;;  %v4484_v22 = vunpack.c.h.bf16 %v14029_v55  ;;  %v14750_v52 = vld [vmem:[#allocation195_spill] sm:$0xff]  ;;  %v10463_v30 = vpop.eup %7165  ;;  %v14754_v21 = vld [vmem:[#allocation220_spill] sm:$0xff] }
 0x20a   : > { %14745 = vst [vmem:[#allocation6_spill] sm:$0xff] %v10444_v26  ;;  %v5118_v11 = vadd.f32 %v4615_v15, %v4614_v46  ;;  %v3887_v15 = vadd.bf16 1065369472, %v7164_v62  ;;  %7179 = vpow.bf16 %v6690_v43  ;;  %v14749_v46 = vld [vmem:[#allocation193_spill] sm:$0xff]  ;;  %v10466_v63 = vmul.f32 %v4324_v0, %v10158_v20  ;;  %v14752_v17 = vld [vmem:[#allocation27_spill] sm:$0xff]  ;;  %v10476_v62 = vpop.eup %7167  ;;  %v10482_v20 = vpop.permute.xlu0 %1354 }
 0x20b   : > { %14748 = vst [vmem:[#allocation135_spill] sm:$0xff] %v10457_v9  ;;  %v5121_v60 = vadd.f32 %v14750_v52, %v14749_v46  ;;  %7181 = vrcp.bf16 %v3807_v8  ;;  %v10470_v1 = vadd.f32 %v14753_v54, %v14752_v17  ;;  %v10474_v35 = vadd.f32 %v14754_v21, %v10296_v6  ;;  %14755 = vst [vmem:[#allocation181_spill] sm:$0xff] %v10476_v62  ;;  %v10486_v52 = vpop.f32.mrb[118].mxu1 }
 0x20c   : > { %14751 = vst [vmem:[#allocation173_spill] sm:$0xff] %v10466_v63  ;;  %5119 = vadd.xlane.f32.xlu1 %v5118_v11  ;;  %v10479_v43 = vmul.f32 %v4484_v22, %v10161_v47  ;;  %7183 = vrcp.bf16 %v3887_v15  ;;  %14757 = vst [vmem:[#allocation190_spill] sm:$0xff] %v10482_v20  ;;  %v14758_v11 = vld [vmem:[#allocation206_spill] sm:$0xff]  ;;  %v14761_v22 = vld [vmem:[#allocation211_spill] sm:$0xff]  ;;  %v14763_v15 = vmul.bf16 1065369472, %v10463_v30 }
 0x20d   : > { %5122 = vadd.xlane.f32.xlu0 %v5121_v60  ;;  %v14759_v0 = vmul.bf16 1065369472, %v14758_v11  ;;  %14760 = vst [vmem:[#allocation8_spill] sm:$0xff] %v10486_v52  ;;  %v3010_v21 = vpack.c.bf16 %v10470_v1, %v10440_v29  ;;  %v3090_v47 = vpack.c.bf16 %v10474_v35, %v10444_v26  ;;  %v14762_v55 = vmul.bf16 1065369472, %v14761_v22  ;;  %v14764_v60 = vld [vmem:[#allocation10_spill] sm:$0xff]  ;;  %v10508_v29 = vpop.permute.xlu1 %1359 }
 0x20e   : > { %14756 = vst [vmem:[#allocation188_spill] sm:$0xff] %v10479_v43  ;;  %v4325_v43 = vunpack.c.h.bf16 %v14763_v15  ;;  %v10500_v11 = vadd.f32 %v9818_v36, %v14752_v17  ;;  %v7170_v54 = vpop.eup %7169  ;;  %v14765_v52 = vmul.bf16 1065369472, %v10476_v62  ;;  %v14766_v20 = vld [vmem:[#allocation108_spill] sm:$0xff]  ;;  %v10529_v62 = vpop.f32.mrb[119].mxu1 }
 0x20f   : > { %v4298_v8 = vunpack.c.l.bf16 %v14759_v0  ;;  %v4299_v46 = vunpack.c.l.bf16 %v14762_v55  ;;  %v10504_v0 = vadd.f32 %v9820_v4, %v10296_v6  ;;  %v6611_v55 = vmul.bf16 3216621497, %v3010_v21  ;;  %v7172_v63 = vpop.eup %7171  ;;  %v10518_v6 = vpop.f32.mrb[119].mxu0  ;;  %14770 = vst [vmem:[#allocation214_spill] sm:$0xff] %v10529_v62 }
 0x210   : > { %v4485_v26 = vunpack.c.h.bf16 %v14765_v52  ;;  %v6691_v22 = vmul.bf16 3216621497, %v3090_v47  ;;  %v3808_v36 = vadd.bf16 1065369472, %v7170_v54  ;;  %v3011_v17 = vpack.c.bf16 %v10500_v11, %v10449_v12  ;;  %14767 = vst [vmem:[#allocation153_spill] sm:$0xff] %v10518_v6  ;;  %v14769_v54 = vld [vmem:[#allocation213_spill] sm:$0xff] }
 0x211   : > { %v4618_v50 = vmul.f32 %v4298_v8, %v14764_v60  ;;  %v4619_v15 = vmul.f32 %v4299_v46, %v14766_v20  ;;  %v10512_v8 = vmul.f32 %v4325_v43, %v10173_v38  ;;  %v3091_v4 = vpack.c.bf16 %v10504_v0, %v10457_v9  ;;  %v10523_v46 = vpop.eup %7173  ;;  %v10525_v38 = vpop.permute.xlu0 %1364 }
 0x212   : > { %v10521_v52 = vmul.f32 %v4485_v26, %v10176_v14  ;;  %v3888_v21 = vadd.bf16 1065369472, %v7172_v63  ;;  %7185 = vpow.bf16 %v6611_v55  ;;  %v6612_v43 = vmul.bf16 3216621497, %v3011_v17  ;;  %v10531_v9 = vpop.eup %7175 }
 0x213   : > { %v5124_v47 = vadd.f32 %v4619_v15, %v4618_v50  ;;  %7187 = vrcp.bf16 %v3808_v36  ;;  %v6692_v20 = vmul.bf16 3216621497, %v3091_v4  ;;  %v5127_v60 = vadd.f32 %v9814_v31, %v14769_v54  ;;  %14771 = vst [vmem:[#allocation154_spill] sm:$0xff] %v10531_v9  ;;  %v10538_v15 = vpop.f32.mrb[120].mxu0  ;;  %v10540_v36 = vpop.f32.mrb[120].mxu1  ;;  %v14776_v4 = vld [vmem:[#allocation30_spill] sm:$0xff] }
 0x214   : > { %14768 = vst [vmem:[#allocation28_spill] sm:$0xff] %v10521_v52  ;;  %v14036_v14 = vmul.bf16 1065369472, %v10523_v46  ;;  %7189 = vrcp.bf16 %v3888_v21  ;;  %v14772_v50 = vmul.bf16 1065369472, %v9870_v2  ;;  %14774 = vst [vmem:[#allocation217_spill] sm:$0xff] %v10538_v15  ;;  %v7178_v17 = vpop.eup %7177  ;;  %v10545_v54 = vadd.f32 %v9851_v23, %v14776_v4  ;;  %v10557_v31 = vpop.permute.xlu1 %1369 }
 0x215   : > { %5125 = vadd.xlane.f32.xlu1 %v5124_v47  ;;  %v14773_v26 = vmul.bf16 1065369472, %v9879_v3  ;;  %14775 = vst [vmem:[#allocation193_spill] sm:$0xff] %v10540_v36  ;;  %7191 = vpow.bf16 %v6691_v22  ;;  %5128 = vadd.xlane.f32.xlu0 %v5127_v60  ;;  %v10549_v2 = vadd.f32 %v9853_v37, %v10328_v27  ;;  %v10551_v21 = vpop.f32.mrb[121].mxu0  ;;  %v10553_v3 = vpop.f32.mrb[121].mxu1  ;;  %v14781_v22 = vld [vmem:[#allocation12_spill] sm:$0xff] }
 0x216   : > { %v4302_v63 = vunpack.c.l.bf16 %v14772_v50  ;;  %14777 = vst [vmem:[#allocation195_spill] sm:$0xff] %v10545_v54  ;;  %14779 = vst [vmem:[#allocation219_spill] sm:$0xff] %v10551_v21  ;;  %v7180_v47 = vpop.eup %7179  ;;  %v4328_v50 = vunpack.c.h.bf16 %v14036_v14  ;;  %7193 = vpow.bf16 %v6612_v43  ;;  %v10560_v23 = vpop.f32.mrb[122].mxu0  ;;  %v14783_v37 = vmul.bf16 1065369472, %v10531_v9 }
 0x217   : > { %v4303_v55 = vunpack.c.l.bf16 %v14773_v26  ;;  %14778 = vst [vmem:[#allocation27_spill] sm:$0xff] %v10549_v2  ;;  %14780 = vst [vmem:[#allocation220_spill] sm:$0xff] %v10553_v3  ;;  %v3809_v26 = vadd.bf16 1065369472, %v7178_v17  ;;  %v10562_v52 = vpop.eup %7181  ;;  %v3889_v21 = vadd.bf16 1065369472, %v7180_v47  ;;  %7195 = vpow.bf16 %v6692_v20 }
 0x218   : > { %v4622_v60 = vmul.f32 %v4302_v63, %v14781_v22  ;;  %14782 = vst [vmem:[#allocation206_spill] sm:$0xff] %v10560_v23  ;;  %v4488_v36 = vunpack.c.h.bf16 %v14783_v37  ;;  %v14784_v3 = vld [vmem:[#allocation183_spill] sm:$0xff]  ;;  %v10567_v62 = vpop.eup %7183  ;;  %v10570_v17 = vmul.f32 %v4328_v50, %v10266_v51  ;;  %v14037_v43 = vmul.bf16 1065369472, %v10562_v52  ;;  %v10577_v22 = vpop.f32.mrb[122].mxu1  ;;  %v14792_v50 = vld [vmem:[#allocation234_spill] sm:$0xff] }
 0x219   : > { %v4623_v15 = vmul.f32 %v4303_v55, %v14784_v3  ;;  %14785 = vst [vmem:[#allocation211_spill] sm:$0xff] %v10567_v62  ;;  %7197 = vrcp.bf16 %v3809_v26  ;;  %v10575_v63 = vadd.f32 %v9860_v33, %v14776_v4  ;;  %14787 = vst [vmem:[#allocation108_spill] sm:$0xff] %v10577_v22  ;;  %v14039_v20 = vmul.bf16 1065369472, %v10567_v62  ;;  %v10583_v55 = vpop.permute.xlu0 %1374  ;;  %v10585_v51 = vpop.f32.mrb[123].mxu0  ;;  %v14791_v4 = vld [vmem:[#allocation230_spill] sm:$0xff] }
 0x21a   : > { %v10580_v37 = vmul.f32 %v4488_v36, %v10269_v56  ;;  %7199 = vrcp.bf16 %v3889_v21  ;;  %14789 = vst [vmem:[#allocation30_spill] sm:$0xff] %v10585_v51  ;;  %v4329_v47 = vunpack.c.h.bf16 %v14037_v43  ;;  %v10591_v33 = vadd.f32 %v9868_v13, %v10328_v27  ;;  %v14793_v56 = vld [vmem:[#allocation29_spill] sm:$0xff]  ;;  %v14794_v36 = vld [vmem:[#allocation163_spill] sm:$0xff]  ;;  %v14796_v43 = vld [vmem:[#allocation240_spill] sm:$0xff]  ;;  %v10633_v23 = vpop.f32.mrb[124].mxu0 }
 0x21b   : > { %14786 = vst [vmem:[#allocation10_spill] sm:$0xff] %v10575_v63  ;;  %v5130_v3 = vadd.f32 %v4623_v15, %v4622_v60  ;;  %v5133_v26 = vadd.f32 %v14792_v50, %v14791_v4  ;;  %v10597_v14 = vadd.f32 %v14794_v36, %v14793_v56  ;;  %v4489_v21 = vunpack.c.h.bf16 %v14039_v20  ;;  %v14795_v15 = vld [vmem:[#allocation224_spill] sm:$0xff]  ;;  %v10612_v50 = vpop.permute.xlu1 %1379  ;;  %v14806_v62 = vld [vmem:[#allocation199_spill] sm:$0xff]  ;;  %14807 = vst [vmem:[#allocation29_spill] sm:$0xff] %v10633_v23 }
 0x21c   : > { %14788 = vst [vmem:[#allocation213_spill] sm:$0xff] %v10580_v37  ;;  %14790 = vst [vmem:[#allocation12_spill] sm:$0xff] %v10591_v33  ;;  %v10603_v60 = vadd.f32 %v14795_v15, %v10349_v16  ;;  %v14797_v37 = vmul.bf16 1065369472, %v14796_v43  ;;  %v14798_v13 = vld [vmem:[#allocation20_spill] sm:$0xff]  ;;  %v10610_v4 = vmul.f32 %v4329_v47, %v10282_v10  ;;  %v14802_v15 = vld [vmem:[#allocation227_spill] sm:$0xff] }
 0x21d   : > { %5131 = vadd.xlane.f32.xlu1 %v5130_v3  ;;  %v14799_v27 = vmul.bf16 1065369472, %v14798_v13  ;;  %14800 = vst [vmem:[#allocation183_spill] sm:$0xff] %v10612_v50  ;;  %5134 = vadd.xlane.f32.xlu0 %v5133_v26  ;;  %v3012_v36 = vpack.c.bf16 %v10597_v14, %v10545_v54  ;;  %v14801_v3 = vld [vmem:[#allocation226_spill] sm:$0xff]  ;;  %v10622_v43 = vadd.f32 %v14802_v15, %v10349_v16  ;;  %v7186_v13 = vpop.eup %7185 }
 0x21e   : > { %v4306_v9 = vunpack.c.l.bf16 %v14797_v37  ;;  %v10618_v20 = vadd.f32 %v14801_v3, %v14793_v56  ;;  %v10624_v37 = vpop.f32.mrb[123].mxu1  ;;  %v10627_v10 = vmul.f32 %v4489_v21, %v10285_v18  ;;  %v3092_v47 = vpack.c.bf16 %v10603_v60, %v10549_v2  ;;  %v14805_v26 = vld [vmem:[#allocation14_spill] sm:$0xff]  ;;  %v10637_v3 = vpop.eup %7187 }
 0x21f   : > { %v4307_v51 = vunpack.c.l.bf16 %v14799_v27  ;;  %14803 = vst [vmem:[#allocation230_spill] sm:$0xff] %v10624_v37  ;;  %v10635_v56 = vpop.f32.mrb[124].mxu1  ;;  %v3810_v16 = vadd.bf16 1065369472, %v7186_v13  ;;  %v6613_v15 = vmul.bf16 3216621497, %v3012_v36  ;;  %v3093_v18 = vpack.c.bf16 %v10622_v43, %v10591_v33 }
 0x220   : > { %14804 = vst [vmem:[#allocation234_spill] sm:$0xff] %v10627_v10  ;;  %v4626_v27 = vmul.f32 %v4306_v9, %v14805_v26  ;;  %14808 = vst [vmem:[#allocation163_spill] sm:$0xff] %v10635_v56  ;;  %v3013_v37 = vpack.c.bf16 %v10618_v20, %v10575_v63  ;;  %v10643_v21 = vpop.f32.mrb[125].mxu0  ;;  %v10645_v2 = vpop.f32.mrb[125].mxu1  ;;  %v6693_v26 = vmul.bf16 3216621497, %v3092_v47 }
 0x221   : > { %v4627_v22 = vmul.f32 %v4307_v51, %v14806_v62  ;;  %14809 = vst [vmem:[#allocation224_spill] sm:$0xff] %v10643_v21  ;;  %14810 = vst [vmem:[#allocation240_spill] sm:$0xff] %v10645_v2  ;;  %v10647_v9 = vpop.eup %7189  ;;  %v14046_v62 = vmul.bf16 1065369472, %v10637_v3  ;;  %v10650_v51 = vpop.permute.xlu0 %1384  ;;  %v14812_v13 = vld [vmem:[#allocation247_spill] sm:$0xff]  ;;  %v14813_v36 = vld [vmem:[#allocation176_spill] sm:$0xff]  ;;  %7201 = vrcp.bf16 %v3810_v16 }
 0x222   : > { %14811 = vst [vmem:[#allocation20_spill] sm:$0xff] %v10647_v9  ;;  %v5139_v56 = vadd.f32 %v14813_v36, %v14812_v13  ;;  %v10654_v23 = vpop.f32.mrb[126].mxu0  ;;  %v7192_v6 = vpop.eup %7191  ;;  %v14047_v33 = vmul.bf16 1065369472, %v10647_v9  ;;  %v6614_v21 = vmul.bf16 3216621497, %v3013_v37  ;;  %7203 = vpow.bf16 %v6613_v15 }
 0x223   : > { %v5136_v10 = vadd.f32 %v4627_v22, %v4626_v27  ;;  %14814 = vst [vmem:[#allocation226_spill] sm:$0xff] %v10654_v23  ;;  %v6694_v63 = vmul.bf16 3216621497, %v3093_v18  ;;  %v7194_v2 = vpop.eup %7193  ;;  %v4332_v54 = vunpack.c.h.bf16 %v14046_v62  ;;  %v3890_v50 = vadd.bf16 1065369472, %v7192_v6 }
 0x224   : > { %5140 = vadd.xlane.f32.xlu0 %v5139_v56  ;;  %v14815_v22 = vmul.bf16 1065369472, %v10087_v5  ;;  %v7196_v27 = vpop.eup %7195  ;;  %v4492_v13 = vunpack.c.h.bf16 %v14047_v33  ;;  %v3811_v36 = vadd.bf16 1065369472, %v7194_v2  ;;  %7205 = vpow.bf16 %v6693_v26  ;;  %v10677_v26 = vpop.permute.xlu1 %1389 }
 0x225   : > { %5137 = vadd.xlane.f32.xlu1 %v5136_v10  ;;  %v14816_v37 = vmul.bf16 1065369472, %v10109_v39  ;;  %v10665_v18 = vpop.eup %7197  ;;  %v10668_v62 = vmul.f32 %v4332_v54, %v10364_v48  ;;  %7207 = vrcp.bf16 %v3890_v50  ;;  %v3891_v6 = vadd.bf16 1065369472, %v7196_v27  ;;  %v14817_v10 = vld [vmem:[#allocation16_spill] sm:$0xff]  ;;  %v14820_v39 = vld [vmem:[#allocation161_spill] sm:$0xff]  ;;  %v10683_v54 = vpop.permute.xlu0 %1394 }
 0x226   : > { %v4310_v47 = vunpack.c.l.bf16 %v14815_v22  ;;  %v10671_v5 = vpop.eup %7199  ;;  %v10674_v15 = vmul.f32 %v4492_v13, %v10373_v41  ;;  %v14049_v2 = vmul.bf16 1065369472, %v10665_v18  ;;  %7209 = vrcp.bf16 %v3811_v36  ;;  %v14822_v50 = vld [vmem:[#allocation32_spill] sm:$0xff] }
 0x227   : > { %v4311_v16 = vunpack.c.l.bf16 %v14816_v37  ;;  %14818 = vst [vmem:[#allocation227_spill] sm:$0xff] %v10671_v5  ;;  %v10680_v37 = vpop.f32.mrb[126].mxu1  ;;  %v14048_v48 = vmul.bf16 1065369472, %v10671_v5  ;;  %7211 = vrcp.bf16 %v3891_v6  ;;  %v14824_v41 = vld [vmem:[#allocation232_spill] sm:$0xff] }
 0x228   : > { %v4630_v56 = vmul.f32 %v4310_v47, %v14817_v10  ;;  %14819 = vst [vmem:[#allocation14_spill] sm:$0xff] %v10674_v15  ;;  %14821 = vst [vmem:[#allocation199_spill] sm:$0xff] %v10680_v37  ;;  %v14823_v47 = vld [vmem:[#allocation231_spill] sm:$0xff]  ;;  %v10691_v13 = vadd.f32 %v14824_v41, %v10380_v24  ;;  %v4333_v36 = vunpack.c.h.bf16 %v14049_v2  ;;  %7213 = vpow.bf16 %v6614_v21  ;;  %v14826_v10 = vld [vmem:[#allocation17_spill] sm:$0xff] }
 0x229   : > { %v4631_v22 = vmul.f32 %v4311_v16, %v14820_v39  ;;  %v10687_v27 = vadd.f32 %v14823_v47, %v14822_v50  ;;  %v10697_v39 = vadd.f32 %v14826_v10, %v14822_v50  ;;  %v4493_v6 = vunpack.c.h.bf16 %v14048_v48  ;;  %v14827_v47 = vld [vmem:[#allocation167_spill] sm:$0xff]  ;;  %v14831_v50 = vld [vmem:[#allocation170_spill] sm:$0xff] }
 0x22a   : > { %14825 = vst [vmem:[#allocation247_spill] sm:$0xff] %v10691_v13  ;;  %7215 = vpow.bf16 %v6694_v63  ;;  %v10703_v33 = vadd.f32 %v14827_v47, %v10380_v24  ;;  %v5145_v41 = vadd.f32 %v10146_v61, %v10127_v40  ;;  %v10708_v15 = vmul.f32 %v4333_v36, %v10402_v49  ;;  %v14829_v21 = vld [vmem:[#allocation31_spill] sm:$0xff]  ;;  %v10720_v24 = vpop.f32.mrb[127].mxu0 }
 0x22b   : > { %v5142_v16 = vadd.f32 %v4631_v22, %v4630_v56  ;;  %v14830_v56 = vld [vmem:[#allocation9_spill] sm:$0xff]  ;;  %v10716_v10 = vadd.f32 %v14831_v50, %v10397_v28  ;;  %v14832_v63 = vmul.bf16 1065369472, %v10180_v7  ;;  %14833 = vst [vmem:[#allocation16_spill] sm:$0xff] %v10720_v24  ;;  %v10723_v47 = vmul.f32 %v4493_v6, %v10406_v34  ;;  %v14836_v49 = vld [vmem:[#allocation239_spill] sm:$0xff]  ;;  %v10735_v50 = vpop.f32.mrb[127].mxu1  ;;  %v10737_v7 = vpop.permute.xlu1 %1399 }
 0x22c   : > { %14828 = vst [vmem:[#allocation176_spill] sm:$0xff] %v10703_v33  ;;  %v10712_v22 = vadd.f32 %v14830_v56, %v14829_v21  ;;  %5146 = vadd.xlane.f32.xlu0 %v5145_v41  ;;  %v14835_v40 = vmul.bf16 1065369472, %v10206_v59  ;;  %v10729_v36 = vadd.f32 %v14836_v49, %v14829_v21  ;;  %14838 = vst [vmem:[#allocation32_spill] sm:$0xff] %v10735_v50  ;;  %v14839_v59 = vld [vmem:[#allocation18_spill] sm:$0xff] }
 0x22d   : > { %5143 = vadd.xlane.f32.xlu1 %v5142_v16  ;;  %v4314_v48 = vunpack.c.l.bf16 %v14832_v63  ;;  %14834 = vst [vmem:[#allocation161_spill] sm:$0xff] %v10723_v47  ;;  %v14837_v16 = vld [vmem:[#allocation242_spill] sm:$0xff]  ;;  %v3094_v6 = vpack.c.bf16 %v10716_v10, %v10691_v13  ;;  %v5151_v21 = vadd.f32 %v10237_v53, %v10219_v42  ;;  %v10746_v63 = vpop.eup %7201  ;;  %v14842_v47 = vmul.bf16 1065369472, %v10305_v45 }
 0x22e   : > { %v4315_v61 = vunpack.c.l.bf16 %v14835_v40  ;;  %v10733_v56 = vadd.f32 %v14837_v16, %v10397_v28  ;;  %v3014_v34 = vpack.c.bf16 %v10712_v22, %v10687_v27  ;;  %v10748_v40 = vpop.permute.xlu0 %1404  ;;  %v14841_v28 = vld [vmem:[#allocation105_spill] sm:$0xff]  ;;  %v3015_v16 = vpack.c.bf16 %v10729_v36, %v10697_v39  ;;  %v7204_v5 = vpop.eup %7203 }
 0x22f   : > { %v4634_v41 = vmul.f32 %v4314_v48, %v14839_v59  ;;  %14840 = vst [vmem:[#allocation231_spill] sm:$0xff] %v10748_v40  ;;  %v4318_v13 = vunpack.c.l.bf16 %v14842_v47  ;;  %v14055_v48 = vmul.bf16 1065369472, %v10746_v63  ;;  %v6695_v42 = vmul.bf16 3216621497, %v3094_v6  ;;  %v7206_v50 = vpop.eup %7205  ;;  %v10767_v6 = vpop.f32.mrb[128].mxu1 }
 0x230   : > { %v4635_v49 = vmul.f32 %v4315_v61, %v14841_v28  ;;  %v3095_v2 = vpack.c.bf16 %v10733_v56, %v10703_v33  ;;  %v6615_v59 = vmul.bf16 3216621497, %v3014_v34  ;;  %v14843_v53 = vmul.bf16 1065369472, %v10336_v25  ;;  %5152 = vadd.xlane.f32.xlu0 %v5151_v21  ;;  %v10760_v23 = vpop.eup %7207  ;;  %v14845_v33 = vld [vmem:[#allocation55_spill] sm:$0xff]  ;;  %v10765_v34 = vpop.f32.mrb[128].mxu0 }
 0x231   : > { %v3812_v24 = vadd.bf16 1065369472, %v7204_v5  ;;  %v6616_v28 = vmul.bf16 3216621497, %v3015_v16  ;;  %14844 = vst [vmem:[#allocation232_spill] sm:$0xff] %v10760_v23  ;;  %v4336_v45 = vunpack.c.h.bf16 %v14055_v48  ;;  %v4638_v40 = vmul.f32 %v4318_v13, %v14845_v33  ;;  %14846 = vst [vmem:[#allocation17_spill] sm:$0xff] %v10765_v34  ;;  %v10769_v25 = vpop.eup %7209 }
 0x232   : > { %v4319_v9 = vunpack.c.l.bf16 %v14843_v53  ;;  %v5148_v61 = vadd.f32 %v4635_v49, %v4634_v41  ;;  %v6696_v37 = vmul.bf16 3216621497, %v3095_v2  ;;  %v3892_v47 = vadd.bf16 1065369472, %v7206_v50  ;;  %14847 = vst [vmem:[#allocation167_spill] sm:$0xff] %v10767_v6  ;;  %v14848_v2 = vld [vmem:[#allocation174_spill] sm:$0xff]  ;;  %v10781_v33 = vpop.eup %7211 }
 0x233   : > { %7217 = vpow.bf16 %v6615_v59  ;;  %v14056_v5 = vmul.bf16 1065369472, %v10760_v23  ;;  %v14849_v21 = vld [vmem:[#allocation34_spill] sm:$0xff]  ;;  %v14850_v49 = vld [vmem:[#allocation243_spill] sm:$0xff]  ;;  %v10777_v50 = vpop.f32.mrb[129].mxu0  ;;  %v10779_v59 = vpop.f32.mrb[129].mxu1  ;;  %v10784_v13 = vmul.f32 %v4336_v45, %v10470_v1 }
 0x234   : > { %7219 = vrcp.bf16 %v3812_v24  ;;  %5149 = vadd.xlane.f32.xlu1 %v5148_v61  ;;  %v4639_v41 = vmul.f32 %v4319_v9, %v14848_v2  ;;  %v10775_v16 = vadd.f32 %v14850_v49, %v14849_v21  ;;  %14851 = vst [vmem:[#allocation31_spill] sm:$0xff] %v10777_v50  ;;  %14852 = vst [vmem:[#allocation9_spill] sm:$0xff] %v10779_v59  ;;  %v14059_v53 = vmul.bf16 1065369472, %v10769_v25  ;;  %v10787_v24 = vpop.permute.xlu1 %1409  ;;  %v14854_v9 = vld [vmem:[#allocation244_spill] sm:$0xff]  ;;  %v10793_v2 = vpop.f32.mrb[130].mxu0 }
 0x235   : > { %14853 = vst [vmem:[#allocation170_spill] sm:$0xff] %v10781_v33  ;;  %7221 = vrcp.bf16 %v3892_v47  ;;  %v10791_v61 = vadd.f32 %v14854_v9, %v10432_v57  ;;  %14856 = vst [vmem:[#allocation242_spill] sm:$0xff] %v10793_v2  ;;  %v7214_v49 = vpop.eup %7213  ;;  %v4496_v48 = vunpack.c.h.bf16 %v14056_v5  ;;  %v14058_v59 = vmul.bf16 1065369472, %v10781_v33  ;;  %v10798_v50 = vpop.permute.xlu0 %1414  ;;  %v14858_v2 = vld [vmem:[#allocation89_spill] sm:$0xff] }
 0x236   : > { %7223 = vpow.bf16 %v6695_v42  ;;  %v5154_v1 = vadd.f32 %v4639_v41, %v4638_v40  ;;  %v10800_v45 = vpop.f32.mrb[130].mxu1  ;;  %v7216_v47 = vpop.eup %7215  ;;  %v4337_v6 = vunpack.c.h.bf16 %v14059_v53  ;;  %v3813_v9 = vadd.bf16 1065369472, %v7214_v49 }
 0x237   : > { %14855 = vst [vmem:[#allocation239_spill] sm:$0xff] %v10791_v61  ;;  %14857 = vst [vmem:[#allocation18_spill] sm:$0xff] %v10800_v45  ;;  %7225 = vpow.bf16 %v6616_v28  ;;  %v10806_v34 = vadd.f32 %v14858_v2, %v14849_v21  ;;  %v10809_v5 = vmul.f32 %v4496_v48, %v10474_v35  ;;  %v4497_v23 = vunpack.c.h.bf16 %v14058_v59  ;;  %v10813_v40 = vpop.f32.mrb[131].mxu0  ;;  %v14861_v28 = vld [vmem:[#allocation245_spill] sm:$0xff]  ;;  %v10824_v48 = vpop.f32.mrb[131].mxu1 }
 0x238   : > { %v3893_v42 = vadd.bf16 1065369472, %v7216_v47  ;;  %7227 = vpow.bf16 %v6696_v37  ;;  %5155 = vadd.xlane.f32.xlu1 %v5154_v1  ;;  %14860 = vst [vmem:[#allocation55_spill] sm:$0xff] %v10813_v40  ;;  %v10816_v41 = vmul.f32 %v4337_v6, %v10500_v11  ;;  %v10820_v49 = vadd.f32 %v14861_v28, %v10432_v57  ;;  %14863 = vst [vmem:[#allocation34_spill] sm:$0xff] %v10824_v48  ;;  %v14865_v37 = vld [vmem:[#allocation33_spill] sm:$0xff]  ;;  %v10849_v28 = vpop.permute.xlu1 %1419 }
 0x239   : > { %14859 = vst [vmem:[#allocation105_spill] sm:$0xff] %v10809_v5  ;;  %7229 = vrcp.bf16 %v3813_v9  ;;  %v5157_v35 = vadd.f32 %v10378_v58, %v10346_v32  ;;  %v10827_v21 = vmul.f32 %v4497_v23, %v10504_v0  ;;  %v14866_v2 = vld [vmem:[#allocation53_spill] sm:$0xff]  ;;  %v14868_v57 = vmul.bf16 1065369472, %v10430_v19  ;;  %v14870_v9 = vld [vmem:[#allocation95_spill] sm:$0xff]  ;;  %v10869_v5 = vpop.f32.mrb[132].mxu1 }
 0x23a   : > { %14862 = vst [vmem:[#allocation174_spill] sm:$0xff] %v10820_v49  ;;  %7231 = vrcp.bf16 %v3893_v42  ;;  %v10831_v1 = vadd.f32 %v14866_v2, %v14865_v37  ;;  %v14867_v11 = vld [vmem:[#allocation93_spill] sm:$0xff]  ;;  %v14869_v32 = vmul.bf16 1065369472, %v10463_v30  ;;  %v10843_v0 = vadd.f32 %v14870_v9, %v14865_v37  ;;  %v14871_v23 = vld [vmem:[#allocation19_spill] sm:$0xff]  ;;  %v10851_v2 = vpop.permute.xlu0 %1424  ;;  %14878 = vst [vmem:[#allocation245_spill] sm:$0xff] %v10869_v5 }
 0x23b   : > { %14864 = vst [vmem:[#allocation243_spill] sm:$0xff] %v10827_v21  ;;  %v10835_v6 = vadd.f32 %v14867_v11, %v10453_v44  ;;  %5158 = vadd.xlane.f32.xlu0 %v5157_v35  ;;  %v4322_v47 = vunpack.c.l.bf16 %v14868_v57  ;;  %v10847_v42 = vadd.f32 %v14871_v23, %v10453_v44  ;;  %14872 = vst [vmem:[#allocation244_spill] sm:$0xff] %v10851_v2  ;;  %v14873_v30 = vld [vmem:[#allocation173_spill] sm:$0xff]  ;;  %v14874_v37 = vmul.bf16 1065369472, %v10523_v46  ;;  %v10867_v21 = vpop.f32.mrb[132].mxu0 }
 0x23c   : > { %v4323_v58 = vunpack.c.l.bf16 %v14869_v32  ;;  %v3016_v35 = vpack.c.bf16 %v10831_v1, %v10775_v16  ;;  %v5163_v11 = vadd.f32 %v10512_v8, %v14873_v30  ;;  %v14875_v32 = vld [vmem:[#allocation22_spill] sm:$0xff]  ;;  %v14876_v44 = vld [vmem:[#allocation249_spill] sm:$0xff]  ;;  %v3017_v59 = vpack.c.bf16 %v10843_v0, %v10806_v34  ;;  %14877 = vst [vmem:[#allocation89_spill] sm:$0xff] %v10867_v21 }
 0x23d   : > { %v3096_v19 = vpack.c.bf16 %v10835_v6, %v10791_v61  ;;  %v4326_v57 = vunpack.c.l.bf16 %v14874_v37  ;;  %v4642_v9 = vmul.f32 %v4322_v47, %v14875_v32  ;;  %v3097_v53 = vpack.c.bf16 %v10847_v42, %v10820_v49  ;;  %v14880_v37 = vld [vmem:[#allocation127_spill] sm:$0xff]  ;;  %v10874_v32 = vpop.f32.mrb[133].mxu0 }
 0x23e   : > { %v4643_v23 = vmul.f32 %v4323_v58, %v14876_v44  ;;  %v7218_v61 = vpop.eup %7217  ;;  %v6617_v33 = vmul.bf16 3216621497, %v3016_v35  ;;  %v14879_v46 = vmul.bf16 1065369472, %v10562_v52  ;;  %14881 = vst [vmem:[#allocation33_spill] sm:$0xff] %v10874_v32  ;;  %v10876_v58 = vpop.f32.mrb[133].mxu1 }
 0x23f   : > { %v6697_v8 = vmul.bf16 3216621497, %v3096_v19  ;;  %v4646_v47 = vmul.f32 %v4326_v57, %v14880_v37  ;;  %14882 = vst [vmem:[#allocation53_spill] sm:$0xff] %v10876_v58  ;;  %v10878_v44 = vpop.eup %7219  ;;  %v3814_v2 = vadd.bf16 1065369472, %v7218_v61  ;;  %5164 = vadd.xlane.f32.xlu0 %v5163_v11  ;;  %v14884_v52 = vld [vmem:[#allocation24_spill] sm:$0xff]  ;;  %v10903_v40 = vpop.permute.xlu0 %1434 }
 0x240   : > { %v4327_v30 = vunpack.c.l.bf16 %v14879_v46  ;;  %v5160_v49 = vadd.f32 %v4643_v23, %v4642_v9  ;;  %v6618_v48 = vmul.bf16 3216621497, %v3017_v59  ;;  %v6698_v21 = vmul.bf16 3216621497, %v3097_v53  ;;  %v10880_v5 = vpop.eup %7221  ;;  %v14885_v46 = vld [vmem:[#allocation36_spill] sm:$0xff]  ;;  %v10888_v32 = vpop.f32.mrb[134].mxu0 }
 0x241   : > { %14883 = vst [vmem:[#allocation93_spill] sm:$0xff] %v10880_v5  ;;  %v14065_v35 = vmul.bf16 1065369472, %v10878_v44  ;;  %7233 = vpow.bf16 %v6617_v33  ;;  %v14886_v57 = vld [vmem:[#allocation100_spill] sm:$0xff]  ;;  %14887 = vst [vmem:[#allocation95_spill] sm:$0xff] %v10888_v32  ;;  %v7224_v58 = vpop.eup %7223  ;;  %v14888_v59 = vld [vmem:[#allocation190_spill] sm:$0xff] }
 0x242   : > { %v4647_v19 = vmul.f32 %v4327_v30, %v14884_v52  ;;  %v10886_v37 = vadd.f32 %v14886_v57, %v14885_v46  ;;  %v14064_v61 = vmul.bf16 1065369472, %v10880_v5  ;;  %7235 = vrcp.bf16 %v3814_v2  ;;  %5161 = vadd.xlane.f32.xlu1 %v5160_v49  ;;  %v14889_v53 = vld [vmem:[#allocation179_spill] sm:$0xff]  ;;  %v7226_v23 = vpop.eup %7225  ;;  %14892 = vst [vmem:[#allocation173_spill] sm:$0xff] %v10903_v40 }
 0x243   : > { %v10893_v11 = vadd.f32 %v14889_v53, %v14888_v59  ;;  %v14891_v9 = vld [vmem:[#allocation63_spill] sm:$0xff]  ;;  %v4340_v30 = vunpack.c.h.bf16 %v14065_v35  ;;  %v3894_v52 = vadd.bf16 1065369472, %v7224_v58  ;;  %7237 = vpow.bf16 %v6697_v8  ;;  %v7228_v32 = vpop.eup %7227  ;;  %v14893_v53 = vld [vmem:[#allocation65_spill] sm:$0xff] }
 0x244   : > { %v10897_v33 = vadd.f32 %v14891_v9, %v14885_v46  ;;  %v5166_v57 = vadd.f32 %v4647_v19, %v4646_v47  ;;  %v4500_v2 = vunpack.c.h.bf16 %v14064_v61  ;;  %v3815_v49 = vadd.bf16 1065369472, %v7226_v23  ;;  %v10909_v46 = vpop.eup %7229  ;;  %v10914_v47 = vpop.permute.xlu1 %1429  ;;  %v14898_v23 = vld [vmem:[#allocation35_spill] sm:$0xff] }
 0x245   : > { %14890 = vst [vmem:[#allocation19_spill] sm:$0xff] %v10893_v11  ;;  %7239 = vpow.bf16 %v6618_v48  ;;  %v10907_v45 = vadd.f32 %v14893_v53, %v14888_v59  ;;  %v10912_v9 = vmul.f32 %v4340_v30, %v10597_v14  ;;  %v3895_v8 = vadd.bf16 1065369472, %v7228_v32  ;;  %14895 = vst [vmem:[#allocation249_spill] sm:$0xff] %v10914_v47  ;;  %v10918_v19 = vpop.eup %7231  ;;  %v14899_v53 = vld [vmem:[#allocation106_spill] sm:$0xff]  ;;  %v10928_v30 = vpop.f32.mrb[134].mxu1 }
 0x246   : > { %7241 = vrcp.bf16 %v3894_v52  ;;  %v5169_v58 = vadd.f32 %v10610_v4, %v10570_v17  ;;  %14896 = vst [vmem:[#allocation127_spill] sm:$0xff] %v10918_v19  ;;  %v10921_v48 = vmul.f32 %v4500_v2, %v10603_v60  ;;  %v14066_v59 = vmul.bf16 1065369472, %v10909_v46  ;;  %5167 = vadd.xlane.f32.xlu1 %v5166_v57  ;;  %14900 = vst [vmem:[#allocation36_spill] sm:$0xff] %v10928_v30  ;;  %v14901_v17 = vld [vmem:[#allocation109_spill] sm:$0xff]  ;;  %v14902_v60 = vld [vmem:[#allocation123_spill] sm:$0xff] }
 0x247   : > { %14894 = vst [vmem:[#allocation22_spill] sm:$0xff] %v10907_v45  ;;  %7243 = vrcp.bf16 %v3815_v49  ;;  %v10926_v14 = vadd.f32 %v14899_v53, %v14898_v23  ;;  %v14067_v32 = vmul.bf16 1065369472, %v10918_v19  ;;  %v10933_v4 = vadd.f32 %v14901_v17, %v10508_v29  ;;  %v14904_v53 = vld [vmem:[#allocation250_spill] sm:$0xff] }
 0x248   : > { %14897 = vst [vmem:[#allocation24_spill] sm:$0xff] %v10921_v48  ;;  %7245 = vrcp.bf16 %v3895_v8  ;;  %5170 = vadd.xlane.f32.xlu0 %v5169_v58  ;;  %v14903_v52 = vmul.bf16 1065369472, %v14902_v60  ;;  %v4341_v57 = vunpack.c.h.bf16 %v14066_v59  ;;  %v10943_v61 = vadd.f32 %v14904_v53, %v14898_v23  ;;  %v14905_v17 = vld [vmem:[#allocation86_spill] sm:$0xff]  ;;  %v10959_v48 = vpop.permute.xlu0 %1444 }
 0x249   : > { %7247 = vpow.bf16 %v6698_v21  ;;  %v3018_v49 = vpack.c.bf16 %v10926_v14, %v10886_v37  ;;  %v4501_v8 = vunpack.c.h.bf16 %v14067_v32  ;;  %v3098_v58 = vpack.c.bf16 %v10933_v4, %v10893_v11  ;;  %v10954_v21 = vpop.f32.mrb[135].mxu0  ;;  %14908 = vst [vmem:[#allocation190_spill] sm:$0xff] %v10959_v48  ;;  %v10965_v11 = vpop.f32.mrb[135].mxu1  ;;  %v14918_v48 = vld [vmem:[#allocation38_spill] sm:$0xff] }
 0x24a   : > { %v4407_v2 = vunpack.c.l.bf16 %v14903_v52  ;;  %v14906_v52 = vld [vmem:[#allocation113_spill] sm:$0xff]  ;;  %14907 = vst [vmem:[#allocation100_spill] sm:$0xff] %v10954_v21  ;;  %v10957_v59 = vmul.f32 %v4341_v57, %v10618_v20  ;;  %v3019_v53 = vpack.c.bf16 %v10943_v61, %v10897_v33  ;;  %v5175_v32 = vadd.f32 %v10708_v15, %v10668_v62  ;;  %14909 = vst [vmem:[#allocation179_spill] sm:$0xff] %v10965_v11 }
 0x24b   : > { %v10952_v35 = vadd.f32 %v14906_v52, %v10508_v29  ;;  %v6619_v23 = vmul.bf16 3216621497, %v3018_v49  ;;  %v10970_v29 = vpop.permute.xlu1 %1439  ;;  %v14912_v52 = vld [vmem:[#allocation130_spill] sm:$0xff]  ;;  %v10975_v49 = vpop.f32.mrb[136].mxu0  ;;  %v14914_v62 = vmul.bf16 1065369472, %v10637_v3 }
 0x24c   : > { %v4727_v60 = vmul.f32 %v4407_v2, %v14905_v17  ;;  %v10968_v2 = vmul.f32 %v4501_v8, %v10622_v43  ;;  %14911 = vst [vmem:[#allocation65_spill] sm:$0xff] %v10970_v29  ;;  %v6699_v17 = vmul.bf16 3216621497, %v3098_v58  ;;  %14913 = vst [vmem:[#allocation35_spill] sm:$0xff] %v10975_v49  ;;  %v7234_v19 = vpop.eup %7233  ;;  %v6620_v5 = vmul.bf16 3216621497, %v3019_v53  ;;  %5176 = vadd.xlane.f32.xlu0 %v5175_v32 }
 0x24d   : > { %v3099_v57 = vpack.c.bf16 %v10952_v35, %v10907_v45  ;;  %7249 = vpow.bf16 %v6619_v23  ;;  %v4330_v15 = vunpack.c.l.bf16 %v14914_v62  ;;  %v14915_v43 = vmul.bf16 1065369472, %v10665_v18  ;;  %v10983_v58 = vpop.f32.mrb[137].mxu0  ;;  %v14919_v23 = vld [vmem:[#allocation115_spill] sm:$0xff] }
 0x24e   : > { %14910 = vst [vmem:[#allocation63_spill] sm:$0xff] %v10968_v2  ;;  %v5286_v20 = vadd.f32 %v4727_v60, %v14912_v52  ;;  %v10981_v2 = vpop.f32.mrb[136].mxu1  ;;  %14917 = vst [vmem:[#allocation109_spill] sm:$0xff] %v10983_v58  ;;  %v10985_v60 = vpop.eup %7235  ;;  %v3816_v52 = vadd.bf16 1065369472, %v7234_v19  ;;  %7251 = vpow.bf16 %v6699_v17  ;;  %v10989_v53 = vadd.f32 %v14919_v23, %v14918_v48  ;;  %v14921_v62 = vld [vmem:[#allocation23_spill] sm:$0xff] }
 0x24f   : > { %v4331_v8 = vunpack.c.l.bf16 %v14915_v43  ;;  %14916 = vst [vmem:[#allocation106_spill] sm:$0xff] %v10981_v2  ;;  %v6700_v45 = vmul.bf16 3216621497, %v3099_v57  ;;  %v10991_v32 = vpop.f32.mrb[137].mxu1  ;;  %v7238_v3 = vpop.eup %7237  ;;  %v14075_v18 = vmul.bf16 1065369472, %v10985_v60  ;;  %7253 = vpow.bf16 %v6620_v5 }
 0x250   : > { %5287 = vadd.xlane.f32.xlu1 %v5286_v20  ;;  %14920 = vst [vmem:[#allocation123_spill] sm:$0xff] %v10991_v32  ;;  %v4650_v43 = vmul.f32 %v4330_v15, %v14921_v62  ;;  %v14922_v29 = vld [vmem:[#allocation7_spill] sm:$0xff]  ;;  %v10996_v2 = vpop.f32.mrb[138].mxu0  ;;  %v7240_v19 = vpop.eup %7239  ;;  %7255 = vrcp.bf16 %v3816_v52  ;;  %v3896_v17 = vadd.bf16 1065369472, %v7238_v3  ;;  %v14924_v20 = vld [vmem:[#allocation21_spill] sm:$0xff] }
 0x251   : > { %v4651_v58 = vmul.f32 %v4331_v8, %v14922_v29  ;;  %14923 = vst [vmem:[#allocation250_spill] sm:$0xff] %v10996_v2  ;;  %v11000_v57 = vadd.f32 %v14924_v20, %v10525_v38  ;;  %v14926_v23 = vld [vmem:[#allocation116_spill] sm:$0xff]  ;;  %v11006_v40 = vpop.eup %7241  ;;  %v4344_v5 = vunpack.c.h.bf16 %v14075_v18  ;;  %v3817_v15 = vadd.bf16 1065369472, %v7240_v19  ;;  %v11010_v29 = vpop.permute.xlu0 %1454  ;;  %v14930_v62 = vld [vmem:[#allocation11_spill] sm:$0xff] }
 0x252   : > { %v11004_v32 = vadd.f32 %v14926_v23, %v14918_v48  ;;  %14928 = vst [vmem:[#allocation130_spill] sm:$0xff] %v11006_v40  ;;  %14929 = vst [vmem:[#allocation38_spill] sm:$0xff] %v11010_v29  ;;  %7257 = vpow.bf16 %v6700_v45  ;;  %v11012_v52 = vpop.eup %7243  ;;  %v14078_v3 = vmul.bf16 1065369472, %v11006_v40  ;;  %v11017_v20 = vadd.f32 %v14930_v62, %v10525_v38  ;;  %v14932_v48 = vld [vmem:[#allocation61_spill] sm:$0xff]  ;;  %v11061_v47 = vpop.f32.mrb[138].mxu1 }
 0x253   : > { %14925 = vst [vmem:[#allocation86_spill] sm:$0xff] %v11000_v57  ;;  %v5172_v8 = vadd.f32 %v4651_v58, %v4650_v43  ;;  %7259 = vrcp.bf16 %v3896_v17  ;;  %v14933_v23 = vmul.bf16 1065369472, %v14932_v48  ;;  %v11021_v49 = vpop.eup %7245  ;;  %v11024_v19 = vmul.f32 %v4344_v5, %v10712_v22  ;;  %v11027_v58 = vpop.permute.xlu1 %1449  ;;  %v14936_v43 = vld [vmem:[#allocation37_spill] sm:$0xff]  ;;  %14946 = vst [vmem:[#allocation11_spill] sm:$0xff] %v11061_v47  ;;  %v14993_v47 = vld [vmem:[#allocation140_spill] sm:$0xff] }
 0x254   : > { %14927 = vst [vmem:[#allocation113_spill] sm:$0xff] %v11004_v32  ;;  %14931 = vst [vmem:[#allocation115_spill] sm:$0xff] %v11017_v20  ;;  %v14080_v45 = vmul.bf16 1065369472, %v11012_v52  ;;  %7261 = vrcp.bf16 %v3817_v15  ;;  %v14937_v17 = vld [vmem:[#allocation121_spill] sm:$0xff]  ;;  %v7248_v38 = vpop.eup %7247  ;;  %v4504_v62 = vunpack.c.h.bf16 %v14078_v3 }
 0x255   : > { %v4408_v2 = vunpack.c.h.bf16 %v14933_v23  ;;  %14934 = vst [vmem:[#allocation23_spill] sm:$0xff] %v11021_v49  ;;  %14935 = vst [vmem:[#allocation7_spill] sm:$0xff] %v11027_v58  ;;  %5173 = vadd.xlane.f32.xlu1 %v5172_v8  ;;  %v11031_v18 = vadd.f32 %v14937_v17, %v14936_v43  ;;  %v14082_v48 = vmul.bf16 1065369472, %v11021_v49  ;;  %v14938_v23 = vld [vmem:[#allocation85_spill] sm:$0xff] }
 0x256   : > { %v14939_v22 = vld [vmem:[#allocation125_spill] sm:$0xff]  ;;  %v4345_v15 = vunpack.c.h.bf16 %v14080_v45  ;;  %v3897_v8 = vadd.bf16 1065369472, %v7248_v38  ;;  %v11048_v3 = vmul.f32 %v4504_v62, %v10716_v10  ;;  %v11058_v38 = vpop.permute.xlu0 %1464 }
 0x257   : > { %v4728_v29 = vmul.f32 %v4408_v2, %v14938_v23  ;;  %v11039_v5 = vadd.f32 %v14939_v22, %v10557_v31  ;;  %v3020_v17 = vpack.c.bf16 %v11031_v18, %v10989_v53  ;;  %v14940_v58 = vld [vmem:[#allocation133_spill] sm:$0xff]  ;;  %v4505_v2 = vunpack.c.h.bf16 %v14082_v48  ;;  %v14943_v23 = vld [vmem:[#allocation131_spill] sm:$0xff]  ;;  %14944 = vst [vmem:[#allocation116_spill] sm:$0xff] %v11058_v38 }
 0x258   : > { %v14941_v11 = vmul.bf16 1065369472, %v14940_v58  ;;  %14942 = vst [vmem:[#allocation21_spill] sm:$0xff] %v11048_v3  ;;  %v11056_v45 = vmul.f32 %v4345_v15, %v10729_v36  ;;  %7263 = vrcp.bf16 %v3897_v8  ;;  %v14945_v58 = vld [vmem:[#allocation96_spill] sm:$0xff]  ;;  %v7250_v10 = vpop.eup %7249  ;;  %v14949_v36 = vld [vmem:[#allocation134_spill] sm:$0xff]  ;;  %v14969_v49 = vld [vmem:[#allocation97_spill] sm:$0xff] }
 0x259   : > { %v5289_v40 = vadd.f32 %v14943_v23, %v4728_v29  ;;  %v3100_v22 = vpack.c.bf16 %v11039_v5, %v11000_v57  ;;  %v6621_v30 = vmul.bf16 3216621497, %v3020_v17  ;;  %v11064_v62 = vmul.f32 %v4505_v2, %v10733_v56  ;;  %v14948_v23 = vld [vmem:[#allocation84_spill] sm:$0xff]  ;;  %v7252_v8 = vpop.eup %7251  ;;  %v11074_v17 = vpop.permute.xlu1 %1459 }
 0x25a   : > { %v4411_v21 = vunpack.c.l.bf16 %v14941_v11  ;;  %v11068_v48 = vadd.f32 %v14948_v23, %v14936_v43  ;;  %v11072_v15 = vadd.f32 %v14949_v36, %v10557_v31  ;;  %14950 = vst [vmem:[#allocation37_spill] sm:$0xff] %v11074_v17  ;;  %v5181_v56 = vadd.f32 %v10816_v41, %v10784_v13  ;;  %v11089_v41 = vpop.f32.mrb[139].mxu0  ;;  %v14982_v17 = vld [vmem:[#allocation183_spill] sm:$0xff] }
 0x25b   : > { %14947 = vst [vmem:[#allocation61_spill] sm:$0xff] %v11064_v62  ;;  %5290 = vadd.xlane.f32.xlu0 %v5289_v40  ;;  %v6701_v29 = vmul.bf16 3216621497, %v3100_v22  ;;  %7265 = vpow.bf16 %v6621_v30  ;;  %v7254_v40 = vpop.eup %7253  ;;  %v3898_v2 = vadd.bf16 1065369472, %v7252_v8  ;;  %14954 = vst [vmem:[#allocation121_spill] sm:$0xff] %v11089_v41 }
 0x25c   : > { %v4731_v11 = vmul.f32 %v4411_v21, %v14945_v58  ;;  %v3818_v21 = vadd.bf16 1065369472, %v7250_v10  ;;  %v14951_v58 = vld [vmem:[#allocation137_spill] sm:$0xff]  ;;  %v3021_v43 = vpack.c.bf16 %v11068_v48, %v11004_v32  ;;  %v3101_v31 = vpack.c.bf16 %v11072_v15, %v11017_v20  ;;  %v11083_v22 = vpop.eup %7255 }
 0x25d   : > { %7267 = vpow.bf16 %v6701_v29  ;;  %v3819_v23 = vadd.bf16 1065369472, %v7254_v40  ;;  %v14952_v30 = vmul.bf16 1065369472, %v10746_v63  ;;  %v14953_v10 = vmul.bf16 1065369472, %v10769_v25  ;;  %v7258_v29 = vpop.eup %7257 }
 0x25e   : > { %v5292_v57 = vadd.f32 %v4731_v11, %v14951_v58  ;;  %7269 = vrcp.bf16 %v3818_v21  ;;  %v14085_v36 = vmul.bf16 1065369472, %v11083_v22  ;;  %v6622_v8 = vmul.bf16 3216621497, %v3021_v43  ;;  %v11092_v20 = vpop.eup %7259  ;;  %v14957_v63 = vld [vmem:[#allocation172_spill] sm:$0xff] }
 0x25f   : > { %v4334_v11 = vunpack.c.l.bf16 %v14952_v30  ;;  %v4335_v13 = vunpack.c.l.bf16 %v14953_v10  ;;  %7271 = vrcp.bf16 %v3898_v2  ;;  %v6702_v58 = vmul.bf16 3216621497, %v3101_v31  ;;  %5182 = vadd.xlane.f32.xlu0 %v5181_v56  ;;  %14955 = vst [vmem:[#allocation85_spill] sm:$0xff] %v11092_v20  ;;  %v11098_v30 = vpop.f32.mrb[139].mxu1  ;;  %v11100_v10 = vpop.eup %7261  ;;  %v14959_v56 = vld [vmem:[#allocation40_spill] sm:$0xff]  ;;  %v14960_v31 = vld [vmem:[#allocation138_spill] sm:$0xff] }
 0x260   : > { %5293 = vadd.xlane.f32.xlu1 %v5292_v57  ;;  %7273 = vrcp.bf16 %v3819_v23  ;;  %v3899_v21 = vadd.bf16 1065369472, %v7258_v29  ;;  %v11094_v57 = vpop.permute.xlu0 %1474  ;;  %14958 = vst [vmem:[#allocation133_spill] sm:$0xff] %v11098_v30  ;;  %v4348_v2 = vunpack.c.h.bf16 %v14085_v36  ;;  %v11107_v23 = vadd.f32 %v14960_v31, %v14959_v56  ;;  %v11109_v29 = vpop.f32.mrb[140].mxu0 }
 0x261   : > { %14956 = vst [vmem:[#allocation125_spill] sm:$0xff] %v11094_v57  ;;  %v4654_v40 = vmul.f32 %v4334_v11, %v14957_v63  ;;  %v4655_v25 = vmul.f32 %v4335_v13, %v10449_v12  ;;  %7275 = vpow.bf16 %v6622_v8  ;;  %14962 = vst [vmem:[#allocation96_spill] sm:$0xff] %v11109_v29  ;;  %v11111_v62 = vpop.f32.mrb[140].mxu1  ;;  %v11114_v11 = vpop.permute.xlu1 %1469  ;;  %v14965_v63 = vld [vmem:[#allocation143_spill] sm:$0xff]  ;;  %v14968_v31 = vmul.bf16 1065369472, %v11092_v20 }
 0x262   : > { %14961 = vst [vmem:[#allocation131_spill] sm:$0xff] %v11107_v23  ;;  %14963 = vst [vmem:[#allocation84_spill] sm:$0xff] %v11111_v62  ;;  %7277 = vrcp.bf16 %v3899_v21  ;;  %v11118_v36 = vadd.f32 %v14965_v63, %v10583_v55  ;;  %v11120_v43 = vpop.f32.mrb[141].mxu0  ;;  %v11123_v8 = vmul.f32 %v4348_v2, %v10831_v1  ;;  %v11129_v12 = vadd.f32 %v14969_v49, %v14959_v56  ;;  %v11131_v21 = vpop.f32.mrb[141].mxu1  ;;  %v14974_v57 = vld [vmem:[#allocation144_spill] sm:$0xff]  ;;  %v14976_v2 = vld [vmem:[#allocation129_spill] sm:$0xff] }
 0x263   : > { %14964 = vst [vmem:[#allocation134_spill] sm:$0xff] %v11114_v11  ;;  %v5178_v13 = vadd.f32 %v4655_v25, %v4654_v40  ;;  %14967 = vst [vmem:[#allocation172_spill] sm:$0xff] %v11120_v43  ;;  %v4508_v3 = vunpack.c.h.bf16 %v14968_v31  ;;  %7279 = vpow.bf16 %v6702_v58  ;;  %v11133_v40 = vpop.f32.mrb[142].mxu0  ;;  %v14973_v25 = vmul.bf16 1065369472, %v11100_v10  ;;  %v14978_v58 = vld [vmem:[#allocation39_spill] sm:$0xff]  ;;  %v11147_v49 = vpop.eup %7263 }
 0x264   : > { %14966 = vst [vmem:[#allocation137_spill] sm:$0xff] %v11118_v36  ;;  %14970 = vst [vmem:[#allocation40_spill] sm:$0xff] %v11129_v12  ;;  %v11139_v1 = vadd.f32 %v14974_v57, %v10583_v55  ;;  %v14977_v20 = vmul.bf16 1065369472, %v14976_v2  ;;  %v14979_v11 = vld [vmem:[#allocation64_spill] sm:$0xff]  ;;  %v14986_v57 = vld [vmem:[#allocation201_spill] sm:$0xff]  ;;  %v11166_v43 = vpop.permute.xlu0 %1484 }
 0x265   : > { %14971 = vst [vmem:[#allocation138_spill] sm:$0xff] %v11131_v21  ;;  %14972 = vst [vmem:[#allocation143_spill] sm:$0xff] %v11133_v40  ;;  %v4349_v63 = vunpack.c.h.bf16 %v14973_v25  ;;  %5179 = vadd.xlane.f32.xlu1 %v5178_v13  ;;  %v11145_v38 = vadd.f32 %v14979_v11, %v14978_v58  ;;  %v11150_v56 = vmul.f32 %v4508_v3, %v10835_v6  ;;  %v14983_v40 = vld [vmem:[#allocation51_spill] sm:$0xff]  ;;  %v14984_v13 = vld [vmem:[#allocation5_spill] sm:$0xff]  ;;  %v14097_v11 = vmul.bf16 1065369472, %v11147_v49 }
 0x266   : > { %14975 = vst [vmem:[#allocation97_spill] sm:$0xff] %v11139_v1  ;;  %v4412_v31 = vunpack.c.h.bf16 %v14977_v20  ;;  %14980 = vst [vmem:[#allocation144_spill] sm:$0xff] %v11147_v49  ;;  %v11154_v25 = vadd.f32 %v14983_v40, %v14982_v17  ;;  %v14985_v21 = vmul.bf16 1065369472, %v14984_v13  ;;  %v11160_v2 = vadd.f32 %v14986_v57, %v14978_v58  ;;  %v14988_v6 = vld [vmem:[#allocation94_spill] sm:$0xff]  ;;  %v14989_v13 = vld [vmem:[#allocation101_spill] sm:$0xff] }
 0x267   : > { %14981 = vst [vmem:[#allocation129_spill] sm:$0xff] %v11150_v56  ;;  %v11163_v20 = vmul.f32 %v4349_v63, %v10843_v0  ;;  %14987 = vst [vmem:[#allocation39_spill] sm:$0xff] %v11166_v43  ;;  %v3022_v40 = vpack.c.bf16 %v11145_v38, %v11107_v23  ;;  %v7266_v56 = vpop.eup %7265  ;;  %v14990_v0 = vld [vmem:[#allocation205_spill] sm:$0xff]  ;;  %v14991_v43 = vld [vmem:[#allocation139_spill] sm:$0xff] }
 0x268   : > { %v4415_v55 = vunpack.c.l.bf16 %v14985_v21  ;;  %v4732_v3 = vmul.f32 %v4412_v31, %v14988_v6  ;;  %v3102_v21 = vpack.c.bf16 %v11154_v25, %v11118_v36  ;;  %v3023_v58 = vpack.c.bf16 %v11160_v2, %v11129_v12  ;;  %v7268_v57 = vpop.eup %7267  ;;  %v11185_v36 = vpop.permute.xlu1 %1479 }
 0x269   : > { %v11178_v63 = vadd.f32 %v14990_v0, %v14982_v17  ;;  %v4509_v31 = vunpack.c.h.bf16 %v14097_v11  ;;  %v3820_v6 = vadd.bf16 1065369472, %v7266_v56  ;;  %v6623_v30 = vmul.bf16 3216621497, %v3022_v40  ;;  %v11183_v41 = vpop.eup %7269  ;;  %14992 = vst [vmem:[#allocation64_spill] sm:$0xff] %v11185_v36  ;;  %v11196_v56 = vpop.xlane.xlu0 %5047 }
 0x26a   : > { %v4735_v62 = vmul.f32 %v4415_v55, %v14989_v13  ;;  %v5295_v29 = vadd.f32 %v14991_v43, %v4732_v3  ;;  %v3900_v55 = vadd.bf16 1065369472, %v7268_v57  ;;  %v6703_v13 = vmul.bf16 3216621497, %v3102_v21  ;;  %v11188_v32 = vpop.eup %7271  ;;  %v11198_v3 = vpop.f32.mrb[142].mxu1 }
 0x26b   : > { %v6624_v23 = vmul.bf16 3216621497, %v3023_v58  ;;  %14994 = vst [vmem:[#allocation183_spill] sm:$0xff] %v11188_v32  ;;  %v11191_v17 = vmul.f32 %v4509_v31, %v10847_v42  ;;  %v14098_v0 = vmul.bf16 1065369472, %v11183_v41  ;;  %7281 = vrcp.bf16 %v3820_v6  ;;  %14996 = vst [vmem:[#allocation5_spill] sm:$0xff] %v11198_v3  ;;  %v11200_v40 = vpop.eup %7273 }
 0x26c   : > { %v5298_v12 = vadd.f32 %v4735_v62, %v14993_v47  ;;  %5296 = vadd.xlane.f32.xlu0 %v5295_v29  ;;  %v3103_v43 = vpack.c.bf16 %v11178_v63, %v11139_v1  ;;  %v14099_v47 = vmul.bf16 1065369472, %v11188_v32  ;;  %7283 = vrcp.bf16 %v3900_v55  ;;  %v11207_v29 = vpop.f32.mrb[143].mxu0  ;;  %v7276_v58 = vpop.eup %7275 }
 0x26d   : > { %14995 = vst [vmem:[#allocation51_spill] sm:$0xff] %v11191_v17  ;;  %v5187_v42 = vadd.f32 %v10957_v59, %v10912_v9  ;;  %v14997_v62 = vmul.bf16 1065369472, %v10878_v44  ;;  %14998 = vst [vmem:[#allocation201_spill] sm:$0xff] %v11207_v29  ;;  %v4352_v57 = vunpack.c.h.bf16 %v14098_v0  ;;  %v14100_v31 = vmul.bf16 1065369472, %v11200_v40  ;;  %v11212_v11 = vpop.eup %7277 }
 0x26e   : > { %5299 = vadd.xlane.f32.xlu1 %v5298_v12  ;;  %7285 = vpow.bf16 %v6623_v30  ;;  %v6704_v6 = vmul.bf16 3216621497, %v3103_v43  ;;  %14999 = vst [vmem:[#allocation94_spill] sm:$0xff] %v11212_v11  ;;  %v4512_v12 = vunpack.c.h.bf16 %v14099_v47  ;;  %v3821_v55 = vadd.bf16 1065369472, %v7276_v58  ;;  %v7280_v59 = vpop.eup %7279  ;;  %v11230_v47 = vpop.f32.mrb[143].mxu1 }
 0x26f   : > { %v4338_v21 = vunpack.c.l.bf16 %v14997_v62  ;;  %7287 = vpow.bf16 %v6703_v13  ;;  %v15000_v44 = vmul.bf16 1065369472, %v10909_v46  ;;  %v11219_v62 = vmul.f32 %v4352_v57, %v10926_v14  ;;  %v11227_v13 = vpop.permute.xlu1 %1489  ;;  %v15003_v46 = vld [vmem:[#allocation195_spill] sm:$0xff]  ;;  %15004 = vst [vmem:[#allocation139_spill] sm:$0xff] %v11230_v47  ;;  %v15022_v17 = vld [vmem:[#allocation8_spill] sm:$0xff] }
 0x270   : > { %v4353_v0 = vunpack.c.h.bf16 %v14100_v31  ;;  %v14101_v30 = vmul.bf16 1065369472, %v11212_v11  ;;  %7289 = vpow.bf16 %v6624_v23  ;;  %5188 = vadd.xlane.f32.xlu0 %v5187_v42  ;;  %v11225_v43 = vmul.f32 %v4512_v12, %v10933_v4  ;;  %15002 = vst [vmem:[#allocation205_spill] sm:$0xff] %v11227_v13  ;;  %v15005_v23 = vld [vmem:[#allocation10_spill] sm:$0xff]  ;;  %v11238_v31 = vpop.xlane.xlu0 %5053  ;;  %v15007_v12 = vld [vmem:[#allocation164_spill] sm:$0xff] }
 0x271   : > { %v4339_v9 = vunpack.c.l.bf16 %v15000_v44  ;;  %7291 = vrcp.bf16 %v3821_v55  ;;  %v3901_v58 = vadd.bf16 1065369472, %v7280_v59  ;;  %v4658_v44 = vmul.f32 %v4338_v21, %v15003_v46  ;;  %v15006_v4 = vld [vmem:[#allocation42_spill] sm:$0xff]  ;;  %v15008_v21 = vld [vmem:[#allocation165_spill] sm:$0xff]  ;;  %v11252_v46 = vpop.f32.mrb[144].mxu0 }
 0x272   : > { %15001 = vst [vmem:[#allocation101_spill] sm:$0xff] %v11225_v43  ;;  %v11233_v14 = vmul.f32 %v4353_v0, %v10943_v61  ;;  %v4513_v57 = vunpack.c.h.bf16 %v14101_v30  ;;  %7293 = vpow.bf16 %v6704_v6  ;;  %v11242_v55 = vadd.f32 %v15007_v12, %v15006_v4  ;;  %v15010_v61 = vld [vmem:[#allocation25_spill] sm:$0xff]  ;;  %15011 = vst [vmem:[#allocation195_spill] sm:$0xff] %v11252_v46  ;;  %v11254_v6 = vpop.f32.mrb[144].mxu1  ;;  %v15016_v30 = vld [vmem:[#allocation136_spill] sm:$0xff]  ;;  %v11265_v43 = vpop.f32.mrb[145].mxu0 }
 0x273   : > { %v4659_v42 = vmul.f32 %v4339_v9, %v15005_v23  ;;  %7295 = vrcp.bf16 %v3901_v58  ;;  %v11246_v59 = vadd.f32 %v15008_v21, %v10650_v51  ;;  %v11250_v0 = vadd.f32 %v15010_v61, %v15006_v4  ;;  %15012 = vst [vmem:[#allocation10_spill] sm:$0xff] %v11254_v6  ;;  %v15014_v23 = vld [vmem:[#allocation207_spill] sm:$0xff]  ;;  %15018 = vst [vmem:[#allocation165_spill] sm:$0xff] %v11265_v43  ;;  %v11267_v11 = vpop.f32.mrb[145].mxu1  ;;  %v15020_v4 = vld [vmem:[#allocation41_spill] sm:$0xff] }
 0x274   : > { %v11257_v9 = vmul.f32 %v4513_v57, %v10952_v35  ;;  %v11261_v12 = vadd.f32 %v15014_v23, %v10650_v51  ;;  %v15017_v1 = vmul.bf16 1065369472, %v15016_v30  ;;  %15019 = vst [vmem:[#allocation25_spill] sm:$0xff] %v11267_v11  ;;  %v15021_v61 = vld [vmem:[#allocation208_spill] sm:$0xff]  ;;  %v11275_v35 = vadd.f32 %v15022_v17, %v10677_v26  ;;  %v15025_v51 = vld [vmem:[#allocation153_spill] sm:$0xff]  ;;  %v11285_v30 = vpop.f32.mrb[146].mxu0  ;;  %v11313_v11 = vpop.xlane.xlu0 %5056 }
 0x275   : > { %15009 = vst [vmem:[#allocation140_spill] sm:$0xff] %v11246_v59  ;;  %v5184_v58 = vadd.f32 %v4659_v42, %v4658_v44  ;;  %v11271_v32 = vadd.f32 %v15021_v61, %v15020_v4  ;;  %v15023_v44 = vld [vmem:[#allocation148_spill] sm:$0xff]  ;;  %v11281_v23 = vadd.f32 %v15025_v51, %v15020_v4  ;;  %15026 = vst [vmem:[#allocation207_spill] sm:$0xff] %v11285_v30  ;;  %v15028_v61 = vld [vmem:[#allocation214_spill] sm:$0xff] }
 0x276   : > { %15013 = vst [vmem:[#allocation42_spill] sm:$0xff] %v11257_v9  ;;  %15015 = vst [vmem:[#allocation164_spill] sm:$0xff] %v11261_v12  ;;  %v4416_v21 = vunpack.c.h.bf16 %v15017_v1  ;;  %v15024_v57 = vmul.bf16 1065369472, %v15023_v44  ;;  %v11283_v1 = vpop.xlane.xlu1 %5050  ;;  %v15027_v9 = vld [vmem:[#allocation99_spill] sm:$0xff]  ;;  %v11290_v13 = vadd.f32 %v15028_v61, %v10677_v26  ;;  %v5193_v17 = vadd.f32 %v11056_v45, %v11024_v19  ;;  %v11296_v36 = vpop.eup %7281  ;;  %v15030_v51 = vld [vmem:[#allocation110_spill] sm:$0xff] }
 0x277   : > { %5185 = vadd.xlane.f32.xlu1 %v5184_v58  ;;  %v15029_v44 = vmul.bf16 1065369472, %v10985_v60  ;;  %v3024_v4 = vpack.c.bf16 %v11271_v32, %v11242_v55  ;;  %v3104_v58 = vpack.c.bf16 %v11275_v35, %v11246_v59  ;;  %v3025_v26 = vpack.c.bf16 %v11281_v23, %v11250_v0  ;;  %v15032_v45 = vld [vmem:[#allocation142_spill] sm:$0xff]  ;;  %v15034_v6 = vld [vmem:[#allocation156_spill] sm:$0xff] }
 0x278   : > { %v4419_v42 = vunpack.c.l.bf16 %v15024_v57  ;;  %v4736_v49 = vmul.f32 %v4416_v21, %v15027_v9  ;;  %v11305_v21 = vpop.eup %7283  ;;  %v14111_v19 = vmul.bf16 1065369472, %v11296_v36  ;;  %v3105_v61 = vpack.c.bf16 %v11290_v13, %v11261_v12 }
 0x279   : > { %v4342_v57 = vunpack.c.l.bf16 %v15029_v44  ;;  %15031 = vst [vmem:[#allocation136_spill] sm:$0xff] %v11305_v21  ;;  %v15033_v44 = vmul.bf16 1065369472, %v11012_v52  ;;  %v7286_v59 = vpop.eup %7285  ;;  %v6705_v43 = vmul.bf16 3216621497, %v3104_v58 }
 0x27a   : > { %v4739_v9 = vmul.f32 %v4419_v42, %v15030_v51  ;;  %v5301_v60 = vadd.f32 %v15032_v45, %v4736_v49  ;;  %v14110_v42 = vmul.bf16 1065369472, %v11305_v21  ;;  %v6625_v51 = vmul.bf16 3216621497, %v3024_v4  ;;  %v7288_v47 = vpop.eup %7287  ;;  %v11322_v58 = vpop.xlane.xlu1 %5059 }
 0x27b   : > { %v4343_v30 = vunpack.c.l.bf16 %v15033_v44  ;;  %v4356_v29 = vunpack.c.h.bf16 %v14111_v19  ;;  %v3822_v49 = vadd.bf16 1065369472, %v7286_v59  ;;  %v6626_v45 = vmul.bf16 3216621497, %v3025_v26  ;;  %v7290_v3 = vpop.eup %7289 }
 0x27c   : > { %v5304_v46 = vadd.f32 %v4739_v9, %v15034_v6  ;;  %5302 = vadd.xlane.f32.xlu0 %v5301_v60  ;;  %v6706_v12 = vmul.bf16 3216621497, %v3105_v61  ;;  %v4516_v52 = vunpack.c.h.bf16 %v14110_v42  ;;  %v3902_v44 = vadd.bf16 1065369472, %v7288_v47  ;;  %v11324_v6 = vpop.f32.mrb[146].mxu1  ;;  %v11326_v9 = vpop.eup %7291 }
 0x27d   : > { %7297 = vpow.bf16 %v6625_v51  ;;  %v4662_v4 = vmul.f32 %v4342_v57, %v10687_v27  ;;  %15035 = vst [vmem:[#allocation41_spill] sm:$0xff] %v11324_v6  ;;  %v11329_v59 = vmul.f32 %v4356_v29, %v11031_v18  ;;  %v3823_v26 = vadd.bf16 1065369472, %v7290_v3  ;;  %v11332_v61 = vpop.f32.mrb[147].mxu0  ;;  %v7294_v47 = vpop.eup %7293  ;;  %v15038_v57 = vld [vmem:[#allocation44_spill] sm:$0xff]  ;;  %v15039_v51 = vld [vmem:[#allocation217_spill] sm:$0xff] }
 0x27e   : > { %5305 = vadd.xlane.f32.xlu1 %v5304_v46  ;;  %7299 = vrcp.bf16 %v3822_v49  ;;  %v4663_v60 = vmul.f32 %v4343_v30, %v10697_v39  ;;  %15036 = vst [vmem:[#allocation208_spill] sm:$0xff] %v11332_v61  ;;  %v11335_v46 = vmul.f32 %v4516_v52, %v11039_v5  ;;  %v14113_v27 = vmul.bf16 1065369472, %v11326_v9  ;;  %v11342_v19 = vpop.f32.mrb[147].mxu1  ;;  %v11344_v18 = vpop.eup %7295  ;;  %v15042_v29 = vld [vmem:[#allocation193_spill] sm:$0xff] }
 0x27f   : > { %7301 = vrcp.bf16 %v3902_v44  ;;  %v11340_v42 = vadd.f32 %v15039_v51, %v15038_v57  ;;  %15040 = vst [vmem:[#allocation148_spill] sm:$0xff] %v11342_v19  ;;  %15041 = vst [vmem:[#allocation153_spill] sm:$0xff] %v11344_v18  ;;  %v3903_v3 = vadd.bf16 1065369472, %v7294_v47  ;;  %v11348_v30 = vadd.f32 %v15042_v29, %v10683_v54  ;;  %v11350_v5 = vpop.xlane.xlu0 %5062  ;;  %v15044_v44 = vld [vmem:[#allocation219_spill] sm:$0xff] }
 0x280   : > { %15037 = vst [vmem:[#allocation8_spill] sm:$0xff] %v11335_v46  ;;  %7303 = vrcp.bf16 %v3823_v26  ;;  %5194 = vadd.xlane.f32.xlu0 %v5193_v17  ;;  %v5190_v39 = vadd.f32 %v4663_v60, %v4662_v4  ;;  %v4357_v49 = vunpack.c.h.bf16 %v14113_v27  ;;  %v14114_v52 = vmul.bf16 1065369472, %v11344_v18  ;;  %v15046_v17 = vld [vmem:[#allocation220_spill] sm:$0xff]  ;;  %v15048_v26 = vld [vmem:[#allocation146_spill] sm:$0xff]  ;;  %v15050_v29 = vld [vmem:[#allocation43_spill] sm:$0xff] }
 0x281   : > { %15043 = vst [vmem:[#allocation99_spill] sm:$0xff] %v11348_v30  ;;  %7305 = vpow.bf16 %v6705_v43  ;;  %v11357_v51 = vadd.f32 %v15044_v44, %v15038_v57  ;;  %v11361_v4 = vadd.f32 %v15046_v17, %v10683_v54  ;;  %v15049_v60 = vmul.bf16 1065369472, %v15048_v26  ;;  %v15051_v46 = vld [vmem:[#allocation206_spill] sm:$0xff]  ;;  %v15052_v57 = vld [vmem:[#allocation108_spill] sm:$0xff]  ;;  %v11378_v54 = vpop.xlane.xlu1 %5065  ;;  %v15054_v17 = vld [vmem:[#allocation155_spill] sm:$0xff] }
 0x282   : > { %7307 = vrcp.bf16 %v3903_v3  ;;  %5191 = vadd.xlane.f32.xlu1 %v5190_v39  ;;  %v11367_v21 = vadd.f32 %v15051_v46, %v15050_v29  ;;  %v11370_v27 = vmul.f32 %v4357_v49, %v11068_v48  ;;  %v4517_v43 = vunpack.c.h.bf16 %v14114_v52  ;;  %v15053_v39 = vld [vmem:[#allocation107_spill] sm:$0xff]  ;;  %v11385_v49 = vpop.f32.mrb[148].mxu0  ;;  %v15063_v18 = vld [vmem:[#allocation157_spill] sm:$0xff] }
 0x283   : > { %15045 = vst [vmem:[#allocation214_spill] sm:$0xff] %v11357_v51  ;;  %15047 = vst [vmem:[#allocation110_spill] sm:$0xff] %v11361_v4  ;;  %v4420_v47 = vunpack.c.h.bf16 %v15049_v60  ;;  %7309 = vpow.bf16 %v6626_v45  ;;  %v11376_v3 = vadd.f32 %v15052_v57, %v10737_v7  ;;  %v15055_v26 = vmul.bf16 1065369472, %v15054_v17  ;;  %v11387_v60 = vpop.f32.mrb[148].mxu1  ;;  %v11402_v17 = vpop.f32.mrb[149].mxu0 }
 0x284   : > { %7311 = vpow.bf16 %v6706_v12  ;;  %v3026_v46 = vpack.c.bf16 %v11367_v21, %v11340_v42  ;;  %15056 = vst [vmem:[#allocation142_spill] sm:$0xff] %v11385_v49  ;;  %15057 = vst [vmem:[#allocation156_spill] sm:$0xff] %v11387_v60  ;;  %v11390_v45 = vmul.f32 %v4517_v43, %v11072_v15  ;;  %v15059_v12 = vld [vmem:[#allocation30_spill] sm:$0xff]  ;;  %v15064_v15 = vld [vmem:[#allocation48_spill] sm:$0xff] }
 0x285   : > { %v4740_v44 = vmul.f32 %v4420_v47, %v15053_v39  ;;  %v4423_v48 = vunpack.c.l.bf16 %v15055_v26  ;;  %v3106_v57 = vpack.c.bf16 %v11376_v3, %v11348_v30  ;;  %v11396_v52 = vadd.f32 %v15059_v12, %v15050_v29  ;;  %v15060_v47 = vld [vmem:[#allocation230_spill] sm:$0xff]  ;;  %15061 = vst [vmem:[#allocation217_spill] sm:$0xff] %v11402_v17  ;;  %v11404_v26 = vpop.f32.mrb[149].mxu1  ;;  %v11412_v29 = vpop.f32.mrb[150].mxu0 }
 0x286   : > { %15058 = vst [vmem:[#allocation44_spill] sm:$0xff] %v11390_v45  ;;  %v11400_v39 = vadd.f32 %v15060_v47, %v10737_v7  ;;  %15062 = vst [vmem:[#allocation193_spill] sm:$0xff] %v11404_v26  ;;  %v6627_v49 = vmul.bf16 3216621497, %v3026_v46  ;;  %v5199_v30 = vadd.f32 %v11163_v20, %v11123_v8  ;;  %v11410_v45 = vpop.xlane.xlu0 %5068  ;;  %v15066_v26 = vmul.bf16 1065369472, %v11083_v22 }
 0x287   : > { %v5307_v60 = vadd.f32 %v15063_v18, %v4740_v44  ;;  %v4743_v43 = vmul.f32 %v4423_v48, %v15064_v15  ;;  %15065 = vst [vmem:[#allocation219_spill] sm:$0xff] %v11412_v29  ;;  %v6707_v12 = vmul.bf16 3216621497, %v3106_v57  ;;  %v3027_v7 = vpack.c.bf16 %v11396_v52, %v11357_v51  ;;  %v15067_v46 = vld [vmem:[#allocation158_spill] sm:$0xff]  ;;  %v15069_v15 = vld [vmem:[#allocation47_spill] sm:$0xff]  ;;  %v15070_v29 = vld [vmem:[#allocation29_spill] sm:$0xff] }
 0x288   : > { %v3107_v47 = vpack.c.bf16 %v11400_v39, %v11361_v4  ;;  %v4346_v18 = vunpack.c.l.bf16 %v15066_v26  ;;  %v7298_v44 = vpop.eup %7297  ;;  %7313 = vpow.bf16 %v6627_v49  ;;  %v15068_v8 = vmul.bf16 1065369472, %v11100_v10  ;;  %v15073_v26 = vld [vmem:[#allocation231_spill] sm:$0xff] }
 0x289   : > { %5308 = vadd.xlane.f32.xlu0 %v5307_v60  ;;  %v5310_v48 = vadd.f32 %v4743_v43, %v15067_v46  ;;  %v11425_v57 = vadd.f32 %v15070_v29, %v15069_v15  ;;  %v11427_v17 = vpop.eup %7299  ;;  %v3824_v19 = vadd.bf16 1065369472, %v7298_v44  ;;  %7315 = vpow.bf16 %v6707_v12  ;;  %v15074_v43 = vld [vmem:[#allocation163_spill] sm:$0xff]  ;;  %v11438_v29 = vpop.xlane.xlu1 %5071 }
 0x28a   : > { %v4347_v20 = vunpack.c.l.bf16 %v15068_v8  ;;  %v6628_v4 = vmul.bf16 3216621497, %v3027_v7  ;;  %v6708_v61 = vmul.bf16 3216621497, %v3107_v47  ;;  %v11429_v22 = vpop.eup %7301  ;;  %v14119_v60 = vmul.bf16 1065369472, %v11427_v17 }
 0x28b   : > { %15071 = vst [vmem:[#allocation220_spill] sm:$0xff] %v11425_v57  ;;  %15072 = vst [vmem:[#allocation146_spill] sm:$0xff] %v11429_v22  ;;  %5311 = vadd.xlane.f32.xlu1 %v5310_v48  ;;  %v4666_v49 = vmul.f32 %v4346_v18, %v10775_v16  ;;  %v11436_v46 = vadd.f32 %v15074_v43, %v15073_v26  ;;  %v11440_v8 = vpop.f32.mrb[150].mxu1  ;;  %v11442_v12 = vpop.eup %7303  ;;  %7317 = vrcp.bf16 %v3824_v19  ;;  %v15077_v47 = vld [vmem:[#allocation224_spill] sm:$0xff] }
 0x28c   : > { %v4667_v10 = vmul.f32 %v4347_v20, %v10806_v34  ;;  %15076 = vst [vmem:[#allocation206_spill] sm:$0xff] %v11440_v8  ;;  %v11447_v44 = vadd.f32 %v15077_v47, %v15069_v15  ;;  %v15079_v16 = vld [vmem:[#allocation240_spill] sm:$0xff]  ;;  %v11453_v18 = vpop.f32.mrb[151].mxu0  ;;  %v7306_v48 = vpop.eup %7305  ;;  %v4360_v20 = vunpack.c.h.bf16 %v14119_v60  ;;  %v14120_v43 = vmul.bf16 1065369472, %v11442_v12 }
 0x28d   : > { %15075 = vst [vmem:[#allocation43_spill] sm:$0xff] %v11436_v46  ;;  %v11451_v34 = vadd.f32 %v15079_v16, %v15073_v26  ;;  %15081 = vst [vmem:[#allocation155_spill] sm:$0xff] %v11453_v18  ;;  %7319 = vpow.bf16 %v6628_v4  ;;  %5200 = vadd.xlane.f32.xlu0 %v5199_v30  ;;  %v11458_v19 = vpop.xlane.xlu0 %5074  ;;  %v11460_v8 = vpop.eup %7307  ;;  %v15084_v15 = vmul.bf16 1065369472, %v11429_v22  ;;  %v3904_v26 = vadd.bf16 1065369472, %v7306_v48 }
 0x28e   : > { %15078 = vst [vmem:[#allocation108_spill] sm:$0xff] %v11447_v44  ;;  %v5196_v7 = vadd.f32 %v4667_v10, %v4666_v49  ;;  %15082 = vst [vmem:[#allocation30_spill] sm:$0xff] %v11458_v19  ;;  %7321 = vpow.bf16 %v6708_v61  ;;  %v15085_v16 = vld [vmem:[#allocation152_spill] sm:$0xff]  ;;  %v7310_v51 = vpop.eup %7309  ;;  %v11467_v60 = vmul.f32 %v4360_v20, %v11145_v38  ;;  %v4361_v30 = vunpack.c.h.bf16 %v14120_v43  ;;  %v15087_v49 = vld [vmem:[#allocation46_spill] sm:$0xff] }
 0x28f   : > { %15080 = vst [vmem:[#allocation107_spill] sm:$0xff] %v11451_v34  ;;  %15083 = vst [vmem:[#allocation230_spill] sm:$0xff] %v11460_v8  ;;  %v4520_v47 = vunpack.c.h.bf16 %v15084_v15  ;;  %v15086_v18 = vmul.bf16 1065369472, %v15085_v16  ;;  %v14122_v4 = vmul.bf16 1065369472, %v11460_v8  ;;  %v7312_v61 = vpop.eup %7311  ;;  %7323 = vrcp.bf16 %v3904_v26 }
 0x290   : > { %5197 = vadd.xlane.f32.xlu1 %v5196_v7  ;;  %v15088_v10 = vld [vmem:[#allocation226_spill] sm:$0xff]  ;;  %v11476_v15 = vpop.f32.mrb[151].mxu1  ;;  %v15091_v38 = vld [vmem:[#allocation52_spill] sm:$0xff]  ;;  %v11482_v16 = vpop.f32.mrb[152].mxu0  ;;  %v11485_v43 = vmul.f32 %v4361_v30, %v11160_v2 }
 0x291   : > { %v4424_v6 = vunpack.c.h.bf16 %v15086_v18  ;;  %v11474_v19 = vadd.f32 %v15088_v10, %v15087_v49  ;;  %15089 = vst [vmem:[#allocation157_spill] sm:$0xff] %v11476_v15  ;;  %v11479_v48 = vmul.f32 %v4520_v47, %v11154_v25  ;;  %v3825_v18 = vadd.bf16 1065369472, %v7310_v51  ;;  %15092 = vst [vmem:[#allocation158_spill] sm:$0xff] %v11482_v16  ;;  %v11491_v15 = vpop.xlane.xlu1 %5077  ;;  %v11493_v25 = vpop.f32.mrb[152].mxu1  ;;  %v15094_v51 = vld [vmem:[#allocation160_spill] sm:$0xff] }
 0x292   : > { %v4521_v7 = vunpack.c.h.bf16 %v14122_v4  ;;  %v3905_v10 = vadd.bf16 1065369472, %v7312_v61  ;;  %15093 = vst [vmem:[#allocation47_spill] sm:$0xff] %v11493_v25  ;;  %v15096_v2 = vld [vmem:[#allocation72_spill] sm:$0xff]  ;;  %v11504_v61 = vpop.f32.mrb[153].mxu1 }
 0x293   : > { %15090 = vst [vmem:[#allocation48_spill] sm:$0xff] %v11479_v48  ;;  %v4744_v20 = vmul.f32 %v4424_v6, %v15091_v38  ;;  %v3028_v22 = vpack.c.bf16 %v11474_v19, %v11425_v57  ;;  %7325 = vrcp.bf16 %v3825_v18  ;;  %v15095_v6 = vld [vmem:[#allocation199_spill] sm:$0xff]  ;;  %v15097_v30 = vmul.bf16 1065369472, %v15096_v2  ;;  %v11502_v48 = vpop.f32.mrb[153].mxu0  ;;  %15099 = vst [vmem:[#allocation231_spill] sm:$0xff] %v11504_v61 }
 0x294   : > { %v11498_v26 = vadd.f32 %v15095_v6, %v10787_v24  ;;  %15098 = vst [vmem:[#allocation29_spill] sm:$0xff] %v11502_v48  ;;  %v11507_v4 = vmul.f32 %v4521_v7, %v11178_v63  ;;  %7327 = vrcp.bf16 %v3905_v10  ;;  %v15101_v18 = vld [vmem:[#allocation16_spill] sm:$0xff]  ;;  %v7314_v6 = vpop.eup %7313  ;;  %v15106_v48 = vld [vmem:[#allocation70_spill] sm:$0xff]  ;;  %v11566_v16 = vpop.f32.mrb[154].mxu1 }
 0x295   : > { %v5313_v47 = vadd.f32 %v15094_v51, %v4744_v20  ;;  %v4427_v38 = vunpack.c.l.bf16 %v15097_v30  ;;  %v6629_v8 = vmul.bf16 3216621497, %v3028_v22  ;;  %v11511_v25 = vadd.f32 %v15101_v18, %v15087_v49  ;;  %v11513_v20 = vpop.xlane.xlu0 %5080  ;;  %v11515_v51 = vpop.f32.mrb[154].mxu0  ;;  %v15103_v30 = vld [vmem:[#allocation58_spill] sm:$0xff]  ;;  %v15104_v63 = vld [vmem:[#allocation32_spill] sm:$0xff]  ;;  %15121 = vst [vmem:[#allocation199_spill] sm:$0xff] %v11566_v16 }
 0x296   : > { %15100 = vst [vmem:[#allocation163_spill] sm:$0xff] %v11507_v4  ;;  %15102 = vst [vmem:[#allocation224_spill] sm:$0xff] %v11515_v51  ;;  %v3108_v2 = vpack.c.bf16 %v11498_v26, %v11436_v46  ;;  %v11522_v7 = vadd.f32 %v15104_v63, %v10787_v24  ;;  %v5205_v22 = vadd.f32 %v11233_v14, %v11219_v62  ;;  %v7316_v49 = vpop.eup %7315  ;;  %v3826_v10 = vadd.bf16 1065369472, %v7314_v6 }
 0x297   : > { %5314 = vadd.xlane.f32.xlu0 %v5313_v47  ;;  %v4747_v61 = vmul.f32 %v4427_v38, %v15103_v30  ;;  %7329 = vpow.bf16 %v6629_v8  ;;  %v3029_v18 = vpack.c.bf16 %v11511_v25, %v11447_v44  ;;  %v15105_v47 = vmul.bf16 1065369472, %v11183_v41  ;;  %v11533_v30 = vpop.eup %7317 }
 0x298   : > { %v3906_v51 = vadd.bf16 1065369472, %v7316_v49  ;;  %v6709_v46 = vmul.bf16 3216621497, %v3108_v2  ;;  %v3109_v24 = vpack.c.bf16 %v11522_v7, %v11451_v34  ;;  %7331 = vrcp.bf16 %v3826_v10  ;;  %v7320_v63 = vpop.eup %7319 }
 0x299   : > { %v4350_v4 = vunpack.c.l.bf16 %v15105_v47  ;;  %v5316_v38 = vadd.f32 %v4747_v61, %v15106_v48  ;;  %v6630_v62 = vmul.bf16 3216621497, %v3029_v18  ;;  %v15107_v14 = vmul.bf16 1065369472, %v11200_v40  ;;  %v15108_v48 = vld [vmem:[#allocation50_spill] sm:$0xff]  ;;  %v15109_v61 = vld [vmem:[#allocation17_spill] sm:$0xff]  ;;  %v11543_v47 = vpop.xlane.xlu1 %5083  ;;  %v7322_v10 = vpop.eup %7321 }
 0x29a   : > { %v14126_v41 = vmul.bf16 1065369472, %v11533_v30  ;;  %7333 = vrcp.bf16 %v3906_v51  ;;  %v6710_v2 = vmul.bf16 3216621497, %v3109_v24  ;;  %v11541_v49 = vadd.f32 %v15109_v61, %v15108_v48  ;;  %v11558_v61 = vpop.eup %7323 }
 0x29b   : > { %v4351_v8 = vunpack.c.l.bf16 %v15107_v14  ;;  %v4670_v6 = vmul.f32 %v4350_v4, %v10886_v37  ;;  %5317 = vadd.xlane.f32.xlu1 %v5316_v38  ;;  %5206 = vadd.xlane.f32.xlu0 %v5205_v22  ;;  %v3827_v18 = vadd.bf16 1065369472, %v7320_v63  ;;  %7335 = vpow.bf16 %v6709_v46  ;;  %v15111_v37 = vld [vmem:[#allocation167_spill] sm:$0xff]  ;;  %v11550_v14 = vpop.xlane.xlu0 %5086  ;;  %15116 = vst [vmem:[#allocation52_spill] sm:$0xff] %v11558_v61 }
 0x29c   : > { %15110 = vst [vmem:[#allocation240_spill] sm:$0xff] %v11541_v49  ;;  %v11548_v4 = vadd.f32 %v15111_v37, %v10798_v50  ;;  %15113 = vst [vmem:[#allocation46_spill] sm:$0xff] %v11550_v14  ;;  %v4364_v51 = vunpack.c.h.bf16 %v14126_v41  ;;  %v3907_v22 = vadd.bf16 1065369472, %v7322_v10  ;;  %7337 = vpow.bf16 %v6630_v62  ;;  %v15114_v38 = vld [vmem:[#allocation31_spill] sm:$0xff] }
 0x29d   : > { %v4671_v40 = vmul.f32 %v4351_v8, %v10897_v33  ;;  %v11556_v24 = vadd.f32 %v15114_v38, %v15108_v48  ;;  %7339 = vrcp.bf16 %v3827_v18  ;;  %v15117_v33 = vld [vmem:[#allocation9_spill] sm:$0xff]  ;;  %v15119_v63 = vld [vmem:[#allocation159_spill] sm:$0xff]  ;;  %v14128_v62 = vmul.bf16 1065369472, %v11558_v61  ;;  %v15123_v38 = vld [vmem:[#allocation242_spill] sm:$0xff] }
 0x29e   : > { %15112 = vst [vmem:[#allocation152_spill] sm:$0xff] %v11548_v4  ;;  %v11562_v8 = vadd.f32 %v15117_v33, %v10798_v50  ;;  %v15120_v37 = vmul.bf16 1065369472, %v15119_v63  ;;  %v11569_v10 = vmul.f32 %v4364_v51, %v11271_v32  ;;  %7341 = vrcp.bf16 %v3907_v22  ;;  %v15122_v48 = vld [vmem:[#allocation49_spill] sm:$0xff]  ;;  %v11578_v18 = vpop.eup %7325  ;;  %v15125_v50 = vld [vmem:[#allocation119_spill] sm:$0xff]  ;;  %v15126_v33 = vld [vmem:[#allocation18_spill] sm:$0xff] }
 0x29f   : > { %15115 = vst [vmem:[#allocation226_spill] sm:$0xff] %v11556_v24  ;;  %v5202_v46 = vadd.f32 %v4671_v40, %v4670_v6  ;;  %v11574_v41 = vadd.f32 %v15123_v38, %v15122_v48  ;;  %v11576_v6 = vpop.f32.mrb[155].mxu0  ;;  %7343 = vpow.bf16 %v6710_v2  ;;  %v11583_v63 = vadd.f32 %v15126_v33, %v10849_v28  ;;  %v15127_v32 = vld [vmem:[#allocation92_spill] sm:$0xff]  ;;  %v11587_v22 = vpop.eup %7327 }
 0x2a0   : > { %15118 = vst [vmem:[#allocation160_spill] sm:$0xff] %v11562_v8  ;;  %v4428_v34 = vunpack.c.h.bf16 %v15120_v37  ;;  %15124 = vst [vmem:[#allocation72_spill] sm:$0xff] %v11576_v6  ;;  %v15128_v51 = vmul.bf16 1065369472, %v15127_v32  ;;  %v4524_v38 = vunpack.c.h.bf16 %v14128_v62  ;;  %v14133_v33 = vmul.bf16 1065369472, %v11587_v22  ;;  %v11605_v14 = vpop.xlane.xlu0 %5092 }
 0x2a1   : > { %5203 = vadd.xlane.f32.xlu1 %v5202_v46  ;;  %15129 = vst [vmem:[#allocation16_spill] sm:$0xff] %v11587_v22  ;;  %v3030_v2 = vpack.c.bf16 %v11574_v41, %v11541_v49  ;;  %v15130_v46 = vld [vmem:[#allocation55_spill] sm:$0xff]  ;;  %v15132_v32 = vld [vmem:[#allocation80_spill] sm:$0xff]  ;;  %v3110_v16 = vpack.c.bf16 %v11583_v63, %v11548_v4  ;;  %15134 = vst [vmem:[#allocation32_spill] sm:$0xff] %v11605_v14  ;;  %v11607_v6 = vpop.f32.mrb[155].mxu1 }
 0x2a2   : > { %v4748_v40 = vmul.f32 %v4428_v34, %v15125_v50  ;;  %v4431_v37 = vunpack.c.l.bf16 %v15128_v51  ;;  %v11596_v34 = vadd.f32 %v15130_v46, %v15122_v48  ;;  %v11598_v50 = vpop.xlane.xlu1 %5089  ;;  %v15133_v61 = vld [vmem:[#allocation128_spill] sm:$0xff]  ;;  %15135 = vst [vmem:[#allocation70_spill] sm:$0xff] %v11607_v6  ;;  %v7330_v49 = vpop.eup %7329  ;;  %v11610_v44 = vmul.f32 %v4524_v38, %v11275_v35 }
 0x2a3   : > { %15131 = vst [vmem:[#allocation58_spill] sm:$0xff] %v11598_v50  ;;  %v15137_v48 = vmul.bf16 1065369472, %v11578_v18  ;;  %v6631_v50 = vmul.bf16 3216621497, %v3030_v2  ;;  %v11619_v6 = vpop.f32.mrb[156].mxu0  ;;  %v11623_v35 = vpop.eup %7331 }
 0x2a4   : > { %v5319_v51 = vadd.f32 %v15132_v32, %v4748_v40  ;;  %v4751_v62 = vmul.f32 %v4431_v37, %v15133_v61  ;;  %15136 = vst [vmem:[#allocation50_spill] sm:$0xff] %v11610_v44  ;;  %v3031_v40 = vpack.c.bf16 %v11596_v34, %v11556_v24  ;;  %v4525_v32 = vunpack.c.h.bf16 %v14133_v33  ;;  %v15138_v37 = vld [vmem:[#allocation169_spill] sm:$0xff]  ;;  %15139 = vst [vmem:[#allocation17_spill] sm:$0xff] %v11619_v6  ;;  %v11621_v57 = vpop.f32.mrb[156].mxu1 }
 0x2a5   : > { %v4365_v46 = vunpack.c.h.bf16 %v15137_v48  ;;  %v3828_v4 = vadd.bf16 1065369472, %v7330_v49  ;;  %v6711_v61 = vmul.bf16 3216621497, %v3110_v16  ;;  %15140 = vst [vmem:[#allocation167_spill] sm:$0xff] %v11621_v57  ;;  %7345 = vpow.bf16 %v6631_v50  ;;  %v15141_v48 = vld [vmem:[#allocation34_spill] sm:$0xff] }
 0x2a6   : > { %5320 = vadd.xlane.f32.xlu0 %v5319_v51  ;;  %v5322_v14 = vadd.f32 %v4751_v62, %v15138_v37  ;;  %v6632_v2 = vmul.bf16 3216621497, %v3031_v40  ;;  %v11630_v44 = vadd.f32 %v15141_v48, %v10849_v28  ;;  %v11632_v49 = vpop.f32.mrb[157].mxu0  ;;  %v11634_v16 = vpop.f32.mrb[157].mxu1  ;;  %v11639_v51 = vmul.f32 %v4525_v32, %v11290_v13 }
 0x2a7   : > { %v11626_v38 = vmul.f32 %v4365_v46, %v11281_v23  ;;  %15142 = vst [vmem:[#allocation31_spill] sm:$0xff] %v11632_v49  ;;  %15143 = vst [vmem:[#allocation9_spill] sm:$0xff] %v11634_v16  ;;  %v11636_v62 = vpop.eup %7333  ;;  %v14136_v37 = vmul.bf16 1065369472, %v11623_v35  ;;  %7347 = vrcp.bf16 %v3828_v4  ;;  %v5211_v23 = vadd.f32 %v11370_v27, %v11329_v59  ;;  %v11644_v50 = vpop.f32.mrb[158].mxu0 }
 0x2a8   : > { %15144 = vst [vmem:[#allocation159_spill] sm:$0xff] %v11636_v62  ;;  %15145 = vst [vmem:[#allocation49_spill] sm:$0xff] %v11639_v51  ;;  %5323 = vadd.xlane.f32.xlu1 %v5322_v14  ;;  %v7336_v28 = vpop.eup %7335  ;;  %7349 = vpow.bf16 %v6711_v61  ;;  %v3111_v40 = vpack.c.bf16 %v11630_v44, %v11562_v8  ;;  %v15147_v48 = vmul.bf16 1065369472, %v11296_v36  ;;  %v11651_v32 = vpop.xlane.xlu1 %5095  ;;  %v15148_v59 = vmul.bf16 1065369472, %v11326_v9 }
 0x2a9   : > { %15146 = vst [vmem:[#allocation242_spill] sm:$0xff] %v11644_v50  ;;  %v7338_v33 = vpop.eup %7337  ;;  %v4368_v4 = vunpack.c.h.bf16 %v14136_v37  ;;  %v3908_v14 = vadd.bf16 1065369472, %v7336_v28  ;;  %7351 = vpow.bf16 %v6632_v2  ;;  %v11657_v46 = vpop.xlane.xlu0 %5098  ;;  %v15149_v8 = vmul.bf16 1065369472, %v11636_v62  ;;  %v15151_v9 = vld [vmem:[#allocation113_spill] sm:$0xff] }
 0x2aa   : > { %v4354_v13 = vunpack.c.l.bf16 %v15147_v48  ;;  %5212 = vadd.xlane.f32.xlu0 %v5211_v23  ;;  %v4355_v27 = vunpack.c.l.bf16 %v15148_v59  ;;  %v11659_v61 = vpop.eup %7339  ;;  %v3829_v48 = vadd.bf16 1065369472, %v7338_v33  ;;  %v6712_v51 = vmul.bf16 3216621497, %v3111_v40  ;;  %v15153_v33 = vld [vmem:[#allocation57_spill] sm:$0xff] }
 0x2ab   : > { %v4528_v36 = vunpack.c.h.bf16 %v15149_v8  ;;  %v11664_v50 = vpop.eup %7341  ;;  %v11667_v28 = vmul.f32 %v4368_v4, %v11367_v21  ;;  %v14139_v2 = vmul.bf16 1065369472, %v11659_v61  ;;  %7353 = vrcp.bf16 %v3908_v14  ;;  %v15154_v40 = vld [vmem:[#allocation89_spill] sm:$0xff] }
 0x2ac   : > { %v4674_v22 = vmul.f32 %v4354_v13, %v10989_v53  ;;  %15150 = vst [vmem:[#allocation119_spill] sm:$0xff] %v11664_v50  ;;  %v4675_v23 = vmul.f32 %v4355_v27, %v15151_v9  ;;  %v7344_v59 = vpop.eup %7343  ;;  %v14138_v8 = vmul.bf16 1065369472, %v11664_v50  ;;  %7355 = vrcp.bf16 %v3829_v48  ;;  %v15156_v27 = vld [vmem:[#allocation244_spill] sm:$0xff]  ;;  %v15157_v9 = vld [vmem:[#allocation245_spill] sm:$0xff]  ;;  %v11695_v62 = vpop.xlane.xlu1 %5101 }
 0x2ad   : > { %v11672_v37 = vmul.f32 %v4528_v36, %v11376_v3  ;;  %v11677_v53 = vadd.f32 %v15154_v40, %v15153_v33  ;;  %v4369_v21 = vunpack.c.h.bf16 %v14139_v2  ;;  %v3909_v13 = vadd.bf16 1065369472, %v7344_v59  ;;  %v15159_v36 = vld [vmem:[#allocation33_spill] sm:$0xff]  ;;  %15163 = vst [vmem:[#allocation169_spill] sm:$0xff] %v11695_v62  ;;  %v15172_v50 = vld [vmem:[#allocation36_spill] sm:$0xff] }
 0x2ae   : > { %7357 = vpow.bf16 %v6712_v51  ;;  %v5208_v4 = vadd.f32 %v4675_v23, %v4674_v22  ;;  %v4529_v14 = vunpack.c.h.bf16 %v14138_v8  ;;  %v11685_v3 = vadd.f32 %v15157_v9, %v15156_v27  ;;  %v15161_v40 = vld [vmem:[#allocation53_spill] sm:$0xff]  ;;  %v15164_v22 = vld [vmem:[#allocation102_spill] sm:$0xff]  ;;  %v15166_v9 = vld [vmem:[#allocation56_spill] sm:$0xff] }
 0x2af   : > { %15152 = vst [vmem:[#allocation18_spill] sm:$0xff] %v11672_v37  ;;  %15155 = vst [vmem:[#allocation92_spill] sm:$0xff] %v11677_v53  ;;  %v11689_v48 = vadd.f32 %v15159_v36, %v15153_v33  ;;  %v11693_v37 = vadd.f32 %v15161_v40, %v15156_v27  ;;  %v11698_v51 = vmul.f32 %v4369_v21, %v11396_v52  ;;  %7359 = vrcp.bf16 %v3909_v13  ;;  %v15167_v8 = vld [vmem:[#allocation95_spill] sm:$0xff]  ;;  %v11706_v33 = vpop.xlane.xlu0 %5104  ;;  %v11708_v36 = vpop.f32.mrb[158].mxu1  ;;  %v15171_v40 = vld [vmem:[#allocation249_spill] sm:$0xff] }
 0x2b0   : > { %15158 = vst [vmem:[#allocation55_spill] sm:$0xff] %v11685_v3  ;;  %5209 = vadd.xlane.f32.xlu1 %v5208_v4  ;;  %v15165_v23 = vmul.bf16 1065369472, %v15164_v22  ;;  %v11704_v2 = vadd.f32 %v15167_v8, %v15166_v9  ;;  %15168 = vst [vmem:[#allocation34_spill] sm:$0xff] %v11706_v33  ;;  %v11711_v27 = vmul.f32 %v4529_v14, %v11400_v39  ;;  %v15173_v21 = vld [vmem:[#allocation120_spill] sm:$0xff]  ;;  %v11719_v22 = vpop.f32.mrb[159].mxu0 }
 0x2b1   : > { %15160 = vst [vmem:[#allocation80_spill] sm:$0xff] %v11689_v48  ;;  %15162 = vst [vmem:[#allocation128_spill] sm:$0xff] %v11693_v37  ;;  %v11715_v52 = vadd.f32 %v15172_v50, %v15171_v40  ;;  %v15174_v13 = vmul.bf16 1065369472, %v15173_v21  ;;  %v15176_v8 = vld [vmem:[#allocation124_spill] sm:$0xff]  ;;  %v7506_v49 = vmov 0.0  }
 0x2b2   : > { %v4432_v59 = vunpack.c.h.bf16 %v15165_v23  ;;  %15169 = vst [vmem:[#allocation113_spill] sm:$0xff] %v11708_v36  ;;  %15170 = vst [vmem:[#allocation57_spill] sm:$0xff] %v11711_v27  ;;  %v11721_v23 = vpop.eup %7345  ;;  %v3032_v36 = vpack.c.bf16 %v11704_v2, %v11677_v53  ;;  %v15177_v39 = vld [vmem:[#allocation100_spill] sm:$0xff]  ;;  %v15178_v27 = vld [vmem:[#allocation145_spill] sm:$0xff]  ;;  %v12072_v57 = vpop.f32.mrb[159].mxu1 }
 0x2b3   : > { %v4435_v4 = vunpack.c.l.bf16 %v15174_v13  ;;  %15175 = vst [vmem:[#allocation89_spill] sm:$0xff] %v11719_v22  ;;  %v11730_v14 = vadd.f32 %v15177_v39, %v15166_v9  ;;  %v11732_v50 = vpop.eup %7347  ;;  %206 = vst.msk [vmem:[#allocation2] sm:$0xff] %vm205_vm1, %v7506_v49  ;;  %v15182_v6 = vadd.bf16 1065369472, %v11721_v23  ;;  %v15184_v33 = vld [vmem:[#allocation126_spill] sm:$0xff]  ;;  %v12085_v62 = vpop.xlane.xlu0 %5110 }
 0x2b4   : > { %v11724_v16 = vmul.f32 %v4432_v59, %v15176_v8  ;;  %207 = vst.msk [vmem:[#allocation2 + $0x8] sm:$0xff] %vm205_vm1, %v7506_v49  ;;  %208 = vst.msk [vmem:[#allocation2 + $0x10] sm:$0xff] %vm205_vm1, %v7506_v49  ;;  %v15179_v59 = vld [vmem:[#allocation179_spill] sm:$0xff]  ;;  %v6633_v13 = vmul.bf16 3216621497, %v3032_v36 }
 0x2b5   : > { %v11738_v22 = vmul.f32 %v4435_v4, %v15178_v27  ;;  %209 = vst.msk [vmem:[#allocation2 + $0x18] sm:$0xff] %vm205_vm1, %v7506_v49  ;;  %210 = vst.msk [vmem:[#allocation2 + $0x20] sm:$0xff] %vm205_vm1, %v7506_v49  ;;  %v12062_v9 = vadd.f32 %v15179_v59, %v15171_v40  ;;  %v7350_v27 = vpop.eup %7349  ;;  %v15180_v8 = vld [vmem:[#allocation91_spill] sm:$0xff]  ;;  %v3033_v21 = vpack.c.bf16 %v11730_v14, %v11689_v48  ;;  %7361 = vrcp.bf16 %v15182_v6 }
 0x2b6   : > { %211 = vst.msk [vmem:[#allocation2 + $0x28] sm:$0xff] %vm205_vm1, %v7506_v49  ;;  %212 = vst.msk [vmem:[#allocation2 + $0x30] sm:$0xff] %vm205_vm1, %v7506_v49  ;;  %v5325_v39 = vadd.f32 %v15180_v8, %v11724_v16  ;;  %v3910_v40 = vadd.bf16 1065369472, %v7350_v27  ;;  %v15183_v59 = vpack.c.bf16 %v11715_v52, %v11685_v3  ;;  %v12081_v8 = vpop.xlane.xlu1 %5107  ;;  %v15186_v36 = vmul.bf16 1065369472, %v11732_v50 }
 0x2b7   : > { %213 = vst.msk [vmem:[#allocation2 + $0x38] sm:$0xff] %vm205_vm1, %v7506_v49  ;;  %214 = vst.msk [vmem:[#allocation2 + $0x40] sm:$0xff] %vm205_vm1, %v7506_v49  ;;  %v5328_v16 = vadd.f32 %v11738_v22, %v15184_v33  ;;  %7363 = vpow.bf16 %v6633_v13  ;;  %v3113_v23 = vpack.c.bf16 %v12062_v9, %v11693_v37  ;;  %v5217_v33 = vadd.f32 %v11485_v43, %v11467_v60  ;;  %v15191_v60 = vld [vmem:[#allocation131_spill] sm:$0xff] }
 0x2b8   : > { %215 = vst.msk [vmem:[#allocation2 + $0x48] sm:$0xff] %vm205_vm1, %v7506_v49  ;;  %216 = vst.msk [vmem:[#allocation2 + $0x50] sm:$0xff] %vm205_vm1, %v7506_v49  ;;  %v6713_v4 = vmul.bf16 3216621497, %v15183_v59  ;;  %v4372_v53 = vunpack.c.h.bf16 %v15186_v36  ;;  %5326 = vadd.xlane.f32.xlu0 %v5325_v39  ;;  %7365 = vrcp.bf16 %v3910_v40  ;;  %v15189_v22 = vmul.bf16 1065369472, %v11427_v17 }
 0x2b9   : > { %217 = vst.msk [vmem:[#allocation2 + $0x58] sm:$0xff] %vm205_vm1, %v7506_v49  ;;  %218 = vst.msk [vmem:[#allocation2 + $0x60] sm:$0xff] %vm205_vm1, %v7506_v49  ;;  %5329 = vadd.xlane.f32.xlu1 %v5328_v16  ;;  %v15190_v39 = vmul.bf16 1065369472, %v11442_v12  ;;  %v6714_v36 = vmul.bf16 3216621497, %v3113_v23 }
 0x2ba   : > { %219 = vst.msk [vmem:[#allocation2 + $0x68] sm:$0xff] %vm205_vm1, %v7506_v49  ;;  %220 = vst.msk [vmem:[#allocation2 + $0x70] sm:$0xff] %vm205_vm1, %v7506_v49  ;;  %v4358_v27 = vunpack.c.l.bf16 %v15189_v22  ;;  %v12098_v13 = vmul.f32 %v4372_v53, %v11474_v19  ;;  %v4886_v37 = vld [vmem:[#allocation2] sm:$0xff]  ;;  %v15192_v19 = vld [vmem:[#allocation40_spill] sm:$0xff] }
 0x2bb   : > { %221 = vst.msk [vmem:[#allocation2 + $0x78] sm:$0xff] %vm205_vm1, %v7506_v49  ;;  %222 = vst.msk [vmem:[#allocation2 + $0x80] sm:$0xff] %vm205_vm1, %v7506_v49  ;;  %v4887_v3 = vld [vmem:[#allocation2 + $0x8] sm:$0xff] }
 0x2bc   : > { %223 = vst.msk [vmem:[#allocation2 + $0x88] sm:$0xff] %vm205_vm1, %v7506_v49  ;;  %224 = vst.msk [vmem:[#allocation2 + $0x90] sm:$0xff] %vm205_vm1, %v7506_v49  ;;  %v4678_v43 = vmul.f32 %v4358_v27, %v15191_v60  ;;  %5218 = vadd.xlane.f32.xlu0 %v5217_v33  ;;  %v12114_v27 = vpop.xlane.xlu1 %5113  ;;  %v12120_v60 = vpop.xlane.xlu0 %5116 }
 0x2bd   : > { %225 = vst.msk [vmem:[#allocation2 + $0x98] sm:$0xff] %vm205_vm1, %v7506_v49  ;;  %226 = vst.msk [vmem:[#allocation2 + $0xa0] sm:$0xff] %vm205_vm1, %v7506_v49 }
 0x2be   : > { %227 = vst.msk [vmem:[#allocation2 + $0xa8] sm:$0xff] %vm205_vm1, %v7506_v49  ;;  %228 = vst.msk [vmem:[#allocation2 + $0xb0] sm:$0xff] %vm205_vm1, %v7506_v49 }
 0x2bf   : > { %229 = vst.msk [vmem:[#allocation2 + $0xb8] sm:$0xff] %vm205_vm1, %v7506_v49  ;;  %230 = vst.msk [vmem:[#allocation2 + $0xc0] sm:$0xff] %vm205_vm1, %v7506_v49 }
 0x2c0   : > { %231 = vst.msk [vmem:[#allocation2 + $0xc8] sm:$0xff] %vm205_vm1, %v7506_v49  ;;  %232 = vst.msk [vmem:[#allocation2 + $0xd0] sm:$0xff] %vm205_vm1, %v7506_v49 }
 0x2c1   : > { %233 = vst.msk [vmem:[#allocation2 + $0xd8] sm:$0xff] %vm205_vm1, %v7506_v49  ;;  %234 = vst.msk [vmem:[#allocation2 + $0xe0] sm:$0xff] %vm205_vm1, %v7506_v49 }
 0x2c2   : > { %235 = vst.msk [vmem:[#allocation2 + $0xe8] sm:$0xff] %vm205_vm1, %v7506_v49  ;;  %236 = vst.msk [vmem:[#allocation2 + $0xf0] sm:$0xff] %vm205_vm1, %v7506_v49 }
 0x2c3   : > { %237 = vst.msk [vmem:[#allocation2 + $0xf8] sm:$0xff] %vm205_vm1, %v7506_v49  ;;  %238 = vst.msk [vmem:[#allocation2 + $0x100] sm:$0xff] %vm205_vm1, %v7506_v49 }
 0x2c4   : > { %239 = vst.msk [vmem:[#allocation2 + $0x108] sm:$0xff] %vm205_vm1, %v7506_v49  ;;  %240 = vst.msk [vmem:[#allocation2 + $0x110] sm:$0xff] %vm205_vm1, %v7506_v49 }
 0x2c5   : > { %241 = vst.msk [vmem:[#allocation2 + $0x118] sm:$0xff] %vm205_vm1, %v7506_v49  ;;  %242 = vst.msk [vmem:[#allocation2 + $0x120] sm:$0xff] %vm205_vm1, %v7506_v49 }
 0x2c6   : > { %243 = vst.msk [vmem:[#allocation2 + $0x128] sm:$0xff] %vm205_vm1, %v7506_v49  ;;  %244 = vst.msk [vmem:[#allocation2 + $0x130] sm:$0xff] %vm205_vm1, %v7506_v49 }
 0x2c7   : > { %245 = vst.msk [vmem:[#allocation2 + $0x138] sm:$0xff] %vm205_vm1, %v7506_v49  ;;  %246 = vst.msk [vmem:[#allocation2 + $0x140] sm:$0xff] %vm205_vm1, %v7506_v49 }
 0x2c8   : > { %247 = vst.msk [vmem:[#allocation2 + $0x148] sm:$0xff] %vm205_vm1, %v7506_v49  ;;  %248 = vst.msk [vmem:[#allocation2 + $0x150] sm:$0xff] %vm205_vm1, %v7506_v49 }
 0x2c9   : > { %249 = vst.msk [vmem:[#allocation2 + $0x158] sm:$0xff] %vm205_vm1, %v7506_v49  ;;  %250 = vst.msk [vmem:[#allocation2 + $0x160] sm:$0xff] %vm205_vm1, %v7506_v49 }
 0x2ca   : > { %251 = vst.msk [vmem:[#allocation2 + $0x168] sm:$0xff] %vm205_vm1, %v7506_v49  ;;  %252 = vst.msk [vmem:[#allocation2 + $0x170] sm:$0xff] %vm205_vm1, %v7506_v49 }
 0x2cb   : > { %253 = vst.msk [vmem:[#allocation2 + $0x178] sm:$0xff] %vm205_vm1, %v7506_v49  ;;  %254 = vst.msk [vmem:[#allocation2 + $0x180] sm:$0xff] %vm205_vm1, %v7506_v49 }
 0x2cc   : > { %255 = vst.msk [vmem:[#allocation2 + $0x188] sm:$0xff] %vm205_vm1, %v7506_v49  ;;  %256 = vst.msk [vmem:[#allocation2 + $0x190] sm:$0xff] %vm205_vm1, %v7506_v49 }
 0x2cd   : > { %257 = vst.msk [vmem:[#allocation2 + $0x198] sm:$0xff] %vm205_vm1, %v7506_v49  ;;  %258 = vst.msk [vmem:[#allocation2 + $0x1a0] sm:$0xff] %vm205_vm1, %v7506_v49 }
 0x2ce   : > { %259 = vst.msk [vmem:[#allocation2 + $0x1a8] sm:$0xff] %vm205_vm1, %v7506_v49  ;;  %260 = vst.msk [vmem:[#allocation2 + $0x1b0] sm:$0xff] %vm205_vm1, %v7506_v49 }
 0x2cf   : > { %261 = vst.msk [vmem:[#allocation2 + $0x1b8] sm:$0xff] %vm205_vm1, %v7506_v49  ;;  %262 = vst.msk [vmem:[#allocation2 + $0x1c0] sm:$0xff] %vm205_vm1, %v7506_v49 }
 0x2d0   : > { %263 = vst.msk [vmem:[#allocation2 + $0x1c8] sm:$0xff] %vm205_vm1, %v7506_v49  ;;  %264 = vst.msk [vmem:[#allocation2 + $0x1d0] sm:$0xff] %vm205_vm1, %v7506_v49 }
 0x2d1   : > { %265 = vst.msk [vmem:[#allocation2 + $0x1d8] sm:$0xff] %vm205_vm1, %v7506_v49  ;;  %266 = vst.msk [vmem:[#allocation2 + $0x1e0] sm:$0xff] %vm205_vm1, %v7506_v49 }
 0x2d2   : > { %267 = vst.msk [vmem:[#allocation2 + $0x1e8] sm:$0xff] %vm205_vm1, %v7506_v49  ;;  %268 = vst.msk [vmem:[#allocation2 + $0x1f0] sm:$0xff] %vm205_vm1, %v7506_v49 }
 0x2d3   : > { %269 = vst.msk [vmem:[#allocation2 + $0x1f8] sm:$0xff] %vm205_vm1, %v7506_v49  ;;  %270 = vst.msk [vmem:[#allocation2 + $0x200] sm:$0xff] %vm205_vm1, %v7506_v49 }
 0x2d4   : > { %271 = vst.msk [vmem:[#allocation2 + $0x208] sm:$0xff] %vm205_vm1, %v7506_v49  ;;  %272 = vst.msk [vmem:[#allocation2 + $0x210] sm:$0xff] %vm205_vm1, %v7506_v49 }
 0x2d5   : > { %273 = vst.msk [vmem:[#allocation2 + $0x218] sm:$0xff] %vm205_vm1, %v7506_v49  ;;  %274 = vst.msk [vmem:[#allocation2 + $0x220] sm:$0xff] %vm205_vm1, %v7506_v49 }
 0x2d6   : > { %275 = vst.msk [vmem:[#allocation2 + $0x228] sm:$0xff] %vm205_vm1, %v7506_v49  ;;  %276 = vst.msk [vmem:[#allocation2 + $0x230] sm:$0xff] %vm205_vm1, %v7506_v49 }
 0x2d7   : > { %277 = vst.msk [vmem:[#allocation2 + $0x238] sm:$0xff] %vm205_vm1, %v7506_v49  ;;  %278 = vst.msk [vmem:[#allocation2 + $0x240] sm:$0xff] %vm205_vm1, %v7506_v49 }
 0x2d8   : > { %279 = vst.msk [vmem:[#allocation2 + $0x248] sm:$0xff] %vm205_vm1, %v7506_v49  ;;  %280 = vst.msk [vmem:[#allocation2 + $0x250] sm:$0xff] %vm205_vm1, %v7506_v49 }
 0x2d9   : > { %281 = vst.msk [vmem:[#allocation2 + $0x258] sm:$0xff] %vm205_vm1, %v7506_v49  ;;  %282 = vst.msk [vmem:[#allocation2 + $0x260] sm:$0xff] %vm205_vm1, %v7506_v49 }
 0x2da   : > { %283 = vst.msk [vmem:[#allocation2 + $0x268] sm:$0xff] %vm205_vm1, %v7506_v49  ;;  %284 = vst.msk [vmem:[#allocation2 + $0x270] sm:$0xff] %vm205_vm1, %v7506_v49 }
 0x2db   : > { %285 = vst.msk [vmem:[#allocation2 + $0x278] sm:$0xff] %vm205_vm1, %v7506_v49  ;;  %286 = vst.msk [vmem:[#allocation2 + $0x280] sm:$0xff] %vm205_vm1, %v7506_v49 }
 0x2dc   : > { %287 = vst.msk [vmem:[#allocation2 + $0x288] sm:$0xff] %vm205_vm1, %v7506_v49  ;;  %288 = vst.msk [vmem:[#allocation2 + $0x290] sm:$0xff] %vm205_vm1, %v7506_v49 }
 0x2dd   : > { %289 = vst.msk [vmem:[#allocation2 + $0x298] sm:$0xff] %vm205_vm1, %v7506_v49  ;;  %290 = vst.msk [vmem:[#allocation2 + $0x2a0] sm:$0xff] %vm205_vm1, %v7506_v49 }
 0x2de   : > { %291 = vst.msk [vmem:[#allocation2 + $0x2a8] sm:$0xff] %vm205_vm1, %v7506_v49  ;;  %292 = vst.msk [vmem:[#allocation2 + $0x2b0] sm:$0xff] %vm205_vm1, %v7506_v49 }
 0x2df   : > { %293 = vst.msk [vmem:[#allocation2 + $0x2b8] sm:$0xff] %vm205_vm1, %v7506_v49  ;;  %294 = vst.msk [vmem:[#allocation2 + $0x2c0] sm:$0xff] %vm205_vm1, %v7506_v49 }
 0x2e0   : > { %295 = vst.msk [vmem:[#allocation2 + $0x2c8] sm:$0xff] %vm205_vm1, %v7506_v49  ;;  %296 = vst.msk [vmem:[#allocation2 + $0x2d0] sm:$0xff] %vm205_vm1, %v7506_v49 }
 0x2e1   : > { %297 = vst.msk [vmem:[#allocation2 + $0x2d8] sm:$0xff] %vm205_vm1, %v7506_v49  ;;  %298 = vst.msk [vmem:[#allocation2 + $0x2e0] sm:$0xff] %vm205_vm1, %v7506_v49 }
 0x2e2   : > { %299 = vst.msk [vmem:[#allocation2 + $0x2e8] sm:$0xff] %vm205_vm1, %v7506_v49  ;;  %300 = vst.msk [vmem:[#allocation2 + $0x2f0] sm:$0xff] %vm205_vm1, %v7506_v49 }
 0x2e3   : > { %301 = vst.msk [vmem:[#allocation2 + $0x2f8] sm:$0xff] %vm205_vm1, %v7506_v49  ;;  %302 = vst.msk [vmem:[#allocation2 + $0x300] sm:$0xff] %vm205_vm1, %v7506_v49 }
 0x2e4   : > { %303 = vst.msk [vmem:[#allocation2 + $0x308] sm:$0xff] %vm205_vm1, %v7506_v49  ;;  %304 = vst.msk [vmem:[#allocation2 + $0x310] sm:$0xff] %vm205_vm1, %v7506_v49 }
 0x2e5   : > { %305 = vst.msk [vmem:[#allocation2 + $0x318] sm:$0xff] %vm205_vm1, %v7506_v49  ;;  %306 = vst.msk [vmem:[#allocation2 + $0x320] sm:$0xff] %vm205_vm1, %v7506_v49 }
 0x2e6   : > { %307 = vst.msk [vmem:[#allocation2 + $0x328] sm:$0xff] %vm205_vm1, %v7506_v49  ;;  %308 = vst.msk [vmem:[#allocation2 + $0x330] sm:$0xff] %vm205_vm1, %v7506_v49 }
 0x2e7   : > { %309 = vst.msk [vmem:[#allocation2 + $0x338] sm:$0xff] %vm205_vm1, %v7506_v49  ;;  %310 = vst.msk [vmem:[#allocation2 + $0x340] sm:$0xff] %vm205_vm1, %v7506_v49 }
 0x2e8   : > { %311 = vst.msk [vmem:[#allocation2 + $0x348] sm:$0xff] %vm205_vm1, %v7506_v49  ;;  %312 = vst.msk [vmem:[#allocation2 + $0x350] sm:$0xff] %vm205_vm1, %v7506_v49 }
 0x2e9   : > { %313 = vst.msk [vmem:[#allocation2 + $0x358] sm:$0xff] %vm205_vm1, %v7506_v49  ;;  %314 = vst.msk [vmem:[#allocation2 + $0x360] sm:$0xff] %vm205_vm1, %v7506_v49 }
 0x2ea   : > { %315 = vst.msk [vmem:[#allocation2 + $0x368] sm:$0xff] %vm205_vm1, %v7506_v49  ;;  %316 = vst.msk [vmem:[#allocation2 + $0x370] sm:$0xff] %vm205_vm1, %v7506_v49 }
 0x2eb   : > { %317 = vst.msk [vmem:[#allocation2 + $0x378] sm:$0xff] %vm205_vm1, %v7506_v49  ;;  %318 = vst.msk [vmem:[#allocation2 + $0x380] sm:$0xff] %vm205_vm1, %v7506_v49 }
 0x2ec   : > { %319 = vst.msk [vmem:[#allocation2 + $0x388] sm:$0xff] %vm205_vm1, %v7506_v49  ;;  %320 = vst.msk [vmem:[#allocation2 + $0x390] sm:$0xff] %vm205_vm1, %v7506_v49 }
 0x2ed   : > { %321 = vst.msk [vmem:[#allocation2 + $0x398] sm:$0xff] %vm205_vm1, %v7506_v49  ;;  %322 = vst.msk [vmem:[#allocation2 + $0x3a0] sm:$0xff] %vm205_vm1, %v7506_v49 }
 0x2ee   : > { %323 = vst.msk [vmem:[#allocation2 + $0x3a8] sm:$0xff] %vm205_vm1, %v7506_v49  ;;  %324 = vst.msk [vmem:[#allocation2 + $0x3b0] sm:$0xff] %vm205_vm1, %v7506_v49 }
 0x2ef   : > { %325 = vst.msk [vmem:[#allocation2 + $0x3b8] sm:$0xff] %vm205_vm1, %v7506_v49  ;;  %326 = vst.msk [vmem:[#allocation2 + $0x3c0] sm:$0xff] %vm205_vm1, %v7506_v49 }
 0x2f0   : > { %327 = vst.msk [vmem:[#allocation2 + $0x3c8] sm:$0xff] %vm205_vm1, %v7506_v49  ;;  %328 = vst.msk [vmem:[#allocation2 + $0x3d0] sm:$0xff] %vm205_vm1, %v7506_v49 }
 0x2f1   : > { %329 = vst.msk [vmem:[#allocation2 + $0x3d8] sm:$0xff] %vm205_vm1, %v7506_v49  ;;  %330 = vst.msk [vmem:[#allocation2 + $0x3e0] sm:$0xff] %vm205_vm1, %v7506_v49 }
 0x2f2   : > { %331 = vst.msk [vmem:[#allocation2 + $0x3e8] sm:$0xff] %vm205_vm1, %v7506_v49  ;;  %332 = vst.msk [vmem:[#allocation2 + $0x3f0] sm:$0xff] %vm205_vm1, %v7506_v49 }
 0x2f3   : > { %333 = vst.msk [vmem:[#allocation2 + $0x3f8] sm:$0xff] %vm205_vm1, %v7506_v49  ;;  %334 = vst.msk [vmem:[#allocation2 + $0x400] sm:$0xff] %vm205_vm1, %v7506_v49 }
 0x2f4   : > { %335 = vst.msk [vmem:[#allocation2 + $0x408] sm:$0xff] %vm205_vm1, %v7506_v49  ;;  %336 = vst.msk [vmem:[#allocation2 + $0x410] sm:$0xff] %vm205_vm1, %v7506_v49 }
 0x2f5   : > { %337 = vst.msk [vmem:[#allocation2 + $0x418] sm:$0xff] %vm205_vm1, %v7506_v49  ;;  %338 = vst.msk [vmem:[#allocation2 + $0x420] sm:$0xff] %vm205_vm1, %v7506_v49 }
 0x2f6   : > { %339 = vst.msk [vmem:[#allocation2 + $0x428] sm:$0xff] %vm205_vm1, %v7506_v49  ;;  %340 = vst.msk [vmem:[#allocation2 + $0x430] sm:$0xff] %vm205_vm1, %v7506_v49 }
 0x2f7   : > { %341 = vst.msk [vmem:[#allocation2 + $0x438] sm:$0xff] %vm205_vm1, %v7506_v49  ;;  %342 = vst.msk [vmem:[#allocation2 + $0x440] sm:$0xff] %vm205_vm1, %v7506_v49 }
 0x2f8   : > { %343 = vst.msk [vmem:[#allocation2 + $0x448] sm:$0xff] %vm205_vm1, %v7506_v49  ;;  %344 = vst.msk [vmem:[#allocation2 + $0x450] sm:$0xff] %vm205_vm1, %v7506_v49 }
 0x2f9   : > { %345 = vst.msk [vmem:[#allocation2 + $0x458] sm:$0xff] %vm205_vm1, %v7506_v49  ;;  %346 = vst.msk [vmem:[#allocation2 + $0x460] sm:$0xff] %vm205_vm1, %v7506_v49 }
 0x2fa   : > { %347 = vst.msk [vmem:[#allocation2 + $0x468] sm:$0xff] %vm205_vm1, %v7506_v49  ;;  %348 = vst.msk [vmem:[#allocation2 + $0x470] sm:$0xff] %vm205_vm1, %v7506_v49 }
 0x2fb   : > { %349 = vst.msk [vmem:[#allocation2 + $0x478] sm:$0xff] %vm205_vm1, %v7506_v49  ;;  %350 = vst.msk [vmem:[#allocation2 + $0x480] sm:$0xff] %vm205_vm1, %v7506_v49 }
 0x2fc   : > { %351 = vst.msk [vmem:[#allocation2 + $0x488] sm:$0xff] %vm205_vm1, %v7506_v49  ;;  %352 = vst.msk [vmem:[#allocation2 + $0x490] sm:$0xff] %vm205_vm1, %v7506_v49 }
 0x2fd   : > { %353 = vst.msk [vmem:[#allocation2 + $0x498] sm:$0xff] %vm205_vm1, %v7506_v49  ;;  %354 = vst.msk [vmem:[#allocation2 + $0x4a0] sm:$0xff] %vm205_vm1, %v7506_v49 }
 0x2fe   : > { %355 = vst.msk [vmem:[#allocation2 + $0x4a8] sm:$0xff] %vm205_vm1, %v7506_v49  ;;  %356 = vst.msk [vmem:[#allocation2 + $0x4b0] sm:$0xff] %vm205_vm1, %v7506_v49 }
 0x2ff   : > { %357 = vst.msk [vmem:[#allocation2 + $0x4b8] sm:$0xff] %vm205_vm1, %v7506_v49  ;;  %358 = vst.msk [vmem:[#allocation2 + $0x4c0] sm:$0xff] %vm205_vm1, %v7506_v49 }
 0x300   : > { %359 = vst.msk [vmem:[#allocation2 + $0x4c8] sm:$0xff] %vm205_vm1, %v7506_v49  ;;  %360 = vst.msk [vmem:[#allocation2 + $0x4d0] sm:$0xff] %vm205_vm1, %v7506_v49 }
 0x301   : > { %361 = vst.msk [vmem:[#allocation2 + $0x4d8] sm:$0xff] %vm205_vm1, %v7506_v49  ;;  %362 = vst.msk [vmem:[#allocation2 + $0x4e0] sm:$0xff] %vm205_vm1, %v7506_v49 }
 0x302   : > { %363 = vst.msk [vmem:[#allocation2 + $0x4e8] sm:$0xff] %vm205_vm1, %v7506_v49  ;;  %364 = vst.msk [vmem:[#allocation2 + $0x4f0] sm:$0xff] %vm205_vm1, %v7506_v49 }
 0x303   : > { %365 = vst.msk [vmem:[#allocation2 + $0x4f8] sm:$0xff] %vm205_vm1, %v7506_v49  ;;  %15181 = vst [vmem:[#allocation244_spill] sm:$0xff] %v12072_v57  ;;  %v7352_v49 = vpop.eup %7351  ;;  %v6634_v57 = vmul.bf16 3216621497, %v3033_v21 }
 0x304   : > { %15185 = vst [vmem:[#allocation245_spill] sm:$0xff] %v12081_v8  ;;  %v3831_v48 = vadd.bf16 1065369472, %v7352_v49  ;;  %15187 = vst [vmem:[#allocation33_spill] sm:$0xff] %v12085_v62  ;;  %v12087_v6 = vpop.eup %7353  ;;  %v4359_v49 = vunpack.c.l.bf16 %v15190_v39 }
 0x305   : > { %15188 = vst [vmem:[#allocation53_spill] sm:$0xff] %v12087_v6  ;;  %v12095_v59 = vpop.eup %7355  ;;  %v14145_v21 = vmul.bf16 1065369472, %v12087_v6  ;;  %15194 = vst [vmem:[#allocation56_spill] sm:$0xff] %v12114_v27 }
 0x306   : > { %7367 = vrcp.bf16 %v3831_v48  ;;  %v7358_v40 = vpop.eup %7357  ;;  %v14147_v16 = vmul.bf16 1065369472, %v12095_v59  ;;  %v4679_v53 = vmul.f32 %v4359_v49, %v15192_v19  ;;  %v4888_v48 = vld [vmem:[#allocation2 + $0x10] sm:$0xff]  ;;  %v4889_v49 = vld [vmem:[#allocation2 + $0x18] sm:$0xff]  ;;  %15196 = vst [vmem:[#allocation249_spill] sm:$0xff] %v12120_v60 }
 0x307   : > { %7369 = vpow.bf16 %v6713_v4  ;;  %v4532_v17 = vunpack.c.h.bf16 %v14145_v21  ;;  %v3911_v22 = vadd.bf16 1065369472, %v7358_v40  ;;  %v12108_v12 = vpop.eup %7359  ;;  %v5526_v4 = vadd.f32 %v11196_v56, %v4886_v37  ;;  %v15211_v21 = vld [vmem:[#allocation65_spill] sm:$0xff] }
 0x308   : > { %7371 = vpow.bf16 %v6634_v57  ;;  %15193 = vst [vmem:[#allocation102_spill] sm:$0xff] %v12108_v12  ;;  %v4373_v39 = vunpack.c.h.bf16 %v14147_v16  ;;  %v5528_v23 = vadd.f32 %v11238_v31, %v4888_v48  ;;  %v14146_v57 = vmul.bf16 1065369472, %v12108_v12  ;;  %v15197_v31 = vld [vmem:[#allocation60_spill] sm:$0xff]  ;;  %v15205_v48 = vld [vmem:[#allocation123_spill] sm:$0xff]  ;;  %v15213_v16 = vld [vmem:[#allocation185_spill] sm:$0xff] }
 0x309   : > { %7373 = vpow.bf16 %v6714_v36  ;;  %v12117_v40 = vmul.f32 %v4532_v17, %v11498_v26  ;;  %v5214_v33 = vadd.f32 %v4679_v53, %v4678_v43  ;;  %5687 = vst.msk [vmem:[#allocation2] sm:$0xff] %vm205_vm1, %v5526_v4  ;;  %v5527_v56 = vadd.f32 %v11283_v1, %v4887_v3  ;;  %v15198_v26 = vld [vmem:[#allocation35_spill] sm:$0xff]  ;;  %v15200_v36 = vld [vmem:[#allocation173_spill] sm:$0xff]  ;;  %v15201_v17 = vld [vmem:[#allocation106_spill] sm:$0xff] }
 0x30a   : > { %7375 = vrcp.bf16 %v3911_v22  ;;  %v12123_v19 = vmul.f32 %v4373_v39, %v11511_v25  ;;  %5689 = vst.msk [vmem:[#allocation2 + $0x10] sm:$0xff] %vm205_vm1, %v5528_v23  ;;  %v12130_v37 = vadd.f32 %v15198_v26, %v15197_v31  ;;  %v12134_v43 = vadd.f32 %v15201_v17, %v15200_v36  ;;  %v15203_v25 = vld [vmem:[#allocation109_spill] sm:$0xff]  ;;  %v15209_v23 = vld [vmem:[#allocation59_spill] sm:$0xff]  ;;  %v15210_v26 = vld [vmem:[#allocation250_spill] sm:$0xff] }
 0x30b   : > { %15195 = vst [vmem:[#allocation95_spill] sm:$0xff] %v12117_v40  ;;  %v4533_v22 = vunpack.c.h.bf16 %v14146_v57  ;;  %5215 = vadd.xlane.f32.xlu1 %v5214_v33  ;;  %v12140_v53 = vadd.f32 %v15203_v25, %v15197_v31  ;;  %v12144_v39 = vadd.f32 %v15205_v48, %v15200_v36  ;;  %v15207_v1 = vld [vmem:[#allocation177_spill] sm:$0xff]  ;;  %5688 = vst.msk [vmem:[#allocation2 + $0x8] sm:$0xff] %vm205_vm1, %v5527_v56  ;;  %v15212_v57 = vld [vmem:[#allocation11_spill] sm:$0xff]  ;;  %v15214_v31 = vmul.bf16 1065369472, %v15213_v16  ;;  %v12160_v36 = vpop.eup %7361 }
 0x30c   : > { %15199 = vst [vmem:[#allocation36_spill] sm:$0xff] %v12130_v37  ;;  %15202 = vst [vmem:[#allocation120_spill] sm:$0xff] %v12134_v43  ;;  %v15208_v3 = vmul.bf16 1065369472, %v15207_v1  ;;  %v12151_v17 = vadd.f32 %v15210_v26, %v15209_v23  ;;  %v12155_v33 = vadd.f32 %v15212_v57, %v15211_v21  ;;  %v5529_v40 = vadd.f32 %v11313_v11, %v4889_v49  ;;  %v15216_v56 = vld [vmem:[#allocation141_spill] sm:$0xff]  ;;  %v7364_v16 = vpop.eup %7363  ;;  %v15219_v49 = vld [vmem:[#allocation150_spill] sm:$0xff] }
 0x30d   : > { %15204 = vst [vmem:[#allocation124_spill] sm:$0xff] %v12140_v53  ;;  %15206 = vst [vmem:[#allocation100_spill] sm:$0xff] %v12144_v39  ;;  %v4439_v25 = vunpack.c.l.bf16 %v15214_v31  ;;  %v12164_v48 = vmul.f32 %v4533_v22, %v11522_v7  ;;  %v15218_v57 = vld [vmem:[#allocation133_spill] sm:$0xff] }
 0x30e   : > { %v4436_v4 = vunpack.c.h.bf16 %v15208_v3  ;;  %v15217_v3 = vld [vmem:[#allocation121_spill] sm:$0xff]  ;;  %v12173_v12 = vadd.f32 %v15218_v57, %v15211_v21  ;;  %v3034_v11 = vpack.c.bf16 %v12151_v17, %v12130_v37  ;;  %v3114_v7 = vpack.c.bf16 %v12155_v33, %v12134_v43  ;;  %5690 = vst.msk [vmem:[#allocation2 + $0x18] sm:$0xff] %vm205_vm1, %v5529_v40  ;;  %v15222_v21 = vld [vmem:[#allocation186_spill] sm:$0xff] }
 0x30f   : > { %15215 = vst [vmem:[#allocation145_spill] sm:$0xff] %v12164_v48  ;;  %v12169_v26 = vadd.f32 %v15217_v3, %v15209_v23  ;;  %v4759_v22 = vmul.f32 %v4439_v25, %v15219_v49  ;;  %v12184_v23 = vpop.eup %7365  ;;  %v12191_v48 = vpop.xlane.xlu0 %5122  ;;  %v15224_v25 = vmul.bf16 1065369472, %v12160_v36 }
 0x310   : > { %v4756_v1 = vmul.f32 %v4436_v4, %v15216_v56  ;;  %v12182_v4 = vpop.xlane.xlu1 %5119  ;;  %15221 = vst [vmem:[#allocation91_spill] sm:$0xff] %v12184_v23  ;;  %v3832_v56 = vadd.bf16 1065369472, %v7364_v16  ;;  %v3115_v31 = vpack.c.bf16 %v12173_v12, %v12144_v39  ;;  %15223 = vst [vmem:[#allocation126_spill] sm:$0xff] %v12191_v48  ;;  %v14156_v49 = vmul.bf16 1065369472, %v12184_v23 }
 0x311   : > { %15220 = vst [vmem:[#allocation179_spill] sm:$0xff] %v12182_v4  ;;  %v3035_v57 = vpack.c.bf16 %v12169_v26, %v12140_v53  ;;  %v12193_v43 = vpop.eup %7367  ;;  %v4376_v40 = vunpack.c.h.bf16 %v15224_v25  ;;  %v6635_v6 = vmul.bf16 3216621497, %v3034_v11  ;;  %v6715_v37 = vmul.bf16 3216621497, %v3114_v7  ;;  %v5852_v39 = vld [vmem:[#allocation2 + $0x10] sm:$0xff] }
 0x312   : > { %v5331_v3 = vadd.f32 %v15222_v21, %v4756_v1  ;;  %v7370_v16 = vpop.eup %7369  ;;  %v14157_v1 = vmul.bf16 1065369472, %v12193_v43  ;;  %7377 = vrcp.bf16 %v3832_v56  ;;  %v5850_v21 = vld [vmem:[#allocation2] sm:$0xff]  ;;  %v4536_v7 = vunpack.c.h.bf16 %v14156_v49  ;;  %v15253_v49 = vld [vmem:[#allocation204_spill] sm:$0xff] }
 0x313   : > { %v15225_v53 = vld [vmem:[#allocation187_spill] sm:$0xff]  ;;  %v6636_v4 = vmul.bf16 3216621497, %v3035_v57  ;;  %v7372_v25 = vpop.eup %7371  ;;  %v12206_v11 = vmul.f32 %v4376_v40, %v11574_v41  ;;  %v3912_v60 = vadd.bf16 1065369472, %v7370_v16  ;;  %v6010_v27 = vmul.f32 0.00390625, %v5850_v21 }
 0x314   : > { %5332 = vadd.xlane.f32.xlu0 %v5331_v3  ;;  %v5334_v48 = vadd.f32 %v4759_v22, %v15225_v53  ;;  %v7374_v62 = vpop.eup %7373  ;;  %v4377_v56 = vunpack.c.h.bf16 %v14157_v1  ;;  %v3833_v8 = vadd.bf16 1065369472, %v7372_v25  ;;  %v6012_v24 = vmul.f32 0.00390625, %v5852_v39  ;;  %v5851_v3 = vld [vmem:[#allocation2 + $0x8] sm:$0xff]  ;;  %v4890_v53 = vld [vmem:[#allocation2 + $0x20] sm:$0xff]  ;;  %v12219_v21 = vpop.xlane.xlu1 %5125  ;;  %v4892_v25 = vld [vmem:[#allocation2 + $0x30] sm:$0xff] }
 0x315   : > { %7379 = vpow.bf16 %v6635_v6  ;;  %v12212_v22 = vpop.eup %7375  ;;  %v12215_v41 = vmul.f32 %v4536_v7, %v11583_v63  ;;  %6170 = vst.msk [vmem:[%s12201_s19] sm:$0xff] %vm205_vm1, %v6010_v27  ;;  %v3913_v57 = vadd.bf16 1065369472, %v7374_v62  ;;  %v6011_v40 = vmul.f32 0.00390625, %v5851_v3  ;;  %v4891_v16 = vld [vmem:[#allocation2 + $0x28] sm:$0xff]  ;;  %v5853_v63 = vld [vmem:[#allocation2 + $0x18] sm:$0xff] }
 0x316   : > { %5335 = vadd.xlane.f32.xlu1 %v5334_v48  ;;  %15226 = vst [vmem:[#allocation131_spill] sm:$0xff] %v12212_v22  ;;  %7381 = vrcp.bf16 %v3912_v60  ;;  %v12222_v39 = vmul.f32 %v4377_v56, %v11596_v34  ;;  %v14155_v6 = vmul.bf16 1065369472, %v12212_v22  ;;  %6172 = vst.msk [vmem:[%s12201_s19 + $0x10] sm:$0xff] %vm205_vm1, %v6012_v24  ;;  %v6716_v48 = vmul.bf16 3216621497, %v3115_v31  ;;  %v12227_v60 = vpop.xlane.xlu0 %5128 }
 0x317   : > { %15227 = vst [vmem:[#allocation40_spill] sm:$0xff] %v12215_v41  ;;  %7383 = vrcp.bf16 %v3833_v8  ;;  %6171 = vst.msk [vmem:[%s12201_s19 + $0x8] sm:$0xff] %vm205_vm1, %v6011_v40  ;;  %v6013_v62 = vmul.f32 0.00390625, %v5853_v63  ;;  %v5530_v27 = vadd.f32 %v11322_v58, %v4890_v53  ;;  %v5223_v34 = vadd.f32 %v11626_v38, %v11569_v10  ;;  %v15230_v38 = vld [vmem:[#allocation67_spill] sm:$0xff]  ;;  %v15231_v3 = vld [vmem:[#allocation96_spill] sm:$0xff] }
 0x318   : > { %7385 = vrcp.bf16 %v3913_v57  ;;  %v4537_v7 = vunpack.c.h.bf16 %v14155_v6  ;;  %v15228_v24 = vmul.bf16 1065369472, %v11533_v30  ;;  %v15229_v31 = vmul.bf16 1065369472, %v11578_v18  ;;  %v15234_v57 = vld [vmem:[#allocation84_spill] sm:$0xff] }
 0x319   : > { %7387 = vpow.bf16 %v6715_v37  ;;  %6173 = vst.msk [vmem:[%s12201_s19 + $0x18] sm:$0xff] %vm205_vm1, %v6013_v62  ;;  %5691 = vst.msk [vmem:[#allocation2 + $0x20] sm:$0xff] %vm205_vm1, %v5530_v27  ;;  %5224 = vadd.xlane.f32.xlu0 %v5223_v34  ;;  %v5531_v58 = vadd.f32 %v11350_v5, %v4891_v16  ;;  %v5532_v10 = vadd.f32 %v11378_v54, %v4892_v25  ;;  %v15233_v5 = vld [vmem:[#allocation190_spill] sm:$0xff]  ;;  %v15236_v40 = vld [vmem:[#allocation172_spill] sm:$0xff]  ;;  %v12270_v25 = vpop.xlane.xlu1 %5131 }
 0x31a   : > { %v4362_v8 = vunpack.c.l.bf16 %v15228_v24  ;;  %v4363_v56 = vunpack.c.l.bf16 %v15229_v31  ;;  %7389 = vpow.bf16 %v6636_v4  ;;  %v12247_v53 = vadd.f32 %v15231_v3, %v15230_v38  ;;  %v4893_v4 = vld [vmem:[#allocation2 + $0x38] sm:$0xff]  ;;  %v15242_v34 = vld [vmem:[#allocation143_spill] sm:$0xff]  ;;  %v12282_v3 = vpop.xlane.xlu0 %5134 }
 0x31b   : > { %v12250_v30 = vmul.f32 %v4537_v7, %v11630_v44  ;;  %7391 = vpow.bf16 %v6716_v48  ;;  %5692 = vst.msk [vmem:[#allocation2 + $0x28] sm:$0xff] %vm205_vm1, %v5531_v58  ;;  %5693 = vst.msk [vmem:[#allocation2 + $0x30] sm:$0xff] %vm205_vm1, %v5532_v10  ;;  %v12258_v54 = vadd.f32 %v15234_v57, %v15233_v5  ;;  %v12262_v16 = vadd.f32 %v15236_v40, %v15230_v38  ;;  %v15237_v44 = vld [vmem:[#allocation138_spill] sm:$0xff]  ;;  %v15243_v24 = vld [vmem:[#allocation7_spill] sm:$0xff] }
 0x31c   : > { %v4682_v18 = vmul.f32 %v4362_v8, %v11242_v55  ;;  %v4683_v37 = vmul.f32 %v4363_v56, %v11250_v0  ;;  %v12266_v63 = vadd.f32 %v15237_v44, %v15233_v5  ;;  %v15239_v55 = vld [vmem:[#allocation182_spill] sm:$0xff]  ;;  %v15244_v8 = vld [vmem:[#allocation5_spill] sm:$0xff]  ;;  %v4894_v38 = vld [vmem:[#allocation2 + $0x40] sm:$0xff] }
 0x31d   : > { %15232 = vst [vmem:[#allocation60_spill] sm:$0xff] %v12250_v30  ;;  %15235 = vst [vmem:[#allocation35_spill] sm:$0xff] %v12258_v54  ;;  %v15240_v48 = vmul.bf16 1065369472, %v15239_v55  ;;  %v15241_v27 = vld [vmem:[#allocation66_spill] sm:$0xff]  ;;  %v12278_v31 = vadd.f32 %v15244_v8, %v15243_v24  ;;  %v12284_v5 = vpop.eup %7377  ;;  %v15247_v57 = vld [vmem:[#allocation147_spill] sm:$0xff] }
 0x31e   : > { %15238 = vst [vmem:[#allocation173_spill] sm:$0xff] %v12266_v63  ;;  %v5220_v62 = vadd.f32 %v4683_v37, %v4682_v18  ;;  %v12274_v7 = vadd.f32 %v15242_v34, %v15241_v27  ;;  %v15245_v56 = vld [vmem:[#allocation198_spill] sm:$0xff]  ;;  %v5533_v18 = vadd.f32 %v11410_v45, %v4893_v4  ;;  %v15248_v37 = vld [vmem:[#allocation201_spill] sm:$0xff]  ;;  %v15249_v55 = vld [vmem:[#allocation139_spill] sm:$0xff]  ;;  %v14159_v34 = vmul.bf16 1065369472, %v12284_v5 }
 0x31f   : > { %v4440_v0 = vunpack.c.h.bf16 %v15240_v48  ;;  %v15246_v58 = vmul.bf16 1065369472, %v15245_v56  ;;  %v12290_v44 = vadd.f32 %v15248_v37, %v15241_v27  ;;  %v12294_v48 = vadd.f32 %v15249_v55, %v15243_v24  ;;  %v15251_v4 = vld [vmem:[#allocation191_spill] sm:$0xff] }
 0x320   : > { %5221 = vadd.xlane.f32.xlu1 %v5220_v62  ;;  %v3036_v8 = vpack.c.bf16 %v12274_v7, %v12247_v53  ;;  %v3116_v56 = vpack.c.bf16 %v12278_v31, %v12258_v54  ;;  %v7380_v45 = vpop.eup %7379  ;;  %5694 = vst.msk [vmem:[#allocation2 + $0x38] sm:$0xff] %vm205_vm1, %v5533_v18  ;;  %v5534_v62 = vadd.f32 %v11438_v29, %v4894_v38  ;;  %v4380_v55 = vunpack.c.h.bf16 %v14159_v34  ;;  %v12320_v38 = vpop.xlane.xlu1 %5137 }
 0x321   : > { %v4443_v10 = vunpack.c.l.bf16 %v15246_v58  ;;  %v4760_v40 = vmul.f32 %v4440_v0, %v15247_v57  ;;  %v15250_v0 = vld [vmem:[#allocation166_spill] sm:$0xff]  ;;  %v3037_v27 = vpack.c.bf16 %v12290_v44, %v12262_v16  ;;  %v3117_v24 = vpack.c.bf16 %v12294_v48, %v12266_v63  ;;  %v12309_v37 = vpop.eup %7381 }
 0x322   : > { %15252 = vst [vmem:[#allocation106_spill] sm:$0xff] %v12309_v37  ;;  %v3834_v6 = vadd.bf16 1065369472, %v7380_v45  ;;  %v14161_v18 = vmul.bf16 1065369472, %v12309_v37  ;;  %5695 = vst.msk [vmem:[#allocation2 + $0x40] sm:$0xff] %vm205_vm1, %v5534_v62  ;;  %v5229_v29 = vadd.f32 %v11698_v51, %v11667_v28 }
 0x323   : > { %v4763_v58 = vmul.f32 %v4443_v10, %v15250_v0  ;;  %v5337_v57 = vadd.f32 %v15251_v4, %v4760_v40  ;;  %v5854_v10 = vld [vmem:[#allocation2 + $0x20] sm:$0xff]  ;;  %v6637_v0 = vmul.bf16 3216621497, %v3036_v8  ;;  %v12314_v4 = vpop.eup %7383  ;;  %v6717_v54 = vmul.bf16 3216621497, %v3116_v56 }
 0x324   : > { %v6014_v1 = vmul.f32 0.00390625, %v5854_v10  ;;  %v12322_v45 = vpop.eup %7385  ;;  %v12325_v8 = vmul.f32 %v4380_v55, %v11704_v2  ;;  %7393 = vrcp.bf16 %v3834_v6  ;;  %v5856_v10 = vld [vmem:[#allocation2 + $0x30] sm:$0xff]  ;;  %v6638_v56 = vmul.bf16 3216621497, %v3037_v27 }
 0x325   : > { %v5340_v40 = vadd.f32 %v4763_v58, %v15253_v49  ;;  %5338 = vadd.xlane.f32.xlu0 %v5337_v57  ;;  %15254 = vst [vmem:[#allocation109_spill] sm:$0xff] %v12322_v45  ;;  %v14164_v49 = vmul.bf16 1065369472, %v12314_v4  ;;  %v5855_v58 = vld [vmem:[#allocation2 + $0x28] sm:$0xff]  ;;  %v12328_v57 = vpop.xlane.xlu0 %5140  ;;  %v7388_v62 = vpop.eup %7387  ;;  %v4540_v28 = vunpack.c.h.bf16 %v14161_v18  ;;  %v14163_v51 = vmul.bf16 1065369472, %v12322_v45 }
 0x326   : > { %6174 = vst.msk [vmem:[%s12201_s19 + $0x20] sm:$0xff] %vm205_vm1, %v6014_v1  ;;  %v6015_v2 = vmul.f32 0.00390625, %v5855_v58  ;;  %v6016_v55 = vmul.f32 0.00390625, %v5856_v10  ;;  %v7390_v34 = vpop.eup %7389  ;;  %7395 = vpow.bf16 %v6637_v0  ;;  %v6718_v27 = vmul.bf16 3216621497, %v3117_v24  ;;  %v4895_v1 = vld [vmem:[#allocation2 + $0x48] sm:$0xff] }
 0x327   : > { %5341 = vadd.xlane.f32.xlu1 %v5340_v40  ;;  %v4381_v6 = vunpack.c.h.bf16 %v14164_v49  ;;  %v3914_v40 = vadd.bf16 1065369472, %v7388_v62  ;;  %v7392_v63 = vpop.eup %7391  ;;  %v12338_v30 = vmul.f32 %v4540_v28, %v11715_v52  ;;  %v4541_v18 = vunpack.c.h.bf16 %v14163_v51  ;;  %v4896_v58 = vld [vmem:[#allocation2 + $0x50] sm:$0xff]  ;;  %v5857_v52 = vld [vmem:[#allocation2 + $0x38] sm:$0xff] }
 0x328   : > { %v3835_v37 = vadd.bf16 1065369472, %v7390_v34  ;;  %6175 = vst.msk [vmem:[%s12201_s19 + $0x28] sm:$0xff] %vm205_vm1, %v6015_v2  ;;  %6176 = vst.msk [vmem:[%s12201_s19 + $0x30] sm:$0xff] %vm205_vm1, %v6016_v55  ;;  %7397 = vpow.bf16 %v6717_v54  ;;  %v3915_v24 = vadd.bf16 1065369472, %v7392_v63  ;;  %v12356_v2 = vpop.xlane.xlu1 %5143 }
 0x329   : > { %15255 = vst [vmem:[#allocation123_spill] sm:$0xff] %v12338_v30  ;;  %5230 = vadd.xlane.f32.xlu0 %v5229_v29  ;;  %v12347_v10 = vmul.f32 %v4381_v6, %v11730_v14  ;;  %7399 = vrcp.bf16 %v3914_v40  ;;  %v15256_v0 = vmul.bf16 1065369472, %v11623_v35  ;;  %v12352_v34 = vmul.f32 %v4541_v18, %v12062_v9  ;;  %v5858_v14 = vld [vmem:[#allocation2 + $0x40] sm:$0xff]  ;;  %v15259_v6 = vld [vmem:[#allocation30_spill] sm:$0xff]  ;;  %v12361_v40 = vpop.xlane.xlu0 %5146  ;;  %v15261_v18 = vld [vmem:[#allocation69_spill] sm:$0xff] }
 0x32a   : > { %7401 = vrcp.bf16 %v3835_v37  ;;  %v6017_v28 = vmul.f32 0.00390625, %v5857_v52  ;;  %v15258_v54 = vmul.bf16 1065369472, %v11659_v61  ;;  %v5535_v63 = vadd.f32 %v15259_v6, %v4895_v1  ;;  %v15260_v37 = vld [vmem:[#allocation214_spill] sm:$0xff]  ;;  %v15262_v52 = vld [vmem:[#allocation195_spill] sm:$0xff] }
 0x32b   : > { %v4366_v62 = vunpack.c.l.bf16 %v15256_v0  ;;  %15257 = vst [vmem:[#allocation177_spill] sm:$0xff] %v12352_v34  ;;  %7403 = vrcp.bf16 %v3915_v24  ;;  %v5536_v35 = vadd.f32 %v11491_v15, %v4896_v58  ;;  %v6018_v9 = vmul.f32 0.00390625, %v5858_v14  ;;  %v4897_v24 = vld [vmem:[#allocation2 + $0x58] sm:$0xff]  ;;  %v15266_v58 = vld [vmem:[#allocation165_spill] sm:$0xff] }
 0x32c   : > { %v4367_v29 = vunpack.c.l.bf16 %v15258_v54  ;;  %6177 = vst.msk [vmem:[%s12201_s19 + $0x38] sm:$0xff] %vm205_vm1, %v6017_v28  ;;  %7405 = vpow.bf16 %v6638_v56  ;;  %v12368_v0 = vadd.f32 %v15262_v52, %v15261_v18  ;;  %5696 = vst.msk [vmem:[#allocation2 + $0x48] sm:$0xff] %vm205_vm1, %v5535_v63  ;;  %v15264_v15 = vld [vmem:[#allocation10_spill] sm:$0xff]  ;;  %v12378_v56 = vadd.f32 %v15266_v58, %v15261_v18  ;;  %v4898_v54 = vld [vmem:[#allocation2 + $0x60] sm:$0xff] }
 0x32d   : > { %v4686_v55 = vmul.f32 %v4366_v62, %v11340_v42  ;;  %7407 = vpow.bf16 %v6718_v27  ;;  %5697 = vst.msk [vmem:[#allocation2 + $0x50] sm:$0xff] %vm205_vm1, %v5536_v35  ;;  %v15263_v42 = vld [vmem:[#allocation38_spill] sm:$0xff]  ;;  %v15267_v62 = vld [vmem:[#allocation25_spill] sm:$0xff]  ;;  %6178 = vst.msk [vmem:[%s12201_s19 + $0x40] sm:$0xff] %vm205_vm1, %v6018_v9 }
 0x32e   : > { %v4687_v61 = vmul.f32 %v4367_v29, %v15260_v37  ;;  %v12374_v1 = vadd.f32 %v15264_v15, %v15263_v42  ;;  %v12382_v28 = vadd.f32 %v15267_v62, %v15263_v42  ;;  %v15269_v29 = vld [vmem:[#allocation194_spill] sm:$0xff]  ;;  %v15271_v63 = vld [vmem:[#allocation68_spill] sm:$0xff]  ;;  %v15272_v35 = vld [vmem:[#allocation207_spill] sm:$0xff]  ;;  %v5537_v42 = vadd.f32 %v11513_v20, %v4897_v24  ;;  %v12415_v24 = vpop.xlane.xlu1 %5149 }
 0x32f   : > { %v15270_v14 = vmul.bf16 1065369472, %v15269_v29  ;;  %v12390_v37 = vadd.f32 %v15272_v35, %v15271_v63  ;;  %v15273_v52 = vld [vmem:[#allocation37_spill] sm:$0xff]  ;;  %v15275_v18 = vld [vmem:[#allocation203_spill] sm:$0xff]  ;;  %v15277_v62 = vld [vmem:[#allocation208_spill] sm:$0xff]  ;;  %v12407_v29 = vpop.eup %7393  ;;  %v5538_v20 = vadd.f32 %v11543_v47, %v4898_v54 }
 0x330   : > { %15265 = vst [vmem:[#allocation59_spill] sm:$0xff] %v12374_v1  ;;  %15268 = vst [vmem:[#allocation250_spill] sm:$0xff] %v12382_v28  ;;  %v5226_v27 = vadd.f32 %v4687_v61, %v4686_v55  ;;  %v15274_v15 = vld [vmem:[#allocation41_spill] sm:$0xff]  ;;  %v15276_v58 = vmul.bf16 1065369472, %v15275_v18  ;;  %v12401_v9 = vadd.f32 %v15277_v62, %v15271_v63  ;;  %v15278_v55 = vld [vmem:[#allocation148_spill] sm:$0xff]  ;;  %v12424_v62 = vpop.xlane.xlu0 %5152 }
 0x331   : > { %v4444_v6 = vunpack.c.h.bf16 %v15270_v14  ;;  %v12394_v51 = vadd.f32 %v15274_v15, %v15273_v52  ;;  %v12405_v61 = vadd.f32 %v15278_v55, %v15273_v52  ;;  %v15279_v14 = vld [vmem:[#allocation62_spill] sm:$0xff]  ;;  %v3038_v15 = vpack.c.bf16 %v12390_v37, %v12368_v0  ;;  %5698 = vst.msk [vmem:[#allocation2 + $0x58] sm:$0xff] %vm205_vm1, %v5537_v42  ;;  %v7396_v55 = vpop.eup %7395  ;;  %5699 = vst.msk [vmem:[#allocation2 + $0x60] sm:$0xff] %vm205_vm1, %v5538_v20 }
 0x332   : > { %v4447_v49 = vunpack.c.l.bf16 %v15276_v58  ;;  %5227 = vadd.xlane.f32.xlu1 %v5226_v27  ;;  %v14172_v63 = vmul.bf16 1065369472, %v12407_v29  ;;  %v15280_v58 = vld [vmem:[#allocation78_spill] sm:$0xff]  ;;  %v3039_v27 = vpack.c.bf16 %v12401_v9, %v12378_v56  ;;  %v3836_v34 = vadd.bf16 1065369472, %v7396_v55 }
 0x333   : > { %v4764_v35 = vmul.f32 %v4444_v6, %v15279_v14  ;;  %v3118_v18 = vpack.c.bf16 %v12394_v51, %v12374_v1  ;;  %v3119_v6 = vpack.c.bf16 %v12405_v61, %v12382_v28  ;;  %v15281_v14 = vld [vmem:[#allocation209_spill] sm:$0xff]  ;;  %v6639_v47 = vmul.bf16 3216621497, %v3038_v15  ;;  %v15282_v30 = vld [vmem:[#allocation210_spill] sm:$0xff]  ;;  %v5859_v23 = vld [vmem:[#allocation2 + $0x48] sm:$0xff] }
 0x334   : > { %v4767_v52 = vmul.f32 %v4447_v49, %v15280_v58  ;;  %v5235_v49 = vadd.f32 %v12123_v19, %v12098_v13  ;;  %v7398_v58 = vpop.eup %7397  ;;  %v4384_v42 = vunpack.c.h.bf16 %v14172_v63  ;;  %v6640_v28 = vmul.bf16 3216621497, %v3039_v27 }
 0x335   : > { %v5343_v1 = vadd.f32 %v15281_v14, %v4764_v35  ;;  %v6719_v54 = vmul.bf16 3216621497, %v3118_v18  ;;  %v12433_v41 = vpop.eup %7399  ;;  %v3916_v22 = vadd.bf16 1065369472, %v7398_v58  ;;  %v5860_v35 = vld [vmem:[#allocation2 + $0x50] sm:$0xff]  ;;  %7409 = vpow.bf16 %v6639_v47  ;;  %v12448_v14 = vpop.xlane.xlu1 %5155 }
 0x336   : > { %v5346_v45 = vadd.f32 %v4767_v52, %v15282_v30  ;;  %15283 = vst [vmem:[#allocation65_spill] sm:$0xff] %v12433_v41  ;;  %v6720_v15 = vmul.bf16 3216621497, %v3119_v6  ;;  %v15284_v18 = vmul.bf16 1065369472, %v11732_v50  ;;  %v12437_v13 = vpop.eup %7401  ;;  %v12440_v19 = vmul.f32 %v4384_v42, %v12151_v17  ;;  %v12456_v58 = vpop.xlane.xlu0 %5158 }
 0x337   : > { %5344 = vadd.xlane.f32.xlu0 %v5343_v1  ;;  %v14170_v30 = vmul.bf16 1065369472, %v12433_v41  ;;  %7411 = vrcp.bf16 %v3836_v34  ;;  %v6019_v52 = vmul.f32 0.00390625, %v5859_v23  ;;  %v12443_v27 = vpop.eup %7403  ;;  %v14171_v1 = vmul.bf16 1065369472, %v12437_v13  ;;  %v15287_v23 = vld [vmem:[#allocation220_spill] sm:$0xff] }
 0x338   : > { %v4370_v20 = vunpack.c.l.bf16 %v15284_v18  ;;  %5347 = vadd.xlane.f32.xlu1 %v5346_v45  ;;  %15285 = vst [vmem:[#allocation11_spill] sm:$0xff] %v12443_v27  ;;  %7413 = vrcp.bf16 %v3916_v22  ;;  %v6020_v6 = vmul.f32 0.00390625, %v5860_v35  ;;  %v15286_v50 = vmul.bf16 1065369472, %v12095_v59  ;;  %v7406_v47 = vpop.eup %7405  ;;  %15288 = vst [vmem:[#allocation185_spill] sm:$0xff] %v12456_v58  ;;  %v5861_v35 = vld [vmem:[#allocation2 + $0x58] sm:$0xff] }
 0x339   : > { %v4544_v17 = vunpack.c.h.bf16 %v14170_v30  ;;  %v14173_v34 = vmul.bf16 1065369472, %v12443_v27  ;;  %6179 = vst.msk [vmem:[%s12201_s19 + $0x48] sm:$0xff] %vm205_vm1, %v6019_v52  ;;  %7415 = vpow.bf16 %v6719_v54  ;;  %v7408_v22 = vpop.eup %7407  ;;  %v4385_v59 = vunpack.c.h.bf16 %v14171_v1  ;;  %v15289_v18 = vld [vmem:[#allocation108_spill] sm:$0xff]  ;;  %v4900_v52 = vld [vmem:[#allocation2 + $0x70] sm:$0xff] }
 0x33a   : > { %v4371_v55 = vunpack.c.l.bf16 %v15286_v50  ;;  %v4690_v45 = vmul.f32 %v4370_v20, %v15287_v23  ;;  %v3837_v42 = vadd.bf16 1065369472, %v7406_v47  ;;  %6180 = vst.msk [vmem:[%s12201_s19 + $0x50] sm:$0xff] %vm205_vm1, %v6020_v6  ;;  %7417 = vpow.bf16 %v6640_v28  ;;  %v4899_v30 = vld [vmem:[#allocation2 + $0x68] sm:$0xff]  ;;  %v5862_v47 = vld [vmem:[#allocation2 + $0x60] sm:$0xff]  ;;  %v15317_v27 = vld [vmem:[#allocation45_spill] sm:$0xff] }
 0x33b   : > { %5236 = vadd.xlane.f32.xlu0 %v5235_v49  ;;  %v12464_v54 = vmul.f32 %v4544_v17, %v12155_v33  ;;  %v4545_v20 = vunpack.c.h.bf16 %v14173_v34  ;;  %v3917_v23 = vadd.bf16 1065369472, %v7408_v22  ;;  %v6021_v1 = vmul.f32 0.00390625, %v5861_v35  ;;  %v15292_v33 = vld [vmem:[#allocation46_spill] sm:$0xff]  ;;  %v15300_v35 = vld [vmem:[#allocation217_spill] sm:$0xff] }
 0x33c   : > { %v4691_v50 = vmul.f32 %v4371_v55, %v15289_v18  ;;  %v12469_v6 = vmul.f32 %v4385_v59, %v12169_v26  ;;  %7419 = vrcp.bf16 %v3837_v42  ;;  %v6022_v28 = vmul.f32 0.00390625, %v5862_v47  ;;  %v15293_v18 = vld [vmem:[#allocation58_spill] sm:$0xff]  ;;  %v15294_v26 = vld [vmem:[#allocation75_spill] sm:$0xff]  ;;  %v15298_v42 = vld [vmem:[#allocation156_spill] sm:$0xff] }
 0x33d   : > { %15290 = vst [vmem:[#allocation141_spill] sm:$0xff] %v12464_v54  ;;  %v12472_v55 = vmul.f32 %v4545_v20, %v12173_v12  ;;  %7421 = vrcp.bf16 %v3917_v23  ;;  %6181 = vst.msk [vmem:[%s12201_s19 + $0x58] sm:$0xff] %vm205_vm1, %v6021_v1  ;;  %v5539_v17 = vadd.f32 %v15292_v33, %v4899_v30  ;;  %v5540_v63 = vadd.f32 %v15293_v18, %v4900_v52  ;;  %v4901_v34 = vld [vmem:[#allocation2 + $0x78] sm:$0xff]  ;;  %v4902_v30 = vld [vmem:[#allocation2 + $0x80] sm:$0xff] }
 0x33e   : > { %v5232_v49 = vadd.f32 %v4691_v50, %v4690_v45  ;;  %7423 = vpow.bf16 %v6720_v15  ;;  %6182 = vst.msk [vmem:[%s12201_s19 + $0x60] sm:$0xff] %vm205_vm1, %v6022_v28  ;;  %v15295_v22 = vld [vmem:[#allocation142_spill] sm:$0xff]  ;;  %v15297_v45 = vld [vmem:[#allocation116_spill] sm:$0xff]  ;;  %v12490_v1 = vadd.f32 %v15300_v35, %v15294_v26  ;;  %v12492_v50 = vpop.xlane.xlu1 %5161  ;;  %v15303_v15 = vld [vmem:[#allocation193_spill] sm:$0xff] }
 0x33f   : > { %15291 = vst [vmem:[#allocation121_spill] sm:$0xff] %v12472_v55  ;;  %v12482_v59 = vadd.f32 %v15295_v22, %v15294_v26  ;;  %v12486_v12 = vadd.f32 %v15298_v42, %v15297_v45  ;;  %15302 = vst [vmem:[#allocation187_spill] sm:$0xff] %v12492_v50  ;;  %v12498_v52 = vadd.f32 %v15303_v15, %v15297_v45  ;;  %v15305_v20 = vld [vmem:[#allocation200_spill] sm:$0xff]  ;;  %v15307_v28 = vld [vmem:[#allocation74_spill] sm:$0xff]  ;;  %v12510_v42 = vpop.xlane.xlu0 %5164 }
 0x340   : > { %5233 = vadd.xlane.f32.xlu1 %v5232_v49  ;;  %15301 = vst [vmem:[#allocation186_spill] sm:$0xff] %v12490_v1  ;;  %5700 = vst.msk [vmem:[#allocation2 + $0x68] sm:$0xff] %vm205_vm1, %v5539_v17  ;;  %v15306_v23 = vmul.bf16 1065369472, %v15305_v20  ;;  %v15308_v49 = vld [vmem:[#allocation219_spill] sm:$0xff]  ;;  %v15309_v18 = vld [vmem:[#allocation134_spill] sm:$0xff] }
 0x341   : > { %15296 = vst [vmem:[#allocation133_spill] sm:$0xff] %v12482_v59  ;;  %15299 = vst [vmem:[#allocation150_spill] sm:$0xff] %v12486_v12  ;;  %v12504_v33 = vadd.f32 %v15308_v49, %v15307_v28  ;;  %v15310_v26 = vld [vmem:[#allocation206_spill] sm:$0xff]  ;;  %v15312_v17 = vld [vmem:[#allocation216_spill] sm:$0xff]  ;;  %v7410_v49 = vpop.eup %7409 }
 0x342   : > { %5701 = vst.msk [vmem:[#allocation2 + $0x70] sm:$0xff] %vm205_vm1, %v5540_v63  ;;  %15304 = vst [vmem:[#allocation67_spill] sm:$0xff] %v12498_v52  ;;  %v4448_v47 = vunpack.c.h.bf16 %v15306_v23  ;;  %v12508_v22 = vadd.f32 %v15310_v26, %v15309_v18  ;;  %v15313_v35 = vmul.bf16 1065369472, %v15312_v17  ;;  %v15314_v55 = vld [vmem:[#allocation32_spill] sm:$0xff]  ;;  %v15315_v45 = vld [vmem:[#allocation155_spill] sm:$0xff] }
 0x343   : > { %15311 = vst [vmem:[#allocation96_spill] sm:$0xff] %v12510_v42  ;;  %v5541_v54 = vadd.f32 %v15314_v55, %v4901_v34  ;;  %v12517_v15 = vadd.f32 %v15315_v45, %v15307_v28  ;;  %v15316_v20 = vld [vmem:[#allocation157_spill] sm:$0xff]  ;;  %v3040_v26 = vpack.c.bf16 %v12504_v33, %v12482_v59  ;;  %v12529_v34 = vpop.eup %7411  ;;  %v3838_v55 = vadd.bf16 1065369472, %v7410_v49  ;;  %v15318_v28 = vld [vmem:[#allocation114_spill] sm:$0xff]  ;;  %v12544_v59 = vpop.xlane.xlu1 %5167 }
 0x344   : > { %v4451_v63 = vunpack.c.l.bf16 %v15313_v35  ;;  %v12521_v23 = vadd.f32 %v15316_v20, %v15309_v18  ;;  %v4768_v41 = vmul.f32 %v4448_v47, %v15317_v27  ;;  %v3120_v17 = vpack.c.bf16 %v12508_v22, %v12486_v12  ;;  %v12537_v47 = vpop.eup %7413  ;;  %v15320_v12 = vld [vmem:[#allocation212_spill] sm:$0xff]  ;;  %15322 = vst [vmem:[#allocation84_spill] sm:$0xff] %v12544_v59 }
 0x345   : > { %v5542_v35 = vadd.f32 %v11651_v32, %v4902_v30  ;;  %5702 = vst.msk [vmem:[#allocation2 + $0x78] sm:$0xff] %vm205_vm1, %v5541_v54  ;;  %v3041_v18 = vpack.c.bf16 %v12517_v15, %v12490_v1  ;;  %15319 = vst [vmem:[#allocation190_spill] sm:$0xff] %v12537_v47  ;;  %v14183_v20 = vmul.bf16 1065369472, %v12529_v34  ;;  %v6641_v32 = vmul.bf16 3216621497, %v3040_v26  ;;  %v7416_v49 = vpop.eup %7415 }
 0x346   : > { %v4771_v45 = vmul.f32 %v4451_v63, %v15318_v28  ;;  %v3121_v27 = vpack.c.bf16 %v12521_v23, %v12498_v52  ;;  %v5349_v42 = vadd.f32 %v15320_v12, %v4768_v41  ;;  %v6721_v30 = vmul.bf16 3216621497, %v3120_v17  ;;  %v15321_v54 = vld [vmem:[#allocation221_spill] sm:$0xff]  ;;  %v7418_v52 = vpop.eup %7417  ;;  %v12548_v12 = vpop.xlane.xlu0 %5170 }
 0x347   : > { %5703 = vst.msk [vmem:[#allocation2 + $0x80] sm:$0xff] %vm205_vm1, %v5542_v35  ;;  %v14180_v63 = vmul.bf16 1065369472, %v12537_v47  ;;  %7425 = vrcp.bf16 %v3838_v55  ;;  %v6642_v1 = vmul.bf16 3216621497, %v3041_v18  ;;  %v4388_v50 = vunpack.c.h.bf16 %v14183_v20  ;;  %15323 = vst [vmem:[#allocation172_spill] sm:$0xff] %v12548_v12 }
 0x348   : > { %v5352_v28 = vadd.f32 %v4771_v45, %v15321_v54  ;;  %v3918_v58 = vadd.bf16 1065369472, %v7416_v49  ;;  %5350 = vadd.xlane.f32.xlu0 %v5349_v42  ;;  %7427 = vpow.bf16 %v6641_v32  ;;  %v6722_v41 = vmul.bf16 3216621497, %v3121_v27  ;;  %v5863_v35 = vld [vmem:[#allocation2 + $0x68] sm:$0xff]  ;;  %v12554_v49 = vpop.eup %7419 }
 0x349   : > { %v4548_v26 = vunpack.c.h.bf16 %v14180_v63  ;;  %v3839_v17 = vadd.bf16 1065369472, %v7418_v52  ;;  %v5864_v55 = vld [vmem:[#allocation2 + $0x70] sm:$0xff]  ;;  %7429 = vpow.bf16 %v6721_v30  ;;  %v5241_v45 = vadd.f32 %v12222_v39, %v12206_v11  ;;  %v4903_v18 = vld [vmem:[#allocation2 + $0x88] sm:$0xff]  ;;  %v12559_v54 = vpop.eup %7421 }
 0x34a   : > { %5353 = vadd.xlane.f32.xlu1 %v5352_v28  ;;  %v12557_v42 = vmul.f32 %v4388_v50, %v12274_v7  ;;  %7431 = vrcp.bf16 %v3918_v58  ;;  %v6023_v27 = vmul.f32 0.00390625, %v5863_v35  ;;  %v6024_v32 = vmul.f32 0.00390625, %v5864_v55  ;;  %15324 = vst [vmem:[#allocation138_spill] sm:$0xff] %v12559_v54  ;;  %v7424_v39 = vpop.eup %7423 }
 0x34b   : > { %v12562_v52 = vmul.f32 %v4548_v26, %v12278_v31  ;;  %v14181_v30 = vmul.bf16 1065369472, %v12554_v49  ;;  %7433 = vrcp.bf16 %v3839_v17  ;;  %v15326_v28 = vmul.bf16 1065369472, %v12160_v36  ;;  %v4904_v26 = vld [vmem:[#allocation2 + $0x90] sm:$0xff] }
 0x34c   : > { %v14182_v63 = vmul.bf16 1065369472, %v12559_v54  ;;  %6183 = vst.msk [vmem:[%s12201_s19 + $0x68] sm:$0xff] %vm205_vm1, %v6023_v27  ;;  %6184 = vst.msk [vmem:[%s12201_s19 + $0x70] sm:$0xff] %vm205_vm1, %v6024_v32  ;;  %v5865_v7 = vld [vmem:[#allocation2 + $0x78] sm:$0xff]  ;;  %7435 = vpow.bf16 %v6642_v1  ;;  %5242 = vadd.xlane.f32.xlu0 %v5241_v45  ;;  %v5543_v50 = vadd.f32 %v11657_v46, %v4903_v18  ;;  %v12577_v27 = vpop.xlane.xlu1 %5287  ;;  %v12584_v18 = vpop.xlane.xlu0 %5176  ;;  %v15355_v54 = vld [vmem:[#allocation117_spill] sm:$0xff] }
 0x34d   : > { %15325 = vst [vmem:[#allocation182_spill] sm:$0xff] %v12562_v52  ;;  %v4374_v11 = vunpack.c.l.bf16 %v15326_v28  ;;  %v15327_v58 = vmul.bf16 1065369472, %v12193_v43  ;;  %v4389_v36 = vunpack.c.h.bf16 %v14181_v30  ;;  %v3919_v17 = vadd.bf16 1065369472, %v7424_v39  ;;  %15328 = vst [vmem:[#allocation66_spill] sm:$0xff] %v12577_v27 }
 0x34e   : > { %v6025_v35 = vmul.f32 0.00390625, %v5865_v7  ;;  %7437 = vpow.bf16 %v6722_v41  ;;  %v5866_v55 = vld [vmem:[#allocation2 + $0x80] sm:$0xff]  ;;  %v4549_v1 = vunpack.c.h.bf16 %v14182_v63  ;;  %v15329_v43 = vld [vmem:[#allocation240_spill] sm:$0xff]  ;;  %v15330_v28 = vld [vmem:[#allocation226_spill] sm:$0xff]  ;;  %5704 = vst.msk [vmem:[#allocation2 + $0x88] sm:$0xff] %vm205_vm1, %v5543_v50 }
 0x34f   : > { %v4375_v31 = vunpack.c.l.bf16 %v15327_v58  ;;  %v6026_v45 = vmul.f32 0.00390625, %v5866_v55  ;;  %v4694_v32 = vmul.f32 %v4374_v11, %v15329_v43  ;;  %15331 = vst [vmem:[#allocation143_spill] sm:$0xff] %v12584_v18  ;;  %v12587_v39 = vmul.f32 %v4389_v36, %v12290_v44  ;;  %v15332_v41 = vld [vmem:[#allocation169_spill] sm:$0xff]  ;;  %v15334_v30 = vld [vmem:[#allocation158_spill] sm:$0xff]  ;;  %v15338_v43 = vld [vmem:[#allocation47_spill] sm:$0xff] }
 0x350   : > { %7439 = vrcp.bf16 %v3919_v17  ;;  %6185 = vst.msk [vmem:[%s12201_s19 + $0x78] sm:$0xff] %vm205_vm1, %v6025_v35  ;;  %v5544_v7 = vadd.f32 %v15332_v41, %v4904_v26  ;;  %v15333_v58 = vld [vmem:[#allocation77_spill] sm:$0xff]  ;;  %v4905_v55 = vld [vmem:[#allocation2 + $0x98] sm:$0xff]  ;;  %v12597_v11 = vmul.f32 %v4549_v1, %v12294_v48  ;;  %v15344_v35 = vld [vmem:[#allocation215_spill] sm:$0xff] }
 0x351   : > { %v4695_v46 = vmul.f32 %v4375_v31, %v15330_v28  ;;  %v12594_v63 = vadd.f32 %v15334_v30, %v15333_v58  ;;  %6186 = vst.msk [vmem:[%s12201_s19 + $0x80] sm:$0xff] %vm205_vm1, %v6026_v45  ;;  %v15337_v50 = vld [vmem:[#allocation125_spill] sm:$0xff]  ;;  %v15342_v30 = vld [vmem:[#allocation231_spill] sm:$0xff]  ;;  %v15345_v48 = vmul.bf16 1065369472, %v15344_v35  ;;  %v15346_v28 = vld [vmem:[#allocation76_spill] sm:$0xff] }
 0x352   : > { %15336 = vst [vmem:[#allocation5_spill] sm:$0xff] %v12597_v11  ;;  %v12603_v44 = vadd.f32 %v15338_v43, %v15337_v50  ;;  %v15340_v36 = vld [vmem:[#allocation29_spill] sm:$0xff]  ;;  %5705 = vst.msk [vmem:[#allocation2 + $0x90] sm:$0xff] %vm205_vm1, %v5544_v7  ;;  %v12612_v26 = vadd.f32 %v15342_v30, %v15337_v50  ;;  %v15347_v45 = vld [vmem:[#allocation224_spill] sm:$0xff]  ;;  %v12624_v20 = vpop.eup %7425 }
 0x353   : > { %15335 = vst [vmem:[#allocation7_spill] sm:$0xff] %v12594_v63  ;;  %v5238_v31 = vadd.f32 %v4695_v46, %v4694_v32  ;;  %v12607_v17 = vadd.f32 %v15340_v36, %v15333_v58  ;;  %v4452_v1 = vunpack.c.h.bf16 %v15345_v48  ;;  %v12618_v32 = vadd.f32 %v15347_v45, %v15346_v28  ;;  %v15348_v46 = vld [vmem:[#allocation64_spill] sm:$0xff]  ;;  %v15349_v41 = vld [vmem:[#allocation199_spill] sm:$0xff]  ;;  %v15352_v11 = vld [vmem:[#allocation34_spill] sm:$0xff]  ;;  %v7428_v52 = vpop.eup %7427 }
 0x354   : > { %15339 = vst [vmem:[#allocation198_spill] sm:$0xff] %v12603_v44  ;;  %15343 = vst [vmem:[#allocation201_spill] sm:$0xff] %v12612_v26  ;;  %v12622_v43 = vadd.f32 %v15349_v41, %v15348_v46  ;;  %v15350_v58 = vld [vmem:[#allocation15_spill] sm:$0xff]  ;;  %v5545_v50 = vadd.f32 %v15352_v11, %v4905_v55  ;;  %v15353_v30 = vld [vmem:[#allocation72_spill] sm:$0xff]  ;;  %v14190_v41 = vmul.bf16 1065369472, %v12624_v20  ;;  %v12643_v55 = vpop.xlane.xlu1 %5173  ;;  %v7430_v11 = vpop.eup %7429 }
 0x355   : > { %15341 = vst [vmem:[#allocation147_spill] sm:$0xff] %v12607_v17  ;;  %5239 = vadd.xlane.f32.xlu1 %v5238_v31  ;;  %v15351_v7 = vmul.bf16 1065369472, %v15350_v58  ;;  %v12631_v35 = vadd.f32 %v15353_v30, %v15346_v28  ;;  %v15354_v48 = vld [vmem:[#allocation70_spill] sm:$0xff]  ;;  %v4772_v47 = vmul.f32 %v4452_v1, %v15355_v54  ;;  %v3042_v31 = vpack.c.bf16 %v12618_v32, %v12594_v63  ;;  %v12651_v1 = vpop.xlane.xlu0 %5290  ;;  %v5867_v18 = vld [vmem:[#allocation2 + $0x88] sm:$0xff] }
 0x356   : > { %v12635_v45 = vadd.f32 %v15354_v48, %v15348_v46  ;;  %v3122_v58 = vpack.c.bf16 %v12622_v43, %v12603_v44  ;;  %15356 = vst [vmem:[#allocation139_spill] sm:$0xff] %v12643_v55  ;;  %v3840_v28 = vadd.bf16 1065369472, %v7428_v52  ;;  %5706 = vst.msk [vmem:[#allocation2 + $0x98] sm:$0xff] %vm205_vm1, %v5545_v50  ;;  %v12653_v48 = vpop.eup %7431  ;;  %v4392_v44 = vunpack.c.h.bf16 %v14190_v41  ;;  %v15360_v52 = vld [vmem:[#allocation223_spill] sm:$0xff] }
 0x357   : > { %v4455_v36 = vunpack.c.l.bf16 %v15351_v7  ;;  %v15357_v7 = vld [vmem:[#allocation122_spill] sm:$0xff]  ;;  %v3043_v46 = vpack.c.bf16 %v12631_v35, %v12607_v17  ;;  %15358 = vst [vmem:[#allocation166_spill] sm:$0xff] %v12651_v1  ;;  %15359 = vst [vmem:[#allocation191_spill] sm:$0xff] %v12653_v48  ;;  %v3920_v55 = vadd.bf16 1065369472, %v7430_v11  ;;  %v5355_v63 = vadd.f32 %v15360_v52, %v4772_v47  ;;  %v12658_v50 = vpop.eup %7433  ;;  %v15361_v11 = vld [vmem:[#allocation225_spill] sm:$0xff] }
 0x358   : > { %v3123_v54 = vpack.c.bf16 %v12635_v45, %v12612_v26  ;;  %7441 = vrcp.bf16 %v3840_v28  ;;  %v6027_v17 = vmul.f32 0.00390625, %v5867_v18  ;;  %v6723_v26 = vmul.bf16 3216621497, %v3122_v58  ;;  %v7436_v27 = vpop.eup %7435  ;;  %v4906_v47 = vld [vmem:[#allocation2 + $0xa0] sm:$0xff] }
 0x359   : > { %v4775_v30 = vmul.f32 %v4455_v36, %v15357_v7  ;;  %v6643_v36 = vmul.bf16 3216621497, %v3042_v31  ;;  %v14191_v7 = vmul.bf16 1065369472, %v12653_v48  ;;  %v12662_v1 = vmul.f32 %v4392_v44, %v12390_v37  ;;  %5356 = vadd.xlane.f32.xlu0 %v5355_v63  ;;  %v7438_v31 = vpop.eup %7437  ;;  %v5868_v18 = vld [vmem:[#allocation2 + $0x90] sm:$0xff]  ;;  %v12672_v63 = vpop.xlane.xlu1 %5293  ;;  %v15401_v48 = vld [vmem:[#allocation228_spill] sm:$0xff] }
 0x35a   : > { %v14192_v12 = vmul.bf16 1065369472, %v12658_v50  ;;  %7443 = vrcp.bf16 %v3920_v55  ;;  %v3841_v59 = vadd.bf16 1065369472, %v7436_v27  ;;  %6187 = vst.msk [vmem:[%s12201_s19 + $0x88] sm:$0xff] %vm205_vm1, %v6027_v17  ;;  %v6028_v55 = vmul.f32 0.00390625, %v5868_v18 }
 0x35b   : > { %v5358_v41 = vadd.f32 %v4775_v30, %v15361_v11  ;;  %v4552_v52 = vunpack.c.h.bf16 %v14191_v7  ;;  %7445 = vpow.bf16 %v6643_v36  ;;  %v6644_v58 = vmul.bf16 3216621497, %v3043_v46  ;;  %15362 = vst [vmem:[#allocation204_spill] sm:$0xff] %v12672_v63  ;;  %v12674_v28 = vpop.eup %7439  ;;  %v15365_v17 = vld [vmem:[#allocation245_spill] sm:$0xff]  ;;  %v4907_v46 = vld [vmem:[#allocation2 + $0xa8] sm:$0xff]  ;;  %v12680_v7 = vpop.xlane.xlu0 %5182 }
 0x35c   : > { %v4393_v37 = vunpack.c.h.bf16 %v14192_v12  ;;  %v3921_v44 = vadd.bf16 1065369472, %v7438_v31  ;;  %7447 = vpow.bf16 %v6723_v26  ;;  %15363 = vst [vmem:[#allocation30_spill] sm:$0xff] %v12674_v28  ;;  %v6724_v27 = vmul.bf16 3216621497, %v3123_v54  ;;  %v4908_v11 = vld [vmem:[#allocation2 + $0xb0] sm:$0xff] }
 0x35d   : > { %5359 = vadd.xlane.f32.xlu1 %v5358_v41  ;;  %v12677_v30 = vmul.f32 %v4552_v52, %v12394_v51  ;;  %7449 = vrcp.bf16 %v3841_v59  ;;  %v5546_v36 = vadd.f32 %v15365_v17, %v4906_v47  ;;  %15366 = vst [vmem:[#allocation69_spill] sm:$0xff] %v12680_v7  ;;  %v14193_v26 = vmul.bf16 1065369472, %v12674_v28  ;;  %6188 = vst.msk [vmem:[%s12201_s19 + $0x90] sm:$0xff] %vm205_vm1, %v6028_v55  ;;  %v5869_v41 = vld [vmem:[#allocation2 + $0x98] sm:$0xff]  ;;  %v15370_v55 = vld [vmem:[#allocation56_spill] sm:$0xff] }
 0x35e   : > { %v12683_v31 = vmul.f32 %v4393_v37, %v12401_v9  ;;  %7451 = vrcp.bf16 %v3921_v44  ;;  %v5247_v51 = vadd.f32 %v12347_v10, %v12325_v8  ;;  %v6029_v59 = vmul.f32 0.00390625, %v5869_v41  ;;  %v15369_v37 = vld [vmem:[#allocation33_spill] sm:$0xff]  ;;  %v15371_v8 = vld [vmem:[#allocation92_spill] sm:$0xff] }
 0x35f   : > { %15364 = vst [vmem:[#allocation214_spill] sm:$0xff] %v12677_v30  ;;  %7453 = vpow.bf16 %v6644_v58  ;;  %5707 = vst.msk [vmem:[#allocation2 + $0xa0] sm:$0xff] %vm205_vm1, %v5546_v36  ;;  %v15367_v54 = vmul.bf16 1065369472, %v12284_v5  ;;  %v15368_v9 = vmul.bf16 1065369472, %v12314_v4  ;;  %v4553_v18 = vunpack.c.h.bf16 %v14193_v26 }
 0x360   : > { %7455 = vpow.bf16 %v6724_v27  ;;  %5248 = vadd.xlane.f32.xlu0 %v5247_v51  ;;  %v5547_v44 = vadd.f32 %v15369_v37, %v4907_v46  ;;  %v5548_v17 = vadd.f32 %v15370_v55, %v4908_v11  ;;  %6189 = vst.msk [vmem:[%s12201_s19 + $0x98] sm:$0xff] %vm205_vm1, %v6029_v59  ;;  %v15372_v58 = vld [vmem:[#allocation80_spill] sm:$0xff]  ;;  %v15373_v5 = vld [vmem:[#allocation83_spill] sm:$0xff]  ;;  %v15374_v41 = vld [vmem:[#allocation17_spill] sm:$0xff] }
 0x361   : > { %v4378_v47 = vunpack.c.l.bf16 %v15367_v54  ;;  %v4379_v52 = vunpack.c.l.bf16 %v15368_v9  ;;  %v12705_v54 = vadd.f32 %v15374_v41, %v15373_v5  ;;  %v15376_v4 = vld [vmem:[#allocation39_spill] sm:$0xff]  ;;  %v4909_v27 = vld [vmem:[#allocation2 + $0xb8] sm:$0xff]  ;;  %v12712_v51 = vmul.f32 %v4553_v18, %v12405_v61  ;;  %v15382_v59 = vld [vmem:[#allocation9_spill] sm:$0xff] }
 0x362   : > { %v15377_v9 = vld [vmem:[#allocation167_spill] sm:$0xff]  ;;  %5708 = vst.msk [vmem:[#allocation2 + $0xa8] sm:$0xff] %vm205_vm1, %v5547_v44  ;;  %5709 = vst.msk [vmem:[#allocation2 + $0xb0] sm:$0xff] %vm205_vm1, %v5548_v17  ;;  %v15387_v61 = vld [vmem:[#allocation82_spill] sm:$0xff] }
 0x363   : > { %v4698_v10 = vmul.f32 %v4378_v47, %v15371_v8  ;;  %v4699_v36 = vmul.f32 %v4379_v52, %v15372_v58  ;;  %15375 = vst [vmem:[#allocation195_spill] sm:$0xff] %v12705_v54  ;;  %v12709_v12 = vadd.f32 %v15377_v9, %v15376_v4  ;;  %15379 = vst [vmem:[#allocation10_spill] sm:$0xff] %v12712_v51  ;;  %v15380_v46 = vld [vmem:[#allocation31_spill] sm:$0xff]  ;;  %v15384_v52 = vld [vmem:[#allocation222_spill] sm:$0xff]  ;;  %v12726_v8 = vpop.xlane.xlu1 %5179  ;;  %v12738_v51 = vpop.xlane.xlu0 %5296 }
 0x364   : > { %v12718_v11 = vadd.f32 %v15380_v46, %v15373_v5  ;;  %v12722_v47 = vadd.f32 %v15382_v59, %v15376_v4  ;;  %v15385_v37 = vmul.bf16 1065369472, %v15384_v52  ;;  %15386 = vst [vmem:[#allocation194_spill] sm:$0xff] %v12726_v8  ;;  %v15388_v18 = vld [vmem:[#allocation242_spill] sm:$0xff]  ;;  %v15389_v44 = vld [vmem:[#allocation205_spill] sm:$0xff]  ;;  %v15391_v5 = vld [vmem:[#allocation112_spill] sm:$0xff]  ;;  %v12740_v4 = vpop.eup %7441 }
 0x365   : > { %15378 = vst [vmem:[#allocation38_spill] sm:$0xff] %v12709_v12  ;;  %v5244_v58 = vadd.f32 %v4699_v36, %v4698_v10  ;;  %v12730_v41 = vadd.f32 %v15388_v18, %v15387_v61  ;;  %v15390_v17 = vld [vmem:[#allocation113_spill] sm:$0xff]  ;;  %v15392_v46 = vmul.bf16 1065369472, %v15391_v5  ;;  %15393 = vst [vmem:[#allocation68_spill] sm:$0xff] %v12738_v51  ;;  %v15394_v59 = vld [vmem:[#allocation178_spill] sm:$0xff] }
 0x366   : > { %15381 = vst [vmem:[#allocation165_spill] sm:$0xff] %v12718_v11  ;;  %15383 = vst [vmem:[#allocation25_spill] sm:$0xff] %v12722_v47  ;;  %v4456_v55 = vunpack.c.h.bf16 %v15385_v37  ;;  %v12734_v9 = vadd.f32 %v15390_v17, %v15389_v44  ;;  %v15395_v37 = vld [vmem:[#allocation249_spill] sm:$0xff]  ;;  %v15397_v18 = vld [vmem:[#allocation244_spill] sm:$0xff]  ;;  %v12752_v17 = vpop.eup %7443  ;;  %v15402_v51 = vmul.bf16 1065369472, %v12740_v4 }
 0x367   : > { %v4459_v26 = vunpack.c.l.bf16 %v15392_v46  ;;  %v5549_v30 = vadd.f32 %v15395_v37, %v4909_v27  ;;  %v15396_v10 = vld [vmem:[#allocation89_spill] sm:$0xff]  ;;  %v12750_v28 = vadd.f32 %v15397_v18, %v15389_v44  ;;  %15399 = vst [vmem:[#allocation37_spill] sm:$0xff] %v12752_v17  ;;  %5245 = vadd.xlane.f32.xlu1 %v5244_v58  ;;  %v3044_v46 = vpack.c.bf16 %v12730_v41, %v12705_v54  ;;  %v15400_v27 = vld [vmem:[#allocation192_spill] sm:$0xff]  ;;  %v7446_v37 = vpop.eup %7445  ;;  %v12774_v63 = vpop.xlane.xlu1 %5299 }
 0x368   : > { %v4776_v52 = vmul.f32 %v4456_v55, %v15394_v59  ;;  %v12746_v36 = vadd.f32 %v15396_v10, %v15387_v61  ;;  %v3124_v55 = vpack.c.bf16 %v12734_v9, %v12709_v12  ;;  %v5870_v10 = vld [vmem:[#allocation2 + $0xa0] sm:$0xff]  ;;  %v7448_v5 = vpop.eup %7447  ;;  %v4396_v12 = vunpack.c.h.bf16 %v15402_v51 }
 0x369   : > { %15398 = vst [vmem:[#allocation207_spill] sm:$0xff] %v12750_v28  ;;  %v4779_v59 = vmul.f32 %v4459_v26, %v15400_v27  ;;  %5710 = vst.msk [vmem:[#allocation2 + $0xb8] sm:$0xff] %vm205_vm1, %v5549_v30  ;;  %v3125_v58 = vpack.c.bf16 %v12750_v28, %v12722_v47  ;;  %v3842_v26 = vadd.bf16 1065369472, %v7446_v37  ;;  %v6030_v27 = vmul.f32 0.00390625, %v5870_v10  ;;  %v12769_v61 = vpop.eup %7449  ;;  %v5872_v37 = vld [vmem:[#allocation2 + $0xb0] sm:$0xff] }
 0x36a   : > { %v5361_v44 = vadd.f32 %v15401_v48, %v4776_v52  ;;  %v3045_v18 = vpack.c.bf16 %v12746_v36, %v12718_v11  ;;  %v6645_v8 = vmul.bf16 3216621497, %v3044_v46  ;;  %v15403_v48 = vmul.bf16 1065369472, %v12752_v17  ;;  %v15404_v11 = vld [vmem:[#allocation238_spill] sm:$0xff]  ;;  %v12776_v47 = vpop.eup %7451  ;;  %v5871_v46 = vld [vmem:[#allocation2 + $0xa8] sm:$0xff] }
 0x36b   : > { %v3922_v30 = vadd.bf16 1065369472, %v7448_v5  ;;  %v6725_v7 = vmul.bf16 3216621497, %v3124_v55  ;;  %v5364_v54 = vadd.f32 %v4779_v59, %v15404_v11  ;;  %v12779_v28 = vmul.f32 %v4396_v12, %v12504_v33  ;;  %6190 = vst.msk [vmem:[%s12201_s19 + $0xa0] sm:$0xff] %vm205_vm1, %v6030_v27  ;;  %v12784_v5 = vpop.xlane.xlu0 %5188  ;;  %v7454_v55 = vpop.eup %7453  ;;  %v4910_v12 = vld [vmem:[#allocation2 + $0xc0] sm:$0xff] }
 0x36c   : > { %v4556_v52 = vunpack.c.h.bf16 %v15403_v48  ;;  %5362 = vadd.xlane.f32.xlu0 %v5361_v44  ;;  %v14203_v51 = vmul.bf16 1065369472, %v12769_v61  ;;  %7457 = vrcp.bf16 %v3842_v26  ;;  %v6646_v10 = vmul.bf16 3216621497, %v3045_v18  ;;  %v7456_v44 = vpop.eup %7455 }
 0x36d   : > { %v14202_v59 = vmul.bf16 1065369472, %v12776_v47  ;;  %7459 = vrcp.bf16 %v3922_v30  ;;  %v6031_v33 = vmul.f32 0.00390625, %v5871_v46  ;;  %5365 = vadd.xlane.f32.xlu1 %v5364_v54  ;;  %v3843_v27 = vadd.bf16 1065369472, %v7454_v55  ;;  %v4912_v30 = vld [vmem:[#allocation2 + $0xd0] sm:$0xff] }
 0x36e   : > { %v12787_v11 = vmul.f32 %v4556_v52, %v12508_v22  ;;  %v4397_v26 = vunpack.c.h.bf16 %v14203_v51  ;;  %v6032_v18 = vmul.f32 0.00390625, %v5872_v37  ;;  %7461 = vpow.bf16 %v6645_v8  ;;  %v4911_v52 = vld [vmem:[#allocation2 + $0xc8] sm:$0xff]  ;;  %v15405_v55 = vld [vmem:[#allocation179_spill] sm:$0xff] }
 0x36f   : > { %v4557_v48 = vunpack.c.h.bf16 %v14202_v59  ;;  %v3923_v17 = vadd.bf16 1065369472, %v7456_v44  ;;  %6191 = vst.msk [vmem:[%s12201_s19 + $0xa8] sm:$0xff] %vm205_vm1, %v6031_v33  ;;  %7463 = vpow.bf16 %v6725_v7  ;;  %v6726_v22 = vmul.bf16 3216621497, %v3125_v58  ;;  %v4915_v59 = vld [vmem:[#allocation2 + $0xe8] sm:$0xff] }
 0x370   : > { %v12797_v54 = vmul.f32 %v4397_v26, %v12517_v15  ;;  %7465 = vrcp.bf16 %v3843_v27  ;;  %6192 = vst.msk [vmem:[%s12201_s19 + $0xb0] sm:$0xff] %vm205_vm1, %v6032_v18  ;;  %v5873_v46 = vld [vmem:[#allocation2 + $0xb8] sm:$0xff]  ;;  %v5550_v37 = vadd.f32 %v15405_v55, %v4910_v12  ;;  %v5253_v8 = vadd.f32 %v12469_v6, %v12440_v19  ;;  %v4914_v26 = vld [vmem:[#allocation2 + $0xe0] sm:$0xff]  ;;  %v12809_v27 = vpop.xlane.xlu1 %5185 }
 0x371   : > { %v12805_v44 = vmul.f32 %v4557_v48, %v12521_v23  ;;  %7467 = vrcp.bf16 %v3923_v17  ;;  %v6033_v7 = vmul.f32 0.00390625, %v5873_v46  ;;  %v15406_v58 = vmul.bf16 1065369472, %v12407_v29  ;;  %v4913_v15 = vld [vmem:[#allocation2 + $0xd8] sm:$0xff]  ;;  %v12816_v17 = vpop.xlane.xlu0 %5302  ;;  %v15409_v29 = vld [vmem:[#allocation36_spill] sm:$0xff]  ;;  %v15410_v46 = vld [vmem:[#allocation233_spill] sm:$0xff] }
 0x372   : > { %7469 = vpow.bf16 %v6646_v10  ;;  %5711 = vst.msk [vmem:[#allocation2 + $0xc0] sm:$0xff] %vm205_vm1, %v5550_v37  ;;  %5254 = vadd.xlane.f32.xlu0 %v5253_v8  ;;  %v15407_v12 = vmul.bf16 1065369472, %v12437_v13  ;;  %v15408_v19 = vld [vmem:[#allocation126_spill] sm:$0xff]  ;;  %v5552_v23 = vadd.f32 %v12219_v21, %v4912_v30  ;;  %v15411_v55 = vmul.bf16 1065369472, %v15410_v46 }
 0x373   : > { %v4382_v33 = vunpack.c.l.bf16 %v15406_v58  ;;  %v5551_v6 = vadd.f32 %v15408_v19, %v4911_v52  ;;  %6193 = vst.msk [vmem:[%s12201_s19 + $0xb8] sm:$0xff] %vm205_vm1, %v6033_v7  ;;  %7471 = vpow.bf16 %v6726_v22  ;;  %v15412_v58 = vld [vmem:[#allocation237_spill] sm:$0xff]  ;;  %v5553_v21 = vadd.f32 %v12227_v60, %v4913_v15 }
 0x374   : > { %v4383_v18 = vunpack.c.l.bf16 %v15407_v12  ;;  %v4460_v10 = vunpack.c.h.bf16 %v15411_v55  ;;  %v15413_v37 = vmul.bf16 1065369472, %v15412_v58  ;;  %v4916_v13 = vld [vmem:[#allocation2 + $0xf0] sm:$0xff]  ;;  %v15414_v12 = vld [vmem:[#allocation124_spill] sm:$0xff]  ;;  %5713 = vst.msk [vmem:[#allocation2 + $0xd0] sm:$0xff] %vm205_vm1, %v5552_v23  ;;  %v5554_v22 = vadd.f32 %v12270_v25, %v4914_v26  ;;  %v4918_v26 = vld [vmem:[#allocation2 + $0x100] sm:$0xff] }
 0x375   : > { %v4702_v48 = vmul.f32 %v4382_v33, %v15409_v29  ;;  %5712 = vst.msk [vmem:[#allocation2 + $0xc8] sm:$0xff] %vm205_vm1, %v5551_v6  ;;  %v5259_v52 = vadd.f32 %v12587_v39, %v12557_v42  ;;  %v15415_v30 = vld [vmem:[#allocation189_spill] sm:$0xff]  ;;  %v15417_v29 = vmul.bf16 1065369472, %v12529_v34  ;;  %v4917_v6 = vld [vmem:[#allocation2 + $0xf8] sm:$0xff]  ;;  %5714 = vst.msk [vmem:[#allocation2 + $0xd8] sm:$0xff] %vm205_vm1, %v5553_v21  ;;  %v5555_v60 = vadd.f32 %v12282_v3, %v4915_v59 }
 0x376   : > { %v4463_v8 = vunpack.c.l.bf16 %v15413_v37  ;;  %v4703_v51 = vmul.f32 %v4383_v18, %v15414_v12  ;;  %v4780_v7 = vmul.f32 %v4460_v10, %v15415_v30  ;;  %v15416_v33 = vld [vmem:[#allocation197_spill] sm:$0xff]  ;;  %v15418_v18 = vmul.bf16 1065369472, %v12554_v49  ;;  %5715 = vst.msk [vmem:[#allocation2 + $0xe0] sm:$0xff] %vm205_vm1, %v5554_v22  ;;  %v15419_v42 = vld [vmem:[#allocation236_spill] sm:$0xff]  ;;  %v15422_v49 = vld [vmem:[#allocation87_spill] sm:$0xff]  ;;  %v12861_v30 = vpop.xlane.xlu0 %5194 }
 0x377   : > { %v4386_v46 = vunpack.c.l.bf16 %v15417_v29  ;;  %v5556_v25 = vadd.f32 %v12320_v38, %v4916_v13  ;;  %v15420_v39 = vmul.bf16 1065369472, %v15419_v42  ;;  %v12844_v23 = vpop.eup %7457  ;;  %v15421_v34 = vld [vmem:[#allocation241_spill] sm:$0xff]  ;;  %5716 = vst.msk [vmem:[#allocation2 + $0xe8] sm:$0xff] %vm205_vm1, %v5555_v60  ;;  %v15423_v38 = vld [vmem:[#allocation196_spill] sm:$0xff]  ;;  %v15424_v13 = vld [vmem:[#allocation98_spill] sm:$0xff]  ;;  %v5558_v29 = vadd.f32 %v12356_v2, %v4918_v26 }
 0x378   : > { %v4783_v19 = vmul.f32 %v4463_v8, %v15416_v33  ;;  %v4387_v55 = vunpack.c.l.bf16 %v15418_v18  ;;  %v5250_v58 = vadd.f32 %v4703_v51, %v4702_v48  ;;  %v5367_v10 = vadd.f32 %v15421_v34, %v4780_v7  ;;  %v12850_v8 = vpop.xlane.xlu1 %5305  ;;  %v12852_v12 = vpop.eup %7459 }
 0x379   : > { %v4464_v15 = vunpack.c.h.bf16 %v15420_v39  ;;  %v4706_v51 = vmul.f32 %v4386_v46, %v12247_v53  ;;  %v4079_v3 = vmul.bf16 1065369472, %v12844_v23  ;;  %5717 = vst.msk [vmem:[#allocation2 + $0xf0] sm:$0xff] %vm205_vm1, %v5556_v25  ;;  %v15425_v21 = vmul.bf16 1065369472, %v15424_v13  ;;  %v5874_v33 = vld [vmem:[#allocation2 + $0xc0] sm:$0xff] }
 0x37a   : > { %v5370_v37 = vadd.f32 %v4783_v19, %v15422_v49  ;;  %v4707_v48 = vmul.f32 %v4387_v55, %v12262_v16  ;;  %5251 = vadd.xlane.f32.xlu1 %v5250_v58  ;;  %v5557_v53 = vadd.f32 %v12328_v57, %v4917_v6  ;;  %v7462_v16 = vpop.eup %7461  ;;  %v4239_v7 = vmul.bf16 1065369472, %v12852_v12  ;;  %5368 = vadd.xlane.f32.xlu0 %v5367_v10  ;;  %v15426_v6 = vld [vmem:[#allocation246_spill] sm:$0xff] }
 0x37b   : > { %v4784_v59 = vmul.f32 %v4464_v15, %v15423_v38  ;;  %v4467_v22 = vunpack.c.l.bf16 %v15425_v21  ;;  %v12867_v46 = vadd.f32 %v12683_v31, %v12662_v1  ;;  %v7464_v18 = vpop.eup %7463  ;;  %v4400_v55 = vunpack.c.h.bf16 %v4079_v3  ;;  %v5876_v1 = vld [vmem:[#allocation2 + $0xd0] sm:$0xff]  ;;  %5719 = vst.msk [vmem:[#allocation2 + $0x100] sm:$0xff] %vm205_vm1, %v5558_v29  ;;  %v4919_v29 = vld [vmem:[#allocation2 + $0x108] sm:$0xff] }
 0x37c   : > { %v5256_v19 = vadd.f32 %v4707_v48, %v4706_v51  ;;  %v3844_v58 = vadd.bf16 1065369472, %v7462_v16  ;;  %v6034_v57 = vmul.f32 0.00390625, %v5874_v33  ;;  %5718 = vst.msk [vmem:[#allocation2 + $0xf8] sm:$0xff] %vm205_vm1, %v5557_v53  ;;  %v12873_v25 = vpop.eup %7465  ;;  %v4560_v2 = vunpack.c.h.bf16 %v4239_v7  ;;  %v5875_v39 = vld [vmem:[#allocation2 + $0xc8] sm:$0xff]  ;;  %v15427_v31 = vld [vmem:[#allocation149_spill] sm:$0xff] }
 0x37d   : > { %v5373_v60 = vadd.f32 %v15426_v6, %v4784_v59  ;;  %v3924_v42 = vadd.bf16 1065369472, %v7464_v18  ;;  %v4787_v15 = vmul.f32 %v4467_v22, %v15427_v31  ;;  %v15428_v26 = vmul.bf16 1065369472, %v12624_v20  ;;  %v12881_v10 = vpop.eup %7467  ;;  %v5877_v21 = vld [vmem:[#allocation2 + $0xd8] sm:$0xff]  ;;  %v12893_v22 = vpop.xlane.xlu1 %5191  ;;  %v15429_v6 = vld [vmem:[#allocation180_spill] sm:$0xff] }
 0x37e   : > { %v12884_v49 = vmul.f32 %v4400_v55, %v12618_v32  ;;  %v4081_v51 = vmul.bf16 1065369472, %v12873_v25  ;;  %7473 = vrcp.bf16 %v3844_v58  ;;  %6194 = vst.msk [vmem:[%s12201_s19 + $0xc0] sm:$0xff] %vm205_vm1, %v6034_v57  ;;  %v6035_v48 = vmul.f32 0.00390625, %v5875_v39  ;;  %5371 = vadd.xlane.f32.xlu1 %v5370_v37  ;;  %v7470_v38 = vpop.eup %7469  ;;  %v5878_v32 = vld [vmem:[#allocation2 + $0xe0] sm:$0xff]  ;;  %5260 = vadd.xlane.f32.xlu0 %v5259_v52  ;;  %v12899_v18 = vpop.xlane.xlu0 %5308  ;;  %v5879_v58 = vld [vmem:[#allocation2 + $0xe8] sm:$0xff] }
 0x37f   : > { %v4390_v34 = vunpack.c.l.bf16 %v15428_v26  ;;  %v12890_v59 = vmul.f32 %v4560_v2, %v12622_v43  ;;  %v4241_v20 = vmul.bf16 1065369472, %v12881_v10  ;;  %7475 = vrcp.bf16 %v3924_v42  ;;  %v7472_v53 = vpop.eup %7471 }
 0x380   : > { %v6036_v13 = vmul.f32 0.00390625, %v5876_v1  ;;  %v4401_v16 = vunpack.c.h.bf16 %v4081_v51  ;;  %v3845_v33 = vadd.bf16 1065369472, %v7470_v38  ;;  %6195 = vst.msk [vmem:[%s12201_s19 + $0xc8] sm:$0xff] %vm205_vm1, %v6035_v48  ;;  %v6037_v43 = vmul.f32 0.00390625, %v5877_v21  ;;  %v5880_v57 = vld [vmem:[#allocation2 + $0xf0] sm:$0xff] }
 0x381   : > { %v6038_v37 = vmul.f32 0.00390625, %v5878_v32  ;;  %v4561_v55 = vunpack.c.h.bf16 %v4241_v20  ;;  %v3925_v52 = vadd.bf16 1065369472, %v7472_v53  ;;  %v5376_v2 = vadd.f32 %v4787_v15, %v15429_v6  ;;  %v4920_v1 = vld [vmem:[#allocation2 + $0x110] sm:$0xff]  ;;  %v4922_v21 = vld [vmem:[#allocation2 + $0x120] sm:$0xff] }
 0x382   : > { %6196 = vst.msk [vmem:[%s12201_s19 + $0xd0] sm:$0xff] %vm205_vm1, %v6036_v13  ;;  %v15430_v42 = vmul.bf16 1065369472, %v12658_v50  ;;  %v12909_v31 = vmul.f32 %v4401_v16, %v12631_v35  ;;  %7477 = vrcp.bf16 %v3845_v33  ;;  %6197 = vst.msk [vmem:[%s12201_s19 + $0xd8] sm:$0xff] %vm205_vm1, %v6037_v43  ;;  %5257 = vadd.xlane.f32.xlu1 %v5256_v19  ;;  %v6039_v26 = vmul.f32 0.00390625, %v5879_v58  ;;  %5374 = vadd.xlane.f32.xlu0 %v5373_v60  ;;  %v4921_v13 = vld [vmem:[#allocation2 + $0x118] sm:$0xff] }
 0x383   : > { %6198 = vst.msk [vmem:[%s12201_s19 + $0xe0] sm:$0xff] %vm205_vm1, %v6038_v37  ;;  %v6040_v48 = vmul.f32 0.00390625, %v5880_v57  ;;  %v12916_v38 = vmul.f32 %v4561_v55, %v12635_v45  ;;  %7479 = vrcp.bf16 %v3925_v52  ;;  %v5881_v50 = vld [vmem:[#allocation2 + $0xf8] sm:$0xff]  ;;  %v4710_v15 = vmul.f32 %v4390_v34, %v12368_v0  ;;  %v5882_v32 = vld [vmem:[#allocation2 + $0x100] sm:$0xff]  ;;  %v15435_v55 = vld [vmem:[#allocation73_spill] sm:$0xff] }
 0x384   : > { %v4391_v39 = vunpack.c.l.bf16 %v15430_v42  ;;  %6199 = vst.msk [vmem:[%s12201_s19 + $0xe8] sm:$0xff] %vm205_vm1, %v6039_v26  ;;  %v6041_v19 = vmul.f32 0.00390625, %v5881_v50  ;;  %v5559_v53 = vadd.f32 %v12361_v40, %v4919_v29  ;;  %v5560_v45 = vadd.f32 %v12415_v24, %v4920_v1  ;;  %v15431_v16 = vld [vmem:[#allocation175_spill] sm:$0xff]  ;;  %v4923_v57 = vld [vmem:[#allocation2 + $0x128] sm:$0xff]  ;;  %v4924_v6 = vld [vmem:[#allocation2 + $0x130] sm:$0xff]  ;;  %v12932_v42 = vpop.xlane.xlu1 %5311  ;;  %v12943_v26 = vpop.xlane.xlu0 %5200 }
 0x385   : > { %6200 = vst.msk [vmem:[%s12201_s19 + $0xf0] sm:$0xff] %vm205_vm1, %v6040_v48  ;;  %v15432_v60 = vmul.bf16 1065369472, %v15431_v16  ;;  %v6042_v43 = vmul.f32 0.00390625, %v5882_v32  ;;  %v15436_v52 = vmul.bf16 1065369472, %v15435_v55  ;;  %v5561_v29 = vadd.f32 %v12424_v62, %v4921_v13 }
 0x386   : > { %v4711_v35 = vmul.f32 %v4391_v39, %v12378_v56  ;;  %v15433_v56 = vld [vmem:[#allocation104_spill] sm:$0xff]  ;;  %5377 = vadd.xlane.f32.xlu1 %v5376_v2  ;;  %6201 = vst.msk [vmem:[%s12201_s19 + $0xf8] sm:$0xff] %vm205_vm1, %v6041_v19  ;;  %5720 = vst.msk [vmem:[#allocation2 + $0x108] sm:$0xff] %vm205_vm1, %v5559_v53  ;;  %v15437_v40 = vld [vmem:[#allocation90_spill] sm:$0xff]  ;;  %v5562_v39 = vadd.f32 %v12448_v14, %v4922_v21  ;;  %v5271_v1 = vadd.f32 %v12797_v54, %v12779_v28 }
 0x387   : > { %v4468_v33 = vunpack.c.h.bf16 %v15432_v60  ;;  %v15434_v34 = vmul.bf16 1065369472, %v15433_v56  ;;  %v4471_v58 = vunpack.c.l.bf16 %v15436_v52  ;;  %5721 = vst.msk [vmem:[#allocation2 + $0x110] sm:$0xff] %vm205_vm1, %v5560_v45  ;;  %6202 = vst.msk [vmem:[%s12201_s19 + $0x100] sm:$0xff] %vm205_vm1, %v6042_v43  ;;  %5266 = vadd.xlane.f32.xlu0 %v12867_v46  ;;  %v15438_v2 = vld [vmem:[#allocation218_spill] sm:$0xff]  ;;  %v4926_v21 = vld [vmem:[#allocation2 + $0x140] sm:$0xff] }
 0x388   : > { %v5262_v0 = vadd.f32 %v4711_v35, %v4710_v15  ;;  %v15439_v50 = vld [vmem:[#allocation162_spill] sm:$0xff]  ;;  %v15440_v35 = vmul.bf16 1065369472, %v12740_v4  ;;  %v15441_v62 = vmul.bf16 1065369472, %v12769_v61  ;;  %v15442_v32 = vld [vmem:[#allocation111_spill] sm:$0xff] }
 0x389   : > { %v4470_v37 = vunpack.c.l.bf16 %v15434_v34  ;;  %v4788_v24 = vmul.f32 %v4468_v33, %v15437_v40  ;;  %v4791_v15 = vmul.f32 %v4471_v58, %v15439_v50  ;;  %v4925_v14 = vld [vmem:[#allocation2 + $0x138] sm:$0xff]  ;;  %5722 = vst.msk [vmem:[#allocation2 + $0x118] sm:$0xff] %vm205_vm1, %v5561_v29  ;;  %5723 = vst.msk [vmem:[#allocation2 + $0x120] sm:$0xff] %vm205_vm1, %v5562_v39  ;;  %v15443_v54 = vld [vmem:[#allocation185_spill] sm:$0xff]  ;;  %v12963_v4 = vpop.eup %7473 }
 0x38a   : > { %v4394_v19 = vunpack.c.l.bf16 %v15440_v35  ;;  %v4395_v13 = vunpack.c.l.bf16 %v15441_v62  ;;  %v5563_v46 = vadd.f32 %v15443_v54, %v4923_v57  ;;  %v15444_v53 = vld [vmem:[#allocation187_spill] sm:$0xff]  ;;  %v15445_v16 = vld [vmem:[#allocation248_spill] sm:$0xff]  ;;  %v15446_v60 = vld [vmem:[#allocation54_spill] sm:$0xff]  ;;  %v12969_v40 = vpop.eup %7475  ;;  %v4083_v57 = vmul.bf16 1065369472, %v12963_v4  ;;  %5263 = vadd.xlane.f32.xlu1 %v5262_v0  ;;  %v12984_v54 = vpop.xlane.xlu1 %5197 }
 0x38b   : > { %v4790_v48 = vmul.f32 %v4470_v37, %v15438_v2  ;;  %v5379_v28 = vadd.f32 %v15442_v32, %v4788_v24  ;;  %v5564_v45 = vadd.f32 %v15444_v53, %v4924_v6  ;;  %v12961_v33 = vadd.f32 %v15446_v60, %v15445_v16  ;;  %v15447_v43 = vld [vmem:[#allocation133_spill] sm:$0xff]  ;;  %v15448_v34 = vld [vmem:[#allocation186_spill] sm:$0xff]  ;;  %v15451_v6 = vld [vmem:[#allocation79_spill] sm:$0xff] }
 0x38c   : > { %v4714_v56 = vmul.f32 %v4394_v19, %v15447_v43  ;;  %v4715_v37 = vmul.f32 %v4395_v13, %v15448_v34  ;;  %v15449_v55 = vld [vmem:[#allocation118_spill] sm:$0xff]  ;;  %5724 = vst.msk [vmem:[#allocation2 + $0x128] sm:$0xff] %vm205_vm1, %v5563_v46  ;;  %v15452_v24 = vmul.bf16 1065369472, %v15451_v6  ;;  %v15453_v39 = vld [vmem:[#allocation96_spill] sm:$0xff]  ;;  %v4966_v35 = vld [vmem:[#allocation2 + $0x280] sm:$0xff]  ;;  %v12982_v0 = vadd.f32 %v12909_v31, %v12884_v49 }
 0x38d   : > { %v5382_v61 = vadd.f32 %v4791_v15, %v4790_v48  ;;  %v15450_v52 = vmul.bf16 1065369472, %v15449_v55  ;;  %5725 = vst.msk [vmem:[#allocation2 + $0x130] sm:$0xff] %vm205_vm1, %v5564_v45  ;;  %v5565_v2 = vadd.f32 %v15453_v39, %v4925_v14  ;;  %v15454_v48 = vld [vmem:[#allocation84_spill] sm:$0xff]  ;;  %v4243_v19 = vmul.bf16 1065369472, %v12969_v40  ;;  %5380 = vadd.xlane.f32.xlu0 %v5379_v28  ;;  %v12995_v45 = vpop.xlane.xlu0 %5314  ;;  %v12997_v49 = vpop.eup %7477 }
 0x38e   : > { %v4475_v29 = vunpack.c.l.bf16 %v15452_v24  ;;  %v5566_v50 = vadd.f32 %v15454_v48, %v4926_v21  ;;  %v4927_v15 = vld [vmem:[#allocation2 + $0x148] sm:$0xff]  ;;  %v5268_v62 = vadd.f32 %v4715_v37, %v4714_v56  ;;  %v15455_v13 = vld [vmem:[#allocation229_spill] sm:$0xff]  ;;  %v4404_v46 = vunpack.c.h.bf16 %v4083_v57  ;;  %v15456_v14 = vld [vmem:[#allocation235_spill] sm:$0xff] }
 0x38f   : > { %v4474_v58 = vunpack.c.l.bf16 %v15450_v52  ;;  %5726 = vst.msk [vmem:[#allocation2 + $0x138] sm:$0xff] %vm205_vm1, %v5565_v2  ;;  %v4398_v21 = vunpack.c.l.bf16 %v4079_v3  ;;  %v4399_v28 = vunpack.c.l.bf16 %v4081_v51  ;;  %v4564_v31 = vunpack.c.h.bf16 %v4243_v19  ;;  %v5883_v16 = vld [vmem:[#allocation2 + $0x108] sm:$0xff]  ;;  %v5884_v60 = vld [vmem:[#allocation2 + $0x110] sm:$0xff]  ;;  %v15458_v34 = vld [vmem:[#allocation66_spill] sm:$0xff]  ;;  %v13007_v3 = vpop.eup %7479  ;;  %5383 = vadd.xlane.f32.xlu1 %v5382_v61 }
 0x390   : > { %v4795_v53 = vmul.f32 %v4475_v29, %v15456_v14  ;;  %5727 = vst.msk [vmem:[#allocation2 + $0x140] sm:$0xff] %vm205_vm1, %v5566_v50  ;;  %v15457_v43 = vld [vmem:[#allocation172_spill] sm:$0xff]  ;;  %v5606_v37 = vadd.f32 %v15458_v34, %v4966_v35  ;;  %v15459_v55 = vld [vmem:[#allocation81_spill] sm:$0xff]  ;;  %v4724_v25 = vmul.f32 %v4404_v46, %v12730_v41  ;;  %v4085_v51 = vmul.bf16 1065369472, %v12997_v49  ;;  %v4929_v24 = vld [vmem:[#allocation2 + $0x158] sm:$0xff] }
 0x391   : > { %v4794_v32 = vmul.f32 %v4474_v58, %v15455_v13  ;;  %v5567_v56 = vadd.f32 %v15457_v43, %v4927_v15  ;;  %v15460_v52 = vld [vmem:[#allocation132_spill] sm:$0xff]  ;;  %v6043_v58 = vmul.f32 0.00390625, %v5883_v16  ;;  %v6044_v6 = vmul.f32 0.00390625, %v5884_v60  ;;  %v5885_v2 = vld [vmem:[#allocation2 + $0x118] sm:$0xff]  ;;  %v5886_v48 = vld [vmem:[#allocation2 + $0x120] sm:$0xff]  ;;  %5272 = vadd.xlane.f32.xlu0 %v5271_v1 }
 0x392   : > { %v13005_v23 = vadd.f32 %v15460_v52, %v15459_v55  ;;  %v13012_v29 = vmul.f32 %v4564_v31, %v12734_v9  ;;  %v4245_v39 = vmul.bf16 1065369472, %v13007_v3  ;;  %v15461_v15 = vld [vmem:[#allocation7_spill] sm:$0xff]  ;;  %5767 = vst.msk [vmem:[#allocation2 + $0x280] sm:$0xff] %vm205_vm1, %v5606_v37  ;;  %v4405_v41 = vunpack.c.h.bf16 %v4085_v51  ;;  %v4928_v14 = vld [vmem:[#allocation2 + $0x150] sm:$0xff]  ;;  %v15465_v16 = vld [vmem:[#allocation26_spill] sm:$0xff]  ;;  %v13030_v37 = vpop.xlane.xlu1 %5317 }
 0x393   : > { %v5388_v50 = vadd.f32 %v4795_v53, %v4794_v32  ;;  %v4718_v35 = vmul.f32 %v4398_v21, %v15461_v15  ;;  %5728 = vst.msk [vmem:[#allocation2 + $0x148] sm:$0xff] %vm205_vm1, %v5567_v56  ;;  %6203 = vst.msk [vmem:[%s12201_s19 + $0x108] sm:$0xff] %vm205_vm1, %v6043_v58  ;;  %v6045_v9 = vmul.f32 0.00390625, %v5885_v2  ;;  %v6046_v61 = vmul.f32 0.00390625, %v5886_v48  ;;  %v15462_v13 = vld [vmem:[#allocation147_spill] sm:$0xff]  ;;  %v5887_v32 = vld [vmem:[#allocation2 + $0x128] sm:$0xff]  ;;  %5269 = vadd.xlane.f32.xlu1 %v5268_v62  ;;  %v13037_v48 = vpop.xlane.xlu0 %5206 }
 0x394   : > { %6204 = vst.msk [vmem:[%s12201_s19 + $0x110] sm:$0xff] %vm205_vm1, %v6044_v6  ;;  %v4719_v46 = vmul.f32 %v4399_v28, %v15462_v13  ;;  %v4565_v1 = vunpack.c.h.bf16 %v4245_v39  ;;  %v5888_v53 = vld [vmem:[#allocation2 + $0x130] sm:$0xff]  ;;  %v15463_v21 = vld [vmem:[#allocation151_spill] sm:$0xff]  ;;  %v15466_v60 = vmul.bf16 1065369472, %v15465_v16  ;;  %v4725_v55 = vmul.f32 %v4405_v41, %v12746_v36  ;;  %v4967_v6 = vld [vmem:[#allocation2 + $0x288] sm:$0xff] }
 0x395   : > { %v15464_v49 = vmul.bf16 1065369472, %v15463_v21  ;;  %v15467_v56 = vld [vmem:[#allocation143_spill] sm:$0xff]  ;;  %6205 = vst.msk [vmem:[%s12201_s19 + $0x118] sm:$0xff] %vm205_vm1, %v6045_v9  ;;  %6206 = vst.msk [vmem:[%s12201_s19 + $0x120] sm:$0xff] %vm205_vm1, %v6046_v61  ;;  %v6047_v28 = vmul.f32 0.00390625, %v5887_v32  ;;  %5386 = vadd.xlane.f32.xlu0 %v12961_v33  ;;  %v4402_v33 = vunpack.c.l.bf16 %v4083_v57  ;;  %v4563_v12 = vunpack.c.l.bf16 %v4245_v39 }
 0x396   : > { %v4479_v43 = vunpack.c.l.bf16 %v15466_v60  ;;  %v5569_v34 = vadd.f32 %v15467_v56, %v4929_v24  ;;  %v6048_v52 = vmul.f32 0.00390625, %v5888_v53  ;;  %v5274_v58 = vadd.f32 %v4719_v46, %v4718_v35  ;;  %v4968_v2 = vld [vmem:[#allocation2 + $0x290] sm:$0xff]  ;;  %v15468_v15 = vld [vmem:[#allocation207_spill] sm:$0xff]  ;;  %v5889_v36 = vld [vmem:[#allocation2 + $0x138] sm:$0xff] }
 0x397   : > { %v4478_v31 = vunpack.c.l.bf16 %v15464_v49  ;;  %v13040_v24 = vmul.f32 %v4565_v1, %v15468_v15  ;;  %v5890_v41 = vld [vmem:[#allocation2 + $0x140] sm:$0xff]  ;;  %6207 = vst.msk [vmem:[%s12201_s19 + $0x128] sm:$0xff] %vm205_vm1, %v6047_v28  ;;  %v6049_v46 = vmul.f32 0.00390625, %v5889_v36  ;;  %v13051_v32 = vadd.f32 %v4725_v55, %v4724_v25  ;;  %v4931_v53 = vld [vmem:[#allocation2 + $0x168] sm:$0xff]  ;;  %v15472_v16 = vld [vmem:[#allocation166_spill] sm:$0xff]  ;;  %5389 = vadd.xlane.f32.xlu1 %v5388_v50 }
 0x398   : > { %v15469_v9 = vld [vmem:[#allocation171_spill] sm:$0xff]  ;;  %5730 = vst.msk [vmem:[#allocation2 + $0x158] sm:$0xff] %vm205_vm1, %v5569_v34  ;;  %6208 = vst.msk [vmem:[%s12201_s19 + $0x130] sm:$0xff] %vm205_vm1, %v6048_v52  ;;  %v6050_v1 = vmul.f32 0.00390625, %v5890_v41  ;;  %v15473_v60 = vld [vmem:[#allocation204_spill] sm:$0xff] }
 0x399   : > { %v4798_v13 = vmul.f32 %v4478_v31, %v15469_v9  ;;  %v15470_v61 = vld [vmem:[#allocation3_spill] sm:$0xff]  ;;  %v4403_v31 = vunpack.c.l.bf16 %v4085_v51  ;;  %6209 = vst.msk [vmem:[%s12201_s19 + $0x138] sm:$0xff] %vm205_vm1, %v6049_v46  ;;  %v15475_v55 = vld [vmem:[#allocation4_spill] sm:$0xff]  ;;  %v15476_v28 = vld [vmem:[#allocation202_spill] sm:$0xff]  ;;  %5278 = vadd.xlane.f32.xlu0 %v12982_v0 }
 0x39a   : > { %v4799_v21 = vmul.f32 %v4479_v43, %v15470_v61  ;;  %v15471_v62 = vld [vmem:[#allocation139_spill] sm:$0xff]  ;;  %v5608_v43 = vadd.f32 %v15473_v60, %v4968_v2  ;;  %6210 = vst.msk [vmem:[%s12201_s19 + $0x140] sm:$0xff] %vm205_vm1, %v6050_v1  ;;  %v5891_v25 = vld [vmem:[#allocation2 + $0x148] sm:$0xff]  ;;  %v13067_v52 = vadd.f32 %v15476_v28, %v15475_v55  ;;  %v4969_v50 = vld [vmem:[#allocation2 + $0x298] sm:$0xff]  ;;  %v13078_v1 = vpop.xlane.xlu1 %5203 }
 0x39b   : > { %v5568_v35 = vadd.f32 %v15471_v62, %v4928_v14  ;;  %v5607_v14 = vadd.f32 %v15472_v16, %v4967_v6  ;;  %v4930_v56 = vld [vmem:[#allocation2 + $0x160] sm:$0xff]  ;;  %v15477_v15 = vld [vmem:[#allocation168_spill] sm:$0xff]  ;;  %v15479_v6 = vld [vmem:[#allocation181_spill] sm:$0xff]  ;;  %v6051_v9 = vmul.f32 0.00390625, %v5891_v25  ;;  %5275 = vadd.xlane.f32.xlu1 %v5274_v58 }
 0x39c   : > { %v13055_v49 = vadd.f32 %v4799_v21, %v4798_v13  ;;  %v5930_v34 = vld [vmem:[#allocation2 + $0x280] sm:$0xff]  ;;  %v15478_v51 = vmul.bf16 1065369472, %v15477_v15  ;;  %v15480_v41 = vmul.bf16 1065369472, %v15479_v6  ;;  %v15481_v61 = vld [vmem:[#allocation165_spill] sm:$0xff] }
 0x39d   : > { %5729 = vst.msk [vmem:[#allocation2 + $0x150] sm:$0xff] %vm205_vm1, %v5568_v35  ;;  %v15474_v4 = vld [vmem:[#allocation195_spill] sm:$0xff]  ;;  %v6090_v13 = vmul.f32 0.00390625, %v5930_v34  ;;  %v4723_v21 = vmul.f32 %v4403_v31, %v15481_v61  ;;  %5768 = vst.msk [vmem:[#allocation2 + $0x288] sm:$0xff] %vm205_vm1, %v5607_v14  ;;  %v15482_v62 = vld [vmem:[#allocation69_spill] sm:$0xff]  ;;  %v13087_v31 = vpop.xlane.xlu0 %5320  ;;  %5392 = vadd.xlane.f32.xlu0 %v13005_v23 }
 0x39e   : > { %v4722_v57 = vmul.f32 %v4402_v33, %v15474_v4  ;;  %v4482_v36 = vunpack.c.l.bf16 %v15478_v51  ;;  %v4483_v2 = vunpack.c.l.bf16 %v15480_v41  ;;  %5769 = vst.msk [vmem:[#allocation2 + $0x290] sm:$0xff] %vm205_vm1, %v5608_v43  ;;  %v5571_v35 = vadd.f32 %v15482_v62, %v4931_v53  ;;  %v4970_v46 = vld [vmem:[#allocation2 + $0x2a0] sm:$0xff]  ;;  %v15484_v60 = vld [vmem:[#allocation184_spill] sm:$0xff]  ;;  %v15485_v55 = vld [vmem:[#allocation194_spill] sm:$0xff] }
 0x39f   : > { %v15483_v33 = vld [vmem:[#allocation71_spill] sm:$0xff]  ;;  %v5570_v28 = vadd.f32 %v15485_v55, %v4930_v56  ;;  %v15486_v0 = vld [vmem:[#allocation188_spill] sm:$0xff]  ;;  %6211 = vst.msk [vmem:[%s12201_s19 + $0x148] sm:$0xff] %vm205_vm1, %v6051_v9  ;;  %6250 = vst.msk [vmem:[%s12201_s19 + $0x280] sm:$0xff] %vm205_vm1, %v6090_v13  ;;  %5395 = vadd.xlane.f32.xlu1 %v13055_v49 }
 0x3a0   : > { %v4802_v16 = vmul.f32 %v4482_v36, %v15483_v33  ;;  %v4803_v4 = vmul.f32 %v4483_v2, %v15484_v60  ;;  %v15487_v25 = vld [vmem:[#allocation28_spill] sm:$0xff]  ;;  %v13093_v53 = vadd.f32 %v4723_v21, %v4722_v57  ;;  %5732 = vst.msk [vmem:[#allocation2 + $0x168] sm:$0xff] %vm205_vm1, %v5571_v35  ;;  %v15488_v14 = vld [vmem:[#allocation154_spill] sm:$0xff]  ;;  %v15490_v51 = vld [vmem:[#allocation211_spill] sm:$0xff]  ;;  %v5610_v57 = vadd.f32 %v12774_v63, %v4970_v46 }
 0x3a1   : > { %v13085_v34 = vadd.f32 %v15487_v25, %v15486_v0  ;;  %v15489_v43 = vmul.bf16 1065369472, %v15488_v14  ;;  %v15491_v36 = vmul.bf16 1065369472, %v15490_v51  ;;  %v15492_v6 = vld [vmem:[#allocation68_spill] sm:$0xff]  ;;  %v4933_v2 = vld [vmem:[#allocation2 + $0x178] sm:$0xff]  ;;  %v13145_v49 = vpop.xlane.xlu0 %5212  ;;  %5284 = vadd.xlane.f32.xlu0 %v13051_v32 }
 0x3a2   : > { %v5609_v41 = vadd.f32 %v15492_v6, %v4969_v50  ;;  %v4932_v61 = vld [vmem:[#allocation2 + $0x170] sm:$0xff]  ;;  %v5893_v62 = vld [vmem:[#allocation2 + $0x158] sm:$0xff]  ;;  %v13101_v33 = vadd.f32 %v4803_v4, %v4802_v16  ;;  %5731 = vst.msk [vmem:[#allocation2 + $0x160] sm:$0xff] %vm205_vm1, %v5570_v28  ;;  %v15495_v35 = vld [vmem:[#allocation20_spill] sm:$0xff]  ;;  %v5573_v6 = vadd.f32 %v12784_v5, %v4933_v2 }
 0x3a3   : > { %v4486_v15 = vunpack.c.l.bf16 %v15489_v43  ;;  %v4487_v56 = vunpack.c.l.bf16 %v15491_v36  ;;  %v15493_v9 = vld [vmem:[#allocation213_spill] sm:$0xff]  ;;  %v15494_v13 = vld [vmem:[#allocation234_spill] sm:$0xff]  ;;  %v15496_v60 = vmul.bf16 1065369472, %v15495_v35  ;;  %v6053_v50 = vmul.f32 0.00390625, %v5893_v62  ;;  %v15497_v0 = vld [vmem:[#allocation88_spill] sm:$0xff]  ;;  %5281 = vadd.xlane.f32.xlu1 %v13093_v53 }
 0x3a4   : > { %v13107_v21 = vadd.f32 %v15494_v13, %v15493_v9  ;;  %v15498_v25 = vld [vmem:[#allocation251_spill] sm:$0xff]  ;;  %5770 = vst.msk [vmem:[#allocation2 + $0x298] sm:$0xff] %vm205_vm1, %v5609_v41  ;;  %v4971_v46 = vld [vmem:[#allocation2 + $0x2a8] sm:$0xff]  ;;  %v4972_v14 = vld [vmem:[#allocation2 + $0x2b0] sm:$0xff]  ;;  %v5572_v23 = vadd.f32 %v12809_v27, %v4932_v61 }
 0x3a5   : > { %v4490_v55 = vunpack.c.l.bf16 %v15496_v60  ;;  %v4806_v58 = vmul.f32 %v4486_v15, %v15497_v0  ;;  %v4807_v16 = vmul.f32 %v4487_v56, %v15498_v25  ;;  %v15499_v4 = vld [vmem:[#allocation227_spill] sm:$0xff]  ;;  %v5892_v43 = vld [vmem:[#allocation2 + $0x150] sm:$0xff]  ;;  %5771 = vst.msk [vmem:[#allocation2 + $0x2a0] sm:$0xff] %vm205_vm1, %v5610_v57  ;;  %v15502_v62 = vld [vmem:[#allocation14_spill] sm:$0xff]  ;;  %v13132_v25 = vpop.xlane.xlu1 %5323  ;;  %5398 = vadd.xlane.f32.xlu0 %v13067_v52 }
 0x3a6   : > { %v15500_v28 = vmul.bf16 1065369472, %v15499_v4  ;;  %v15501_v51 = vld [vmem:[#allocation103_spill] sm:$0xff]  ;;  %v15503_v15 = vld [vmem:[#allocation161_spill] sm:$0xff]  ;;  %6213 = vst.msk [vmem:[%s12201_s19 + $0x158] sm:$0xff] %vm205_vm1, %v6053_v50  ;;  %v6052_v56 = vmul.f32 0.00390625, %v5892_v43 }
 0x3a7   : > { %v4810_v36 = vmul.f32 %v4490_v55, %v15501_v51  ;;  %v13123_v9 = vadd.f32 %v15503_v15, %v15502_v62  ;;  %v13127_v41 = vadd.f32 %v4807_v16, %v4806_v58  ;;  %v15504_v13 = vld [vmem:[#allocation13_spill] sm:$0xff]  ;;  %v15505_v60 = vld [vmem:[#allocation232_spill] sm:$0xff]  ;;  %5734 = vst.msk [vmem:[#allocation2 + $0x178] sm:$0xff] %vm205_vm1, %v5573_v6  ;;  %5733 = vst.msk [vmem:[#allocation2 + $0x170] sm:$0xff] %vm205_vm1, %v5572_v23  ;;  %5401 = vadd.xlane.f32.xlu1 %v13101_v33 }
 0x3a8   : > { %v4491_v63 = vunpack.c.l.bf16 %v15500_v28  ;;  %v15506_v57 = vmul.bf16 1065369472, %v15505_v60  ;;  %v4935_v55 = vld [vmem:[#allocation2 + $0x188] sm:$0xff]  ;;  %v5932_v27 = vld [vmem:[#allocation2 + $0x290] sm:$0xff]  ;;  %v15507_v2 = vld [vmem:[#allocation170_spill] sm:$0xff]  ;;  %v5611_v58 = vadd.f32 %v12816_v17, %v4971_v46  ;;  %v5612_v16 = vadd.f32 %v12850_v8, %v4972_v14  ;;  %6212 = vst.msk [vmem:[%s12201_s19 + $0x150] sm:$0xff] %vm205_vm1, %v6052_v56 }
 0x3a9   : > { %v5931_v5 = vld [vmem:[#allocation2 + $0x288] sm:$0xff]  ;;  %v15508_v61 = vmul.bf16 1065369472, %v15507_v2  ;;  %v15509_v4 = vld [vmem:[#allocation105_spill] sm:$0xff]  ;;  %v15510_v28 = vld [vmem:[#allocation243_spill] sm:$0xff]  ;;  %v6092_v6 = vmul.f32 0.00390625, %v5932_v27  ;;  %v5575_v32 = vadd.f32 %v12861_v30, %v4935_v55  ;;  %5404 = vadd.xlane.f32.xlu0 %v13085_v34 }
 0x3aa   : > { %v4811_v35 = vmul.f32 %v4491_v63, %v15504_v13  ;;  %v4494_v0 = vunpack.c.l.bf16 %v15506_v57  ;;  %v13143_v63 = vadd.f32 %v15510_v28, %v15509_v4  ;;  %v4934_v43 = vld [vmem:[#allocation2 + $0x180] sm:$0xff]  ;;  %v6091_v51 = vmul.f32 0.00390625, %v5931_v5  ;;  %v15511_v17 = vld [vmem:[#allocation6_spill] sm:$0xff]  ;;  %v5895_v8 = vld [vmem:[#allocation2 + $0x168] sm:$0xff]  ;;  %5772 = vst.msk [vmem:[#allocation2 + $0x2a8] sm:$0xff] %vm205_vm1, %v5611_v58 }
 0x3ab   : > { %v4495_v50 = vunpack.c.l.bf16 %v15508_v61  ;;  %v15512_v14 = vld [vmem:[#allocation135_spill] sm:$0xff]  ;;  %5773 = vst.msk [vmem:[#allocation2 + $0x2b0] sm:$0xff] %vm205_vm1, %v5612_v16  ;;  %v15513_v15 = vld [vmem:[#allocation93_spill] sm:$0xff]  ;;  %v4973_v5 = vld [vmem:[#allocation2 + $0x2b8] sm:$0xff]  ;;  %5407 = vadd.xlane.f32.xlu1 %v13127_v41 }
 0x3ac   : > { %v13150_v23 = vadd.f32 %v4811_v35, %v4810_v36  ;;  %v4814_v46 = vmul.f32 %v4494_v0, %v15511_v17  ;;  %v15514_v13 = vmul.bf16 1065369472, %v15513_v15  ;;  %v15515_v57 = vld [vmem:[#allocation127_spill] sm:$0xff]  ;;  %6251 = vst.msk [vmem:[%s12201_s19 + $0x288] sm:$0xff] %vm205_vm1, %v6091_v51  ;;  %6252 = vst.msk [vmem:[%s12201_s19 + $0x290] sm:$0xff] %vm205_vm1, %v6092_v6  ;;  %v6055_v36 = vmul.f32 0.00390625, %v5895_v8 }
 0x3ad   : > { %v4815_v62 = vmul.f32 %v4495_v50, %v15512_v14  ;;  %v15516_v56 = vmul.bf16 1065369472, %v15515_v57  ;;  %v5894_v35 = vld [vmem:[#allocation2 + $0x160] sm:$0xff]  ;;  %v5574_v0 = vadd.f32 %v12893_v22, %v4934_v43  ;;  %v15517_v27 = vld [vmem:[#allocation24_spill] sm:$0xff]  ;;  %v15519_v58 = vld [vmem:[#allocation130_spill] sm:$0xff]  ;;  %5736 = vst.msk [vmem:[#allocation2 + $0x188] sm:$0xff] %vm205_vm1, %v5575_v32  ;;  %5410 = vadd.xlane.f32.xlu0 %v13107_v21 }
 0x3ae   : > { %v4498_v60 = vunpack.c.l.bf16 %v15514_v13  ;;  %v15518_v61 = vld [vmem:[#allocation63_spill] sm:$0xff]  ;;  %v15520_v16 = vmul.bf16 1065369472, %v15519_v58  ;;  %v6054_v30 = vmul.f32 0.00390625, %v5894_v35  ;;  %v5933_v55 = vld [vmem:[#allocation2 + $0x298] sm:$0xff]  ;;  %v15522_v8 = vld [vmem:[#allocation12_spill] sm:$0xff] }
 0x3af   : > { %v4499_v2 = vunpack.c.l.bf16 %v15516_v56  ;;  %v13168_v50 = vadd.f32 %v15518_v61, %v15517_v27  ;;  %v4974_v28 = vld [vmem:[#allocation2 + $0x2c0] sm:$0xff]  ;;  %v13173_v51 = vadd.f32 %v4815_v62, %v4814_v46  ;;  %v4937_v22 = vld [vmem:[#allocation2 + $0x198] sm:$0xff]  ;;  %6215 = vst.msk [vmem:[%s12201_s19 + $0x168] sm:$0xff] %vm205_vm1, %v6055_v36  ;;  %v6093_v43 = vmul.f32 0.00390625, %v5933_v55  ;;  %5735 = vst.msk [vmem:[#allocation2 + $0x180] sm:$0xff] %vm205_vm1, %v5574_v0  ;;  %v13197_v61 = vpop.xlane.xlu0 %5326  ;;  %5413 = vadd.xlane.f32.xlu1 %v13150_v23 }
 0x3b0   : > { %v4502_v4 = vunpack.c.l.bf16 %v15520_v16  ;;  %v15521_v6 = vld [vmem:[#allocation27_spill] sm:$0xff]  ;;  %v4936_v56 = vld [vmem:[#allocation2 + $0x190] sm:$0xff]  ;;  %6214 = vst.msk [vmem:[%s12201_s19 + $0x160] sm:$0xff] %vm205_vm1, %v6054_v30  ;;  %v5614_v36 = vadd.f32 %v12932_v42, %v4974_v28  ;;  %v15528_v58 = vld [vmem:[#allocation176_spill] sm:$0xff]  ;;  %v5577_v28 = vadd.f32 %v12943_v26, %v4937_v22 }
 0x3b1   : > { %v4818_v17 = vmul.f32 %v4498_v60, %v15521_v6  ;;  %v4819_v14 = vmul.f32 %v4499_v2, %v15522_v8  ;;  %v5934_v15 = vld [vmem:[#allocation2 + $0x2a0] sm:$0xff]  ;;  %v5613_v60 = vadd.f32 %v12899_v18, %v4973_v5  ;;  %v13186_v2 = vpop.xlane.xlu1 %5209  ;;  %v15526_v35 = vld [vmem:[#allocation21_spill] sm:$0xff]  ;;  %6253 = vst.msk [vmem:[%s12201_s19 + $0x298] sm:$0xff] %vm205_vm1, %v6093_v43  ;;  %v5897_v18 = vld [vmem:[#allocation2 + $0x178] sm:$0xff]  ;;  %5416 = vadd.xlane.f32.xlu0 %v13123_v9 }
 0x3b2   : > { %v15523_v53 = vld [vmem:[#allocation23_spill] sm:$0xff]  ;;  %v6094_v52 = vmul.f32 0.00390625, %v5934_v15  ;;  %v15527_v0 = vld [vmem:[#allocation61_spill] sm:$0xff]  ;;  %v15531_v6 = vld [vmem:[#allocation144_spill] sm:$0xff]  ;;  %5775 = vst.msk [vmem:[#allocation2 + $0x2c0] sm:$0xff] %vm205_vm1, %v5614_v36  ;;  %v5576_v15 = vadd.f32 %v12984_v54, %v4936_v56 }
 0x3b3   : > { %v15524_v13 = vmul.bf16 1065369472, %v15523_v53  ;;  %v15525_v62 = vld [vmem:[#allocation247_spill] sm:$0xff]  ;;  %v13190_v32 = vadd.f32 %v4819_v14, %v4818_v17  ;;  %v13195_v27 = vadd.f32 %v15527_v0, %v15526_v35  ;;  %v5896_v5 = vld [vmem:[#allocation2 + $0x170] sm:$0xff]  ;;  %5774 = vst.msk [vmem:[#allocation2 + $0x2b8] sm:$0xff] %vm205_vm1, %v5613_v60  ;;  %v4975_v8 = vld [vmem:[#allocation2 + $0x2c8] sm:$0xff]  ;;  %5419 = vadd.xlane.f32.xlu1 %v13173_v51 }
 0x3b4   : > { %v4822_v57 = vmul.f32 %v4502_v4, %v15525_v62  ;;  %v15529_v4 = vld [vmem:[#allocation85_spill] sm:$0xff]  ;;  %v15532_v17 = vmul.bf16 1065369472, %v15531_v6  ;;  %6254 = vst.msk [vmem:[%s12201_s19 + $0x2a0] sm:$0xff] %vm205_vm1, %v6094_v52  ;;  %v6057_v14 = vmul.f32 0.00390625, %v5897_v18  ;;  %v6056_v43 = vmul.f32 0.00390625, %v5896_v5 }
 0x3b5   : > { %v4503_v46 = vunpack.c.l.bf16 %v15524_v13  ;;  %v15530_v30 = vmul.bf16 1065369472, %v15529_v4  ;;  %v15533_v53 = vld [vmem:[#allocation129_spill] sm:$0xff]  ;;  %v15534_v13 = vld [vmem:[#allocation51_spill] sm:$0xff]  ;;  %v5935_v26 = vld [vmem:[#allocation2 + $0x2a8] sm:$0xff]  ;;  %5738 = vst.msk [vmem:[#allocation2 + $0x198] sm:$0xff] %vm205_vm1, %v5577_v28  ;;  %5422 = vadd.xlane.f32.xlu0 %v13143_v63 }
 0x3b6   : > { %v4507_v42 = vunpack.c.l.bf16 %v15532_v17  ;;  %v4976_v62 = vld [vmem:[#allocation2 + $0x2d0] sm:$0xff]  ;;  %v15535_v60 = vld [vmem:[#allocation239_spill] sm:$0xff]  ;;  %v15536_v35 = vld [vmem:[#allocation174_spill] sm:$0xff]  ;;  %6217 = vst.msk [vmem:[%s12201_s19 + $0x178] sm:$0xff] %vm205_vm1, %v6057_v14  ;;  %v6095_v34 = vmul.f32 0.00390625, %v5935_v26 }
 0x3b7   : > { %v4823_v16 = vmul.f32 %v4503_v46, %v15528_v58  ;;  %v4506_v55 = vunpack.c.l.bf16 %v15530_v30  ;;  %v13215_v46 = vadd.f32 %v15534_v13, %v15533_v53  ;;  %v5936_v22 = vld [vmem:[#allocation2 + $0x2b0] sm:$0xff]  ;;  %v15537_v36 = vld [vmem:[#allocation183_spill] sm:$0xff]  ;;  %6216 = vst.msk [vmem:[%s12201_s19 + $0x170] sm:$0xff] %vm205_vm1, %v6056_v43  ;;  %5737 = vst.msk [vmem:[#allocation2 + $0x190] sm:$0xff] %vm205_vm1, %v5576_v15  ;;  %v5616_v28 = vadd.f32 %v13030_v37, %v4976_v62  ;;  %v13241_v13 = vpop.xlane.xlu1 %5329 }
 0x3b8   : > { %v4827_v0 = vmul.f32 %v4507_v42, %v15536_v35  ;;  %v15538_v18 = vmul.bf16 1065369472, %v15537_v36  ;;  %v6096_v56 = vmul.f32 0.00390625, %v5936_v22  ;;  %v4939_v4 = vld [vmem:[#allocation2 + $0x1a8] sm:$0xff]  ;;  %v4938_v30 = vld [vmem:[#allocation2 + $0x1a0] sm:$0xff]  ;;  %v15542_v14 = vld [vmem:[#allocation101_spill] sm:$0xff]  ;;  %v13254_v36 = vpop.xlane.xlu0 %5218  ;;  %5425 = vadd.xlane.f32.xlu1 %v13190_v32 }
 0x3b9   : > { %v13218_v33 = vadd.f32 %v4823_v16, %v4822_v57  ;;  %v4826_v52 = vmul.f32 %v4506_v55, %v15535_v60  ;;  %v15539_v57 = vld [vmem:[#allocation94_spill] sm:$0xff]  ;;  %v5615_v16 = vadd.f32 %v12995_v45, %v4975_v8  ;;  %v5899_v55 = vld [vmem:[#allocation2 + $0x188] sm:$0xff]  ;;  %v15541_v17 = vld [vmem:[#allocation19_spill] sm:$0xff]  ;;  %6255 = vst.msk [vmem:[%s12201_s19 + $0x2a8] sm:$0xff] %vm205_vm1, %v6095_v34  ;;  %v5578_v34 = vadd.f32 %v13078_v1, %v4938_v30 }
 0x3ba   : > { %v4510_v54 = vunpack.c.l.bf16 %v15538_v18  ;;  %v15540_v5 = vmul.bf16 1065369472, %v15539_v57  ;;  %v15543_v43 = vld [vmem:[#allocation42_spill] sm:$0xff]  ;;  %6256 = vst.msk [vmem:[%s12201_s19 + $0x2b0] sm:$0xff] %vm205_vm1, %v6096_v56  ;;  %v6059_v45 = vmul.f32 0.00390625, %v5899_v55  ;;  %v5898_v8 = vld [vmem:[#allocation2 + $0x180] sm:$0xff]  ;;  %5428 = vadd.xlane.f32.xlu0 %v13168_v50 }
 0x3bb   : > { %v13233_v6 = vadd.f32 %v4827_v0, %v4826_v52  ;;  %v13239_v53 = vadd.f32 %v15543_v43, %v15542_v14  ;;  %v15544_v15 = vld [vmem:[#allocation22_spill] sm:$0xff]  ;;  %5776 = vst.msk [vmem:[#allocation2 + $0x2c8] sm:$0xff] %vm205_vm1, %v5615_v16  ;;  %v15545_v37 = vld [vmem:[#allocation136_spill] sm:$0xff]  ;;  %v15547_v60 = vld [vmem:[#allocation153_spill] sm:$0xff]  ;;  %v6058_v18 = vmul.f32 0.00390625, %v5898_v8  ;;  %v5216_v9 = vpop.xlane.xlu1 %5215 }
 0x3bc   : > { %v4511_v58 = vunpack.c.l.bf16 %v15540_v5  ;;  %v4830_v42 = vmul.f32 %v4510_v54, %v15541_v17  ;;  %v15546_v62 = vmul.bf16 1065369472, %v15545_v37  ;;  %v15548_v52 = vmul.bf16 1065369472, %v15547_v60  ;;  %v4977_v0 = vld [vmem:[#allocation2 + $0x2d8] sm:$0xff]  ;;  %v4978_v41 = vld [vmem:[#allocation2 + $0x2e0] sm:$0xff]  ;;  %5431 = vadd.xlane.f32.xlu1 %v13218_v33 }
 0x3bd   : > { %5777 = vst.msk [vmem:[#allocation2 + $0x2d0] sm:$0xff] %vm205_vm1, %v5616_v28  ;;  %v5579_v54 = vadd.f32 %v13037_v48, %v4939_v4  ;;  %v15549_v56 = vld [vmem:[#allocation8_spill] sm:$0xff]  ;;  %6219 = vst.msk [vmem:[%s12201_s19 + $0x188] sm:$0xff] %vm205_vm1, %v6059_v45  ;;  %v15551_v55 = vld [vmem:[#allocation86_spill] sm:$0xff]  ;;  %v5617_v45 = vadd.f32 %v13087_v31, %v4977_v0 }
 0x3be   : > { %v4831_v26 = vmul.f32 %v4511_v58, %v15544_v15  ;;  %v4514_v22 = vunpack.c.l.bf16 %v15546_v62  ;;  %v4515_v35 = vunpack.c.l.bf16 %v15548_v52  ;;  %v15550_v57 = vld [vmem:[#allocation44_spill] sm:$0xff]  ;;  %v5937_v58 = vld [vmem:[#allocation2 + $0x2b8] sm:$0xff]  ;;  %v15552_v14 = vld [vmem:[#allocation115_spill] sm:$0xff]  ;;  %6218 = vst.msk [vmem:[%s12201_s19 + $0x180] sm:$0xff] %vm205_vm1, %v6058_v18  ;;  %v5618_v15 = vadd.f32 %v13132_v25, %v4978_v41  ;;  %5434 = vadd.xlane.f32.xlu0 %v13195_v27 }
 0x3bf   : > { %v13262_v5 = vadd.f32 %v15550_v57, %v15549_v56  ;;  %v15553_v43 = vld [vmem:[#allocation146_spill] sm:$0xff]  ;;  %v6097_v48 = vmul.f32 0.00390625, %v5937_v58  ;;  %v5938_v1 = vld [vmem:[#allocation2 + $0x2c0] sm:$0xff]  ;;  %5740 = vst.msk [vmem:[#allocation2 + $0x1a8] sm:$0xff] %vm205_vm1, %v5579_v54  ;;  %5739 = vst.msk [vmem:[#allocation2 + $0x1a0] sm:$0xff] %vm205_vm1, %v5578_v34 }
 0x3c0   : > { %v13266_v16 = vadd.f32 %v4831_v26, %v4830_v42  ;;  %v4834_v17 = vmul.f32 %v4514_v22, %v15551_v55  ;;  %v4835_v21 = vmul.f32 %v4515_v35, %v15552_v14  ;;  %v15554_v8 = vmul.bf16 1065369472, %v15553_v43  ;;  %v15555_v4 = vld [vmem:[#allocation230_spill] sm:$0xff]  ;;  %v4940_v37 = vld [vmem:[#allocation2 + $0x1b0] sm:$0xff]  ;;  %v15558_v18 = vld [vmem:[#allocation48_spill] sm:$0xff]  ;;  %5778 = vst.msk [vmem:[#allocation2 + $0x2d8] sm:$0xff] %vm205_vm1, %v5617_v45  ;;  %5437 = vadd.xlane.f32.xlu1 %v13233_v6 }
 0x3c1   : > { %v15556_v30 = vmul.bf16 1065369472, %v15555_v4  ;;  %v4941_v26 = vld [vmem:[#allocation2 + $0x1b8] sm:$0xff]  ;;  %v6098_v62 = vmul.f32 0.00390625, %v5938_v1  ;;  %v15557_v52 = vld [vmem:[#allocation137_spill] sm:$0xff]  ;;  %v15559_v54 = vld [vmem:[#allocation163_spill] sm:$0xff] }
 0x3c2   : > { %v4518_v28 = vunpack.c.l.bf16 %v15554_v8  ;;  %v5901_v22 = vld [vmem:[#allocation2 + $0x198] sm:$0xff]  ;;  %v13281_v60 = vadd.f32 %v4835_v21, %v4834_v17  ;;  %v13286_v34 = vadd.f32 %v15559_v54, %v15558_v18  ;;  %6257 = vst.msk [vmem:[%s12201_s19 + $0x2b8] sm:$0xff] %vm205_vm1, %v6097_v48  ;;  %v5900_v25 = vld [vmem:[#allocation2 + $0x190] sm:$0xff]  ;;  %5779 = vst.msk [vmem:[#allocation2 + $0x2e0] sm:$0xff] %vm205_vm1, %v5618_v15  ;;  %v5581_v8 = vadd.f32 %v13145_v49, %v4941_v26 }
 0x3c3   : > { %v4519_v42 = vunpack.c.l.bf16 %v15556_v30  ;;  %v6061_v31 = vmul.f32 0.00390625, %v5901_v22  ;;  %v15560_v0 = vld [vmem:[#allocation97_spill] sm:$0xff]  ;;  %v15561_v41 = vld [vmem:[#allocation52_spill] sm:$0xff]  ;;  %6258 = vst.msk [vmem:[%s12201_s19 + $0x2c0] sm:$0xff] %vm205_vm1, %v6098_v62  ;;  %v6060_v43 = vmul.f32 0.00390625, %v5900_v25  ;;  %v15565_v48 = vld [vmem:[#allocation50_spill] sm:$0xff]  ;;  %v5333_v30 = vpop.xlane.xlu0 %5332  ;;  %5440 = vadd.xlane.f32.xlu0 %v13215_v46 }
 0x3c4   : > { %v4838_v35 = vmul.f32 %v4518_v28, %v15557_v52  ;;  %v15562_v56 = vmul.bf16 1065369472, %v15561_v41  ;;  %v15563_v58 = vld [vmem:[#allocation16_spill] sm:$0xff]  ;;  %v4980_v21 = vld [vmem:[#allocation2 + $0x2f0] sm:$0xff]  ;;  %v5580_v28 = vadd.f32 %v13186_v2, %v4940_v37  ;;  %v15569_v62 = vld [vmem:[#allocation159_spill] sm:$0xff]  ;;  %5742 = vst.msk [vmem:[#allocation2 + $0x1b8] sm:$0xff] %vm205_vm1, %v5581_v8  ;;  %5443 = vadd.xlane.f32.xlu1 %v13266_v16 }
 0x3c5   : > { %v4839_v23 = vmul.f32 %v4519_v42, %v15560_v0  ;;  %v15564_v55 = vmul.bf16 1065369472, %v15563_v58  ;;  %v4979_v14 = vld [vmem:[#allocation2 + $0x2e8] sm:$0xff]  ;;  %v15566_v1 = vld [vmem:[#allocation49_spill] sm:$0xff]  ;;  %6221 = vst.msk [vmem:[%s12201_s19 + $0x198] sm:$0xff] %vm205_vm1, %v6061_v31  ;;  %6220 = vst.msk [vmem:[%s12201_s19 + $0x190] sm:$0xff] %vm205_vm1, %v6060_v43 }
 0x3c6   : > { %v4522_v57 = vunpack.c.l.bf16 %v15562_v56  ;;  %v13304_v4 = vadd.f32 %v15566_v1, %v15565_v48  ;;  %v5939_v42 = vld [vmem:[#allocation2 + $0x2c8] sm:$0xff]  ;;  %v15570_v54 = vmul.bf16 1065369472, %v15569_v62  ;;  %v5940_v26 = vld [vmem:[#allocation2 + $0x2d0] sm:$0xff]  ;;  %5741 = vst.msk [vmem:[#allocation2 + $0x1b0] sm:$0xff] %vm205_vm1, %v5580_v28  ;;  %v15571_v37 = vld [vmem:[#allocation119_spill] sm:$0xff]  ;;  %v5619_v0 = vadd.f32 %v13197_v61, %v4979_v14 }
 0x3c7   : > { %v4523_v17 = vunpack.c.l.bf16 %v15564_v55  ;;  %v13308_v45 = vadd.f32 %v4839_v23, %v4838_v35  ;;  %v15567_v15 = vld [vmem:[#allocation140_spill] sm:$0xff]  ;;  %v6099_v2 = vmul.f32 0.00390625, %v5939_v42  ;;  %v15572_v35 = vmul.bf16 1065369472, %v15571_v37  ;;  %v4942_v41 = vld [vmem:[#allocation2 + $0x1c0] sm:$0xff]  ;;  %v15574_v55 = vld [vmem:[#allocation18_spill] sm:$0xff]  ;;  %v5336_v37 = vpop.xlane.xlu1 %5335  ;;  %5446 = vadd.xlane.f32.xlu0 %v13239_v53 }
 0x3c8   : > { %v4842_v22 = vmul.f32 %v4522_v57, %v15567_v15  ;;  %v15568_v52 = vld [vmem:[#allocation164_spill] sm:$0xff]  ;;  %v4526_v25 = vunpack.c.l.bf16 %v15570_v54  ;;  %v5620_v23 = vadd.f32 %v13241_v13, %v4980_v21  ;;  %v6100_v51 = vmul.f32 0.00390625, %v5940_v26  ;;  %v15573_v57 = vld [vmem:[#allocation99_spill] sm:$0xff]  ;;  %v15576_v61 = vld [vmem:[#allocation110_spill] sm:$0xff]  ;;  %5780 = vst.msk [vmem:[#allocation2 + $0x2e8] sm:$0xff] %vm205_vm1, %v5619_v0  ;;  %5449 = vadd.xlane.f32.xlu1 %v13281_v60 }
 0x3c9   : > { %v4843_v18 = vmul.f32 %v4523_v17, %v15568_v52  ;;  %v4943_v49 = vld [vmem:[#allocation2 + $0x1c8] sm:$0xff]  ;;  %v4527_v31 = vunpack.c.l.bf16 %v15572_v35  ;;  %v15575_v17 = vld [vmem:[#allocation57_spill] sm:$0xff]  ;;  %6259 = vst.msk [vmem:[%s12201_s19 + $0x2c8] sm:$0xff] %vm205_vm1, %v6099_v2  ;;  %v5902_v28 = vld [vmem:[#allocation2 + $0x1a0] sm:$0xff]  ;;  %v5582_v62 = vadd.f32 %v5216_v9, %v4942_v41 }
 0x3ca   : > { %v4846_v58 = vmul.f32 %v4526_v25, %v15573_v57  ;;  %v13329_v43 = vadd.f32 %v15575_v17, %v15574_v55  ;;  %v5903_v8 = vld [vmem:[#allocation2 + $0x1a8] sm:$0xff]  ;;  %5781 = vst.msk [vmem:[#allocation2 + $0x2f0] sm:$0xff] %vm205_vm1, %v5620_v23  ;;  %v15577_v63 = vld [vmem:[#allocation53_spill] sm:$0xff]  ;;  %v15579_v48 = vld [vmem:[#allocation102_spill] sm:$0xff]  ;;  %v5583_v15 = vadd.f32 %v13254_v36, %v4943_v49  ;;  %v5225_v17 = vpop.xlane.xlu0 %5224 }
 0x3cb   : > { %v13324_v56 = vadd.f32 %v4843_v18, %v4842_v22  ;;  %v4847_v14 = vmul.f32 %v4527_v31, %v15576_v61  ;;  %v15578_v13 = vmul.bf16 1065369472, %v15577_v63  ;;  %v15580_v1 = vmul.bf16 1065369472, %v15579_v48  ;;  %v4981_v22 = vld [vmem:[#allocation2 + $0x2f8] sm:$0xff]  ;;  %6260 = vst.msk [vmem:[%s12201_s19 + $0x2d0] sm:$0xff] %vm205_vm1, %v6100_v51  ;;  %5452 = vadd.xlane.f32.xlu0 %v13262_v5 }
 0x3cc   : > { %v6063_v52 = vmul.f32 0.00390625, %v5903_v8  ;;  %v6062_v18 = vmul.f32 0.00390625, %v5902_v28  ;;  %v15581_v54 = vld [vmem:[#allocation95_spill] sm:$0xff]  ;;  %v15582_v25 = vld [vmem:[#allocation145_spill] sm:$0xff]  ;;  %v5941_v35 = vld [vmem:[#allocation2 + $0x2d8] sm:$0xff]  ;;  %5744 = vst.msk [vmem:[#allocation2 + $0x1c8] sm:$0xff] %vm205_vm1, %v5583_v15  ;;  %5455 = vadd.xlane.f32.xlu1 %v13308_v45 }
 0x3cd   : > { %v4530_v21 = vunpack.c.l.bf16 %v15578_v13  ;;  %v4531_v42 = vunpack.c.l.bf16 %v15580_v1  ;;  %v13345_v2 = vadd.f32 %v15582_v25, %v15581_v54  ;;  %v4982_v26 = vld [vmem:[#allocation2 + $0x300] sm:$0xff]  ;;  %v13348_v0 = vadd.f32 %v4847_v14, %v4846_v58  ;;  %v4945_v55 = vld [vmem:[#allocation2 + $0x1d8] sm:$0xff]  ;;  %5743 = vst.msk [vmem:[#allocation2 + $0x1c0] sm:$0xff] %vm205_vm1, %v5582_v62  ;;  %v15589_v13 = vld [vmem:[#allocation152_spill] sm:$0xff] }
 0x3ce   : > { %v5942_v31 = vld [vmem:[#allocation2 + $0x2e0] sm:$0xff]  ;;  %6223 = vst.msk [vmem:[%s12201_s19 + $0x1a8] sm:$0xff] %vm205_vm1, %v6063_v52  ;;  %6222 = vst.msk [vmem:[%s12201_s19 + $0x1a0] sm:$0xff] %vm205_vm1, %v6062_v18  ;;  %v6101_v32 = vmul.f32 0.00390625, %v5941_v35  ;;  %v5621_v14 = vadd.f32 %v5333_v30, %v4981_v22  ;;  %v5622_v48 = vadd.f32 %v5336_v37, %v4982_v26  ;;  %v15590_v1 = vld [vmem:[#allocation40_spill] sm:$0xff]  ;;  %v5585_v37 = vadd.f32 %v5225_v17, %v4945_v55 }
 0x3cf   : > { %v15583_v36 = vld [vmem:[#allocation43_spill] sm:$0xff]  ;;  %v6102_v58 = vmul.f32 0.00390625, %v5942_v31  ;;  %v5905_v15 = vld [vmem:[#allocation2 + $0x1b8] sm:$0xff]  ;;  %v5904_v52 = vld [vmem:[#allocation2 + $0x1b0] sm:$0xff]  ;;  %5458 = vadd.xlane.f32.xlu0 %v13286_v34 }
 0x3d0   : > { %v4850_v49 = vmul.f32 %v4530_v21, %v15583_v36  ;;  %v15584_v23 = vld [vmem:[#allocation107_spill] sm:$0xff]  ;;  %6261 = vst.msk [vmem:[%s12201_s19 + $0x2d8] sm:$0xff] %vm205_vm1, %v6101_v32  ;;  %v15592_v18 = vld [vmem:[#allocation160_spill] sm:$0xff]  ;;  %5782 = vst.msk [vmem:[#allocation2 + $0x2f8] sm:$0xff] %vm205_vm1, %v5621_v14  ;;  %v6065_v36 = vmul.f32 0.00390625, %v5905_v15  ;;  %v5222_v14 = vpop.xlane.xlu1 %5221  ;;  %5461 = vadd.xlane.f32.xlu1 %v13324_v56 }
 0x3d1   : > { %v4851_v51 = vmul.f32 %v4531_v42, %v15584_v23  ;;  %v15585_v9 = vld [vmem:[#allocation91_spill] sm:$0xff]  ;;  %v15591_v42 = vld [vmem:[#allocation60_spill] sm:$0xff]  ;;  %6262 = vst.msk [vmem:[%s12201_s19 + $0x2e0] sm:$0xff] %vm205_vm1, %v6102_v58  ;;  %v15593_v30 = vld [vmem:[#allocation106_spill] sm:$0xff] }
 0x3d2   : > { %v15586_v41 = vmul.bf16 1065369472, %v15585_v9  ;;  %v15587_v8 = vld [vmem:[#allocation131_spill] sm:$0xff]  ;;  %v13368_v50 = vadd.f32 %v15591_v42, %v15590_v1  ;;  %v15594_v22 = vmul.bf16 1065369472, %v15593_v30  ;;  %v15595_v25 = vld [vmem:[#allocation109_spill] sm:$0xff] }
 0x3d3   : > { %v15588_v28 = vmul.bf16 1065369472, %v15587_v8  ;;  %v13363_v63 = vadd.f32 %v4851_v51, %v4850_v49  ;;  %v15596_v35 = vmul.bf16 1065369472, %v15595_v25  ;;  %v4944_v31 = vld [vmem:[#allocation2 + $0x1d0] sm:$0xff]  ;;  %v6064_v49 = vmul.f32 0.00390625, %v5904_v52  ;;  %5464 = vadd.xlane.f32.xlu0 %v13304_v4 }
 0x3d4   : > { %v4534_v57 = vunpack.c.l.bf16 %v15586_v41  ;;  %v4538_v54 = vunpack.c.l.bf16 %v15594_v22  ;;  %5783 = vst.msk [vmem:[#allocation2 + $0x300] sm:$0xff] %vm205_vm1, %v5622_v48  ;;  %v15597_v23 = vld [vmem:[#allocation123_spill] sm:$0xff]  ;;  %v15598_v51 = vld [vmem:[#allocation177_spill] sm:$0xff]  ;;  %v5943_v58 = vld [vmem:[#allocation2 + $0x2e8] sm:$0xff]  ;;  %5467 = vadd.xlane.f32.xlu1 %v13348_v0 }
 0x3d5   : > { %v4535_v61 = vunpack.c.l.bf16 %v15588_v28  ;;  %v4539_v26 = vunpack.c.l.bf16 %v15596_v35  ;;  %v13384_v9 = vadd.f32 %v15598_v51, %v15597_v23  ;;  %v15599_v41 = vld [vmem:[#allocation65_spill] sm:$0xff]  ;;  %v15601_v8 = vld [vmem:[#allocation55_spill] sm:$0xff]  ;;  %v15602_v28 = vld [vmem:[#allocation128_spill] sm:$0xff]  ;;  %5746 = vst.msk [vmem:[#allocation2 + $0x1d8] sm:$0xff] %vm205_vm1, %v5585_v37  ;;  %v6103_v27 = vmul.f32 0.00390625, %v5943_v58 }
 0x3d6   : > { %v4854_v21 = vmul.f32 %v4534_v57, %v15589_v13  ;;  %v15600_v57 = vmul.bf16 1065369472, %v15599_v41  ;;  %v5944_v55 = vld [vmem:[#allocation2 + $0x2f0] sm:$0xff]  ;;  %v4858_v33 = vmul.f32 %v4538_v54, %v15601_v8  ;;  %v15603_v13 = vld [vmem:[#allocation11_spill] sm:$0xff]  ;;  %6225 = vst.msk [vmem:[%s12201_s19 + $0x1b8] sm:$0xff] %vm205_vm1, %v6065_v36  ;;  %6224 = vst.msk [vmem:[%s12201_s19 + $0x1b0] sm:$0xff] %vm205_vm1, %v6064_v49  ;;  %v5339_v41 = vpop.xlane.xlu0 %5338 }
 0x3d7   : > { %v4855_v62 = vmul.f32 %v4535_v61, %v15592_v18  ;;  %v4859_v61 = vmul.f32 %v4539_v26, %v15602_v28  ;;  %v15604_v48 = vmul.bf16 1065369472, %v15603_v13  ;;  %v6104_v42 = vmul.f32 0.00390625, %v5944_v55  ;;  %v15605_v15 = vld [vmem:[#allocation120_spill] sm:$0xff]  ;;  %v4984_v25 = vld [vmem:[#allocation2 + $0x310] sm:$0xff]  ;;  %v15609_v23 = vld [vmem:[#allocation190_spill] sm:$0xff]  ;;  %5470 = vadd.xlane.f32.xlu0 %v13329_v43 }
 0x3d8   : > { %v4542_v32 = vunpack.c.l.bf16 %v15600_v57  ;;  %v4983_v18 = vld [vmem:[#allocation2 + $0x308] sm:$0xff]  ;;  %v15607_v35 = vld [vmem:[#allocation141_spill] sm:$0xff]  ;;  %v15610_v36 = vmul.bf16 1065369472, %v15609_v23  ;;  %6263 = vst.msk [vmem:[%s12201_s19 + $0x2e8] sm:$0xff] %vm205_vm1, %v6103_v27  ;;  %v5906_v49 = vld [vmem:[#allocation2 + $0x1c0] sm:$0xff]  ;;  %5473 = vadd.xlane.f32.xlu1 %v13363_v63 }
 0x3d9   : > { %v13389_v17 = vadd.f32 %v4855_v62, %v4854_v21  ;;  %v4543_v1 = vunpack.c.l.bf16 %v15604_v48  ;;  %v5584_v21 = vadd.f32 %v5222_v14, %v4944_v31  ;;  %v5907_v62 = vld [vmem:[#allocation2 + $0x1c8] sm:$0xff]  ;;  %v13401_v30 = vadd.f32 %v4859_v61, %v4858_v33  ;;  %v15608_v26 = vld [vmem:[#allocation121_spill] sm:$0xff]  ;;  %6264 = vst.msk [vmem:[%s12201_s19 + $0x2f0] sm:$0xff] %vm205_vm1, %v6104_v42  ;;  %v15611_v57 = vld [vmem:[#allocation138_spill] sm:$0xff] }
 0x3da   : > { %v4862_v52 = vmul.f32 %v4542_v32, %v15605_v15  ;;  %v15606_v22 = vld [vmem:[#allocation100_spill] sm:$0xff]  ;;  %v13406_v37 = vadd.f32 %v15608_v26, %v15607_v35  ;;  %v4546_v51 = vunpack.c.l.bf16 %v15610_v36  ;;  %v6067_v31 = vmul.f32 0.00390625, %v5907_v62  ;;  %v15613_v55 = vld [vmem:[#allocation182_spill] sm:$0xff]  ;;  %v15614_v8 = vld [vmem:[#allocation5_spill] sm:$0xff] }
 0x3db   : > { %v4863_v54 = vmul.f32 %v4543_v1, %v15606_v22  ;;  %5745 = vst.msk [vmem:[#allocation2 + $0x1d0] sm:$0xff] %vm205_vm1, %v5584_v21  ;;  %v15612_v32 = vmul.bf16 1065369472, %v15611_v57  ;;  %v13420_v33 = vadd.f32 %v15614_v8, %v15613_v55  ;;  %v15615_v28 = vld [vmem:[#allocation191_spill] sm:$0xff]  ;;  %v6066_v14 = vmul.f32 0.00390625, %v5906_v49  ;;  %v5342_v1 = vpop.xlane.xlu1 %5341  ;;  %v5945_v21 = vld [vmem:[#allocation2 + $0x2f8] sm:$0xff]  ;;  %5476 = vadd.xlane.f32.xlu0 %v13345_v2 }
 0x3dc   : > { %v15616_v6 = vmul.bf16 1065369472, %v15615_v28  ;;  %v5623_v48 = vadd.f32 %v5339_v41, %v4983_v18  ;;  %v15617_v27 = vld [vmem:[#allocation35_spill] sm:$0xff]  ;;  %6227 = vst.msk [vmem:[%s12201_s19 + $0x1c8] sm:$0xff] %vm205_vm1, %v6067_v31  ;;  %v5624_v15 = vadd.f32 %v5342_v1, %v4984_v25  ;;  %v15618_v62 = vld [vmem:[#allocation173_spill] sm:$0xff]  ;;  %v4947_v35 = vld [vmem:[#allocation2 + $0x1e8] sm:$0xff]  ;;  %5479 = vadd.xlane.f32.xlu1 %v13389_v17 }
 0x3dd   : > { %v4547_v58 = vunpack.c.l.bf16 %v15612_v32  ;;  %v13425_v13 = vadd.f32 %v4863_v54, %v4862_v52  ;;  %v4866_v42 = vmul.f32 %v4546_v51, %v15617_v27  ;;  %v15619_v26 = vld [vmem:[#allocation30_spill] sm:$0xff]  ;;  %v15621_v57 = vld [vmem:[#allocation59_spill] sm:$0xff]  ;;  %6226 = vst.msk [vmem:[%s12201_s19 + $0x1c0] sm:$0xff] %vm205_vm1, %v6066_v14  ;;  %v6105_v46 = vmul.f32 0.00390625, %v5945_v21  ;;  %v15624_v25 = vld [vmem:[#allocation37_spill] sm:$0xff] }
 0x3de   : > { %v4550_v61 = vunpack.c.l.bf16 %v15616_v6  ;;  %v15620_v23 = vmul.bf16 1065369472, %v15619_v26  ;;  %v5946_v52 = vld [vmem:[#allocation2 + $0x300] sm:$0xff]  ;;  %5784 = vst.msk [vmem:[#allocation2 + $0x308] sm:$0xff] %vm205_vm1, %v5623_v48  ;;  %v15622_v18 = vld [vmem:[#allocation214_spill] sm:$0xff]  ;;  %5785 = vst.msk [vmem:[#allocation2 + $0x310] sm:$0xff] %vm205_vm1, %v5624_v15  ;;  %v5231_v6 = vpop.xlane.xlu0 %5230  ;;  %v13452_v48 = vadd.f32 %v12805_v44, %v12787_v11  ;;  %v4559_v11 = vunpack.c.l.bf16 %v4241_v20 }
 0x3df   : > { %v4867_v22 = vmul.f32 %v4547_v58, %v15618_v62  ;;  %v15623_v54 = vld [vmem:[#allocation10_spill] sm:$0xff]  ;;  %v15625_v31 = vmul.bf16 1065369472, %v15624_v25  ;;  %v15626_v41 = vmul.bf16 1065369472, %v12776_v47  ;;  %v6106_v55 = vmul.f32 0.00390625, %v5946_v52  ;;  %v5228_v5 = vpop.xlane.xlu1 %5227  ;;  %5482 = vadd.xlane.f32.xlu0 %v13368_v50 }
 0x3e0   : > { %v4551_v36 = vunpack.c.l.bf16 %v15620_v23  ;;  %v4870_v32 = vmul.f32 %v4550_v61, %v15621_v57  ;;  %v13439_v51 = vadd.f32 %v15623_v54, %v15622_v18  ;;  %v5909_v8 = vld [vmem:[#allocation2 + $0x1d8] sm:$0xff]  ;;  %6265 = vst.msk [vmem:[%s12201_s19 + $0x2f8] sm:$0xff] %vm205_vm1, %v6105_v46  ;;  %v5587_v16 = vadd.f32 %v5231_v6, %v4947_v35  ;;  %v15629_v21 = vld [vmem:[#allocation67_spill] sm:$0xff]  ;;  %v4948_v4 = vld [vmem:[#allocation2 + $0x1f0] sm:$0xff]  ;;  %5485 = vadd.xlane.f32.xlu1 %v13401_v30 }
 0x3e1   : > { %v4554_v49 = vunpack.c.l.bf16 %v15625_v31  ;;  %v4555_v58 = vunpack.c.l.bf16 %v15626_v41  ;;  %v13447_v28 = vadd.f32 %v4867_v22, %v4866_v42  ;;  %v15627_v61 = vld [vmem:[#allocation250_spill] sm:$0xff]  ;;  %v6069_v47 = vmul.f32 0.00390625, %v5909_v8  ;;  %6266 = vst.msk [vmem:[%s12201_s19 + $0x300] sm:$0xff] %vm205_vm1, %v6106_v55  ;;  %v4986_v25 = vld [vmem:[#allocation2 + $0x320] sm:$0xff]  ;;  %v4987_v63 = vld [vmem:[#allocation2 + $0x328] sm:$0xff] }
 0x3e2   : > { %v4871_v14 = vmul.f32 %v4551_v36, %v15627_v61  ;;  %v15628_v1 = vld [vmem:[#allocation150_spill] sm:$0xff]  ;;  %v4558_v62 = vunpack.c.l.bf16 %v4239_v7  ;;  %v13469_v44 = vadd.f32 %v12916_v38, %v12890_v59  ;;  %v5908_v53 = vld [vmem:[#allocation2 + $0x1d0] sm:$0xff]  ;;  %5748 = vst.msk [vmem:[#allocation2 + $0x1e8] sm:$0xff] %vm205_vm1, %v5587_v16  ;;  %v4562_v35 = vunpack.c.l.bf16 %v4243_v19  ;;  %v5345_v31 = vpop.xlane.xlu0 %5344  ;;  %v4951_v50 = vld [vmem:[#allocation2 + $0x208] sm:$0xff] }
 0x3e3   : > { %v4874_v27 = vmul.f32 %v4554_v49, %v15628_v1  ;;  %v4875_v15 = vmul.f32 %v4555_v58, %v15629_v21  ;;  %6229 = vst.msk [vmem:[%s12201_s19 + $0x1d8] sm:$0xff] %vm205_vm1, %v6069_v47  ;;  %v13482_v7 = vadd.f32 %v13040_v24, %v13012_v29  ;;  %v6068_v10 = vmul.f32 0.00390625, %v5908_v53  ;;  %v15630_v59 = vld [vmem:[#allocation198_spill] sm:$0xff]  ;;  %v15631_v38 = vld [vmem:[#allocation201_spill] sm:$0xff]  ;;  %v4946_v29 = vld [vmem:[#allocation2 + $0x1e0] sm:$0xff]  ;;  %v5348_v34 = vpop.xlane.xlu1 %5347  ;;  %5488 = vadd.xlane.f32.xlu0 %v13384_v9 }
 0x3e4   : > { %v13461_v42 = vadd.f32 %v4871_v14, %v4870_v32  ;;  %v4878_v20 = vmul.f32 %v4558_v62, %v15630_v59  ;;  %v4879_v26 = vmul.f32 %v4559_v11, %v15631_v38  ;;  %v15632_v23 = vld [vmem:[#allocation38_spill] sm:$0xff]  ;;  %v15633_v19 = vld [vmem:[#allocation25_spill] sm:$0xff]  ;;  %v5586_v46 = vadd.f32 %v5228_v5, %v4946_v29  ;;  %5491 = vadd.xlane.f32.xlu1 %v13425_v13  ;;  %v4950_v9 = vld [vmem:[#allocation2 + $0x200] sm:$0xff] }
 0x3e5   : > { %v13474_v22 = vadd.f32 %v4875_v15, %v4874_v27  ;;  %v4882_v40 = vmul.f32 %v4562_v35, %v15632_v23  ;;  %v4883_v3 = vmul.f32 %v4563_v12, %v15633_v19  ;;  %6228 = vst.msk [vmem:[%s12201_s19 + $0x1d0] sm:$0xff] %vm205_vm1, %v6068_v10  ;;  %v5947_v39 = vld [vmem:[#allocation2 + $0x308] sm:$0xff]  ;;  %v5948_v36 = vld [vmem:[#allocation2 + $0x310] sm:$0xff]  ;;  %v4985_v18 = vld [vmem:[#allocation2 + $0x318] sm:$0xff]  ;;  %v5626_v49 = vadd.f32 %v5348_v34, %v4986_v25 }
 0x3e6   : > { %v13492_v24 = vadd.f32 %v4879_v26, %v4878_v20  ;;  %v6107_v60 = vmul.f32 0.00390625, %v5947_v39  ;;  %v6108_v32 = vmul.f32 0.00390625, %v5948_v36  ;;  %5747 = vst.msk [vmem:[#allocation2 + $0x1e0] sm:$0xff] %vm205_vm1, %v5586_v46  ;;  %v5625_v45 = vadd.f32 %v5345_v31, %v4985_v18  ;;  %v4949_v41 = vld [vmem:[#allocation2 + $0x1f8] sm:$0xff]  ;;  %v5237_v58 = vpop.xlane.xlu0 %5236  ;;  %v4988_v16 = vld [vmem:[#allocation2 + $0x330] sm:$0xff]  ;;  %v4990_v26 = vld [vmem:[#allocation2 + $0x340] sm:$0xff] }
 0x3e7   : > { %v13494_v57 = vadd.f32 %v4883_v3, %v4882_v40  ;;  %5787 = vst.msk [vmem:[#allocation2 + $0x320] sm:$0xff] %vm205_vm1, %v5626_v49  ;;  %v5589_v56 = vadd.f32 %v5237_v58, %v4949_v41  ;;  %v5234_v6 = vpop.xlane.xlu1 %5233  ;;  %5494 = vadd.xlane.f32.xlu0 %v13406_v37  ;;  %v4989_v37 = vld [vmem:[#allocation2 + $0x338] sm:$0xff]  ;;  %v4991_v5 = vld [vmem:[#allocation2 + $0x348] sm:$0xff] }
 0x3e8   : > { %6267 = vst.msk [vmem:[%s12201_s19 + $0x308] sm:$0xff] %vm205_vm1, %v6107_v60  ;;  %6268 = vst.msk [vmem:[%s12201_s19 + $0x310] sm:$0xff] %vm205_vm1, %v6108_v32  ;;  %v5588_v0 = vadd.f32 %v5234_v6, %v4948_v4  ;;  %5497 = vadd.xlane.f32.xlu1 %v13447_v28  ;;  %v4953_v19 = vld [vmem:[#allocation2 + $0x218] sm:$0xff]  ;;  %v4955_v31 = vld [vmem:[#allocation2 + $0x228] sm:$0xff] }
 0x3e9   : > { %v5911_v52 = vld [vmem:[#allocation2 + $0x1e8] sm:$0xff]  ;;  %5786 = vst.msk [vmem:[#allocation2 + $0x318] sm:$0xff] %vm205_vm1, %v5625_v45  ;;  %5750 = vst.msk [vmem:[#allocation2 + $0x1f8] sm:$0xff] %vm205_vm1, %v5589_v56 }
 0x3ea   : > { %v6071_v54 = vmul.f32 0.00390625, %v5911_v52  ;;  %5749 = vst.msk [vmem:[#allocation2 + $0x1f0] sm:$0xff] %vm205_vm1, %v5588_v0  ;;  %v5351_v27 = vpop.xlane.xlu0 %5350  ;;  %v4992_v52 = vld [vmem:[#allocation2 + $0x350] sm:$0xff] }
 0x3eb   : > { %v5627_v21 = vadd.f32 %v5351_v27, %v4987_v63  ;;  %v5354_v15 = vpop.xlane.xlu1 %5353  ;;  %5500 = vadd.xlane.f32.xlu0 %v13420_v33  ;;  %v4957_v63 = vld [vmem:[#allocation2 + $0x238] sm:$0xff] }
 0x3ec   : > { %6231 = vst.msk [vmem:[%s12201_s19 + $0x1e8] sm:$0xff] %vm205_vm1, %v6071_v54  ;;  %v5628_v17 = vadd.f32 %v5354_v15, %v4988_v16  ;;  %5503 = vadd.xlane.f32.xlu1 %v13461_v42 }
 0x3ed   : > { %v5910_v55 = vld [vmem:[#allocation2 + $0x1e0] sm:$0xff]  ;;  %5788 = vst.msk [vmem:[#allocation2 + $0x328] sm:$0xff] %vm205_vm1, %v5627_v21 }
 0x3ee   : > { %v6070_v8 = vmul.f32 0.00390625, %v5910_v55  ;;  %v5950_v47 = vld [vmem:[#allocation2 + $0x320] sm:$0xff]  ;;  %5789 = vst.msk [vmem:[#allocation2 + $0x330] sm:$0xff] %vm205_vm1, %v5628_v17  ;;  %v5243_v53 = vpop.xlane.xlu0 %5242  ;;  %v4956_v17 = vld [vmem:[#allocation2 + $0x230] sm:$0xff] }
 0x3ef   : > { %v6110_v43 = vmul.f32 0.00390625, %v5950_v47  ;;  %v5591_v35 = vadd.f32 %v5243_v53, %v4951_v50  ;;  %v5240_v12 = vpop.xlane.xlu1 %5239  ;;  %5506 = vadd.xlane.f32.xlu0 %v13439_v51  ;;  %v4954_v55 = vld [vmem:[#allocation2 + $0x220] sm:$0xff]  ;;  %v4995_v50 = vld [vmem:[#allocation2 + $0x368] sm:$0xff] }
 0x3f0   : > { %6230 = vst.msk [vmem:[%s12201_s19 + $0x1e0] sm:$0xff] %vm205_vm1, %v6070_v8  ;;  %v5949_v61 = vld [vmem:[#allocation2 + $0x318] sm:$0xff]  ;;  %v5590_v20 = vadd.f32 %v5240_v12, %v4950_v9  ;;  %5509 = vadd.xlane.f32.xlu1 %v13474_v22 }
 0x3f1   : > { %v6109_v14 = vmul.f32 0.00390625, %v5949_v61  ;;  %6270 = vst.msk [vmem:[%s12201_s19 + $0x320] sm:$0xff] %vm205_vm1, %v6110_v43  ;;  %v5913_v2 = vld [vmem:[#allocation2 + $0x1f8] sm:$0xff]  ;;  %v5912_v62 = vld [vmem:[#allocation2 + $0x1f0] sm:$0xff]  ;;  %5752 = vst.msk [vmem:[#allocation2 + $0x208] sm:$0xff] %vm205_vm1, %v5591_v35 }
 0x3f2   : > { %v6073_v1 = vmul.f32 0.00390625, %v5913_v2  ;;  %v6072_v11 = vmul.f32 0.00390625, %v5912_v62  ;;  %5751 = vst.msk [vmem:[#allocation2 + $0x200] sm:$0xff] %vm205_vm1, %v5590_v20  ;;  %v5357_v38 = vpop.xlane.xlu0 %5356  ;;  %v4993_v8 = vld [vmem:[#allocation2 + $0x358] sm:$0xff]  ;;  %v4994_v43 = vld [vmem:[#allocation2 + $0x360] sm:$0xff] }
 0x3f3   : > { %6269 = vst.msk [vmem:[%s12201_s19 + $0x318] sm:$0xff] %vm205_vm1, %v6109_v14  ;;  %v5629_v23 = vadd.f32 %v5357_v38, %v4989_v37  ;;  %v5360_v42 = vpop.xlane.xlu1 %5359  ;;  %5512 = vadd.xlane.f32.xlu0 %v13452_v48  ;;  %v4952_v48 = vld [vmem:[#allocation2 + $0x210] sm:$0xff] }
 0x3f4   : > { %6233 = vst.msk [vmem:[%s12201_s19 + $0x1f8] sm:$0xff] %vm205_vm1, %v6073_v1  ;;  %6232 = vst.msk [vmem:[%s12201_s19 + $0x1f0] sm:$0xff] %vm205_vm1, %v6072_v11  ;;  %v5951_v30 = vld [vmem:[#allocation2 + $0x328] sm:$0xff]  ;;  %v5630_v40 = vadd.f32 %v5360_v42, %v4990_v26  ;;  %5515 = vadd.xlane.f32.xlu1 %v13492_v24  ;;  %v4958_v26 = vld [vmem:[#allocation2 + $0x240] sm:$0xff] }
 0x3f5   : > { %v6111_v10 = vmul.f32 0.00390625, %v5951_v30  ;;  %v5952_v59 = vld [vmem:[#allocation2 + $0x330] sm:$0xff]  ;;  %5790 = vst.msk [vmem:[#allocation2 + $0x338] sm:$0xff] %vm205_vm1, %v5629_v23 }
 0x3f6   : > { %v6112_v13 = vmul.f32 0.00390625, %v5952_v59  ;;  %5791 = vst.msk [vmem:[#allocation2 + $0x340] sm:$0xff] %vm205_vm1, %v5630_v40  ;;  %v5249_v39 = vpop.xlane.xlu0 %5248  ;;  %v4996_v30 = vld [vmem:[#allocation2 + $0x370] sm:$0xff]  ;;  %v4959_v59 = vld [vmem:[#allocation2 + $0x248] sm:$0xff]  ;;  %v4997_v40 = vld [vmem:[#allocation2 + $0x378] sm:$0xff] }
 0x3f7   : > { %6271 = vst.msk [vmem:[%s12201_s19 + $0x328] sm:$0xff] %vm205_vm1, %v6111_v10  ;;  %5518 = vadd.xlane.f32.xlu0 %v13469_v44  ;;  %v5593_v22 = vadd.f32 %v5249_v39, %v4953_v19  ;;  %v5246_v36 = vpop.xlane.xlu1 %5245 }
 0x3f8   : > { %6272 = vst.msk [vmem:[%s12201_s19 + $0x330] sm:$0xff] %vm205_vm1, %v6112_v13  ;;  %v5915_v28 = vld [vmem:[#allocation2 + $0x208] sm:$0xff]  ;;  %5521 = vadd.xlane.f32.xlu1 %v13494_v57  ;;  %v5592_v32 = vadd.f32 %v5246_v36, %v4952_v48 }
 0x3f9   : > { %v6075_v33 = vmul.f32 0.00390625, %v5915_v28  ;;  %v5914_v51 = vld [vmem:[#allocation2 + $0x200] sm:$0xff]  ;;  %5754 = vst.msk [vmem:[#allocation2 + $0x218] sm:$0xff] %vm205_vm1, %v5593_v22 }
 0x3fa   : > { %v6074_v3 = vmul.f32 0.00390625, %v5914_v51  ;;  %5753 = vst.msk [vmem:[#allocation2 + $0x210] sm:$0xff] %vm205_vm1, %v5592_v32  ;;  %v5363_v46 = vpop.xlane.xlu0 %5362 }
 0x3fb   : > { %6235 = vst.msk [vmem:[%s12201_s19 + $0x208] sm:$0xff] %vm205_vm1, %v6075_v33  ;;  %5524 = vadd.xlane.f32.xlu0 %v13482_v7  ;;  %v5631_v57 = vadd.f32 %v5363_v46, %v4991_v5  ;;  %v5366_v54 = vpop.xlane.xlu1 %5365 }
 0x3fc   : > { %6234 = vst.msk [vmem:[%s12201_s19 + $0x200] sm:$0xff] %vm205_vm1, %v6074_v3  ;;  %v5953_v29 = vld [vmem:[#allocation2 + $0x338] sm:$0xff]  ;;  %v5632_v25 = vadd.f32 %v5366_v54, %v4992_v52 }
 0x3fd   : > { %v6113_v60 = vmul.f32 0.00390625, %v5953_v29  ;;  %v5954_v24 = vld [vmem:[#allocation2 + $0x340] sm:$0xff]  ;;  %5792 = vst.msk [vmem:[#allocation2 + $0x348] sm:$0xff] %vm205_vm1, %v5631_v57 }
 0x3fe   : > { %v6114_v44 = vmul.f32 0.00390625, %v5954_v24  ;;  %5793 = vst.msk [vmem:[#allocation2 + $0x350] sm:$0xff] %vm205_vm1, %v5632_v25  ;;  %v4998_v29 = vld [vmem:[#allocation2 + $0x380] sm:$0xff]  ;;  %v4961_v24 = vld [vmem:[#allocation2 + $0x258] sm:$0xff]  ;;  %v4999_v25 = vld [vmem:[#allocation2 + $0x388] sm:$0xff] }
 0x3ff   : > { %6273 = vst.msk [vmem:[%s12201_s19 + $0x338] sm:$0xff] %vm205_vm1, %v6113_v60  ;;  %v5255_v34 = vpop.xlane.xlu0 %5254 }
 0x400   : > { %6274 = vst.msk [vmem:[%s12201_s19 + $0x340] sm:$0xff] %vm205_vm1, %v6114_v44  ;;  %v5917_v18 = vld [vmem:[#allocation2 + $0x218] sm:$0xff]  ;;  %v5595_v41 = vadd.f32 %v5255_v34, %v4955_v31 }
 0x401   : > { %v6077_v7 = vmul.f32 0.00390625, %v5917_v18  ;;  %v5916_v45 = vld [vmem:[#allocation2 + $0x210] sm:$0xff] }
 0x402   : > { %v6076_v49 = vmul.f32 0.00390625, %v5916_v45  ;;  %5756 = vst.msk [vmem:[#allocation2 + $0x228] sm:$0xff] %vm205_vm1, %v5595_v41  ;;  %v4960_v18 = vld [vmem:[#allocation2 + $0x250] sm:$0xff] }
 0x403   : > { %6237 = vst.msk [vmem:[%s12201_s19 + $0x218] sm:$0xff] %vm205_vm1, %v6077_v7 }
 0x404   : > { %6236 = vst.msk [vmem:[%s12201_s19 + $0x210] sm:$0xff] %vm205_vm1, %v6076_v49  ;;  %v5955_v58 = vld [vmem:[#allocation2 + $0x348] sm:$0xff] }
 0x405   : > { %v6115_v56 = vmul.f32 0.00390625, %v5955_v58  ;;  %v5956_v4 = vld [vmem:[#allocation2 + $0x350] sm:$0xff] }
 0x406   : > { %v6116_v6 = vmul.f32 0.00390625, %v5956_v4 }
 0x407   : > { %6275 = vst.msk [vmem:[%s12201_s19 + $0x348] sm:$0xff] %vm205_vm1, %v6115_v56  ;;  %v5252_v0 = vpop.xlane.xlu1 %5251  ;;  %v5369_v14 = vpop.xlane.xlu0 %5368  ;;  %v5000_v56 = vld [vmem:[#allocation2 + $0x390] sm:$0xff] }
 0x408   : > { %v5594_v61 = vadd.f32 %v5252_v0, %v4954_v55  ;;  %6276 = vst.msk [vmem:[%s12201_s19 + $0x350] sm:$0xff] %vm205_vm1, %v6116_v6  ;;  %v5633_v47 = vadd.f32 %v5369_v14, %v4993_v8  ;;  %v4963_v8 = vld [vmem:[#allocation2 + $0x268] sm:$0xff] }
 0x409   : > { %v5919_v2 = vld [vmem:[#allocation2 + $0x228] sm:$0xff] }
 0x40a   : > { %5755 = vst.msk [vmem:[#allocation2 + $0x220] sm:$0xff] %vm205_vm1, %v5594_v61  ;;  %5794 = vst.msk [vmem:[#allocation2 + $0x358] sm:$0xff] %vm205_vm1, %v5633_v47  ;;  %v6079_v1 = vmul.f32 0.00390625, %v5919_v2 }
 0x40b   : > { %v5372_v16 = vpop.xlane.xlu1 %5371  ;;  %v5261_v21 = vpop.xlane.xlu0 %5260 }
 0x40c   : > { %v5634_v27 = vadd.f32 %v5372_v16, %v4994_v43  ;;  %v5597_v15 = vadd.f32 %v5261_v21, %v4957_v63  ;;  %6239 = vst.msk [vmem:[%s12201_s19 + $0x228] sm:$0xff] %vm205_vm1, %v6079_v1  ;;  %v4962_v63 = vld [vmem:[#allocation2 + $0x260] sm:$0xff]  ;;  %v5001_v1 = vld [vmem:[#allocation2 + $0x398] sm:$0xff] }
 0x40e   : > { %5795 = vst.msk [vmem:[#allocation2 + $0x360] sm:$0xff] %vm205_vm1, %v5634_v27  ;;  %5758 = vst.msk [vmem:[#allocation2 + $0x238] sm:$0xff] %vm205_vm1, %v5597_v15 }
 0x40f   : > { %v5258_v62 = vpop.xlane.xlu1 %5257  ;;  %v5375_v53 = vpop.xlane.xlu0 %5374 }
 0x410   : > { %v5596_v11 = vadd.f32 %v5258_v62, %v4956_v17  ;;  %v5635_v9 = vadd.f32 %v5375_v53, %v4995_v50 }
 0x411   : > { %v5918_v35 = vld [vmem:[#allocation2 + $0x220] sm:$0xff]  ;;  %v5957_v10 = vld [vmem:[#allocation2 + $0x358] sm:$0xff] }
 0x412   : > { %v6078_v12 = vmul.f32 0.00390625, %v5918_v35  ;;  %5757 = vst.msk [vmem:[#allocation2 + $0x230] sm:$0xff] %vm205_vm1, %v5596_v11  ;;  %v6117_v20 = vmul.f32 0.00390625, %v5957_v10  ;;  %5796 = vst.msk [vmem:[#allocation2 + $0x368] sm:$0xff] %vm205_vm1, %v5635_v9  ;;  %v5002_v11 = vld [vmem:[#allocation2 + $0x3a0] sm:$0xff]  ;;  %v4965_v9 = vld [vmem:[#allocation2 + $0x278] sm:$0xff] }
 0x413   : > { %v5378_v13 = vpop.xlane.xlu1 %5377 }
 0x414   : > { %6238 = vst.msk [vmem:[%s12201_s19 + $0x220] sm:$0xff] %vm205_vm1, %v6078_v12  ;;  %v5636_v37 = vadd.f32 %v5378_v13, %v4996_v30  ;;  %v5267_v28 = vpop.xlane.xlu0 %5266  ;;  %6277 = vst.msk [vmem:[%s12201_s19 + $0x358] sm:$0xff] %vm205_vm1, %v6117_v20 }
 0x415   : > { %v5958_v33 = vld [vmem:[#allocation2 + $0x360] sm:$0xff]  ;;  %v5599_v38 = vadd.f32 %v5267_v28, %v4959_v59  ;;  %v5921_v42 = vld [vmem:[#allocation2 + $0x238] sm:$0xff] }
 0x416   : > { %v6118_v23 = vmul.f32 0.00390625, %v5958_v33  ;;  %5797 = vst.msk [vmem:[#allocation2 + $0x370] sm:$0xff] %vm205_vm1, %v5636_v37  ;;  %v6081_v19 = vmul.f32 0.00390625, %v5921_v42  ;;  %v4964_v37 = vld [vmem:[#allocation2 + $0x270] sm:$0xff] }
 0x417   : > { %5760 = vst.msk [vmem:[#allocation2 + $0x248] sm:$0xff] %vm205_vm1, %v5599_v38  ;;  %v5264_v51 = vpop.xlane.xlu1 %5263  ;;  %v5003_v38 = vld [vmem:[#allocation2 + $0x3a8] sm:$0xff] }
 0x418   : > { %6278 = vst.msk [vmem:[%s12201_s19 + $0x360] sm:$0xff] %vm205_vm1, %v6118_v23  ;;  %v5598_v3 = vadd.f32 %v5264_v51, %v4958_v26  ;;  %6241 = vst.msk [vmem:[%s12201_s19 + $0x238] sm:$0xff] %vm205_vm1, %v6081_v19 }
 0x419   : > { %v5920_v22 = vld [vmem:[#allocation2 + $0x230] sm:$0xff]  ;;  %v5959_v36 = vld [vmem:[#allocation2 + $0x368] sm:$0xff] }
 0x41a   : > { %v5381_v39 = vpop.xlane.xlu0 %5380  ;;  %v6080_v60 = vmul.f32 0.00390625, %v5920_v22  ;;  %5759 = vst.msk [vmem:[#allocation2 + $0x240] sm:$0xff] %vm205_vm1, %v5598_v3  ;;  %v6119_v32 = vmul.f32 0.00390625, %v5959_v36  ;;  %v5004_v3 = vld [vmem:[#allocation2 + $0x3b0] sm:$0xff] }
 0x41b   : > { %v5637_v48 = vadd.f32 %v5381_v39, %v4997_v40 }
 0x41c   : > { %v5384_v5 = vpop.xlane.xlu1 %5383  ;;  %6240 = vst.msk [vmem:[%s12201_s19 + $0x230] sm:$0xff] %vm205_vm1, %v6080_v60  ;;  %6279 = vst.msk [vmem:[%s12201_s19 + $0x368] sm:$0xff] %vm205_vm1, %v6119_v32 }
 0x41d   : > { %5798 = vst.msk [vmem:[#allocation2 + $0x378] sm:$0xff] %vm205_vm1, %v5637_v48  ;;  %v5638_v44 = vadd.f32 %v5384_v5, %v4998_v29  ;;  %v5960_v52 = vld [vmem:[#allocation2 + $0x370] sm:$0xff]  ;;  %v5005_v48 = vld [vmem:[#allocation2 + $0x3b8] sm:$0xff] }
 0x41e   : > { %v5273_v46 = vpop.xlane.xlu0 %5272  ;;  %v6120_v54 = vmul.f32 0.00390625, %v5960_v52  ;;  %v5923_v7 = vld [vmem:[#allocation2 + $0x248] sm:$0xff] }
 0x41f   : > { %v5601_v57 = vadd.f32 %v5273_v46, %v4961_v24  ;;  %5799 = vst.msk [vmem:[#allocation2 + $0x380] sm:$0xff] %vm205_vm1, %v5638_v44  ;;  %v6083_v31 = vmul.f32 0.00390625, %v5923_v7  ;;  %v5006_v44 = vld [vmem:[#allocation2 + $0x3c0] sm:$0xff] }
 0x420   : > { %v5270_v45 = vpop.xlane.xlu1 %5269  ;;  %6280 = vst.msk [vmem:[%s12201_s19 + $0x370] sm:$0xff] %vm205_vm1, %v6120_v54 }
 0x421   : > { %5762 = vst.msk [vmem:[#allocation2 + $0x258] sm:$0xff] %vm205_vm1, %v5601_v57  ;;  %v5600_v34 = vadd.f32 %v5270_v45, %v4960_v18  ;;  %6243 = vst.msk [vmem:[%s12201_s19 + $0x248] sm:$0xff] %vm205_vm1, %v6083_v31  ;;  %v5922_v41 = vld [vmem:[#allocation2 + $0x240] sm:$0xff]  ;;  %v5007_v57 = vld [vmem:[#allocation2 + $0x3c8] sm:$0xff] }
 0x422   : > { %v5387_v49 = vpop.xlane.xlu0 %5386  ;;  %v6082_v55 = vmul.f32 0.00390625, %v5922_v41 }
 0x423   : > { %v5639_v58 = vadd.f32 %v5387_v49, %v4999_v25  ;;  %5761 = vst.msk [vmem:[#allocation2 + $0x250] sm:$0xff] %vm205_vm1, %v5600_v34  ;;  %v5008_v34 = vld [vmem:[#allocation2 + $0x3d0] sm:$0xff] }
 0x424   : > { %v5961_v4 = vld [vmem:[#allocation2 + $0x378] sm:$0xff]  ;;  %v5390_v0 = vpop.xlane.xlu1 %5389  ;;  %6242 = vst.msk [vmem:[%s12201_s19 + $0x240] sm:$0xff] %vm205_vm1, %v6082_v55 }
 0x425   : > { %v6121_v6 = vmul.f32 0.00390625, %v5961_v4  ;;  %5800 = vst.msk [vmem:[#allocation2 + $0x388] sm:$0xff] %vm205_vm1, %v5639_v58  ;;  %v5640_v61 = vadd.f32 %v5390_v0, %v5000_v56  ;;  %v5009_v58 = vld [vmem:[#allocation2 + $0x3d8] sm:$0xff] }
 0x426   : > { %v5279_v14 = vpop.xlane.xlu0 %5278  ;;  %v5962_v47 = vld [vmem:[#allocation2 + $0x380] sm:$0xff] }
 0x427   : > { %6281 = vst.msk [vmem:[%s12201_s19 + $0x378] sm:$0xff] %vm205_vm1, %v6121_v6  ;;  %v5603_v43 = vadd.f32 %v5279_v14, %v4963_v8  ;;  %v6122_v2 = vmul.f32 0.00390625, %v5962_v47  ;;  %5801 = vst.msk [vmem:[#allocation2 + $0x390] sm:$0xff] %vm205_vm1, %v5640_v61  ;;  %v5010_v61 = vld [vmem:[#allocation2 + $0x3e0] sm:$0xff] }
 0x428   : > { %v5925_v16 = vld [vmem:[#allocation2 + $0x258] sm:$0xff]  ;;  %v5276_v21 = vpop.xlane.xlu1 %5275 }
 0x429   : > { %v6085_v27 = vmul.f32 0.00390625, %v5925_v16  ;;  %5764 = vst.msk [vmem:[#allocation2 + $0x268] sm:$0xff] %vm205_vm1, %v5603_v43  ;;  %6282 = vst.msk [vmem:[%s12201_s19 + $0x380] sm:$0xff] %vm205_vm1, %v6122_v2  ;;  %v5602_v15 = vadd.f32 %v5276_v21, %v4962_v63  ;;  %v5011_v43 = vld [vmem:[#allocation2 + $0x3e8] sm:$0xff] }
 0x42a   : > { %v5393_v17 = vpop.xlane.xlu0 %5392  ;;  %v5924_v50 = vld [vmem:[#allocation2 + $0x250] sm:$0xff] }
 0x42b   : > { %6245 = vst.msk [vmem:[%s12201_s19 + $0x258] sm:$0xff] %vm205_vm1, %v6085_v27  ;;  %v5641_v62 = vadd.f32 %v5393_v17, %v5001_v1  ;;  %v6084_v53 = vmul.f32 0.00390625, %v5924_v50  ;;  %5763 = vst.msk [vmem:[#allocation2 + $0x260] sm:$0xff] %vm205_vm1, %v5602_v15  ;;  %v5012_v15 = vld [vmem:[#allocation2 + $0x3f0] sm:$0xff] }
 0x42c   : > { %v5963_v35 = vld [vmem:[#allocation2 + $0x388] sm:$0xff]  ;;  %v5396_v12 = vpop.xlane.xlu1 %5395 }
 0x42d   : > { %v6123_v30 = vmul.f32 0.00390625, %v5963_v35  ;;  %5802 = vst.msk [vmem:[#allocation2 + $0x398] sm:$0xff] %vm205_vm1, %v5641_v62  ;;  %6244 = vst.msk [vmem:[%s12201_s19 + $0x250] sm:$0xff] %vm205_vm1, %v6084_v53  ;;  %v5642_v10 = vadd.f32 %v5396_v12, %v5002_v11  ;;  %v5013_v62 = vld [vmem:[#allocation2 + $0x3f8] sm:$0xff] }
 0x42e   : > { %v5285_v59 = vpop.xlane.xlu0 %5284  ;;  %v5964_v20 = vld [vmem:[#allocation2 + $0x390] sm:$0xff] }
 0x42f   : > { %6283 = vst.msk [vmem:[%s12201_s19 + $0x388] sm:$0xff] %vm205_vm1, %v6123_v30  ;;  %v5605_v13 = vadd.f32 %v5285_v59, %v4965_v9  ;;  %v6124_v28 = vmul.f32 0.00390625, %v5964_v20  ;;  %5803 = vst.msk [vmem:[#allocation2 + $0x3a0] sm:$0xff] %vm205_vm1, %v5642_v10  ;;  %v5014_v10 = vld [vmem:[#allocation2 + $0x400] sm:$0xff] }
 0x430   : > { %v5927_v33 = vld [vmem:[#allocation2 + $0x268] sm:$0xff]  ;;  %v5282_v23 = vpop.xlane.xlu1 %5281 }
 0x431   : > { %v6087_v26 = vmul.f32 0.00390625, %v5927_v33  ;;  %5766 = vst.msk [vmem:[#allocation2 + $0x278] sm:$0xff] %vm205_vm1, %v5605_v13  ;;  %6284 = vst.msk [vmem:[%s12201_s19 + $0x390] sm:$0xff] %vm205_vm1, %v6124_v28  ;;  %v5604_v42 = vadd.f32 %v5282_v23, %v4964_v37  ;;  %v5015_v13 = vld [vmem:[#allocation2 + $0x408] sm:$0xff] }
 0x432   : > { %v5399_v40 = vpop.xlane.xlu0 %5398  ;;  %v5926_v19 = vld [vmem:[#allocation2 + $0x260] sm:$0xff] }
 0x433   : > { %6247 = vst.msk [vmem:[%s12201_s19 + $0x268] sm:$0xff] %vm205_vm1, %v6087_v26  ;;  %v5643_v51 = vadd.f32 %v5399_v40, %v5003_v38  ;;  %v6086_v39 = vmul.f32 0.00390625, %v5926_v19  ;;  %5765 = vst.msk [vmem:[#allocation2 + $0x270] sm:$0xff] %vm205_vm1, %v5604_v42  ;;  %v5016_v42 = vld [vmem:[#allocation2 + $0x410] sm:$0xff] }
 0x434   : > { %v5965_v22 = vld [vmem:[#allocation2 + $0x398] sm:$0xff]  ;;  %v5402_v60 = vpop.xlane.xlu1 %5401 }
 0x435   : > { %v6125_v29 = vmul.f32 0.00390625, %v5965_v22  ;;  %5804 = vst.msk [vmem:[#allocation2 + $0x3a8] sm:$0xff] %vm205_vm1, %v5643_v51  ;;  %6246 = vst.msk [vmem:[%s12201_s19 + $0x260] sm:$0xff] %vm205_vm1, %v6086_v39  ;;  %v5644_v36 = vadd.f32 %v5402_v60, %v5004_v3  ;;  %v5017_v51 = vld [vmem:[#allocation2 + $0x418] sm:$0xff] }
 0x436   : > { %v5405_v24 = vpop.xlane.xlu0 %5404  ;;  %v5966_v32 = vld [vmem:[#allocation2 + $0x3a0] sm:$0xff] }
 0x437   : > { %6285 = vst.msk [vmem:[%s12201_s19 + $0x398] sm:$0xff] %vm205_vm1, %v6125_v29  ;;  %v5645_v5 = vadd.f32 %v5405_v24, %v5005_v48  ;;  %v6126_v46 = vmul.f32 0.00390625, %v5966_v32  ;;  %5805 = vst.msk [vmem:[#allocation2 + $0x3b0] sm:$0xff] %vm205_vm1, %v5644_v36  ;;  %v5018_v36 = vld [vmem:[#allocation2 + $0x420] sm:$0xff] }
 0x438   : > { %v5929_v52 = vld [vmem:[#allocation2 + $0x278] sm:$0xff]  ;;  %v5408_v54 = vpop.xlane.xlu1 %5407 }
 0x439   : > { %v6089_v18 = vmul.f32 0.00390625, %v5929_v52  ;;  %5806 = vst.msk [vmem:[#allocation2 + $0x3b8] sm:$0xff] %vm205_vm1, %v5645_v5  ;;  %6286 = vst.msk [vmem:[%s12201_s19 + $0x3a0] sm:$0xff] %vm205_vm1, %v6126_v46  ;;  %v5646_v7 = vadd.f32 %v5408_v54, %v5006_v44  ;;  %v5019_v5 = vld [vmem:[#allocation2 + $0x428] sm:$0xff] }
 0x43a   : > { %v5411_v25 = vpop.xlane.xlu0 %5410  ;;  %v5928_v31 = vld [vmem:[#allocation2 + $0x270] sm:$0xff] }
 0x43b   : > { %6249 = vst.msk [vmem:[%s12201_s19 + $0x278] sm:$0xff] %vm205_vm1, %v6089_v18  ;;  %v5647_v45 = vadd.f32 %v5411_v25, %v5007_v57  ;;  %v6088_v49 = vmul.f32 0.00390625, %v5928_v31  ;;  %5807 = vst.msk [vmem:[#allocation2 + $0x3c0] sm:$0xff] %vm205_vm1, %v5646_v7  ;;  %v5020_v7 = vld [vmem:[#allocation2 + $0x430] sm:$0xff] }
 0x43c   : > { %v5967_v41 = vld [vmem:[#allocation2 + $0x3a8] sm:$0xff]  ;;  %v5414_v55 = vpop.xlane.xlu1 %5413 }
 0x43d   : > { %v6127_v56 = vmul.f32 0.00390625, %v5967_v41  ;;  %5808 = vst.msk [vmem:[#allocation2 + $0x3c8] sm:$0xff] %vm205_vm1, %v5647_v45  ;;  %6248 = vst.msk [vmem:[%s12201_s19 + $0x270] sm:$0xff] %vm205_vm1, %v6088_v49  ;;  %v5648_v4 = vadd.f32 %v5414_v55, %v5008_v34  ;;  %v5021_v45 = vld [vmem:[#allocation2 + $0x438] sm:$0xff] }
 0x43e   : > { %v5417_v8 = vpop.xlane.xlu0 %5416  ;;  %v5968_v6 = vld [vmem:[#allocation2 + $0x3b0] sm:$0xff] }
 0x43f   : > { %6287 = vst.msk [vmem:[%s12201_s19 + $0x3a8] sm:$0xff] %vm205_vm1, %v6127_v56  ;;  %v5649_v0 = vadd.f32 %v5417_v8, %v5009_v58  ;;  %v6128_v14 = vmul.f32 0.00390625, %v5968_v6  ;;  %5809 = vst.msk [vmem:[#allocation2 + $0x3d0] sm:$0xff] %vm205_vm1, %v5648_v4  ;;  %v5022_v4 = vld [vmem:[#allocation2 + $0x440] sm:$0xff] }
 0x440   : > { %v5969_v47 = vld [vmem:[#allocation2 + $0x3b8] sm:$0xff]  ;;  %v5420_v2 = vpop.xlane.xlu1 %5419 }
 0x441   : > { %v6129_v63 = vmul.f32 0.00390625, %v5969_v47  ;;  %5810 = vst.msk [vmem:[#allocation2 + $0x3d8] sm:$0xff] %vm205_vm1, %v5649_v0  ;;  %6288 = vst.msk [vmem:[%s12201_s19 + $0x3b0] sm:$0xff] %vm205_vm1, %v6128_v14  ;;  %v5650_v16 = vadd.f32 %v5420_v2, %v5010_v61  ;;  %v5023_v0 = vld [vmem:[#allocation2 + $0x448] sm:$0xff] }
 0x442   : > { %v5423_v1 = vpop.xlane.xlu0 %5422  ;;  %v5970_v27 = vld [vmem:[#allocation2 + $0x3c0] sm:$0xff] }
 0x443   : > { %6289 = vst.msk [vmem:[%s12201_s19 + $0x3b8] sm:$0xff] %vm205_vm1, %v6129_v63  ;;  %v5651_v21 = vadd.f32 %v5423_v1, %v5011_v43  ;;  %v6130_v17 = vmul.f32 0.00390625, %v5970_v27  ;;  %5811 = vst.msk [vmem:[#allocation2 + $0x3e0] sm:$0xff] %vm205_vm1, %v5650_v16  ;;  %v5024_v16 = vld [vmem:[#allocation2 + $0x450] sm:$0xff] }
 0x444   : > { %v5971_v50 = vld [vmem:[#allocation2 + $0x3c8] sm:$0xff] }
 0x445   : > { %v6131_v11 = vmul.f32 0.00390625, %v5971_v50  ;;  %5812 = vst.msk [vmem:[#allocation2 + $0x3e8] sm:$0xff] %vm205_vm1, %v5651_v21  ;;  %v5426_v53 = vpop.xlane.xlu1 %5425  ;;  %6290 = vst.msk [vmem:[%s12201_s19 + $0x3c0] sm:$0xff] %vm205_vm1, %v6130_v17  ;;  %v5025_v21 = vld [vmem:[#allocation2 + $0x458] sm:$0xff] }
 0x446   : > { %v5652_v35 = vadd.f32 %v5426_v53, %v5012_v15  ;;  %v5972_v30 = vld [vmem:[#allocation2 + $0x3d0] sm:$0xff] }
 0x447   : > { %v5429_v9 = vpop.xlane.xlu0 %5428  ;;  %6291 = vst.msk [vmem:[%s12201_s19 + $0x3c8] sm:$0xff] %vm205_vm1, %v6131_v11  ;;  %v6132_v59 = vmul.f32 0.00390625, %v5972_v30 }
 0x448   : > { %v5653_v12 = vadd.f32 %v5429_v9, %v5013_v62  ;;  %v5973_v20 = vld [vmem:[#allocation2 + $0x3d8] sm:$0xff]  ;;  %5813 = vst.msk [vmem:[#allocation2 + $0x3f0] sm:$0xff] %vm205_vm1, %v5652_v35  ;;  %v5026_v35 = vld [vmem:[#allocation2 + $0x460] sm:$0xff] }
 0x449   : > { %v6133_v37 = vmul.f32 0.00390625, %v5973_v20  ;;  %v5432_v28 = vpop.xlane.xlu1 %5431  ;;  %6292 = vst.msk [vmem:[%s12201_s19 + $0x3d0] sm:$0xff] %vm205_vm1, %v6132_v59 }
 0x44a   : > { %5814 = vst.msk [vmem:[#allocation2 + $0x3f8] sm:$0xff] %vm205_vm1, %v5653_v12  ;;  %v5654_v33 = vadd.f32 %v5432_v28, %v5014_v10  ;;  %v5974_v26 = vld [vmem:[#allocation2 + $0x3e0] sm:$0xff]  ;;  %v5027_v12 = vld [vmem:[#allocation2 + $0x468] sm:$0xff] }
 0x44b   : > { %v5435_v38 = vpop.xlane.xlu0 %5434  ;;  %6293 = vst.msk [vmem:[%s12201_s19 + $0x3d8] sm:$0xff] %vm205_vm1, %v6133_v37  ;;  %v6134_v40 = vmul.f32 0.00390625, %v5974_v26 }
 0x44c   : > { %v5655_v23 = vadd.f32 %v5435_v38, %v5015_v13  ;;  %v5975_v19 = vld [vmem:[#allocation2 + $0x3e8] sm:$0xff]  ;;  %5815 = vst.msk [vmem:[#allocation2 + $0x400] sm:$0xff] %vm205_vm1, %v5654_v33  ;;  %v5028_v33 = vld [vmem:[#allocation2 + $0x470] sm:$0xff] }
 0x44d   : > { %v6135_v3 = vmul.f32 0.00390625, %v5975_v19  ;;  %v5438_v39 = vpop.xlane.xlu1 %5437  ;;  %6294 = vst.msk [vmem:[%s12201_s19 + $0x3e0] sm:$0xff] %vm205_vm1, %v6134_v40 }
 0x44e   : > { %5816 = vst.msk [vmem:[#allocation2 + $0x408] sm:$0xff] %vm205_vm1, %v5655_v23  ;;  %v5656_v22 = vadd.f32 %v5438_v39, %v5016_v42  ;;  %v5029_v23 = vld [vmem:[#allocation2 + $0x478] sm:$0xff] }
 0x44f   : > { %6295 = vst.msk [vmem:[%s12201_s19 + $0x3e8] sm:$0xff] %vm205_vm1, %v6135_v3  ;;  %v5976_v29 = vld [vmem:[#allocation2 + $0x3f0] sm:$0xff] }
 0x450   : > { %v5441_v48 = vpop.xlane.xlu0 %5440  ;;  %v6136_v24 = vmul.f32 0.00390625, %v5976_v29  ;;  %5817 = vst.msk [vmem:[#allocation2 + $0x410] sm:$0xff] %vm205_vm1, %v5656_v22  ;;  %v5030_v22 = vld [vmem:[#allocation2 + $0x480] sm:$0xff] }
 0x451   : > { %v5657_v60 = vadd.f32 %v5441_v48, %v5017_v51  ;;  %v5977_v32 = vld [vmem:[#allocation2 + $0x3f8] sm:$0xff]  ;;  %v5444_v46 = vpop.xlane.xlu1 %5443 }
 0x452   : > { %v6137_v44 = vmul.f32 0.00390625, %v5977_v32  ;;  %6296 = vst.msk [vmem:[%s12201_s19 + $0x3f0] sm:$0xff] %vm205_vm1, %v6136_v24  ;;  %v5658_v52 = vadd.f32 %v5444_v46, %v5018_v36 }
 0x453   : > { %5818 = vst.msk [vmem:[#allocation2 + $0x418] sm:$0xff] %vm205_vm1, %v5657_v60  ;;  %v5978_v18 = vld [vmem:[#allocation2 + $0x400] sm:$0xff]  ;;  %v5031_v60 = vld [vmem:[#allocation2 + $0x488] sm:$0xff] }
 0x454   : > { %v5447_v57 = vpop.xlane.xlu0 %5446  ;;  %6297 = vst.msk [vmem:[%s12201_s19 + $0x3f8] sm:$0xff] %vm205_vm1, %v6137_v44  ;;  %v6138_v25 = vmul.f32 0.00390625, %v5978_v18  ;;  %5819 = vst.msk [vmem:[#allocation2 + $0x420] sm:$0xff] %vm205_vm1, %v5658_v52  ;;  %v5032_v52 = vld [vmem:[#allocation2 + $0x490] sm:$0xff] }
 0x455   : > { %v5659_v54 = vadd.f32 %v5447_v57, %v5019_v5  ;;  %v5979_v31 = vld [vmem:[#allocation2 + $0x408] sm:$0xff]  ;;  %v5450_v49 = vpop.xlane.xlu1 %5449 }
 0x456   : > { %v6139_v34 = vmul.f32 0.00390625, %v5979_v31  ;;  %6298 = vst.msk [vmem:[%s12201_s19 + $0x400] sm:$0xff] %vm205_vm1, %v6138_v25  ;;  %v5660_v41 = vadd.f32 %v5450_v49, %v5020_v7 }
 0x457   : > { %5820 = vst.msk [vmem:[#allocation2 + $0x428] sm:$0xff] %vm205_vm1, %v5659_v54  ;;  %v5980_v56 = vld [vmem:[#allocation2 + $0x410] sm:$0xff]  ;;  %v5033_v54 = vld [vmem:[#allocation2 + $0x498] sm:$0xff] }
 0x458   : > { %v5453_v58 = vpop.xlane.xlu0 %5452  ;;  %6299 = vst.msk [vmem:[%s12201_s19 + $0x408] sm:$0xff] %vm205_vm1, %v6139_v34  ;;  %v6140_v8 = vmul.f32 0.00390625, %v5980_v56  ;;  %5821 = vst.msk [vmem:[#allocation2 + $0x430] sm:$0xff] %vm205_vm1, %v5660_v41  ;;  %v5034_v41 = vld [vmem:[#allocation2 + $0x4a0] sm:$0xff] }
 0x459   : > { %v5661_v55 = vadd.f32 %v5453_v58, %v5021_v45  ;;  %v5456_v14 = vpop.xlane.xlu1 %5455 }
 0x45a   : > { %v5981_v6 = vld [vmem:[#allocation2 + $0x418] sm:$0xff]  ;;  %6300 = vst.msk [vmem:[%s12201_s19 + $0x410] sm:$0xff] %vm205_vm1, %v6140_v8  ;;  %v5662_v47 = vadd.f32 %v5456_v14, %v5022_v4 }
 0x45b   : > { %v6141_v61 = vmul.f32 0.00390625, %v5981_v6  ;;  %5822 = vst.msk [vmem:[#allocation2 + $0x438] sm:$0xff] %vm205_vm1, %v5661_v55  ;;  %v5982_v63 = vld [vmem:[#allocation2 + $0x420] sm:$0xff]  ;;  %v5035_v55 = vld [vmem:[#allocation2 + $0x4a8] sm:$0xff] }
 0x45c   : > { %v5459_v43 = vpop.xlane.xlu0 %5458  ;;  %v6142_v1 = vmul.f32 0.00390625, %v5982_v63  ;;  %5823 = vst.msk [vmem:[#allocation2 + $0x440] sm:$0xff] %vm205_vm1, %v5662_v47  ;;  %v5036_v47 = vld [vmem:[#allocation2 + $0x4b0] sm:$0xff] }
 0x45d   : > { %6301 = vst.msk [vmem:[%s12201_s19 + $0x418] sm:$0xff] %vm205_vm1, %v6141_v61  ;;  %v5663_v2 = vadd.f32 %v5459_v43, %v5023_v0  ;;  %v5462_v17 = vpop.xlane.xlu1 %5461 }
 0x45e   : > { %v5983_v27 = vld [vmem:[#allocation2 + $0x428] sm:$0xff]  ;;  %6302 = vst.msk [vmem:[%s12201_s19 + $0x420] sm:$0xff] %vm205_vm1, %v6142_v1  ;;  %v5664_v50 = vadd.f32 %v5462_v17, %v5024_v16 }
 0x45f   : > { %v6143_v15 = vmul.f32 0.00390625, %v5983_v27  ;;  %5824 = vst.msk [vmem:[#allocation2 + $0x448] sm:$0xff] %vm205_vm1, %v5663_v2  ;;  %v5984_v11 = vld [vmem:[#allocation2 + $0x430] sm:$0xff]  ;;  %v5037_v2 = vld [vmem:[#allocation2 + $0x4b8] sm:$0xff] }
 0x460   : > { %v5465_v62 = vpop.xlane.xlu0 %5464  ;;  %v6144_v9 = vmul.f32 0.00390625, %v5984_v11  ;;  %5825 = vst.msk [vmem:[#allocation2 + $0x450] sm:$0xff] %vm205_vm1, %v5664_v50  ;;  %v5038_v50 = vld [vmem:[#allocation2 + $0x4c0] sm:$0xff] }
 0x461   : > { %6303 = vst.msk [vmem:[%s12201_s19 + $0x428] sm:$0xff] %vm205_vm1, %v6143_v15  ;;  %v5665_v53 = vadd.f32 %v5465_v62, %v5025_v21  ;;  %v5468_v59 = vpop.xlane.xlu1 %5467 }
 0x462   : > { %v5985_v30 = vld [vmem:[#allocation2 + $0x438] sm:$0xff]  ;;  %6304 = vst.msk [vmem:[%s12201_s19 + $0x430] sm:$0xff] %vm205_vm1, %v6144_v9  ;;  %v5666_v20 = vadd.f32 %v5468_v59, %v5026_v35 }
 0x463   : > { %v6145_v10 = vmul.f32 0.00390625, %v5985_v30  ;;  %5826 = vst.msk [vmem:[#allocation2 + $0x458] sm:$0xff] %vm205_vm1, %v5665_v53  ;;  %v5986_v37 = vld [vmem:[#allocation2 + $0x440] sm:$0xff]  ;;  %v5039_v53 = vld [vmem:[#allocation2 + $0x4c8] sm:$0xff] }
 0x464   : > { %v5471_v13 = vpop.xlane.xlu0 %5470  ;;  %v6146_v38 = vmul.f32 0.00390625, %v5986_v37  ;;  %5827 = vst.msk [vmem:[#allocation2 + $0x460] sm:$0xff] %vm205_vm1, %v5666_v20  ;;  %v5040_v20 = vld [vmem:[#allocation2 + $0x4d0] sm:$0xff] }
 0x465   : > { %6305 = vst.msk [vmem:[%s12201_s19 + $0x438] sm:$0xff] %vm205_vm1, %v6145_v10  ;;  %v5667_v28 = vadd.f32 %v5471_v13, %v5027_v12  ;;  %v5474_v40 = vpop.xlane.xlu1 %5473 }
 0x466   : > { %v5987_v26 = vld [vmem:[#allocation2 + $0x448] sm:$0xff]  ;;  %6306 = vst.msk [vmem:[%s12201_s19 + $0x440] sm:$0xff] %vm205_vm1, %v6146_v38  ;;  %v5668_v19 = vadd.f32 %v5474_v40, %v5028_v33 }
 0x467   : > { %v6147_v42 = vmul.f32 0.00390625, %v5987_v26  ;;  %5828 = vst.msk [vmem:[#allocation2 + $0x468] sm:$0xff] %vm205_vm1, %v5667_v28  ;;  %v5988_v3 = vld [vmem:[#allocation2 + $0x450] sm:$0xff]  ;;  %v5041_v28 = vld [vmem:[#allocation2 + $0x4d8] sm:$0xff] }
 0x468   : > { %v5477_v51 = vpop.xlane.xlu0 %5476  ;;  %v6148_v48 = vmul.f32 0.00390625, %v5988_v3  ;;  %5829 = vst.msk [vmem:[#allocation2 + $0x470] sm:$0xff] %vm205_vm1, %v5668_v19  ;;  %v5042_v19 = vld [vmem:[#allocation2 + $0x4e0] sm:$0xff] }
 0x469   : > { %6307 = vst.msk [vmem:[%s12201_s19 + $0x448] sm:$0xff] %vm205_vm1, %v6147_v42  ;;  %v5669_v39 = vadd.f32 %v5477_v51, %v5029_v23  ;;  %v5480_v24 = vpop.xlane.xlu1 %5479 }
 0x46a   : > { %v5989_v29 = vld [vmem:[#allocation2 + $0x458] sm:$0xff]  ;;  %6308 = vst.msk [vmem:[%s12201_s19 + $0x450] sm:$0xff] %vm205_vm1, %v6148_v48  ;;  %v5670_v32 = vadd.f32 %v5480_v24, %v5030_v22 }
 0x46b   : > { %v6149_v36 = vmul.f32 0.00390625, %v5989_v29  ;;  %5830 = vst.msk [vmem:[#allocation2 + $0x478] sm:$0xff] %vm205_vm1, %v5669_v39  ;;  %v5990_v44 = vld [vmem:[#allocation2 + $0x460] sm:$0xff]  ;;  %v5043_v39 = vld [vmem:[#allocation2 + $0x4e8] sm:$0xff] }
 0x46c   : > { %v5483_v5 = vpop.xlane.xlu0 %5482  ;;  %v6150_v57 = vmul.f32 0.00390625, %v5990_v44  ;;  %5831 = vst.msk [vmem:[#allocation2 + $0x480] sm:$0xff] %vm205_vm1, %v5670_v32  ;;  %v5044_v32 = vld [vmem:[#allocation2 + $0x4f0] sm:$0xff] }
 0x46d   : > { %6309 = vst.msk [vmem:[%s12201_s19 + $0x458] sm:$0xff] %vm205_vm1, %v6149_v36  ;;  %v5671_v46 = vadd.f32 %v5483_v5, %v5031_v60  ;;  %v5486_v25 = vpop.xlane.xlu1 %5485 }
 0x46e   : > { %v5991_v18 = vld [vmem:[#allocation2 + $0x468] sm:$0xff]  ;;  %6310 = vst.msk [vmem:[%s12201_s19 + $0x460] sm:$0xff] %vm205_vm1, %v6150_v57  ;;  %v5672_v31 = vadd.f32 %v5486_v25, %v5032_v52 }
 0x46f   : > { %v6151_v7 = vmul.f32 0.00390625, %v5991_v18  ;;  %5832 = vst.msk [vmem:[#allocation2 + $0x488] sm:$0xff] %vm205_vm1, %v5671_v46  ;;  %v5992_v34 = vld [vmem:[#allocation2 + $0x470] sm:$0xff]  ;;  %v5045_v46 = vld [vmem:[#allocation2 + $0x4f8] sm:$0xff] }
 0x470   : > { %v5489_v45 = vpop.xlane.xlu0 %5488  ;;  %v6152_v58 = vmul.f32 0.00390625, %v5992_v34  ;;  %5833 = vst.msk [vmem:[#allocation2 + $0x490] sm:$0xff] %vm205_vm1, %v5672_v31 }
 0x471   : > { %6311 = vst.msk [vmem:[%s12201_s19 + $0x468] sm:$0xff] %vm205_vm1, %v6151_v7  ;;  %v5673_v49 = vadd.f32 %v5489_v45, %v5033_v54  ;;  %v5492_v8 = vpop.xlane.xlu1 %5491 }
 0x472   : > { %v5993_v56 = vld [vmem:[#allocation2 + $0x478] sm:$0xff]  ;;  %6312 = vst.msk [vmem:[%s12201_s19 + $0x470] sm:$0xff] %vm205_vm1, %v6152_v58  ;;  %v5674_v6 = vadd.f32 %v5492_v8, %v5034_v41 }
 0x473   : > { %v6153_v4 = vmul.f32 0.00390625, %v5993_v56  ;;  %5834 = vst.msk [vmem:[#allocation2 + $0x498] sm:$0xff] %vm205_vm1, %v5673_v49  ;;  %v5994_v61 = vld [vmem:[#allocation2 + $0x480] sm:$0xff] }
 0x474   : > { %v5495_v0 = vpop.xlane.xlu0 %5494  ;;  %v6154_v43 = vmul.f32 0.00390625, %v5994_v61  ;;  %5835 = vst.msk [vmem:[#allocation2 + $0x4a0] sm:$0xff] %vm205_vm1, %v5674_v6 }
 0x475   : > { %6313 = vst.msk [vmem:[%s12201_s19 + $0x478] sm:$0xff] %vm205_vm1, %v6153_v4  ;;  %v5675_v14 = vadd.f32 %v5495_v0, %v5035_v55  ;;  %v5498_v1 = vpop.xlane.xlu1 %5497 }
 0x476   : > { %v5995_v63 = vld [vmem:[#allocation2 + $0x488] sm:$0xff]  ;;  %6314 = vst.msk [vmem:[%s12201_s19 + $0x480] sm:$0xff] %vm205_vm1, %v6154_v43  ;;  %v5676_v27 = vadd.f32 %v5498_v1, %v5036_v47 }
 0x477   : > { %v6155_v16 = vmul.f32 0.00390625, %v5995_v63  ;;  %5836 = vst.msk [vmem:[#allocation2 + $0x4a8] sm:$0xff] %vm205_vm1, %v5675_v14  ;;  %v5996_v15 = vld [vmem:[#allocation2 + $0x490] sm:$0xff] }
 0x478   : > { %v5501_v21 = vpop.xlane.xlu0 %5500  ;;  %v6156_v62 = vmul.f32 0.00390625, %v5996_v15  ;;  %5837 = vst.msk [vmem:[#allocation2 + $0x4b0] sm:$0xff] %vm205_vm1, %v5676_v27 }
 0x479   : > { %6315 = vst.msk [vmem:[%s12201_s19 + $0x488] sm:$0xff] %vm205_vm1, %v6155_v16  ;;  %v5677_v17 = vadd.f32 %v5501_v21, %v5037_v2  ;;  %v5504_v9 = vpop.xlane.xlu1 %5503 }
 0x47a   : > { %v5997_v11 = vld [vmem:[#allocation2 + $0x498] sm:$0xff]  ;;  %6316 = vst.msk [vmem:[%s12201_s19 + $0x490] sm:$0xff] %vm205_vm1, %v6156_v62  ;;  %v5678_v30 = vadd.f32 %v5504_v9, %v5038_v50 }
 0x47b   : > { %v6157_v35 = vmul.f32 0.00390625, %v5997_v11  ;;  %5838 = vst.msk [vmem:[#allocation2 + $0x4b8] sm:$0xff] %vm205_vm1, %v5677_v17  ;;  %v5998_v10 = vld [vmem:[#allocation2 + $0x4a0] sm:$0xff] }
 0x47c   : > { %v5507_v12 = vpop.xlane.xlu0 %5506  ;;  %v6158_v13 = vmul.f32 0.00390625, %v5998_v10  ;;  %5839 = vst.msk [vmem:[#allocation2 + $0x4c0] sm:$0xff] %vm205_vm1, %v5678_v30 }
 0x47d   : > { %6317 = vst.msk [vmem:[%s12201_s19 + $0x498] sm:$0xff] %vm205_vm1, %v6157_v35  ;;  %v5679_v59 = vadd.f32 %v5507_v12, %v5039_v53  ;;  %v5510_v38 = vpop.xlane.xlu1 %5509 }
 0x47e   : > { %v5999_v37 = vld [vmem:[#allocation2 + $0x4a8] sm:$0xff]  ;;  %6318 = vst.msk [vmem:[%s12201_s19 + $0x4a0] sm:$0xff] %vm205_vm1, %v6158_v13  ;;  %v5680_v26 = vadd.f32 %v5510_v38, %v5040_v20 }
 0x47f   : > { %v6159_v33 = vmul.f32 0.00390625, %v5999_v37  ;;  %5840 = vst.msk [vmem:[#allocation2 + $0x4c8] sm:$0xff] %vm205_vm1, %v5679_v59  ;;  %v6000_v42 = vld [vmem:[#allocation2 + $0x4b0] sm:$0xff] }
 0x480   : > { %v5513_v23 = vpop.xlane.xlu0 %5512  ;;  %v6160_v51 = vmul.f32 0.00390625, %v6000_v42  ;;  %5841 = vst.msk [vmem:[#allocation2 + $0x4d0] sm:$0xff] %vm205_vm1, %v5680_v26 }
 0x481   : > { %6319 = vst.msk [vmem:[%s12201_s19 + $0x4a8] sm:$0xff] %vm205_vm1, %v6159_v33  ;;  %v5681_v40 = vadd.f32 %v5513_v23, %v5041_v28  ;;  %v5516_v48 = vpop.xlane.xlu1 %5515 }
 0x482   : > { %v6001_v3 = vld [vmem:[#allocation2 + $0x4b8] sm:$0xff]  ;;  %6320 = vst.msk [vmem:[%s12201_s19 + $0x4b0] sm:$0xff] %vm205_vm1, %v6160_v51  ;;  %v5682_v29 = vadd.f32 %v5516_v48, %v5042_v19 }
 0x483   : > { %v6161_v22 = vmul.f32 0.00390625, %v6001_v3  ;;  %5842 = vst.msk [vmem:[#allocation2 + $0x4d8] sm:$0xff] %vm205_vm1, %v5681_v40  ;;  %v6002_v36 = vld [vmem:[#allocation2 + $0x4c0] sm:$0xff] }
 0x484   : > { %v5519_v60 = vpop.xlane.xlu0 %5518  ;;  %v6162_v5 = vmul.f32 0.00390625, %v6002_v36  ;;  %5843 = vst.msk [vmem:[#allocation2 + $0x4e0] sm:$0xff] %vm205_vm1, %v5682_v29 }
 0x485   : > { %6321 = vst.msk [vmem:[%s12201_s19 + $0x4b8] sm:$0xff] %vm205_vm1, %v6161_v22  ;;  %v5683_v24 = vadd.f32 %v5519_v60, %v5043_v39  ;;  %v5522_v57 = vpop.xlane.xlu1 %5521 }
 0x486   : > { %v6003_v44 = vld [vmem:[#allocation2 + $0x4c8] sm:$0xff]  ;;  %6322 = vst.msk [vmem:[%s12201_s19 + $0x4c0] sm:$0xff] %vm205_vm1, %v6162_v5  ;;  %v5684_v18 = vadd.f32 %v5522_v57, %v5044_v32 }
 0x487   : > { %v6163_v52 = vmul.f32 0.00390625, %v6003_v44  ;;  %5844 = vst.msk [vmem:[#allocation2 + $0x4e8] sm:$0xff] %vm205_vm1, %v5683_v24  ;;  %v6004_v7 = vld [vmem:[#allocation2 + $0x4d0] sm:$0xff] }
 0x488   : > { %v5525_v54 = vpop.xlane.xlu0 %5524  ;;  %v6164_v31 = vmul.f32 0.00390625, %v6004_v7  ;;  %5845 = vst.msk [vmem:[#allocation2 + $0x4f0] sm:$0xff] %vm205_vm1, %v5684_v18 }
 0x489   : > { %6323 = vst.msk [vmem:[%s12201_s19 + $0x4c8] sm:$0xff] %vm205_vm1, %v6163_v52  ;;  %v5685_v25 = vadd.f32 %v5525_v54, %v5045_v46 }
 0x48a   : > { %v6005_v45 = vld [vmem:[#allocation2 + $0x4d8] sm:$0xff]  ;;  %6324 = vst.msk [vmem:[%s12201_s19 + $0x4d0] sm:$0xff] %vm205_vm1, %v6164_v31 }
 0x48b   : > { %v6165_v34 = vmul.f32 0.00390625, %v6005_v45  ;;  %5846 = vst.msk [vmem:[#allocation2 + $0x4f8] sm:$0xff] %vm205_vm1, %v5685_v25  ;;  %v6006_v49 = vld [vmem:[#allocation2 + $0x4e0] sm:$0xff] }
 0x48c   : > { %v6166_v41 = vmul.f32 0.00390625, %v6006_v49 }
 0x48d   : > { %6325 = vst.msk [vmem:[%s12201_s19 + $0x4d8] sm:$0xff] %vm205_vm1, %v6165_v34 }
 0x48e   : > { %v6007_v58 = vld [vmem:[#allocation2 + $0x4e8] sm:$0xff]  ;;  %6326 = vst.msk [vmem:[%s12201_s19 + $0x4e0] sm:$0xff] %vm205_vm1, %v6166_v41 }
 0x48f   : > { %v6167_v56 = vmul.f32 0.00390625, %v6007_v58  ;;  %v6008_v55 = vld [vmem:[#allocation2 + $0x4f0] sm:$0xff] }
 0x490   : > { %v6168_v4 = vmul.f32 0.00390625, %v6008_v55 }
 0x491   : > { %6327 = vst.msk [vmem:[%s12201_s19 + $0x4e8] sm:$0xff] %vm205_vm1, %v6167_v56 }
 0x492   : > { %v6009_v8 = vld [vmem:[#allocation2 + $0x4f8] sm:$0xff]  ;;  %6328 = vst.msk [vmem:[%s12201_s19 + $0x4f0] sm:$0xff] %vm205_vm1, %v6168_v4 }
 0x493   : > { %v6169_v6 = vmul.f32 0.00390625, %v6009_v8 }
 0x495   : > { %6329 = vst.msk [vmem:[%s12201_s19 + $0x4f8] sm:$0xff] %vm205_vm1, %v6169_v6 }
 0x496 PF: > { %s13_s14 = sadd.s32 1, %s7503_s14   ;;  %s15634_s12 = smov %s7499_s13 }
 0x497   : > { %p10_p5 = scmp.ge.s32.totalorder %s13_s14, 4   ;;  %s15635_s13 = smov %s15637_s15 }
 0x499   :  { %12 = sbr.rel (!%p10_p5) target bundleno = 2 (0x2), region = 70 }

</bundles_post_ra>
